<compile_context>
chip_gen: v5e
topology: v5e:2x2
jax: 0.10.0
libtpu: 0.0.40
codegen_flags: <defaults>
</compile_context>

<pallas_src>
import functools

import numpy as np
import jax
import jax.numpy as jnp
from jax.experimental import pallas as pl
from jax.experimental.pallas import tpu as pltpu

# ----- SLAYER neuron / simulation params (synthetic, deterministic) ---------
# TODO(synk): network.yaml / w1Initial.txt / w2Initial.txt are not available;
# deterministic synthetic stand-ins are used for the neuron/simulation dicts
# and the initial weights.
THETA = 2.0      # neuron['theta']
TAU_SR = 4.0     # neuron['tauSr']
TAU_REF = 4.0    # neuron['tauRef']
TS = 1.0         # simulation['Ts']
T_SIM = 64       # simulation['tSample'] / Ts
N_IN, N_HID, N_OUT = 32, 16, 8   # layer dims (Nin, Nhid, Nout)
BATCH = 4                         # lane packing: B*Cin = 128 live lanes

CHUNK = 8        # one sublane group per packed spike-row chunk


# ----------------------------- glue (plain JAX/np) --------------------------
def _alpha_kernel(tau, n_steps, ts, mult=1.0, epsilon=0.01):
    """SLAYER _calculateAlphaKernel: mult * t/tau * exp(1 - t/tau), truncated
    at the first |value| < epsilon past the peak (epsilon=0 => fullRefKernel)."""
    t = np.arange(n_steps, dtype=np.float64) * ts
    k = mult * (t / tau) * np.exp(1.0 - t / tau)
    if epsilon > 0.0:
        cut = np.where((np.abs(k) < epsilon) & (t > tau))[0]
        if cut.size:
            k[cut[0]:] = 0.0
    return k.astype(np.float32)


def _causal_toeplitz(kern):
    """M[s, t] = kern[t - s] for t >= s else 0 (causal temporal conv as matmul)."""
    n = kern.shape[0]
    idx = np.arange(n)
    d = idx[None, :] - idx[:, None]
    return np.where(d >= 0, kern[np.clip(d, 0, n - 1)], 0.0).astype(np.float32)


# ------------------------------- Pallas kernel ------------------------------
def _snn_fused_kernel(s_ref, w1_ref, w2_ref, psp_ref, out_ref, *,
                      theta, inv_ts, n_time, two_a, a_sq, k1_ts):
    psp = psp_ref[...]                                    # (T, T), loaded once

    def layer(s_val, w_ref):
        bc = w_ref.shape[1]
        # dense: (T, B*Cin) @ (B*Cin, B*Cout) -> (T, B*Cout)     [MXU]
        u = jnp.dot(s_val, w_ref[...], preferred_element_type=jnp.float32)
        # psp: causal SRM conv along time as lower-tri Toeplitz matmul [MXU]
        v = jnp.dot(psp, u, preferred_element_type=jnp.float32)   # (T, bc)

        # spike generation, sequential in time.  The accumulated refractory
        # row r[t] follows the exact alpha-kernel recurrence (fullRefKernel):
        #   r[t+1] = 2a*r[t] - a^2*r[t-1] + (k1*Ts)*spk_scaled[t]
        r_prev = jnp.zeros((1, bc), jnp.float32)           # r[t-1]
        r_curr = jnp.zeros((1, bc), jnp.float32)           # r[t]
        sub = jax.lax.broadcasted_iota(jnp.int32, (CHUNK, bc), 0)
        chunks = []
        cur = jnp.zeros((CHUNK, bc), jnp.float32)
        for t in range(n_time):                            # static -> unrolled
            v_t = v[t:t + 1, :]                            # (1, bc) static row
            # fused threshold + 1/Ts scaling in one select
            row = jnp.where(v_t + r_curr >= theta,
                            jnp.float32(inv_ts), jnp.float32(0.0))
            r_next = two_a * r_curr - a_sq * r_prev + k1_ts * row
            r_prev, r_curr = r_curr, r_next
            # pack row t into its sublane of the current 8-row chunk
            cur = jnp.where(sub == (t % CHUNK), row, cur)
            if (t + 1) % CHUNK == 0:
                chunks.append(cur)
                cur = jnp.zeros((CHUNK, bc), jnp.float32)
        rem = n_time % CHUNK
        if rem:
            chunks.append(cur[:rem, :])
        return chunks[0] if len(chunks) == 1 else jnp.concatenate(chunks, axis=0)

    s1 = layer(s_ref[...], w1_ref)        # hidden spikes stay in registers
    out_ref[...] = layer(s1, w2_ref)      # single full-tile output store


def slayer_network_forward(spike_input, w1bd, w2bd, psp_lower, *,
                           theta, ts, tau_ref):
    """Fused SLAYER network: spike(psp(fc2(spike(psp(fc1(s)))))).
    spike_input: (B, Cin, T) float32. w{1,2}bd: precomputed block-diagonal
    kron(eye(B), W.T). Returns (B, Cout, T)."""
    b, c_in, n_time = spike_input.shape
    bc_out = w2bd.shape[1]
    c_out = bc_out // b

    # time-major layout with batch folded onto the channel (lane) axis
    s0 = spike_input.transpose(2, 0, 1).reshape(n_time, b * c_in)   # (T, B*Cin)

    # refractory alpha-kernel recurrence constants (fullRefKernel, epsilon=0)
    a = float(np.exp(-ts / tau_ref))
    k1 = float(-2.0 * theta * (ts / tau_ref) * np.exp(1.0 - ts / tau_ref))

    kernel = functools.partial(
        _snn_fused_kernel, theta=float(theta), inv_ts=float(1.0 / ts),
        n_time=int(n_time), two_a=2.0 * a, a_sq=a * a, k1_ts=k1 * float(ts))

    vmem = pltpu.MemorySpace.VMEM
    out = pl.pallas_call(
        kernel,
        out_shape=jax.ShapeDtypeStruct((n_time, bc_out), jnp.float32),
        in_specs=[pl.BlockSpec(memory_space=vmem) for _ in range(4)],
        out_specs=pl.BlockSpec(memory_space=vmem),
    )(s0, w1bd, w2bd, psp_lower)

    # back to SLAYER's (B, C, T)
    return out.reshape(n_time, b, c_out).transpose(1, 2, 0)


network_forward = jax.jit(slayer_network_forward,
                          static_argnames=("theta", "ts", "tau_ref"))


# ------------------------------ numpy reference -----------------------------
def _reference(spikes_in, weights, psp_mat, ref_kern, theta, ts):
    """Direct SLAYER semantics: dense -> psp -> sequential spike with explicit
    (O(T^2)) refractory-kernel injection."""
    x = np.asarray(spikes_in, dtype=np.float32)
    for w in weights:
        u = np.einsum('ni,bit->bnt', np.asarray(w), x).astype(np.float32)
        v = np.einsum('bns,st->bnt', u, psp_mat).astype(np.float32)
        out = np.zeros_like(v)
        n_time = v.shape[-1]
        for t in range(n_time):
            spk = (v[:, :, t] >= theta).astype(np.float32)
            out[:, :, t] = spk / ts
            v[:, :, t:] += spk[:, :, None] * ref_kern[: n_time - t][None, None, :]
        x = out
    return x


# ------------------------------------ main -----------------------------------
if __name__ == "__main__":
    key = jax.random.PRNGKey(0)
    k_in, k_w1, k_w2 = jax.random.split(key, 3)

    # Poisson-like input spike raster, spike amplitude 1/Ts
    spike_input = (jax.random.uniform(k_in, (BATCH, N_IN, T_SIM))
                   < 0.25).astype(jnp.float32) / TS
    # deterministic synthetic stand-ins for w1Initial.txt / w2Initial.txt
    w1 = jax.random.uniform(k_w1, (N_HID, N_IN), minval=-0.1, maxval=0.4,
                            dtype=jnp.float32)
    w2 = jax.random.uniform(k_w2, (N_OUT, N_HID), minval=-0.1, maxval=0.4,
                            dtype=jnp.float32)

    srm_kern = _alpha_kernel(TAU_SR, T_SIM, TS, mult=1.0, epsilon=0.01)
    ref_kern = _alpha_kernel(TAU_REF, T_SIM, TS, mult=-2.0 * THETA,
                             epsilon=0.0)          # fullRefKernel=True
    psp_upper = _causal_toeplitz(srm_kern)          # M[s, t] = k[t - s]
    psp_lower = jnp.asarray(psp_upper.T)            # K[t, s] = k[t - s]

    # hoisted weight preprocessing: block-diagonal batched weights, built once
    w1_np = np.asarray(w1)
    w2_np = np.asarray(w2)
    w1bd = jnp.asarray(np.kron(np.eye(BATCH, dtype=np.float32), w1_np.T))
    w2bd = jnp.asarray(np.kron(np.eye(BATCH, dtype=np.float32), w2_np.T))

    # sanity: the in-kernel 2nd-order recurrence reproduces the full (eps=0)
    # alpha refractory kernel (validates the O(T) reformulation exactly)
    a64 = np.exp(-TS / TAU_REF)
    rec = np.zeros(T_SIM, np.float64)
    rec[1] = -2.0 * THETA * (TS / TAU_REF) * np.exp(1.0 - TS / TAU_REF)
    for n in range(2, T_SIM):
        rec[n] = 2.0 * a64 * rec[n - 1] - a64 * a64 * rec[n - 2]
    assert np.allclose(rec, ref_kern.astype(np.float64), atol=1e-5), \
        "refractory recurrence does not reproduce the alpha kernel"

    out = network_forward(spike_input, w1bd, w2bd, psp_lower,
                          theta=THETA, ts=TS, tau_ref=TAU_REF)
    out = jax.block_until_ready(out)

    expected = _reference(np.asarray(spike_input), [w1_np, w2_np],
                          psp_upper, ref_kern, THETA, TS)
    assert out.shape == (BATCH, N_OUT, T_SIM)
    # NOTE: spike outputs are 0 / 1/Ts; near-threshold potentials could in
    # principle flip between MXU/recurrence f32 rounding and the numpy direct
    # formula, but this seed/data has comfortable margins.
    assert np.allclose(np.asarray(out), expected, atol=1e-4), \
        "Pallas output does not match reference"
    print("KERNEL_OK")
</pallas_src>

<mosaic_0001>
module attributes {stable_mosaic.version = 11 : i64} {
  func.func @_snn_fused_kernel(%arg0: memref<64x128xf32, #tpu.memory_space<vmem>>, %arg1: memref<128x64xf32, #tpu.memory_space<vmem>>, %arg2: memref<64x32xf32, #tpu.memory_space<vmem>>, %arg3: memref<64x64xf32, #tpu.memory_space<vmem>>, %arg4: memref<64x32xf32, #tpu.memory_space<vmem>>) attributes {dimension_semantics = [], scalar_prefetch = 0 : i64, scratch_operands = 0 : i64, tpu.core_type = #tpu.core_type<tc>} {
    %c0 = arith.constant 0 : index
    %c0_0 = arith.constant 0 : index
    %0 = vector.load %arg3[%c0, %c0_0] : memref<64x64xf32, #tpu.memory_space<vmem>>, vector<64x64xf32>
    %c0_1 = arith.constant 0 : index
    %c0_2 = arith.constant 0 : index
    %1 = vector.load %arg0[%c0_1, %c0_2] : memref<64x128xf32, #tpu.memory_space<vmem>>, vector<64x128xf32>
    %c0_3 = arith.constant 0 : index
    %c0_4 = arith.constant 0 : index
    %2 = vector.load %arg1[%c0_3, %c0_4] : memref<128x64xf32, #tpu.memory_space<vmem>>, vector<128x64xf32>
    %cst = arith.constant dense<0.000000e+00> : vector<64x64xf32>
    %3 = tpu.matmul %1, %2, %cst {dimension_numbers = #tpu.dot_dimension_numbers<[1], [0], [0], [1], [0, 0, 1, 1], [], []>} : vector<64x128xf32>, vector<128x64xf32>, vector<64x64xf32> -> vector<64x64xf32>
    %cst_5 = arith.constant dense<0.000000e+00> : vector<64x64xf32>
    %4 = tpu.matmul %0, %3, %cst_5 {dimension_numbers = #tpu.dot_dimension_numbers<[1], [0], [0], [1], [0, 0, 1, 1], [], []>} : vector<64x64xf32>, vector<64x64xf32>, vector<64x64xf32> -> vector<64x64xf32>
    %cst_6 = arith.constant 0.000000e+00 : f32
    %5 = vector.broadcast %cst_6 : f32 to vector<1x64xf32>
    %cst_7 = arith.constant 0.000000e+00 : f32
    %6 = vector.broadcast %cst_7 : f32 to vector<1x64xf32>
    %7 = tpu.iota {dimensions = array<i32: 0>} : vector<8x64xi32>
    %cst_8 = arith.constant 0.000000e+00 : f32
    %8 = vector.broadcast %cst_8 : f32 to vector<8x64xf32>
    %9 = vector.extract_strided_slice %4 {offsets = [0, 0], sizes = [1, 64], strides = [1, 1]} : vector<64x64xf32> to vector<1x64xf32>
    %10 = arith.addf %9, %6 : vector<1x64xf32>
    %cst_9 = arith.constant 2.000000e+00 : f32
    %11 = vector.broadcast %cst_9 : f32 to vector<1x64xf32>
    %12 = arith.cmpf oge, %10, %11 : vector<1x64xf32>
    %cst_10 = arith.constant 1.000000e+00 : f32
    %cst_11 = arith.constant 0.000000e+00 : f32
    %13 = vector.broadcast %cst_10 : f32 to vector<1x64xf32>
    %14 = vector.broadcast %cst_11 : f32 to vector<1x64xf32>
    %15 = arith.select %12, %13, %14 : vector<1x64xi1>, vector<1x64xf32>
    %cst_12 = arith.constant 1.55760157 : f32
    %16 = vector.broadcast %cst_12 : f32 to vector<1x64xf32>
    %17 = arith.mulf %16, %6 : vector<1x64xf32>
    %cst_13 = arith.constant 0.606530666 : f32
    %18 = vector.broadcast %cst_13 : f32 to vector<1x64xf32>
    %19 = arith.mulf %18, %5 : vector<1x64xf32>
    %20 = arith.subf %17, %19 : vector<1x64xf32>
    %cst_14 = arith.constant -2.117000e+00 : f32
    %21 = vector.broadcast %cst_14 : f32 to vector<1x64xf32>
    %22 = arith.mulf %21, %15 : vector<1x64xf32>
    %23 = arith.addf %20, %22 : vector<1x64xf32>
    %c0_i32 = arith.constant 0 : i32
    %24 = vector.broadcast %c0_i32 : i32 to vector<8x64xi32>
    %25 = arith.cmpi eq, %7, %24 : vector<8x64xi32>
    %26 = vector.shape_cast %15 : vector<1x64xf32> to vector<1x64xf32>
    %27 = vector.broadcast %26 : vector<1x64xf32> to vector<8x64xf32>
    %28 = arith.select %25, %27, %8 : vector<8x64xi1>, vector<8x64xf32>
    %29 = vector.extract_strided_slice %4 {offsets = [1, 0], sizes = [1, 64], strides = [1, 1]} : vector<64x64xf32> to vector<1x64xf32>
    %30 = arith.addf %29, %23 : vector<1x64xf32>
    %cst_15 = arith.constant 2.000000e+00 : f32
    %31 = vector.broadcast %cst_15 : f32 to vector<1x64xf32>
    %32 = arith.cmpf oge, %30, %31 : vector<1x64xf32>
    %cst_16 = arith.constant 1.000000e+00 : f32
    %cst_17 = arith.constant 0.000000e+00 : f32
    %33 = vector.broadcast %cst_16 : f32 to vector<1x64xf32>
    %34 = vector.broadcast %cst_17 : f32 to vector<1x64xf32>
    %35 = arith.select %32, %33, %34 : vector<1x64xi1>, vector<1x64xf32>
    %cst_18 = arith.constant 1.55760157 : f32
    %36 = vector.broadcast %cst_18 : f32 to vector<1x64xf32>
    %37 = arith.mulf %36, %23 : vector<1x64xf32>
    %cst_19 = arith.constant 0.606530666 : f32
    %38 = vector.broadcast %cst_19 : f32 to vector<1x64xf32>
    %39 = arith.mulf %38, %6 : vector<1x64xf32>
    %40 = arith.subf %37, %39 : vector<1x64xf32>
    %cst_20 = arith.constant -2.117000e+00 : f32
    %41 = vector.broadcast %cst_20 : f32 to vector<1x64xf32>
    %42 = arith.mulf %41, %35 : vector<1x64xf32>
    %43 = arith.addf %40, %42 : vector<1x64xf32>
    %c1_i32 = arith.constant 1 : i32
    %44 = vector.broadcast %c1_i32 : i32 to vector<8x64xi32>
    %45 = arith.cmpi eq, %7, %44 : vector<8x64xi32>
    %46 = vector.shape_cast %35 : vector<1x64xf32> to vector<1x64xf32>
    %47 = vector.broadcast %46 : vector<1x64xf32> to vector<8x64xf32>
    %48 = arith.select %45, %47, %28 : vector<8x64xi1>, vector<8x64xf32>
    %49 = vector.extract_strided_slice %4 {offsets = [2, 0], sizes = [1, 64], strides = [1, 1]} : vector<64x64xf32> to vector<1x64xf32>
    %50 = arith.addf %49, %43 : vector<1x64xf32>
    %cst_21 = arith.constant 2.000000e+00 : f32
    %51 = vector.broadcast %cst_21 : f32 to vector<1x64xf32>
    %52 = arith.cmpf oge, %50, %51 : vector<1x64xf32>
    %cst_22 = arith.constant 1.000000e+00 : f32
    %cst_23 = arith.constant 0.000000e+00 : f32
    %53 = vector.broadcast %cst_22 : f32 to vector<1x64xf32>
    %54 = vector.broadcast %cst_23 : f32 to vector<1x64xf32>
    %55 = arith.select %52, %53, %54 : vector<1x64xi1>, vector<1x64xf32>
    %cst_24 = arith.constant 1.55760157 : f32
    %56 = vector.broadcast %cst_24 : f32 to vector<1x64xf32>
    %57 = arith.mulf %56, %43 : vector<1x64xf32>
    %cst_25 = arith.constant 0.606530666 : f32
    %58 = vector.broadcast %cst_25 : f32 to vector<1x64xf32>
    %59 = arith.mulf %58, %23 : vector<1x64xf32>
    %60 = arith.subf %57, %59 : vector<1x64xf32>
    %cst_26 = arith.constant -2.117000e+00 : f32
    %61 = vector.broadcast %cst_26 : f32 to vector<1x64xf32>
    %62 = arith.mulf %61, %55 : vector<1x64xf32>
    %63 = arith.addf %60, %62 : vector<1x64xf32>
    %c2_i32 = arith.constant 2 : i32
    %64 = vector.broadcast %c2_i32 : i32 to vector<8x64xi32>
    %65 = arith.cmpi eq, %7, %64 : vector<8x64xi32>
    %66 = vector.shape_cast %55 : vector<1x64xf32> to vector<1x64xf32>
    %67 = vector.broadcast %66 : vector<1x64xf32> to vector<8x64xf32>
    %68 = arith.select %65, %67, %48 : vector<8x64xi1>, vector<8x64xf32>
    %69 = vector.extract_strided_slice %4 {offsets = [3, 0], sizes = [1, 64], strides = [1, 1]} : vector<64x64xf32> to vector<1x64xf32>
    %70 = arith.addf %69, %63 : vector<1x64xf32>
    %cst_27 = arith.constant 2.000000e+00 : f32
    %71 = vector.broadcast %cst_27 : f32 to vector<1x64xf32>
    %72 = arith.cmpf oge, %70, %71 : vector<1x64xf32>
    %cst_28 = arith.constant 1.000000e+00 : f32
    %cst_29 = arith.constant 0.000000e+00 : f32
    %73 = vector.broadcast %cst_28 : f32 to vector<1x64xf32>
    %74 = vector.broadcast %cst_29 : f32 to vector<1x64xf32>
    %75 = arith.select %72, %73, %74 : vector<1x64xi1>, vector<1x64xf32>
    %cst_30 = arith.constant 1.55760157 : f32
    %76 = vector.broadcast %cst_30 : f32 to vector<1x64xf32>
    %77 = arith.mulf %76, %63 : vector<1x64xf32>
    %cst_31 = arith.constant 0.606530666 : f32
    %78 = vector.broadcast %cst_31 : f32 to vector<1x64xf32>
    %79 = arith.mulf %78, %43 : vector<1x64xf32>
    %80 = arith.subf %77, %79 : vector<1x64xf32>
    %cst_32 = arith.constant -2.117000e+00 : f32
    %81 = vector.broadcast %cst_32 : f32 to vector<1x64xf32>
    %82 = arith.mulf %81, %75 : vector<1x64xf32>
    %83 = arith.addf %80, %82 : vector<1x64xf32>
    %c3_i32 = arith.constant 3 : i32
    %84 = vector.broadcast %c3_i32 : i32 to vector<8x64xi32>
    %85 = arith.cmpi eq, %7, %84 : vector<8x64xi32>
    %86 = vector.shape_cast %75 : vector<1x64xf32> to vector<1x64xf32>
    %87 = vector.broadcast %86 : vector<1x64xf32> to vector<8x64xf32>
    %88 = arith.select %85, %87, %68 : vector<8x64xi1>, vector<8x64xf32>
    %89 = vector.extract_strided_slice %4 {offsets = [4, 0], sizes = [1, 64], strides = [1, 1]} : vector<64x64xf32> to vector<1x64xf32>
    %90 = arith.addf %89, %83 : vector<1x64xf32>
    %cst_33 = arith.constant 2.000000e+00 : f32
    %91 = vector.broadcast %cst_33 : f32 to vector<1x64xf32>
    %92 = arith.cmpf oge, %90, %91 : vector<1x64xf32>
    %cst_34 = arith.constant 1.000000e+00 : f32
    %cst_35 = arith.constant 0.000000e+00 : f32
    %93 = vector.broadcast %cst_34 : f32 to vector<1x64xf32>
    %94 = vector.broadcast %cst_35 : f32 to vector<1x64xf32>
    %95 = arith.select %92, %93, %94 : vector<1x64xi1>, vector<1x64xf32>
    %cst_36 = arith.constant 1.55760157 : f32
    %96 = vector.broadcast %cst_36 : f32 to vector<1x64xf32>
    %97 = arith.mulf %96, %83 : vector<1x64xf32>
    %cst_37 = arith.constant 0.606530666 : f32
    %98 = vector.broadcast %cst_37 : f32 to vector<1x64xf32>
    %99 = arith.mulf %98, %63 : vector<1x64xf32>
    %100 = arith.subf %97, %99 : vector<1x64xf32>
    %cst_38 = arith.constant -2.117000e+00 : f32
    %101 = vector.broadcast %cst_38 : f32 to vector<1x64xf32>
    %102 = arith.mulf %101, %95 : vector<1x64xf32>
    %103 = arith.addf %100, %102 : vector<1x64xf32>
    %c4_i32 = arith.constant 4 : i32
    %104 = vector.broadcast %c4_i32 : i32 to vector<8x64xi32>
    %105 = arith.cmpi eq, %7, %104 : vector<8x64xi32>
    %106 = vector.shape_cast %95 : vector<1x64xf32> to vector<1x64xf32>
    %107 = vector.broadcast %106 : vector<1x64xf32> to vector<8x64xf32>
    %108 = arith.select %105, %107, %88 : vector<8x64xi1>, vector<8x64xf32>
    %109 = vector.extract_strided_slice %4 {offsets = [5, 0], sizes = [1, 64], strides = [1, 1]} : vector<64x64xf32> to vector<1x64xf32>
    %110 = arith.addf %109, %103 : vector<1x64xf32>
    %cst_39 = arith.constant 2.000000e+00 : f32
    %111 = vector.broadcast %cst_39 : f32 to vector<1x64xf32>
    %112 = arith.cmpf oge, %110, %111 : vector<1x64xf32>
    %cst_40 = arith.constant 1.000000e+00 : f32
    %cst_41 = arith.constant 0.000000e+00 : f32
    %113 = vector.broadcast %cst_40 : f32 to vector<1x64xf32>
    %114 = vector.broadcast %cst_41 : f32 to vector<1x64xf32>
    %115 = arith.select %112, %113, %114 : vector<1x64xi1>, vector<1x64xf32>
    %cst_42 = arith.constant 1.55760157 : f32
    %116 = vector.broadcast %cst_42 : f32 to vector<1x64xf32>
    %117 = arith.mulf %116, %103 : vector<1x64xf32>
    %cst_43 = arith.constant 0.606530666 : f32
    %118 = vector.broadcast %cst_43 : f32 to vector<1x64xf32>
    %119 = arith.mulf %118, %83 : vector<1x64xf32>
    %120 = arith.subf %117, %119 : vector<1x64xf32>
    %cst_44 = arith.constant -2.117000e+00 : f32
    %121 = vector.broadcast %cst_44 : f32 to vector<1x64xf32>
    %122 = arith.mulf %121, %115 : vector<1x64xf32>
    %123 = arith.addf %120, %122 : vector<1x64xf32>
    %c5_i32 = arith.constant 5 : i32
    %124 = vector.broadcast %c5_i32 : i32 to vector<8x64xi32>
    %125 = arith.cmpi eq, %7, %124 : vector<8x64xi32>
    %126 = vector.shape_cast %115 : vector<1x64xf32> to vector<1x64xf32>
    %127 = vector.broadcast %126 : vector<1x64xf32> to vector<8x64xf32>
    %128 = arith.select %125, %127, %108 : vector<8x64xi1>, vector<8x64xf32>
    %129 = vector.extract_strided_slice %4 {offsets = [6, 0], sizes = [1, 64], strides = [1, 1]} : vector<64x64xf32> to vector<1x64xf32>
    %130 = arith.addf %129, %123 : vector<1x64xf32>
    %cst_45 = arith.constant 2.000000e+00 : f32
    %131 = vector.broadcast %cst_45 : f32 to vector<1x64xf32>
    %132 = arith.cmpf oge, %130, %131 : vector<1x64xf32>
    %cst_46 = arith.constant 1.000000e+00 : f32
    %cst_47 = arith.constant 0.000000e+00 : f32
    %133 = vector.broadcast %cst_46 : f32 to vector<1x64xf32>
    %134 = vector.broadcast %cst_47 : f32 to vector<1x64xf32>
    %135 = arith.select %132, %133, %134 : vector<1x64xi1>, vector<1x64xf32>
    %cst_48 = arith.constant 1.55760157 : f32
    %136 = vector.broadcast %cst_48 : f32 to vector<1x64xf32>
    %137 = arith.mulf %136, %123 : vector<1x64xf32>
    %cst_49 = arith.constant 0.606530666 : f32
    %138 = vector.broadcast %cst_49 : f32 to vector<1x64xf32>
    %139 = arith.mulf %138, %103 : vector<1x64xf32>
    %140 = arith.subf %137, %139 : vector<1x64xf32>
    %cst_50 = arith.constant -2.117000e+00 : f32
    %141 = vector.broadcast %cst_50 : f32 to vector<1x64xf32>
    %142 = arith.mulf %141, %135 : vector<1x64xf32>
    %143 = arith.addf %140, %142 : vector<1x64xf32>
    %c6_i32 = arith.constant 6 : i32
    %144 = vector.broadcast %c6_i32 : i32 to vector<8x64xi32>
    %145 = arith.cmpi eq, %7, %144 : vector<8x64xi32>
    %146 = vector.shape_cast %135 : vector<1x64xf32> to vector<1x64xf32>
    %147 = vector.broadcast %146 : vector<1x64xf32> to vector<8x64xf32>
    %148 = arith.select %145, %147, %128 : vector<8x64xi1>, vector<8x64xf32>
    %149 = vector.extract_strided_slice %4 {offsets = [7, 0], sizes = [1, 64], strides = [1, 1]} : vector<64x64xf32> to vector<1x64xf32>
    %150 = arith.addf %149, %143 : vector<1x64xf32>
    %cst_51 = arith.constant 2.000000e+00 : f32
    %151 = vector.broadcast %cst_51 : f32 to vector<1x64xf32>
    %152 = arith.cmpf oge, %150, %151 : vector<1x64xf32>
    %cst_52 = arith.constant 1.000000e+00 : f32
    %cst_53 = arith.constant 0.000000e+00 : f32
    %153 = vector.broadcast %cst_52 : f32 to vector<1x64xf32>
    %154 = vector.broadcast %cst_53 : f32 to vector<1x64xf32>
    %155 = arith.select %152, %153, %154 : vector<1x64xi1>, vector<1x64xf32>
    %cst_54 = arith.constant 1.55760157 : f32
    %156 = vector.broadcast %cst_54 : f32 to vector<1x64xf32>
    %157 = arith.mulf %156, %143 : vector<1x64xf32>
    %cst_55 = arith.constant 0.606530666 : f32
    %158 = vector.broadcast %cst_55 : f32 to vector<1x64xf32>
    %159 = arith.mulf %158, %123 : vector<1x64xf32>
    %160 = arith.subf %157, %159 : vector<1x64xf32>
    %cst_56 = arith.constant -2.117000e+00 : f32
    %161 = vector.broadcast %cst_56 : f32 to vector<1x64xf32>
    %162 = arith.mulf %161, %155 : vector<1x64xf32>
    %163 = arith.addf %160, %162 : vector<1x64xf32>
    %c7_i32 = arith.constant 7 : i32
    %164 = vector.broadcast %c7_i32 : i32 to vector<8x64xi32>
    %165 = arith.cmpi eq, %7, %164 : vector<8x64xi32>
    %166 = vector.shape_cast %155 : vector<1x64xf32> to vector<1x64xf32>
    %167 = vector.broadcast %166 : vector<1x64xf32> to vector<8x64xf32>
    %168 = arith.select %165, %167, %148 : vector<8x64xi1>, vector<8x64xf32>
    %cst_57 = arith.constant 0.000000e+00 : f32
    %169 = vector.broadcast %cst_57 : f32 to vector<8x64xf32>
    %170 = vector.extract_strided_slice %4 {offsets = [8, 0], sizes = [1, 64], strides = [1, 1]} : vector<64x64xf32> to vector<1x64xf32>
    %171 = arith.addf %170, %163 : vector<1x64xf32>
    %cst_58 = arith.constant 2.000000e+00 : f32
    %172 = vector.broadcast %cst_58 : f32 to vector<1x64xf32>
    %173 = arith.cmpf oge, %171, %172 : vector<1x64xf32>
    %cst_59 = arith.constant 1.000000e+00 : f32
    %cst_60 = arith.constant 0.000000e+00 : f32
    %174 = vector.broadcast %cst_59 : f32 to vector<1x64xf32>
    %175 = vector.broadcast %cst_60 : f32 to vector<1x64xf32>
    %176 = arith.select %173, %174, %175 : vector<1x64xi1>, vector<1x64xf32>
    %cst_61 = arith.constant 1.55760157 : f32
    %177 = vector.broadcast %cst_61 : f32 to vector<1x64xf32>
    %178 = arith.mulf %177, %163 : vector<1x64xf32>
    %cst_62 = arith.constant 0.606530666 : f32
    %179 = vector.broadcast %cst_62 : f32 to vector<1x64xf32>
    %180 = arith.mulf %179, %143 : vector<1x64xf32>
    %181 = arith.subf %178, %180 : vector<1x64xf32>
    %cst_63 = arith.constant -2.117000e+00 : f32
    %182 = vector.broadcast %cst_63 : f32 to vector<1x64xf32>
    %183 = arith.mulf %182, %176 : vector<1x64xf32>
    %184 = arith.addf %181, %183 : vector<1x64xf32>
    %c0_i32_64 = arith.constant 0 : i32
    %185 = vector.broadcast %c0_i32_64 : i32 to vector<8x64xi32>
    %186 = arith.cmpi eq, %7, %185 : vector<8x64xi32>
    %187 = vector.shape_cast %176 : vector<1x64xf32> to vector<1x64xf32>
    %188 = vector.broadcast %187 : vector<1x64xf32> to vector<8x64xf32>
    %189 = arith.select %186, %188, %169 : vector<8x64xi1>, vector<8x64xf32>
    %190 = vector.extract_strided_slice %4 {offsets = [9, 0], sizes = [1, 64], strides = [1, 1]} : vector<64x64xf32> to vector<1x64xf32>
    %191 = arith.addf %190, %184 : vector<1x64xf32>
    %cst_65 = arith.constant 2.000000e+00 : f32
    %192 = vector.broadcast %cst_65 : f32 to vector<1x64xf32>
    %193 = arith.cmpf oge, %191, %192 : vector<1x64xf32>
    %cst_66 = arith.constant 1.000000e+00 : f32
    %cst_67 = arith.constant 0.000000e+00 : f32
    %194 = vector.broadcast %cst_66 : f32 to vector<1x64xf32>
    %195 = vector.broadcast %cst_67 : f32 to vector<1x64xf32>
    %196 = arith.select %193, %194, %195 : vector<1x64xi1>, vector<1x64xf32>
    %cst_68 = arith.constant 1.55760157 : f32
    %197 = vector.broadcast %cst_68 : f32 to vector<1x64xf32>
    %198 = arith.mulf %197, %184 : vector<1x64xf32>
    %cst_69 = arith.constant 0.606530666 : f32
    %199 = vector.broadcast %cst_69 : f32 to vector<1x64xf32>
    %200 = arith.mulf %199, %163 : vector<1x64xf32>
    %201 = arith.subf %198, %200 : vector<1x64xf32>
    %cst_70 = arith.constant -2.117000e+00 : f32
    %202 = vector.broadcast %cst_70 : f32 to vector<1x64xf32>
    %203 = arith.mulf %202, %196 : vector<1x64xf32>
    %204 = arith.addf %201, %203 : vector<1x64xf32>
    %c1_i32_71 = arith.constant 1 : i32
    %205 = vector.broadcast %c1_i32_71 : i32 to vector<8x64xi32>
    %206 = arith.cmpi eq, %7, %205 : vector<8x64xi32>
    %207 = vector.shape_cast %196 : vector<1x64xf32> to vector<1x64xf32>
    %208 = vector.broadcast %207 : vector<1x64xf32> to vector<8x64xf32>
    %209 = arith.select %206, %208, %189 : vector<8x64xi1>, vector<8x64xf32>
    %210 = vector.extract_strided_slice %4 {offsets = [10, 0], sizes = [1, 64], strides = [1, 1]} : vector<64x64xf32> to vector<1x64xf32>
    %211 = arith.addf %210, %204 : vector<1x64xf32>
    %cst_72 = arith.constant 2.000000e+00 : f32
    %212 = vector.broadcast %cst_72 : f32 to vector<1x64xf32>
    %213 = arith.cmpf oge, %211, %212 : vector<1x64xf32>
    %cst_73 = arith.constant 1.000000e+00 : f32
    %cst_74 = arith.constant 0.000000e+00 : f32
    %214 = vector.broadcast %cst_73 : f32 to vector<1x64xf32>
    %215 = vector.broadcast %cst_74 : f32 to vector<1x64xf32>
    %216 = arith.select %213, %214, %215 : vector<1x64xi1>, vector<1x64xf32>
    %cst_75 = arith.constant 1.55760157 : f32
    %217 = vector.broadcast %cst_75 : f32 to vector<1x64xf32>
    %218 = arith.mulf %217, %204 : vector<1x64xf32>
    %cst_76 = arith.constant 0.606530666 : f32
    %219 = vector.broadcast %cst_76 : f32 to vector<1x64xf32>
    %220 = arith.mulf %219, %184 : vector<1x64xf32>
    %221 = arith.subf %218, %220 : vector<1x64xf32>
    %cst_77 = arith.constant -2.117000e+00 : f32
    %222 = vector.broadcast %cst_77 : f32 to vector<1x64xf32>
    %223 = arith.mulf %222, %216 : vector<1x64xf32>
    %224 = arith.addf %221, %223 : vector<1x64xf32>
    %c2_i32_78 = arith.constant 2 : i32
    %225 = vector.broadcast %c2_i32_78 : i32 to vector<8x64xi32>
    %226 = arith.cmpi eq, %7, %225 : vector<8x64xi32>
    %227 = vector.shape_cast %216 : vector<1x64xf32> to vector<1x64xf32>
    %228 = vector.broadcast %227 : vector<1x64xf32> to vector<8x64xf32>
    %229 = arith.select %226, %228, %209 : vector<8x64xi1>, vector<8x64xf32>
    %230 = vector.extract_strided_slice %4 {offsets = [11, 0], sizes = [1, 64], strides = [1, 1]} : vector<64x64xf32> to vector<1x64xf32>
    %231 = arith.addf %230, %224 : vector<1x64xf32>
    %cst_79 = arith.constant 2.000000e+00 : f32
    %232 = vector.broadcast %cst_79 : f32 to vector<1x64xf32>
    %233 = arith.cmpf oge, %231, %232 : vector<1x64xf32>
    %cst_80 = arith.constant 1.000000e+00 : f32
    %cst_81 = arith.constant 0.000000e+00 : f32
    %234 = vector.broadcast %cst_80 : f32 to vector<1x64xf32>
    %235 = vector.broadcast %cst_81 : f32 to vector<1x64xf32>
    %236 = arith.select %233, %234, %235 : vector<1x64xi1>, vector<1x64xf32>
    %cst_82 = arith.constant 1.55760157 : f32
    %237 = vector.broadcast %cst_82 : f32 to vector<1x64xf32>
    %238 = arith.mulf %237, %224 : vector<1x64xf32>
    %cst_83 = arith.constant 0.606530666 : f32
    %239 = vector.broadcast %cst_83 : f32 to vector<1x64xf32>
    %240 = arith.mulf %239, %204 : vector<1x64xf32>
    %241 = arith.subf %238, %240 : vector<1x64xf32>
    %cst_84 = arith.constant -2.117000e+00 : f32
    %242 = vector.broadcast %cst_84 : f32 to vector<1x64xf32>
    %243 = arith.mulf %242, %236 : vector<1x64xf32>
    %244 = arith.addf %241, %243 : vector<1x64xf32>
    %c3_i32_85 = arith.constant 3 : i32
    %245 = vector.broadcast %c3_i32_85 : i32 to vector<8x64xi32>
    %246 = arith.cmpi eq, %7, %245 : vector<8x64xi32>
    %247 = vector.shape_cast %236 : vector<1x64xf32> to vector<1x64xf32>
    %248 = vector.broadcast %247 : vector<1x64xf32> to vector<8x64xf32>
    %249 = arith.select %246, %248, %229 : vector<8x64xi1>, vector<8x64xf32>
    %250 = vector.extract_strided_slice %4 {offsets = [12, 0], sizes = [1, 64], strides = [1, 1]} : vector<64x64xf32> to vector<1x64xf32>
    %251 = arith.addf %250, %244 : vector<1x64xf32>
    %cst_86 = arith.constant 2.000000e+00 : f32
    %252 = vector.broadcast %cst_86 : f32 to vector<1x64xf32>
    %253 = arith.cmpf oge, %251, %252 : vector<1x64xf32>
    %cst_87 = arith.constant 1.000000e+00 : f32
    %cst_88 = arith.constant 0.000000e+00 : f32
    %254 = vector.broadcast %cst_87 : f32 to vector<1x64xf32>
    %255 = vector.broadcast %cst_88 : f32 to vector<1x64xf32>
    %256 = arith.select %253, %254, %255 : vector<1x64xi1>, vector<1x64xf32>
    %cst_89 = arith.constant 1.55760157 : f32
    %257 = vector.broadcast %cst_89 : f32 to vector<1x64xf32>
    %258 = arith.mulf %257, %244 : vector<1x64xf32>
    %cst_90 = arith.constant 0.606530666 : f32
    %259 = vector.broadcast %cst_90 : f32 to vector<1x64xf32>
    %260 = arith.mulf %259, %224 : vector<1x64xf32>
    %261 = arith.subf %258, %260 : vector<1x64xf32>
    %cst_91 = arith.constant -2.117000e+00 : f32
    %262 = vector.broadcast %cst_91 : f32 to vector<1x64xf32>
    %263 = arith.mulf %262, %256 : vector<1x64xf32>
    %264 = arith.addf %261, %263 : vector<1x64xf32>
    %c4_i32_92 = arith.constant 4 : i32
    %265 = vector.broadcast %c4_i32_92 : i32 to vector<8x64xi32>
    %266 = arith.cmpi eq, %7, %265 : vector<8x64xi32>
    %267 = vector.shape_cast %256 : vector<1x64xf32> to vector<1x64xf32>
    %268 = vector.broadcast %267 : vector<1x64xf32> to vector<8x64xf32>
    %269 = arith.select %266, %268, %249 : vector<8x64xi1>, vector<8x64xf32>
    %270 = vector.extract_strided_slice %4 {offsets = [13, 0], sizes = [1, 64], strides = [1, 1]} : vector<64x64xf32> to vector<1x64xf32>
    %271 = arith.addf %270, %264 : vector<1x64xf32>
    %cst_93 = arith.constant 2.000000e+00 : f32
    %272 = vector.broadcast %cst_93 : f32 to vector<1x64xf32>
    %273 = arith.cmpf oge, %271, %272 : vector<1x64xf32>
    %cst_94 = arith.constant 1.000000e+00 : f32
    %cst_95 = arith.constant 0.000000e+00 : f32
    %274 = vector.broadcast %cst_94 : f32 to vector<1x64xf32>
    %275 = vector.broadcast %cst_95 : f32 to vector<1x64xf32>
    %276 = arith.select %273, %274, %275 : vector<1x64xi1>, vector<1x64xf32>
    %cst_96 = arith.constant 1.55760157 : f32
    %277 = vector.broadcast %cst_96 : f32 to vector<1x64xf32>
    %278 = arith.mulf %277, %264 : vector<1x64xf32>
    %cst_97 = arith.constant 0.606530666 : f32
    %279 = vector.broadcast %cst_97 : f32 to vector<1x64xf32>
    %280 = arith.mulf %279, %244 : vector<1x64xf32>
    %281 = arith.subf %278, %280 : vector<1x64xf32>
    %cst_98 = arith.constant -2.117000e+00 : f32
    %282 = vector.broadcast %cst_98 : f32 to vector<1x64xf32>
    %283 = arith.mulf %282, %276 : vector<1x64xf32>
    %284 = arith.addf %281, %283 : vector<1x64xf32>
    %c5_i32_99 = arith.constant 5 : i32
    %285 = vector.broadcast %c5_i32_99 : i32 to vector<8x64xi32>
    %286 = arith.cmpi eq, %7, %285 : vector<8x64xi32>
    %287 = vector.shape_cast %276 : vector<1x64xf32> to vector<1x64xf32>
    %288 = vector.broadcast %287 : vector<1x64xf32> to vector<8x64xf32>
    %289 = arith.select %286, %288, %269 : vector<8x64xi1>, vector<8x64xf32>
    %290 = vector.extract_strided_slice %4 {offsets = [14, 0], sizes = [1, 64], strides = [1, 1]} : vector<64x64xf32> to vector<1x64xf32>
    %291 = arith.addf %290, %284 : vector<1x64xf32>
    %cst_100 = arith.constant 2.000000e+00 : f32
    %292 = vector.broadcast %cst_100 : f32 to vector<1x64xf32>
    %293 = arith.cmpf oge, %291, %292 : vector<1x64xf32>
    %cst_101 = arith.constant 1.000000e+00 : f32
    %cst_102 = arith.constant 0.000000e+00 : f32
    %294 = vector.broadcast %cst_101 : f32 to vector<1x64xf32>
    %295 = vector.broadcast %cst_102 : f32 to vector<1x64xf32>
    %296 = arith.select %293, %294, %295 : vector<1x64xi1>, vector<1x64xf32>
    %cst_103 = arith.constant 1.55760157 : f32
    %297 = vector.broadcast %cst_103 : f32 to vector<1x64xf32>
    %298 = arith.mulf %297, %284 : vector<1x64xf32>
    %cst_104 = arith.constant 0.606530666 : f32
    %299 = vector.broadcast %cst_104 : f32 to vector<1x64xf32>
    %300 = arith.mulf %299, %264 : vector<1x64xf32>
    %301 = arith.subf %298, %300 : vector<1x64xf32>
    %cst_105 = arith.constant -2.117000e+00 : f32
    %302 = vector.broadcast %cst_105 : f32 to vector<1x64xf32>
    %303 = arith.mulf %302, %296 : vector<1x64xf32>
    %304 = arith.addf %301, %303 : vector<1x64xf32>
    %c6_i32_106 = arith.constant 6 : i32
    %305 = vector.broadcast %c6_i32_106 : i32 to vector<8x64xi32>
    %306 = arith.cmpi eq, %7, %305 : vector<8x64xi32>
    %307 = vector.shape_cast %296 : vector<1x64xf32> to vector<1x64xf32>
    %308 = vector.broadcast %307 : vector<1x64xf32> to vector<8x64xf32>
    %309 = arith.select %306, %308, %289 : vector<8x64xi1>, vector<8x64xf32>
    %310 = vector.extract_strided_slice %4 {offsets = [15, 0], sizes = [1, 64], strides = [1, 1]} : vector<64x64xf32> to vector<1x64xf32>
    %311 = arith.addf %310, %304 : vector<1x64xf32>
    %cst_107 = arith.constant 2.000000e+00 : f32
    %312 = vector.broadcast %cst_107 : f32 to vector<1x64xf32>
    %313 = arith.cmpf oge, %311, %312 : vector<1x64xf32>
    %cst_108 = arith.constant 1.000000e+00 : f32
    %cst_109 = arith.constant 0.000000e+00 : f32
    %314 = vector.broadcast %cst_108 : f32 to vector<1x64xf32>
    %315 = vector.broadcast %cst_109 : f32 to vector<1x64xf32>
    %316 = arith.select %313, %314, %315 : vector<1x64xi1>, vector<1x64xf32>
    %cst_110 = arith.constant 1.55760157 : f32
    %317 = vector.broadcast %cst_110 : f32 to vector<1x64xf32>
    %318 = arith.mulf %317, %304 : vector<1x64xf32>
    %cst_111 = arith.constant 0.606530666 : f32
    %319 = vector.broadcast %cst_111 : f32 to vector<1x64xf32>
    %320 = arith.mulf %319, %284 : vector<1x64xf32>
    %321 = arith.subf %318, %320 : vector<1x64xf32>
    %cst_112 = arith.constant -2.117000e+00 : f32
    %322 = vector.broadcast %cst_112 : f32 to vector<1x64xf32>
    %323 = arith.mulf %322, %316 : vector<1x64xf32>
    %324 = arith.addf %321, %323 : vector<1x64xf32>
    %c7_i32_113 = arith.constant 7 : i32
    %325 = vector.broadcast %c7_i32_113 : i32 to vector<8x64xi32>
    %326 = arith.cmpi eq, %7, %325 : vector<8x64xi32>
    %327 = vector.shape_cast %316 : vector<1x64xf32> to vector<1x64xf32>
    %328 = vector.broadcast %327 : vector<1x64xf32> to vector<8x64xf32>
    %329 = arith.select %326, %328, %309 : vector<8x64xi1>, vector<8x64xf32>
    %cst_114 = arith.constant 0.000000e+00 : f32
    %330 = vector.broadcast %cst_114 : f32 to vector<8x64xf32>
    %331 = vector.extract_strided_slice %4 {offsets = [16, 0], sizes = [1, 64], strides = [1, 1]} : vector<64x64xf32> to vector<1x64xf32>
    %332 = arith.addf %331, %324 : vector<1x64xf32>
    %cst_115 = arith.constant 2.000000e+00 : f32
    %333 = vector.broadcast %cst_115 : f32 to vector<1x64xf32>
    %334 = arith.cmpf oge, %332, %333 : vector<1x64xf32>
    %cst_116 = arith.constant 1.000000e+00 : f32
    %cst_117 = arith.constant 0.000000e+00 : f32
    %335 = vector.broadcast %cst_116 : f32 to vector<1x64xf32>
    %336 = vector.broadcast %cst_117 : f32 to vector<1x64xf32>
    %337 = arith.select %334, %335, %336 : vector<1x64xi1>, vector<1x64xf32>
    %cst_118 = arith.constant 1.55760157 : f32
    %338 = vector.broadcast %cst_118 : f32 to vector<1x64xf32>
    %339 = arith.mulf %338, %324 : vector<1x64xf32>
    %cst_119 = arith.constant 0.606530666 : f32
    %340 = vector.broadcast %cst_119 : f32 to vector<1x64xf32>
    %341 = arith.mulf %340, %304 : vector<1x64xf32>
    %342 = arith.subf %339, %341 : vector<1x64xf32>
    %cst_120 = arith.constant -2.117000e+00 : f32
    %343 = vector.broadcast %cst_120 : f32 to vector<1x64xf32>
    %344 = arith.mulf %343, %337 : vector<1x64xf32>
    %345 = arith.addf %342, %344 : vector<1x64xf32>
    %c0_i32_121 = arith.constant 0 : i32
    %346 = vector.broadcast %c0_i32_121 : i32 to vector<8x64xi32>
    %347 = arith.cmpi eq, %7, %346 : vector<8x64xi32>
    %348 = vector.shape_cast %337 : vector<1x64xf32> to vector<1x64xf32>
    %349 = vector.broadcast %348 : vector<1x64xf32> to vector<8x64xf32>
    %350 = arith.select %347, %349, %330 : vector<8x64xi1>, vector<8x64xf32>
    %351 = vector.extract_strided_slice %4 {offsets = [17, 0], sizes = [1, 64], strides = [1, 1]} : vector<64x64xf32> to vector<1x64xf32>
    %352 = arith.addf %351, %345 : vector<1x64xf32>
    %cst_122 = arith.constant 2.000000e+00 : f32
    %353 = vector.broadcast %cst_122 : f32 to vector<1x64xf32>
    %354 = arith.cmpf oge, %352, %353 : vector<1x64xf32>
    %cst_123 = arith.constant 1.000000e+00 : f32
    %cst_124 = arith.constant 0.000000e+00 : f32
    %355 = vector.broadcast %cst_123 : f32 to vector<1x64xf32>
    %356 = vector.broadcast %cst_124 : f32 to vector<1x64xf32>
    %357 = arith.select %354, %355, %356 : vector<1x64xi1>, vector<1x64xf32>
    %cst_125 = arith.constant 1.55760157 : f32
    %358 = vector.broadcast %cst_125 : f32 to vector<1x64xf32>
    %359 = arith.mulf %358, %345 : vector<1x64xf32>
    %cst_126 = arith.constant 0.606530666 : f32
    %360 = vector.broadcast %cst_126 : f32 to vector<1x64xf32>
    %361 = arith.mulf %360, %324 : vector<1x64xf32>
    %362 = arith.subf %359, %361 : vector<1x64xf32>
    %cst_127 = arith.constant -2.117000e+00 : f32
    %363 = vector.broadcast %cst_127 : f32 to vector<1x64xf32>
    %364 = arith.mulf %363, %357 : vector<1x64xf32>
    %365 = arith.addf %362, %364 : vector<1x64xf32>
    %c1_i32_128 = arith.constant 1 : i32
    %366 = vector.broadcast %c1_i32_128 : i32 to vector<8x64xi32>
    %367 = arith.cmpi eq, %7, %366 : vector<8x64xi32>
    %368 = vector.shape_cast %357 : vector<1x64xf32> to vector<1x64xf32>
    %369 = vector.broadcast %368 : vector<1x64xf32> to vector<8x64xf32>
    %370 = arith.select %367, %369, %350 : vector<8x64xi1>, vector<8x64xf32>
    %371 = vector.extract_strided_slice %4 {offsets = [18, 0], sizes = [1, 64], strides = [1, 1]} : vector<64x64xf32> to vector<1x64xf32>
    %372 = arith.addf %371, %365 : vector<1x64xf32>
    %cst_129 = arith.constant 2.000000e+00 : f32
    %373 = vector.broadcast %cst_129 : f32 to vector<1x64xf32>
    %374 = arith.cmpf oge, %372, %373 : vector<1x64xf32>
    %cst_130 = arith.constant 1.000000e+00 : f32
    %cst_131 = arith.constant 0.000000e+00 : f32
    %375 = vector.broadcast %cst_130 : f32 to vector<1x64xf32>
    %376 = vector.broadcast %cst_131 : f32 to vector<1x64xf32>
    %377 = arith.select %374, %375, %376 : vector<1x64xi1>, vector<1x64xf32>
    %cst_132 = arith.constant 1.55760157 : f32
    %378 = vector.broadcast %cst_132 : f32 to vector<1x64xf32>
    %379 = arith.mulf %378, %365 : vector<1x64xf32>
    %cst_133 = arith.constant 0.606530666 : f32
    %380 = vector.broadcast %cst_133 : f32 to vector<1x64xf32>
    %381 = arith.mulf %380, %345 : vector<1x64xf32>
    %382 = arith.subf %379, %381 : vector<1x64xf32>
    %cst_134 = arith.constant -2.117000e+00 : f32
    %383 = vector.broadcast %cst_134 : f32 to vector<1x64xf32>
    %384 = arith.mulf %383, %377 : vector<1x64xf32>
    %385 = arith.addf %382, %384 : vector<1x64xf32>
    %c2_i32_135 = arith.constant 2 : i32
    %386 = vector.broadcast %c2_i32_135 : i32 to vector<8x64xi32>
    %387 = arith.cmpi eq, %7, %386 : vector<8x64xi32>
    %388 = vector.shape_cast %377 : vector<1x64xf32> to vector<1x64xf32>
    %389 = vector.broadcast %388 : vector<1x64xf32> to vector<8x64xf32>
    %390 = arith.select %387, %389, %370 : vector<8x64xi1>, vector<8x64xf32>
    %391 = vector.extract_strided_slice %4 {offsets = [19, 0], sizes = [1, 64], strides = [1, 1]} : vector<64x64xf32> to vector<1x64xf32>
    %392 = arith.addf %391, %385 : vector<1x64xf32>
    %cst_136 = arith.constant 2.000000e+00 : f32
    %393 = vector.broadcast %cst_136 : f32 to vector<1x64xf32>
    %394 = arith.cmpf oge, %392, %393 : vector<1x64xf32>
    %cst_137 = arith.constant 1.000000e+00 : f32
    %cst_138 = arith.constant 0.000000e+00 : f32
    %395 = vector.broadcast %cst_137 : f32 to vector<1x64xf32>
    %396 = vector.broadcast %cst_138 : f32 to vector<1x64xf32>
    %397 = arith.select %394, %395, %396 : vector<1x64xi1>, vector<1x64xf32>
    %cst_139 = arith.constant 1.55760157 : f32
    %398 = vector.broadcast %cst_139 : f32 to vector<1x64xf32>
    %399 = arith.mulf %398, %385 : vector<1x64xf32>
    %cst_140 = arith.constant 0.606530666 : f32
    %400 = vector.broadcast %cst_140 : f32 to vector<1x64xf32>
    %401 = arith.mulf %400, %365 : vector<1x64xf32>
    %402 = arith.subf %399, %401 : vector<1x64xf32>
    %cst_141 = arith.constant -2.117000e+00 : f32
    %403 = vector.broadcast %cst_141 : f32 to vector<1x64xf32>
    %404 = arith.mulf %403, %397 : vector<1x64xf32>
    %405 = arith.addf %402, %404 : vector<1x64xf32>
    %c3_i32_142 = arith.constant 3 : i32
    %406 = vector.broadcast %c3_i32_142 : i32 to vector<8x64xi32>
    %407 = arith.cmpi eq, %7, %406 : vector<8x64xi32>
    %408 = vector.shape_cast %397 : vector<1x64xf32> to vector<1x64xf32>
    %409 = vector.broadcast %408 : vector<1x64xf32> to vector<8x64xf32>
    %410 = arith.select %407, %409, %390 : vector<8x64xi1>, vector<8x64xf32>
    %411 = vector.extract_strided_slice %4 {offsets = [20, 0], sizes = [1, 64], strides = [1, 1]} : vector<64x64xf32> to vector<1x64xf32>
    %412 = arith.addf %411, %405 : vector<1x64xf32>
    %cst_143 = arith.constant 2.000000e+00 : f32
    %413 = vector.broadcast %cst_143 : f32 to vector<1x64xf32>
    %414 = arith.cmpf oge, %412, %413 : vector<1x64xf32>
    %cst_144 = arith.constant 1.000000e+00 : f32
    %cst_145 = arith.constant 0.000000e+00 : f32
    %415 = vector.broadcast %cst_144 : f32 to vector<1x64xf32>
    %416 = vector.broadcast %cst_145 : f32 to vector<1x64xf32>
    %417 = arith.select %414, %415, %416 : vector<1x64xi1>, vector<1x64xf32>
    %cst_146 = arith.constant 1.55760157 : f32
    %418 = vector.broadcast %cst_146 : f32 to vector<1x64xf32>
    %419 = arith.mulf %418, %405 : vector<1x64xf32>
    %cst_147 = arith.constant 0.606530666 : f32
    %420 = vector.broadcast %cst_147 : f32 to vector<1x64xf32>
    %421 = arith.mulf %420, %385 : vector<1x64xf32>
    %422 = arith.subf %419, %421 : vector<1x64xf32>
    %cst_148 = arith.constant -2.117000e+00 : f32
    %423 = vector.broadcast %cst_148 : f32 to vector<1x64xf32>
    %424 = arith.mulf %423, %417 : vector<1x64xf32>
    %425 = arith.addf %422, %424 : vector<1x64xf32>
    %c4_i32_149 = arith.constant 4 : i32
    %426 = vector.broadcast %c4_i32_149 : i32 to vector<8x64xi32>
    %427 = arith.cmpi eq, %7, %426 : vector<8x64xi32>
    %428 = vector.shape_cast %417 : vector<1x64xf32> to vector<1x64xf32>
    %429 = vector.broadcast %428 : vector<1x64xf32> to vector<8x64xf32>
    %430 = arith.select %427, %429, %410 : vector<8x64xi1>, vector<8x64xf32>
    %431 = vector.extract_strided_slice %4 {offsets = [21, 0], sizes = [1, 64], strides = [1, 1]} : vector<64x64xf32> to vector<1x64xf32>
    %432 = arith.addf %431, %425 : vector<1x64xf32>
    %cst_150 = arith.constant 2.000000e+00 : f32
    %433 = vector.broadcast %cst_150 : f32 to vector<1x64xf32>
    %434 = arith.cmpf oge, %432, %433 : vector<1x64xf32>
    %cst_151 = arith.constant 1.000000e+00 : f32
    %cst_152 = arith.constant 0.000000e+00 : f32
    %435 = vector.broadcast %cst_151 : f32 to vector<1x64xf32>
    %436 = vector.broadcast %cst_152 : f32 to vector<1x64xf32>
    %437 = arith.select %434, %435, %436 : vector<1x64xi1>, vector<1x64xf32>
    %cst_153 = arith.constant 1.55760157 : f32
    %438 = vector.broadcast %cst_153 : f32 to vector<1x64xf32>
    %439 = arith.mulf %438, %425 : vector<1x64xf32>
    %cst_154 = arith.constant 0.606530666 : f32
    %440 = vector.broadcast %cst_154 : f32 to vector<1x64xf32>
    %441 = arith.mulf %440, %405 : vector<1x64xf32>
    %442 = arith.subf %439, %441 : vector<1x64xf32>
    %cst_155 = arith.constant -2.117000e+00 : f32
    %443 = vector.broadcast %cst_155 : f32 to vector<1x64xf32>
    %444 = arith.mulf %443, %437 : vector<1x64xf32>
    %445 = arith.addf %442, %444 : vector<1x64xf32>
    %c5_i32_156 = arith.constant 5 : i32
    %446 = vector.broadcast %c5_i32_156 : i32 to vector<8x64xi32>
    %447 = arith.cmpi eq, %7, %446 : vector<8x64xi32>
    %448 = vector.shape_cast %437 : vector<1x64xf32> to vector<1x64xf32>
    %449 = vector.broadcast %448 : vector<1x64xf32> to vector<8x64xf32>
    %450 = arith.select %447, %449, %430 : vector<8x64xi1>, vector<8x64xf32>
    %451 = vector.extract_strided_slice %4 {offsets = [22, 0], sizes = [1, 64], strides = [1, 1]} : vector<64x64xf32> to vector<1x64xf32>
    %452 = arith.addf %451, %445 : vector<1x64xf32>
    %cst_157 = arith.constant 2.000000e+00 : f32
    %453 = vector.broadcast %cst_157 : f32 to vector<1x64xf32>
    %454 = arith.cmpf oge, %452, %453 : vector<1x64xf32>
    %cst_158 = arith.constant 1.000000e+00 : f32
    %cst_159 = arith.constant 0.000000e+00 : f32
    %455 = vector.broadcast %cst_158 : f32 to vector<1x64xf32>
    %456 = vector.broadcast %cst_159 : f32 to vector<1x64xf32>
    %457 = arith.select %454, %455, %456 : vector<1x64xi1>, vector<1x64xf32>
    %cst_160 = arith.constant 1.55760157 : f32
    %458 = vector.broadcast %cst_160 : f32 to vector<1x64xf32>
    %459 = arith.mulf %458, %445 : vector<1x64xf32>
    %cst_161 = arith.constant 0.606530666 : f32
    %460 = vector.broadcast %cst_161 : f32 to vector<1x64xf32>
    %461 = arith.mulf %460, %425 : vector<1x64xf32>
    %462 = arith.subf %459, %461 : vector<1x64xf32>
    %cst_162 = arith.constant -2.117000e+00 : f32
    %463 = vector.broadcast %cst_162 : f32 to vector<1x64xf32>
    %464 = arith.mulf %463, %457 : vector<1x64xf32>
    %465 = arith.addf %462, %464 : vector<1x64xf32>
    %c6_i32_163 = arith.constant 6 : i32
    %466 = vector.broadcast %c6_i32_163 : i32 to vector<8x64xi32>
    %467 = arith.cmpi eq, %7, %466 : vector<8x64xi32>
    %468 = vector.shape_cast %457 : vector<1x64xf32> to vector<1x64xf32>
    %469 = vector.broadcast %468 : vector<1x64xf32> to vector<8x64xf32>
    %470 = arith.select %467, %469, %450 : vector<8x64xi1>, vector<8x64xf32>
    %471 = vector.extract_strided_slice %4 {offsets = [23, 0], sizes = [1, 64], strides = [1, 1]} : vector<64x64xf32> to vector<1x64xf32>
    %472 = arith.addf %471, %465 : vector<1x64xf32>
    %cst_164 = arith.constant 2.000000e+00 : f32
    %473 = vector.broadcast %cst_164 : f32 to vector<1x64xf32>
    %474 = arith.cmpf oge, %472, %473 : vector<1x64xf32>
    %cst_165 = arith.constant 1.000000e+00 : f32
    %cst_166 = arith.constant 0.000000e+00 : f32
    %475 = vector.broadcast %cst_165 : f32 to vector<1x64xf32>
    %476 = vector.broadcast %cst_166 : f32 to vector<1x64xf32>
    %477 = arith.select %474, %475, %476 : vector<1x64xi1>, vector<1x64xf32>
    %cst_167 = arith.constant 1.55760157 : f32
    %478 = vector.broadcast %cst_167 : f32 to vector<1x64xf32>
    %479 = arith.mulf %478, %465 : vector<1x64xf32>
    %cst_168 = arith.constant 0.606530666 : f32
    %480 = vector.broadcast %cst_168 : f32 to vector<1x64xf32>
    %481 = arith.mulf %480, %445 : vector<1x64xf32>
    %482 = arith.subf %479, %481 : vector<1x64xf32>
    %cst_169 = arith.constant -2.117000e+00 : f32
    %483 = vector.broadcast %cst_169 : f32 to vector<1x64xf32>
    %484 = arith.mulf %483, %477 : vector<1x64xf32>
    %485 = arith.addf %482, %484 : vector<1x64xf32>
    %c7_i32_170 = arith.constant 7 : i32
    %486 = vector.broadcast %c7_i32_170 : i32 to vector<8x64xi32>
    %487 = arith.cmpi eq, %7, %486 : vector<8x64xi32>
    %488 = vector.shape_cast %477 : vector<1x64xf32> to vector<1x64xf32>
    %489 = vector.broadcast %488 : vector<1x64xf32> to vector<8x64xf32>
    %490 = arith.select %487, %489, %470 : vector<8x64xi1>, vector<8x64xf32>
    %cst_171 = arith.constant 0.000000e+00 : f32
    %491 = vector.broadcast %cst_171 : f32 to vector<8x64xf32>
    %492 = vector.extract_strided_slice %4 {offsets = [24, 0], sizes = [1, 64], strides = [1, 1]} : vector<64x64xf32> to vector<1x64xf32>
    %493 = arith.addf %492, %485 : vector<1x64xf32>
    %cst_172 = arith.constant 2.000000e+00 : f32
    %494 = vector.broadcast %cst_172 : f32 to vector<1x64xf32>
    %495 = arith.cmpf oge, %493, %494 : vector<1x64xf32>
    %cst_173 = arith.constant 1.000000e+00 : f32
    %cst_174 = arith.constant 0.000000e+00 : f32
    %496 = vector.broadcast %cst_173 : f32 to vector<1x64xf32>
    %497 = vector.broadcast %cst_174 : f32 to vector<1x64xf32>
    %498 = arith.select %495, %496, %497 : vector<1x64xi1>, vector<1x64xf32>
    %cst_175 = arith.constant 1.55760157 : f32
    %499 = vector.broadcast %cst_175 : f32 to vector<1x64xf32>
    %500 = arith.mulf %499, %485 : vector<1x64xf32>
    %cst_176 = arith.constant 0.606530666 : f32
    %501 = vector.broadcast %cst_176 : f32 to vector<1x64xf32>
    %502 = arith.mulf %501, %465 : vector<1x64xf32>
    %503 = arith.subf %500, %502 : vector<1x64xf32>
    %cst_177 = arith.constant -2.117000e+00 : f32
    %504 = vector.broadcast %cst_177 : f32 to vector<1x64xf32>
    %505 = arith.mulf %504, %498 : vector<1x64xf32>
    %506 = arith.addf %503, %505 : vector<1x64xf32>
    %c0_i32_178 = arith.constant 0 : i32
    %507 = vector.broadcast %c0_i32_178 : i32 to vector<8x64xi32>
    %508 = arith.cmpi eq, %7, %507 : vector<8x64xi32>
    %509 = vector.shape_cast %498 : vector<1x64xf32> to vector<1x64xf32>
    %510 = vector.broadcast %509 : vector<1x64xf32> to vector<8x64xf32>
    %511 = arith.select %508, %510, %491 : vector<8x64xi1>, vector<8x64xf32>
    %512 = vector.extract_strided_slice %4 {offsets = [25, 0], sizes = [1, 64], strides = [1, 1]} : vector<64x64xf32> to vector<1x64xf32>
    %513 = arith.addf %512, %506 : vector<1x64xf32>
    %cst_179 = arith.constant 2.000000e+00 : f32
    %514 = vector.broadcast %cst_179 : f32 to vector<1x64xf32>
    %515 = arith.cmpf oge, %513, %514 : vector<1x64xf32>
    %cst_180 = arith.constant 1.000000e+00 : f32
    %cst_181 = arith.constant 0.000000e+00 : f32
    %516 = vector.broadcast %cst_180 : f32 to vector<1x64xf32>
    %517 = vector.broadcast %cst_181 : f32 to vector<1x64xf32>
    %518 = arith.select %515, %516, %517 : vector<1x64xi1>, vector<1x64xf32>
    %cst_182 = arith.constant 1.55760157 : f32
    %519 = vector.broadcast %cst_182 : f32 to vector<1x64xf32>
    %520 = arith.mulf %519, %506 : vector<1x64xf32>
    %cst_183 = arith.constant 0.606530666 : f32
    %521 = vector.broadcast %cst_183 : f32 to vector<1x64xf32>
    %522 = arith.mulf %521, %485 : vector<1x64xf32>
    %523 = arith.subf %520, %522 : vector<1x64xf32>
    %cst_184 = arith.constant -2.117000e+00 : f32
    %524 = vector.broadcast %cst_184 : f32 to vector<1x64xf32>
    %525 = arith.mulf %524, %518 : vector<1x64xf32>
    %526 = arith.addf %523, %525 : vector<1x64xf32>
    %c1_i32_185 = arith.constant 1 : i32
    %527 = vector.broadcast %c1_i32_185 : i32 to vector<8x64xi32>
    %528 = arith.cmpi eq, %7, %527 : vector<8x64xi32>
    %529 = vector.shape_cast %518 : vector<1x64xf32> to vector<1x64xf32>
    %530 = vector.broadcast %529 : vector<1x64xf32> to vector<8x64xf32>
    %531 = arith.select %528, %530, %511 : vector<8x64xi1>, vector<8x64xf32>
    %532 = vector.extract_strided_slice %4 {offsets = [26, 0], sizes = [1, 64], strides = [1, 1]} : vector<64x64xf32> to vector<1x64xf32>
    %533 = arith.addf %532, %526 : vector<1x64xf32>
    %cst_186 = arith.constant 2.000000e+00 : f32
    %534 = vector.broadcast %cst_186 : f32 to vector<1x64xf32>
    %535 = arith.cmpf oge, %533, %534 : vector<1x64xf32>
    %cst_187 = arith.constant 1.000000e+00 : f32
    %cst_188 = arith.constant 0.000000e+00 : f32
    %536 = vector.broadcast %cst_187 : f32 to vector<1x64xf32>
    %537 = vector.broadcast %cst_188 : f32 to vector<1x64xf32>
    %538 = arith.select %535, %536, %537 : vector<1x64xi1>, vector<1x64xf32>
    %cst_189 = arith.constant 1.55760157 : f32
    %539 = vector.broadcast %cst_189 : f32 to vector<1x64xf32>
    %540 = arith.mulf %539, %526 : vector<1x64xf32>
    %cst_190 = arith.constant 0.606530666 : f32
    %541 = vector.broadcast %cst_190 : f32 to vector<1x64xf32>
    %542 = arith.mulf %541, %506 : vector<1x64xf32>
    %543 = arith.subf %540, %542 : vector<1x64xf32>
    %cst_191 = arith.constant -2.117000e+00 : f32
    %544 = vector.broadcast %cst_191 : f32 to vector<1x64xf32>
    %545 = arith.mulf %544, %538 : vector<1x64xf32>
    %546 = arith.addf %543, %545 : vector<1x64xf32>
    %c2_i32_192 = arith.constant 2 : i32
    %547 = vector.broadcast %c2_i32_192 : i32 to vector<8x64xi32>
    %548 = arith.cmpi eq, %7, %547 : vector<8x64xi32>
    %549 = vector.shape_cast %538 : vector<1x64xf32> to vector<1x64xf32>
    %550 = vector.broadcast %549 : vector<1x64xf32> to vector<8x64xf32>
    %551 = arith.select %548, %550, %531 : vector<8x64xi1>, vector<8x64xf32>
    %552 = vector.extract_strided_slice %4 {offsets = [27, 0], sizes = [1, 64], strides = [1, 1]} : vector<64x64xf32> to vector<1x64xf32>
    %553 = arith.addf %552, %546 : vector<1x64xf32>
    %cst_193 = arith.constant 2.000000e+00 : f32
    %554 = vector.broadcast %cst_193 : f32 to vector<1x64xf32>
    %555 = arith.cmpf oge, %553, %554 : vector<1x64xf32>
    %cst_194 = arith.constant 1.000000e+00 : f32
    %cst_195 = arith.constant 0.000000e+00 : f32
    %556 = vector.broadcast %cst_194 : f32 to vector<1x64xf32>
    %557 = vector.broadcast %cst_195 : f32 to vector<1x64xf32>
    %558 = arith.select %555, %556, %557 : vector<1x64xi1>, vector<1x64xf32>
    %cst_196 = arith.constant 1.55760157 : f32
    %559 = vector.broadcast %cst_196 : f32 to vector<1x64xf32>
    %560 = arith.mulf %559, %546 : vector<1x64xf32>
    %cst_197 = arith.constant 0.606530666 : f32
    %561 = vector.broadcast %cst_197 : f32 to vector<1x64xf32>
    %562 = arith.mulf %561, %526 : vector<1x64xf32>
    %563 = arith.subf %560, %562 : vector<1x64xf32>
    %cst_198 = arith.constant -2.117000e+00 : f32
    %564 = vector.broadcast %cst_198 : f32 to vector<1x64xf32>
    %565 = arith.mulf %564, %558 : vector<1x64xf32>
    %566 = arith.addf %563, %565 : vector<1x64xf32>
    %c3_i32_199 = arith.constant 3 : i32
    %567 = vector.broadcast %c3_i32_199 : i32 to vector<8x64xi32>
    %568 = arith.cmpi eq, %7, %567 : vector<8x64xi32>
    %569 = vector.shape_cast %558 : vector<1x64xf32> to vector<1x64xf32>
    %570 = vector.broadcast %569 : vector<1x64xf32> to vector<8x64xf32>
    %571 = arith.select %568, %570, %551 : vector<8x64xi1>, vector<8x64xf32>
    %572 = vector.extract_strided_slice %4 {offsets = [28, 0], sizes = [1, 64], strides = [1, 1]} : vector<64x64xf32> to vector<1x64xf32>
    %573 = arith.addf %572, %566 : vector<1x64xf32>
    %cst_200 = arith.constant 2.000000e+00 : f32
    %574 = vector.broadcast %cst_200 : f32 to vector<1x64xf32>
    %575 = arith.cmpf oge, %573, %574 : vector<1x64xf32>
    %cst_201 = arith.constant 1.000000e+00 : f32
    %cst_202 = arith.constant 0.000000e+00 : f32
    %576 = vector.broadcast %cst_201 : f32 to vector<1x64xf32>
    %577 = vector.broadcast %cst_202 : f32 to vector<1x64xf32>
    %578 = arith.select %575, %576, %577 : vector<1x64xi1>, vector<1x64xf32>
    %cst_203 = arith.constant 1.55760157 : f32
    %579 = vector.broadcast %cst_203 : f32 to vector<1x64xf32>
    %580 = arith.mulf %579, %566 : vector<1x64xf32>
    %cst_204 = arith.constant 0.606530666 : f32
    %581 = vector.broadcast %cst_204 : f32 to vector<1x64xf32>
    %582 = arith.mulf %581, %546 : vector<1x64xf32>
    %583 = arith.subf %580, %582 : vector<1x64xf32>
    %cst_205 = arith.constant -2.117000e+00 : f32
    %584 = vector.broadcast %cst_205 : f32 to vector<1x64xf32>
    %585 = arith.mulf %584, %578 : vector<1x64xf32>
    %586 = arith.addf %583, %585 : vector<1x64xf32>
    %c4_i32_206 = arith.constant 4 : i32
    %587 = vector.broadcast %c4_i32_206 : i32 to vector<8x64xi32>
    %588 = arith.cmpi eq, %7, %587 : vector<8x64xi32>
    %589 = vector.shape_cast %578 : vector<1x64xf32> to vector<1x64xf32>
    %590 = vector.broadcast %589 : vector<1x64xf32> to vector<8x64xf32>
    %591 = arith.select %588, %590, %571 : vector<8x64xi1>, vector<8x64xf32>
    %592 = vector.extract_strided_slice %4 {offsets = [29, 0], sizes = [1, 64], strides = [1, 1]} : vector<64x64xf32> to vector<1x64xf32>
    %593 = arith.addf %592, %586 : vector<1x64xf32>
    %cst_207 = arith.constant 2.000000e+00 : f32
    %594 = vector.broadcast %cst_207 : f32 to vector<1x64xf32>
    %595 = arith.cmpf oge, %593, %594 : vector<1x64xf32>
    %cst_208 = arith.constant 1.000000e+00 : f32
    %cst_209 = arith.constant 0.000000e+00 : f32
    %596 = vector.broadcast %cst_208 : f32 to vector<1x64xf32>
    %597 = vector.broadcast %cst_209 : f32 to vector<1x64xf32>
    %598 = arith.select %595, %596, %597 : vector<1x64xi1>, vector<1x64xf32>
    %cst_210 = arith.constant 1.55760157 : f32
    %599 = vector.broadcast %cst_210 : f32 to vector<1x64xf32>
    %600 = arith.mulf %599, %586 : vector<1x64xf32>
    %cst_211 = arith.constant 0.606530666 : f32
    %601 = vector.broadcast %cst_211 : f32 to vector<1x64xf32>
    %602 = arith.mulf %601, %566 : vector<1x64xf32>
    %603 = arith.subf %600, %602 : vector<1x64xf32>
    %cst_212 = arith.constant -2.117000e+00 : f32
    %604 = vector.broadcast %cst_212 : f32 to vector<1x64xf32>
    %605 = arith.mulf %604, %598 : vector<1x64xf32>
    %606 = arith.addf %603, %605 : vector<1x64xf32>
    %c5_i32_213 = arith.constant 5 : i32
    %607 = vector.broadcast %c5_i32_213 : i32 to vector<8x64xi32>
    %608 = arith.cmpi eq, %7, %607 : vector<8x64xi32>
    %609 = vector.shape_cast %598 : vector<1x64xf32> to vector<1x64xf32>
    %610 = vector.broadcast %609 : vector<1x64xf32> to vector<8x64xf32>
    %611 = arith.select %608, %610, %591 : vector<8x64xi1>, vector<8x64xf32>
    %612 = vector.extract_strided_slice %4 {offsets = [30, 0], sizes = [1, 64], strides = [1, 1]} : vector<64x64xf32> to vector<1x64xf32>
    %613 = arith.addf %612, %606 : vector<1x64xf32>
    %cst_214 = arith.constant 2.000000e+00 : f32
    %614 = vector.broadcast %cst_214 : f32 to vector<1x64xf32>
    %615 = arith.cmpf oge, %613, %614 : vector<1x64xf32>
    %cst_215 = arith.constant 1.000000e+00 : f32
    %cst_216 = arith.constant 0.000000e+00 : f32
    %616 = vector.broadcast %cst_215 : f32 to vector<1x64xf32>
    %617 = vector.broadcast %cst_216 : f32 to vector<1x64xf32>
    %618 = arith.select %615, %616, %617 : vector<1x64xi1>, vector<1x64xf32>
    %cst_217 = arith.constant 1.55760157 : f32
    %619 = vector.broadcast %cst_217 : f32 to vector<1x64xf32>
    %620 = arith.mulf %619, %606 : vector<1x64xf32>
    %cst_218 = arith.constant 0.606530666 : f32
    %621 = vector.broadcast %cst_218 : f32 to vector<1x64xf32>
    %622 = arith.mulf %621, %586 : vector<1x64xf32>
    %623 = arith.subf %620, %622 : vector<1x64xf32>
    %cst_219 = arith.constant -2.117000e+00 : f32
    %624 = vector.broadcast %cst_219 : f32 to vector<1x64xf32>
    %625 = arith.mulf %624, %618 : vector<1x64xf32>
    %626 = arith.addf %623, %625 : vector<1x64xf32>
    %c6_i32_220 = arith.constant 6 : i32
    %627 = vector.broadcast %c6_i32_220 : i32 to vector<8x64xi32>
    %628 = arith.cmpi eq, %7, %627 : vector<8x64xi32>
    %629 = vector.shape_cast %618 : vector<1x64xf32> to vector<1x64xf32>
    %630 = vector.broadcast %629 : vector<1x64xf32> to vector<8x64xf32>
    %631 = arith.select %628, %630, %611 : vector<8x64xi1>, vector<8x64xf32>
    %632 = vector.extract_strided_slice %4 {offsets = [31, 0], sizes = [1, 64], strides = [1, 1]} : vector<64x64xf32> to vector<1x64xf32>
    %633 = arith.addf %632, %626 : vector<1x64xf32>
    %cst_221 = arith.constant 2.000000e+00 : f32
    %634 = vector.broadcast %cst_221 : f32 to vector<1x64xf32>
    %635 = arith.cmpf oge, %633, %634 : vector<1x64xf32>
    %cst_222 = arith.constant 1.000000e+00 : f32
    %cst_223 = arith.constant 0.000000e+00 : f32
    %636 = vector.broadcast %cst_222 : f32 to vector<1x64xf32>
    %637 = vector.broadcast %cst_223 : f32 to vector<1x64xf32>
    %638 = arith.select %635, %636, %637 : vector<1x64xi1>, vector<1x64xf32>
    %cst_224 = arith.constant 1.55760157 : f32
    %639 = vector.broadcast %cst_224 : f32 to vector<1x64xf32>
    %640 = arith.mulf %639, %626 : vector<1x64xf32>
    %cst_225 = arith.constant 0.606530666 : f32
    %641 = vector.broadcast %cst_225 : f32 to vector<1x64xf32>
    %642 = arith.mulf %641, %606 : vector<1x64xf32>
    %643 = arith.subf %640, %642 : vector<1x64xf32>
    %cst_226 = arith.constant -2.117000e+00 : f32
    %644 = vector.broadcast %cst_226 : f32 to vector<1x64xf32>
    %645 = arith.mulf %644, %638 : vector<1x64xf32>
    %646 = arith.addf %643, %645 : vector<1x64xf32>
    %c7_i32_227 = arith.constant 7 : i32
    %647 = vector.broadcast %c7_i32_227 : i32 to vector<8x64xi32>
    %648 = arith.cmpi eq, %7, %647 : vector<8x64xi32>
    %649 = vector.shape_cast %638 : vector<1x64xf32> to vector<1x64xf32>
    %650 = vector.broadcast %649 : vector<1x64xf32> to vector<8x64xf32>
    %651 = arith.select %648, %650, %631 : vector<8x64xi1>, vector<8x64xf32>
    %cst_228 = arith.constant 0.000000e+00 : f32
    %652 = vector.broadcast %cst_228 : f32 to vector<8x64xf32>
    %653 = vector.extract_strided_slice %4 {offsets = [32, 0], sizes = [1, 64], strides = [1, 1]} : vector<64x64xf32> to vector<1x64xf32>
    %654 = arith.addf %653, %646 : vector<1x64xf32>
    %cst_229 = arith.constant 2.000000e+00 : f32
    %655 = vector.broadcast %cst_229 : f32 to vector<1x64xf32>
    %656 = arith.cmpf oge, %654, %655 : vector<1x64xf32>
    %cst_230 = arith.constant 1.000000e+00 : f32
    %cst_231 = arith.constant 0.000000e+00 : f32
    %657 = vector.broadcast %cst_230 : f32 to vector<1x64xf32>
    %658 = vector.broadcast %cst_231 : f32 to vector<1x64xf32>
    %659 = arith.select %656, %657, %658 : vector<1x64xi1>, vector<1x64xf32>
    %cst_232 = arith.constant 1.55760157 : f32
    %660 = vector.broadcast %cst_232 : f32 to vector<1x64xf32>
    %661 = arith.mulf %660, %646 : vector<1x64xf32>
    %cst_233 = arith.constant 0.606530666 : f32
    %662 = vector.broadcast %cst_233 : f32 to vector<1x64xf32>
    %663 = arith.mulf %662, %626 : vector<1x64xf32>
    %664 = arith.subf %661, %663 : vector<1x64xf32>
    %cst_234 = arith.constant -2.117000e+00 : f32
    %665 = vector.broadcast %cst_234 : f32 to vector<1x64xf32>
    %666 = arith.mulf %665, %659 : vector<1x64xf32>
    %667 = arith.addf %664, %666 : vector<1x64xf32>
    %c0_i32_235 = arith.constant 0 : i32
    %668 = vector.broadcast %c0_i32_235 : i32 to vector<8x64xi32>
    %669 = arith.cmpi eq, %7, %668 : vector<8x64xi32>
    %670 = vector.shape_cast %659 : vector<1x64xf32> to vector<1x64xf32>
    %671 = vector.broadcast %670 : vector<1x64xf32> to vector<8x64xf32>
    %672 = arith.select %669, %671, %652 : vector<8x64xi1>, vector<8x64xf32>
    %673 = vector.extract_strided_slice %4 {offsets = [33, 0], sizes = [1, 64], strides = [1, 1]} : vector<64x64xf32> to vector<1x64xf32>
    %674 = arith.addf %673, %667 : vector<1x64xf32>
    %cst_236 = arith.constant 2.000000e+00 : f32
    %675 = vector.broadcast %cst_236 : f32 to vector<1x64xf32>
    %676 = arith.cmpf oge, %674, %675 : vector<1x64xf32>
    %cst_237 = arith.constant 1.000000e+00 : f32
    %cst_238 = arith.constant 0.000000e+00 : f32
    %677 = vector.broadcast %cst_237 : f32 to vector<1x64xf32>
    %678 = vector.broadcast %cst_238 : f32 to vector<1x64xf32>
    %679 = arith.select %676, %677, %678 : vector<1x64xi1>, vector<1x64xf32>
    %cst_239 = arith.constant 1.55760157 : f32
    %680 = vector.broadcast %cst_239 : f32 to vector<1x64xf32>
    %681 = arith.mulf %680, %667 : vector<1x64xf32>
    %cst_240 = arith.constant 0.606530666 : f32
    %682 = vector.broadcast %cst_240 : f32 to vector<1x64xf32>
    %683 = arith.mulf %682, %646 : vector<1x64xf32>
    %684 = arith.subf %681, %683 : vector<1x64xf32>
    %cst_241 = arith.constant -2.117000e+00 : f32
    %685 = vector.broadcast %cst_241 : f32 to vector<1x64xf32>
    %686 = arith.mulf %685, %679 : vector<1x64xf32>
    %687 = arith.addf %684, %686 : vector<1x64xf32>
    %c1_i32_242 = arith.constant 1 : i32
    %688 = vector.broadcast %c1_i32_242 : i32 to vector<8x64xi32>
    %689 = arith.cmpi eq, %7, %688 : vector<8x64xi32>
    %690 = vector.shape_cast %679 : vector<1x64xf32> to vector<1x64xf32>
    %691 = vector.broadcast %690 : vector<1x64xf32> to vector<8x64xf32>
    %692 = arith.select %689, %691, %672 : vector<8x64xi1>, vector<8x64xf32>
    %693 = vector.extract_strided_slice %4 {offsets = [34, 0], sizes = [1, 64], strides = [1, 1]} : vector<64x64xf32> to vector<1x64xf32>
    %694 = arith.addf %693, %687 : vector<1x64xf32>
    %cst_243 = arith.constant 2.000000e+00 : f32
    %695 = vector.broadcast %cst_243 : f32 to vector<1x64xf32>
    %696 = arith.cmpf oge, %694, %695 : vector<1x64xf32>
    %cst_244 = arith.constant 1.000000e+00 : f32
    %cst_245 = arith.constant 0.000000e+00 : f32
    %697 = vector.broadcast %cst_244 : f32 to vector<1x64xf32>
    %698 = vector.broadcast %cst_245 : f32 to vector<1x64xf32>
    %699 = arith.select %696, %697, %698 : vector<1x64xi1>, vector<1x64xf32>
    %cst_246 = arith.constant 1.55760157 : f32
    %700 = vector.broadcast %cst_246 : f32 to vector<1x64xf32>
    %701 = arith.mulf %700, %687 : vector<1x64xf32>
    %cst_247 = arith.constant 0.606530666 : f32
    %702 = vector.broadcast %cst_247 : f32 to vector<1x64xf32>
    %703 = arith.mulf %702, %667 : vector<1x64xf32>
    %704 = arith.subf %701, %703 : vector<1x64xf32>
    %cst_248 = arith.constant -2.117000e+00 : f32
    %705 = vector.broadcast %cst_248 : f32 to vector<1x64xf32>
    %706 = arith.mulf %705, %699 : vector<1x64xf32>
    %707 = arith.addf %704, %706 : vector<1x64xf32>
    %c2_i32_249 = arith.constant 2 : i32
    %708 = vector.broadcast %c2_i32_249 : i32 to vector<8x64xi32>
    %709 = arith.cmpi eq, %7, %708 : vector<8x64xi32>
    %710 = vector.shape_cast %699 : vector<1x64xf32> to vector<1x64xf32>
    %711 = vector.broadcast %710 : vector<1x64xf32> to vector<8x64xf32>
    %712 = arith.select %709, %711, %692 : vector<8x64xi1>, vector<8x64xf32>
    %713 = vector.extract_strided_slice %4 {offsets = [35, 0], sizes = [1, 64], strides = [1, 1]} : vector<64x64xf32> to vector<1x64xf32>
    %714 = arith.addf %713, %707 : vector<1x64xf32>
    %cst_250 = arith.constant 2.000000e+00 : f32
    %715 = vector.broadcast %cst_250 : f32 to vector<1x64xf32>
    %716 = arith.cmpf oge, %714, %715 : vector<1x64xf32>
    %cst_251 = arith.constant 1.000000e+00 : f32
    %cst_252 = arith.constant 0.000000e+00 : f32
    %717 = vector.broadcast %cst_251 : f32 to vector<1x64xf32>
    %718 = vector.broadcast %cst_252 : f32 to vector<1x64xf32>
    %719 = arith.select %716, %717, %718 : vector<1x64xi1>, vector<1x64xf32>
    %cst_253 = arith.constant 1.55760157 : f32
    %720 = vector.broadcast %cst_253 : f32 to vector<1x64xf32>
    %721 = arith.mulf %720, %707 : vector<1x64xf32>
    %cst_254 = arith.constant 0.606530666 : f32
    %722 = vector.broadcast %cst_254 : f32 to vector<1x64xf32>
    %723 = arith.mulf %722, %687 : vector<1x64xf32>
    %724 = arith.subf %721, %723 : vector<1x64xf32>
    %cst_255 = arith.constant -2.117000e+00 : f32
    %725 = vector.broadcast %cst_255 : f32 to vector<1x64xf32>
    %726 = arith.mulf %725, %719 : vector<1x64xf32>
    %727 = arith.addf %724, %726 : vector<1x64xf32>
    %c3_i32_256 = arith.constant 3 : i32
    %728 = vector.broadcast %c3_i32_256 : i32 to vector<8x64xi32>
    %729 = arith.cmpi eq, %7, %728 : vector<8x64xi32>
    %730 = vector.shape_cast %719 : vector<1x64xf32> to vector<1x64xf32>
    %731 = vector.broadcast %730 : vector<1x64xf32> to vector<8x64xf32>
    %732 = arith.select %729, %731, %712 : vector<8x64xi1>, vector<8x64xf32>
    %733 = vector.extract_strided_slice %4 {offsets = [36, 0], sizes = [1, 64], strides = [1, 1]} : vector<64x64xf32> to vector<1x64xf32>
    %734 = arith.addf %733, %727 : vector<1x64xf32>
    %cst_257 = arith.constant 2.000000e+00 : f32
    %735 = vector.broadcast %cst_257 : f32 to vector<1x64xf32>
    %736 = arith.cmpf oge, %734, %735 : vector<1x64xf32>
    %cst_258 = arith.constant 1.000000e+00 : f32
    %cst_259 = arith.constant 0.000000e+00 : f32
    %737 = vector.broadcast %cst_258 : f32 to vector<1x64xf32>
    %738 = vector.broadcast %cst_259 : f32 to vector<1x64xf32>
    %739 = arith.select %736, %737, %738 : vector<1x64xi1>, vector<1x64xf32>
    %cst_260 = arith.constant 1.55760157 : f32
    %740 = vector.broadcast %cst_260 : f32 to vector<1x64xf32>
    %741 = arith.mulf %740, %727 : vector<1x64xf32>
    %cst_261 = arith.constant 0.606530666 : f32
    %742 = vector.broadcast %cst_261 : f32 to vector<1x64xf32>
    %743 = arith.mulf %742, %707 : vector<1x64xf32>
    %744 = arith.subf %741, %743 : vector<1x64xf32>
    %cst_262 = arith.constant -2.117000e+00 : f32
    %745 = vector.broadcast %cst_262 : f32 to vector<1x64xf32>
    %746 = arith.mulf %745, %739 : vector<1x64xf32>
    %747 = arith.addf %744, %746 : vector<1x64xf32>
    %c4_i32_263 = arith.constant 4 : i32
    %748 = vector.broadcast %c4_i32_263 : i32 to vector<8x64xi32>
    %749 = arith.cmpi eq, %7, %748 : vector<8x64xi32>
    %750 = vector.shape_cast %739 : vector<1x64xf32> to vector<1x64xf32>
    %751 = vector.broadcast %750 : vector<1x64xf32> to vector<8x64xf32>
    %752 = arith.select %749, %751, %732 : vector<8x64xi1>, vector<8x64xf32>
    %753 = vector.extract_strided_slice %4 {offsets = [37, 0], sizes = [1, 64], strides = [1, 1]} : vector<64x64xf32> to vector<1x64xf32>
    %754 = arith.addf %753, %747 : vector<1x64xf32>
    %cst_264 = arith.constant 2.000000e+00 : f32
    %755 = vector.broadcast %cst_264 : f32 to vector<1x64xf32>
    %756 = arith.cmpf oge, %754, %755 : vector<1x64xf32>
    %cst_265 = arith.constant 1.000000e+00 : f32
    %cst_266 = arith.constant 0.000000e+00 : f32
    %757 = vector.broadcast %cst_265 : f32 to vector<1x64xf32>
    %758 = vector.broadcast %cst_266 : f32 to vector<1x64xf32>
    %759 = arith.select %756, %757, %758 : vector<1x64xi1>, vector<1x64xf32>
    %cst_267 = arith.constant 1.55760157 : f32
    %760 = vector.broadcast %cst_267 : f32 to vector<1x64xf32>
    %761 = arith.mulf %760, %747 : vector<1x64xf32>
    %cst_268 = arith.constant 0.606530666 : f32
    %762 = vector.broadcast %cst_268 : f32 to vector<1x64xf32>
    %763 = arith.mulf %762, %727 : vector<1x64xf32>
    %764 = arith.subf %761, %763 : vector<1x64xf32>
    %cst_269 = arith.constant -2.117000e+00 : f32
    %765 = vector.broadcast %cst_269 : f32 to vector<1x64xf32>
    %766 = arith.mulf %765, %759 : vector<1x64xf32>
    %767 = arith.addf %764, %766 : vector<1x64xf32>
    %c5_i32_270 = arith.constant 5 : i32
    %768 = vector.broadcast %c5_i32_270 : i32 to vector<8x64xi32>
    %769 = arith.cmpi eq, %7, %768 : vector<8x64xi32>
    %770 = vector.shape_cast %759 : vector<1x64xf32> to vector<1x64xf32>
    %771 = vector.broadcast %770 : vector<1x64xf32> to vector<8x64xf32>
    %772 = arith.select %769, %771, %752 : vector<8x64xi1>, vector<8x64xf32>
    %773 = vector.extract_strided_slice %4 {offsets = [38, 0], sizes = [1, 64], strides = [1, 1]} : vector<64x64xf32> to vector<1x64xf32>
    %774 = arith.addf %773, %767 : vector<1x64xf32>
    %cst_271 = arith.constant 2.000000e+00 : f32
    %775 = vector.broadcast %cst_271 : f32 to vector<1x64xf32>
    %776 = arith.cmpf oge, %774, %775 : vector<1x64xf32>
    %cst_272 = arith.constant 1.000000e+00 : f32
    %cst_273 = arith.constant 0.000000e+00 : f32
    %777 = vector.broadcast %cst_272 : f32 to vector<1x64xf32>
    %778 = vector.broadcast %cst_273 : f32 to vector<1x64xf32>
    %779 = arith.select %776, %777, %778 : vector<1x64xi1>, vector<1x64xf32>
    %cst_274 = arith.constant 1.55760157 : f32
    %780 = vector.broadcast %cst_274 : f32 to vector<1x64xf32>
    %781 = arith.mulf %780, %767 : vector<1x64xf32>
    %cst_275 = arith.constant 0.606530666 : f32
    %782 = vector.broadcast %cst_275 : f32 to vector<1x64xf32>
    %783 = arith.mulf %782, %747 : vector<1x64xf32>
    %784 = arith.subf %781, %783 : vector<1x64xf32>
    %cst_276 = arith.constant -2.117000e+00 : f32
    %785 = vector.broadcast %cst_276 : f32 to vector<1x64xf32>
    %786 = arith.mulf %785, %779 : vector<1x64xf32>
    %787 = arith.addf %784, %786 : vector<1x64xf32>
    %c6_i32_277 = arith.constant 6 : i32
    %788 = vector.broadcast %c6_i32_277 : i32 to vector<8x64xi32>
    %789 = arith.cmpi eq, %7, %788 : vector<8x64xi32>
    %790 = vector.shape_cast %779 : vector<1x64xf32> to vector<1x64xf32>
    %791 = vector.broadcast %790 : vector<1x64xf32> to vector<8x64xf32>
    %792 = arith.select %789, %791, %772 : vector<8x64xi1>, vector<8x64xf32>
    %793 = vector.extract_strided_slice %4 {offsets = [39, 0], sizes = [1, 64], strides = [1, 1]} : vector<64x64xf32> to vector<1x64xf32>
    %794 = arith.addf %793, %787 : vector<1x64xf32>
    %cst_278 = arith.constant 2.000000e+00 : f32
    %795 = vector.broadcast %cst_278 : f32 to vector<1x64xf32>
    %796 = arith.cmpf oge, %794, %795 : vector<1x64xf32>
    %cst_279 = arith.constant 1.000000e+00 : f32
    %cst_280 = arith.constant 0.000000e+00 : f32
    %797 = vector.broadcast %cst_279 : f32 to vector<1x64xf32>
    %798 = vector.broadcast %cst_280 : f32 to vector<1x64xf32>
    %799 = arith.select %796, %797, %798 : vector<1x64xi1>, vector<1x64xf32>
    %cst_281 = arith.constant 1.55760157 : f32
    %800 = vector.broadcast %cst_281 : f32 to vector<1x64xf32>
    %801 = arith.mulf %800, %787 : vector<1x64xf32>
    %cst_282 = arith.constant 0.606530666 : f32
    %802 = vector.broadcast %cst_282 : f32 to vector<1x64xf32>
    %803 = arith.mulf %802, %767 : vector<1x64xf32>
    %804 = arith.subf %801, %803 : vector<1x64xf32>
    %cst_283 = arith.constant -2.117000e+00 : f32
    %805 = vector.broadcast %cst_283 : f32 to vector<1x64xf32>
    %806 = arith.mulf %805, %799 : vector<1x64xf32>
    %807 = arith.addf %804, %806 : vector<1x64xf32>
    %c7_i32_284 = arith.constant 7 : i32
    %808 = vector.broadcast %c7_i32_284 : i32 to vector<8x64xi32>
    %809 = arith.cmpi eq, %7, %808 : vector<8x64xi32>
    %810 = vector.shape_cast %799 : vector<1x64xf32> to vector<1x64xf32>
    %811 = vector.broadcast %810 : vector<1x64xf32> to vector<8x64xf32>
    %812 = arith.select %809, %811, %792 : vector<8x64xi1>, vector<8x64xf32>
    %cst_285 = arith.constant 0.000000e+00 : f32
    %813 = vector.broadcast %cst_285 : f32 to vector<8x64xf32>
    %814 = vector.extract_strided_slice %4 {offsets = [40, 0], sizes = [1, 64], strides = [1, 1]} : vector<64x64xf32> to vector<1x64xf32>
    %815 = arith.addf %814, %807 : vector<1x64xf32>
    %cst_286 = arith.constant 2.000000e+00 : f32
    %816 = vector.broadcast %cst_286 : f32 to vector<1x64xf32>
    %817 = arith.cmpf oge, %815, %816 : vector<1x64xf32>
    %cst_287 = arith.constant 1.000000e+00 : f32
    %cst_288 = arith.constant 0.000000e+00 : f32
    %818 = vector.broadcast %cst_287 : f32 to vector<1x64xf32>
    %819 = vector.broadcast %cst_288 : f32 to vector<1x64xf32>
    %820 = arith.select %817, %818, %819 : vector<1x64xi1>, vector<1x64xf32>
    %cst_289 = arith.constant 1.55760157 : f32
    %821 = vector.broadcast %cst_289 : f32 to vector<1x64xf32>
    %822 = arith.mulf %821, %807 : vector<1x64xf32>
    %cst_290 = arith.constant 0.606530666 : f32
    %823 = vector.broadcast %cst_290 : f32 to vector<1x64xf32>
    %824 = arith.mulf %823, %787 : vector<1x64xf32>
    %825 = arith.subf %822, %824 : vector<1x64xf32>
    %cst_291 = arith.constant -2.117000e+00 : f32
    %826 = vector.broadcast %cst_291 : f32 to vector<1x64xf32>
    %827 = arith.mulf %826, %820 : vector<1x64xf32>
    %828 = arith.addf %825, %827 : vector<1x64xf32>
    %c0_i32_292 = arith.constant 0 : i32
    %829 = vector.broadcast %c0_i32_292 : i32 to vector<8x64xi32>
    %830 = arith.cmpi eq, %7, %829 : vector<8x64xi32>
    %831 = vector.shape_cast %820 : vector<1x64xf32> to vector<1x64xf32>
    %832 = vector.broadcast %831 : vector<1x64xf32> to vector<8x64xf32>
    %833 = arith.select %830, %832, %813 : vector<8x64xi1>, vector<8x64xf32>
    %834 = vector.extract_strided_slice %4 {offsets = [41, 0], sizes = [1, 64], strides = [1, 1]} : vector<64x64xf32> to vector<1x64xf32>
    %835 = arith.addf %834, %828 : vector<1x64xf32>
    %cst_293 = arith.constant 2.000000e+00 : f32
    %836 = vector.broadcast %cst_293 : f32 to vector<1x64xf32>
    %837 = arith.cmpf oge, %835, %836 : vector<1x64xf32>
    %cst_294 = arith.constant 1.000000e+00 : f32
    %cst_295 = arith.constant 0.000000e+00 : f32
    %838 = vector.broadcast %cst_294 : f32 to vector<1x64xf32>
    %839 = vector.broadcast %cst_295 : f32 to vector<1x64xf32>
    %840 = arith.select %837, %838, %839 : vector<1x64xi1>, vector<1x64xf32>
    %cst_296 = arith.constant 1.55760157 : f32
    %841 = vector.broadcast %cst_296 : f32 to vector<1x64xf32>
    %842 = arith.mulf %841, %828 : vector<1x64xf32>
    %cst_297 = arith.constant 0.606530666 : f32
    %843 = vector.broadcast %cst_297 : f32 to vector<1x64xf32>
    %844 = arith.mulf %843, %807 : vector<1x64xf32>
    %845 = arith.subf %842, %844 : vector<1x64xf32>
    %cst_298 = arith.constant -2.117000e+00 : f32
    %846 = vector.broadcast %cst_298 : f32 to vector<1x64xf32>
    %847 = arith.mulf %846, %840 : vector<1x64xf32>
    %848 = arith.addf %845, %847 : vector<1x64xf32>
    %c1_i32_299 = arith.constant 1 : i32
    %849 = vector.broadcast %c1_i32_299 : i32 to vector<8x64xi32>
    %850 = arith.cmpi eq, %7, %849 : vector<8x64xi32>
    %851 = vector.shape_cast %840 : vector<1x64xf32> to vector<1x64xf32>
    %852 = vector.broadcast %851 : vector<1x64xf32> to vector<8x64xf32>
    %853 = arith.select %850, %852, %833 : vector<8x64xi1>, vector<8x64xf32>
    %854 = vector.extract_strided_slice %4 {offsets = [42, 0], sizes = [1, 64], strides = [1, 1]} : vector<64x64xf32> to vector<1x64xf32>
    %855 = arith.addf %854, %848 : vector<1x64xf32>
    %cst_300 = arith.constant 2.000000e+00 : f32
    %856 = vector.broadcast %cst_300 : f32 to vector<1x64xf32>
    %857 = arith.cmpf oge, %855, %856 : vector<1x64xf32>
    %cst_301 = arith.constant 1.000000e+00 : f32
    %cst_302 = arith.constant 0.000000e+00 : f32
    %858 = vector.broadcast %cst_301 : f32 to vector<1x64xf32>
    %859 = vector.broadcast %cst_302 : f32 to vector<1x64xf32>
    %860 = arith.select %857, %858, %859 : vector<1x64xi1>, vector<1x64xf32>
    %cst_303 = arith.constant 1.55760157 : f32
    %861 = vector.broadcast %cst_303 : f32 to vector<1x64xf32>
    %862 = arith.mulf %861, %848 : vector<1x64xf32>
    %cst_304 = arith.constant 0.606530666 : f32
    %863 = vector.broadcast %cst_304 : f32 to vector<1x64xf32>
    %864 = arith.mulf %863, %828 : vector<1x64xf32>
    %865 = arith.subf %862, %864 : vector<1x64xf32>
    %cst_305 = arith.constant -2.117000e+00 : f32
    %866 = vector.broadcast %cst_305 : f32 to vector<1x64xf32>
    %867 = arith.mulf %866, %860 : vector<1x64xf32>
    %868 = arith.addf %865, %867 : vector<1x64xf32>
    %c2_i32_306 = arith.constant 2 : i32
    %869 = vector.broadcast %c2_i32_306 : i32 to vector<8x64xi32>
    %870 = arith.cmpi eq, %7, %869 : vector<8x64xi32>
    %871 = vector.shape_cast %860 : vector<1x64xf32> to vector<1x64xf32>
    %872 = vector.broadcast %871 : vector<1x64xf32> to vector<8x64xf32>
    %873 = arith.select %870, %872, %853 : vector<8x64xi1>, vector<8x64xf32>
    %874 = vector.extract_strided_slice %4 {offsets = [43, 0], sizes = [1, 64], strides = [1, 1]} : vector<64x64xf32> to vector<1x64xf32>
    %875 = arith.addf %874, %868 : vector<1x64xf32>
    %cst_307 = arith.constant 2.000000e+00 : f32
    %876 = vector.broadcast %cst_307 : f32 to vector<1x64xf32>
    %877 = arith.cmpf oge, %875, %876 : vector<1x64xf32>
    %cst_308 = arith.constant 1.000000e+00 : f32
    %cst_309 = arith.constant 0.000000e+00 : f32
    %878 = vector.broadcast %cst_308 : f32 to vector<1x64xf32>
    %879 = vector.broadcast %cst_309 : f32 to vector<1x64xf32>
    %880 = arith.select %877, %878, %879 : vector<1x64xi1>, vector<1x64xf32>
    %cst_310 = arith.constant 1.55760157 : f32
    %881 = vector.broadcast %cst_310 : f32 to vector<1x64xf32>
    %882 = arith.mulf %881, %868 : vector<1x64xf32>
    %cst_311 = arith.constant 0.606530666 : f32
    %883 = vector.broadcast %cst_311 : f32 to vector<1x64xf32>
    %884 = arith.mulf %883, %848 : vector<1x64xf32>
    %885 = arith.subf %882, %884 : vector<1x64xf32>
    %cst_312 = arith.constant -2.117000e+00 : f32
    %886 = vector.broadcast %cst_312 : f32 to vector<1x64xf32>
    %887 = arith.mulf %886, %880 : vector<1x64xf32>
    %888 = arith.addf %885, %887 : vector<1x64xf32>
    %c3_i32_313 = arith.constant 3 : i32
    %889 = vector.broadcast %c3_i32_313 : i32 to vector<8x64xi32>
    %890 = arith.cmpi eq, %7, %889 : vector<8x64xi32>
    %891 = vector.shape_cast %880 : vector<1x64xf32> to vector<1x64xf32>
    %892 = vector.broadcast %891 : vector<1x64xf32> to vector<8x64xf32>
    %893 = arith.select %890, %892, %873 : vector<8x64xi1>, vector<8x64xf32>
    %894 = vector.extract_strided_slice %4 {offsets = [44, 0], sizes = [1, 64], strides = [1, 1]} : vector<64x64xf32> to vector<1x64xf32>
    %895 = arith.addf %894, %888 : vector<1x64xf32>
    %cst_314 = arith.constant 2.000000e+00 : f32
    %896 = vector.broadcast %cst_314 : f32 to vector<1x64xf32>
    %897 = arith.cmpf oge, %895, %896 : vector<1x64xf32>
    %cst_315 = arith.constant 1.000000e+00 : f32
    %cst_316 = arith.constant 0.000000e+00 : f32
    %898 = vector.broadcast %cst_315 : f32 to vector<1x64xf32>
    %899 = vector.broadcast %cst_316 : f32 to vector<1x64xf32>
    %900 = arith.select %897, %898, %899 : vector<1x64xi1>, vector<1x64xf32>
    %cst_317 = arith.constant 1.55760157 : f32
    %901 = vector.broadcast %cst_317 : f32 to vector<1x64xf32>
    %902 = arith.mulf %901, %888 : vector<1x64xf32>
    %cst_318 = arith.constant 0.606530666 : f32
    %903 = vector.broadcast %cst_318 : f32 to vector<1x64xf32>
    %904 = arith.mulf %903, %868 : vector<1x64xf32>
    %905 = arith.subf %902, %904 : vector<1x64xf32>
    %cst_319 = arith.constant -2.117000e+00 : f32
    %906 = vector.broadcast %cst_319 : f32 to vector<1x64xf32>
    %907 = arith.mulf %906, %900 : vector<1x64xf32>
    %908 = arith.addf %905, %907 : vector<1x64xf32>
    %c4_i32_320 = arith.constant 4 : i32
    %909 = vector.broadcast %c4_i32_320 : i32 to vector<8x64xi32>
    %910 = arith.cmpi eq, %7, %909 : vector<8x64xi32>
    %911 = vector.shape_cast %900 : vector<1x64xf32> to vector<1x64xf32>
    %912 = vector.broadcast %911 : vector<1x64xf32> to vector<8x64xf32>
    %913 = arith.select %910, %912, %893 : vector<8x64xi1>, vector<8x64xf32>
    %914 = vector.extract_strided_slice %4 {offsets = [45, 0], sizes = [1, 64], strides = [1, 1]} : vector<64x64xf32> to vector<1x64xf32>
    %915 = arith.addf %914, %908 : vector<1x64xf32>
    %cst_321 = arith.constant 2.000000e+00 : f32
    %916 = vector.broadcast %cst_321 : f32 to vector<1x64xf32>
    %917 = arith.cmpf oge, %915, %916 : vector<1x64xf32>
    %cst_322 = arith.constant 1.000000e+00 : f32
    %cst_323 = arith.constant 0.000000e+00 : f32
    %918 = vector.broadcast %cst_322 : f32 to vector<1x64xf32>
    %919 = vector.broadcast %cst_323 : f32 to vector<1x64xf32>
    %920 = arith.select %917, %918, %919 : vector<1x64xi1>, vector<1x64xf32>
    %cst_324 = arith.constant 1.55760157 : f32
    %921 = vector.broadcast %cst_324 : f32 to vector<1x64xf32>
    %922 = arith.mulf %921, %908 : vector<1x64xf32>
    %cst_325 = arith.constant 0.606530666 : f32
    %923 = vector.broadcast %cst_325 : f32 to vector<1x64xf32>
    %924 = arith.mulf %923, %888 : vector<1x64xf32>
    %925 = arith.subf %922, %924 : vector<1x64xf32>
    %cst_326 = arith.constant -2.117000e+00 : f32
    %926 = vector.broadcast %cst_326 : f32 to vector<1x64xf32>
    %927 = arith.mulf %926, %920 : vector<1x64xf32>
    %928 = arith.addf %925, %927 : vector<1x64xf32>
    %c5_i32_327 = arith.constant 5 : i32
    %929 = vector.broadcast %c5_i32_327 : i32 to vector<8x64xi32>
    %930 = arith.cmpi eq, %7, %929 : vector<8x64xi32>
    %931 = vector.shape_cast %920 : vector<1x64xf32> to vector<1x64xf32>
    %932 = vector.broadcast %931 : vector<1x64xf32> to vector<8x64xf32>
    %933 = arith.select %930, %932, %913 : vector<8x64xi1>, vector<8x64xf32>
    %934 = vector.extract_strided_slice %4 {offsets = [46, 0], sizes = [1, 64], strides = [1, 1]} : vector<64x64xf32> to vector<1x64xf32>
    %935 = arith.addf %934, %928 : vector<1x64xf32>
    %cst_328 = arith.constant 2.000000e+00 : f32
    %936 = vector.broadcast %cst_328 : f32 to vector<1x64xf32>
    %937 = arith.cmpf oge, %935, %936 : vector<1x64xf32>
    %cst_329 = arith.constant 1.000000e+00 : f32
    %cst_330 = arith.constant 0.000000e+00 : f32
    %938 = vector.broadcast %cst_329 : f32 to vector<1x64xf32>
    %939 = vector.broadcast %cst_330 : f32 to vector<1x64xf32>
    %940 = arith.select %937, %938, %939 : vector<1x64xi1>, vector<1x64xf32>
    %cst_331 = arith.constant 1.55760157 : f32
    %941 = vector.broadcast %cst_331 : f32 to vector<1x64xf32>
    %942 = arith.mulf %941, %928 : vector<1x64xf32>
    %cst_332 = arith.constant 0.606530666 : f32
    %943 = vector.broadcast %cst_332 : f32 to vector<1x64xf32>
    %944 = arith.mulf %943, %908 : vector<1x64xf32>
    %945 = arith.subf %942, %944 : vector<1x64xf32>
    %cst_333 = arith.constant -2.117000e+00 : f32
    %946 = vector.broadcast %cst_333 : f32 to vector<1x64xf32>
    %947 = arith.mulf %946, %940 : vector<1x64xf32>
    %948 = arith.addf %945, %947 : vector<1x64xf32>
    %c6_i32_334 = arith.constant 6 : i32
    %949 = vector.broadcast %c6_i32_334 : i32 to vector<8x64xi32>
    %950 = arith.cmpi eq, %7, %949 : vector<8x64xi32>
    %951 = vector.shape_cast %940 : vector<1x64xf32> to vector<1x64xf32>
    %952 = vector.broadcast %951 : vector<1x64xf32> to vector<8x64xf32>
    %953 = arith.select %950, %952, %933 : vector<8x64xi1>, vector<8x64xf32>
    %954 = vector.extract_strided_slice %4 {offsets = [47, 0], sizes = [1, 64], strides = [1, 1]} : vector<64x64xf32> to vector<1x64xf32>
    %955 = arith.addf %954, %948 : vector<1x64xf32>
    %cst_335 = arith.constant 2.000000e+00 : f32
    %956 = vector.broadcast %cst_335 : f32 to vector<1x64xf32>
    %957 = arith.cmpf oge, %955, %956 : vector<1x64xf32>
    %cst_336 = arith.constant 1.000000e+00 : f32
    %cst_337 = arith.constant 0.000000e+00 : f32
    %958 = vector.broadcast %cst_336 : f32 to vector<1x64xf32>
    %959 = vector.broadcast %cst_337 : f32 to vector<1x64xf32>
    %960 = arith.select %957, %958, %959 : vector<1x64xi1>, vector<1x64xf32>
    %cst_338 = arith.constant 1.55760157 : f32
    %961 = vector.broadcast %cst_338 : f32 to vector<1x64xf32>
    %962 = arith.mulf %961, %948 : vector<1x64xf32>
    %cst_339 = arith.constant 0.606530666 : f32
    %963 = vector.broadcast %cst_339 : f32 to vector<1x64xf32>
    %964 = arith.mulf %963, %928 : vector<1x64xf32>
    %965 = arith.subf %962, %964 : vector<1x64xf32>
    %cst_340 = arith.constant -2.117000e+00 : f32
    %966 = vector.broadcast %cst_340 : f32 to vector<1x64xf32>
    %967 = arith.mulf %966, %960 : vector<1x64xf32>
    %968 = arith.addf %965, %967 : vector<1x64xf32>
    %c7_i32_341 = arith.constant 7 : i32
    %969 = vector.broadcast %c7_i32_341 : i32 to vector<8x64xi32>
    %970 = arith.cmpi eq, %7, %969 : vector<8x64xi32>
    %971 = vector.shape_cast %960 : vector<1x64xf32> to vector<1x64xf32>
    %972 = vector.broadcast %971 : vector<1x64xf32> to vector<8x64xf32>
    %973 = arith.select %970, %972, %953 : vector<8x64xi1>, vector<8x64xf32>
    %cst_342 = arith.constant 0.000000e+00 : f32
    %974 = vector.broadcast %cst_342 : f32 to vector<8x64xf32>
    %975 = vector.extract_strided_slice %4 {offsets = [48, 0], sizes = [1, 64], strides = [1, 1]} : vector<64x64xf32> to vector<1x64xf32>
    %976 = arith.addf %975, %968 : vector<1x64xf32>
    %cst_343 = arith.constant 2.000000e+00 : f32
    %977 = vector.broadcast %cst_343 : f32 to vector<1x64xf32>
    %978 = arith.cmpf oge, %976, %977 : vector<1x64xf32>
    %cst_344 = arith.constant 1.000000e+00 : f32
    %cst_345 = arith.constant 0.000000e+00 : f32
    %979 = vector.broadcast %cst_344 : f32 to vector<1x64xf32>
    %980 = vector.broadcast %cst_345 : f32 to vector<1x64xf32>
    %981 = arith.select %978, %979, %980 : vector<1x64xi1>, vector<1x64xf32>
    %cst_346 = arith.constant 1.55760157 : f32
    %982 = vector.broadcast %cst_346 : f32 to vector<1x64xf32>
    %983 = arith.mulf %982, %968 : vector<1x64xf32>
    %cst_347 = arith.constant 0.606530666 : f32
    %984 = vector.broadcast %cst_347 : f32 to vector<1x64xf32>
    %985 = arith.mulf %984, %948 : vector<1x64xf32>
    %986 = arith.subf %983, %985 : vector<1x64xf32>
    %cst_348 = arith.constant -2.117000e+00 : f32
    %987 = vector.broadcast %cst_348 : f32 to vector<1x64xf32>
    %988 = arith.mulf %987, %981 : vector<1x64xf32>
    %989 = arith.addf %986, %988 : vector<1x64xf32>
    %c0_i32_349 = arith.constant 0 : i32
    %990 = vector.broadcast %c0_i32_349 : i32 to vector<8x64xi32>
    %991 = arith.cmpi eq, %7, %990 : vector<8x64xi32>
    %992 = vector.shape_cast %981 : vector<1x64xf32> to vector<1x64xf32>
    %993 = vector.broadcast %992 : vector<1x64xf32> to vector<8x64xf32>
    %994 = arith.select %991, %993, %974 : vector<8x64xi1>, vector<8x64xf32>
    %995 = vector.extract_strided_slice %4 {offsets = [49, 0], sizes = [1, 64], strides = [1, 1]} : vector<64x64xf32> to vector<1x64xf32>
    %996 = arith.addf %995, %989 : vector<1x64xf32>
    %cst_350 = arith.constant 2.000000e+00 : f32
    %997 = vector.broadcast %cst_350 : f32 to vector<1x64xf32>
    %998 = arith.cmpf oge, %996, %997 : vector<1x64xf32>
    %cst_351 = arith.constant 1.000000e+00 : f32
    %cst_352 = arith.constant 0.000000e+00 : f32
    %999 = vector.broadcast %cst_351 : f32 to vector<1x64xf32>
    %1000 = vector.broadcast %cst_352 : f32 to vector<1x64xf32>
    %1001 = arith.select %998, %999, %1000 : vector<1x64xi1>, vector<1x64xf32>
    %cst_353 = arith.constant 1.55760157 : f32
    %1002 = vector.broadcast %cst_353 : f32 to vector<1x64xf32>
    %1003 = arith.mulf %1002, %989 : vector<1x64xf32>
    %cst_354 = arith.constant 0.606530666 : f32
    %1004 = vector.broadcast %cst_354 : f32 to vector<1x64xf32>
    %1005 = arith.mulf %1004, %968 : vector<1x64xf32>
    %1006 = arith.subf %1003, %1005 : vector<1x64xf32>
    %cst_355 = arith.constant -2.117000e+00 : f32
    %1007 = vector.broadcast %cst_355 : f32 to vector<1x64xf32>
    %1008 = arith.mulf %1007, %1001 : vector<1x64xf32>
    %1009 = arith.addf %1006, %1008 : vector<1x64xf32>
    %c1_i32_356 = arith.constant 1 : i32
    %1010 = vector.broadcast %c1_i32_356 : i32 to vector<8x64xi32>
    %1011 = arith.cmpi eq, %7, %1010 : vector<8x64xi32>
    %1012 = vector.shape_cast %1001 : vector<1x64xf32> to vector<1x64xf32>
    %1013 = vector.broadcast %1012 : vector<1x64xf32> to vector<8x64xf32>
    %1014 = arith.select %1011, %1013, %994 : vector<8x64xi1>, vector<8x64xf32>
    %1015 = vector.extract_strided_slice %4 {offsets = [50, 0], sizes = [1, 64], strides = [1, 1]} : vector<64x64xf32> to vector<1x64xf32>
    %1016 = arith.addf %1015, %1009 : vector<1x64xf32>
    %cst_357 = arith.constant 2.000000e+00 : f32
    %1017 = vector.broadcast %cst_357 : f32 to vector<1x64xf32>
    %1018 = arith.cmpf oge, %1016, %1017 : vector<1x64xf32>
    %cst_358 = arith.constant 1.000000e+00 : f32
    %cst_359 = arith.constant 0.000000e+00 : f32
    %1019 = vector.broadcast %cst_358 : f32 to vector<1x64xf32>
    %1020 = vector.broadcast %cst_359 : f32 to vector<1x64xf32>
    %1021 = arith.select %1018, %1019, %1020 : vector<1x64xi1>, vector<1x64xf32>
    %cst_360 = arith.constant 1.55760157 : f32
    %1022 = vector.broadcast %cst_360 : f32 to vector<1x64xf32>
    %1023 = arith.mulf %1022, %1009 : vector<1x64xf32>
    %cst_361 = arith.constant 0.606530666 : f32
    %1024 = vector.broadcast %cst_361 : f32 to vector<1x64xf32>
    %1025 = arith.mulf %1024, %989 : vector<1x64xf32>
    %1026 = arith.subf %1023, %1025 : vector<1x64xf32>
    %cst_362 = arith.constant -2.117000e+00 : f32
    %1027 = vector.broadcast %cst_362 : f32 to vector<1x64xf32>
    %1028 = arith.mulf %1027, %1021 : vector<1x64xf32>
    %1029 = arith.addf %1026, %1028 : vector<1x64xf32>
    %c2_i32_363 = arith.constant 2 : i32
    %1030 = vector.broadcast %c2_i32_363 : i32 to vector<8x64xi32>
    %1031 = arith.cmpi eq, %7, %1030 : vector<8x64xi32>
    %1032 = vector.shape_cast %1021 : vector<1x64xf32> to vector<1x64xf32>
    %1033 = vector.broadcast %1032 : vector<1x64xf32> to vector<8x64xf32>
    %1034 = arith.select %1031, %1033, %1014 : vector<8x64xi1>, vector<8x64xf32>
    %1035 = vector.extract_strided_slice %4 {offsets = [51, 0], sizes = [1, 64], strides = [1, 1]} : vector<64x64xf32> to vector<1x64xf32>
    %1036 = arith.addf %1035, %1029 : vector<1x64xf32>
    %cst_364 = arith.constant 2.000000e+00 : f32
    %1037 = vector.broadcast %cst_364 : f32 to vector<1x64xf32>
    %1038 = arith.cmpf oge, %1036, %1037 : vector<1x64xf32>
    %cst_365 = arith.constant 1.000000e+00 : f32
    %cst_366 = arith.constant 0.000000e+00 : f32
    %1039 = vector.broadcast %cst_365 : f32 to vector<1x64xf32>
    %1040 = vector.broadcast %cst_366 : f32 to vector<1x64xf32>
    %1041 = arith.select %1038, %1039, %1040 : vector<1x64xi1>, vector<1x64xf32>
    %cst_367 = arith.constant 1.55760157 : f32
    %1042 = vector.broadcast %cst_367 : f32 to vector<1x64xf32>
    %1043 = arith.mulf %1042, %1029 : vector<1x64xf32>
    %cst_368 = arith.constant 0.606530666 : f32
    %1044 = vector.broadcast %cst_368 : f32 to vector<1x64xf32>
    %1045 = arith.mulf %1044, %1009 : vector<1x64xf32>
    %1046 = arith.subf %1043, %1045 : vector<1x64xf32>
    %cst_369 = arith.constant -2.117000e+00 : f32
    %1047 = vector.broadcast %cst_369 : f32 to vector<1x64xf32>
    %1048 = arith.mulf %1047, %1041 : vector<1x64xf32>
    %1049 = arith.addf %1046, %1048 : vector<1x64xf32>
    %c3_i32_370 = arith.constant 3 : i32
    %1050 = vector.broadcast %c3_i32_370 : i32 to vector<8x64xi32>
    %1051 = arith.cmpi eq, %7, %1050 : vector<8x64xi32>
    %1052 = vector.shape_cast %1041 : vector<1x64xf32> to vector<1x64xf32>
    %1053 = vector.broadcast %1052 : vector<1x64xf32> to vector<8x64xf32>
    %1054 = arith.select %1051, %1053, %1034 : vector<8x64xi1>, vector<8x64xf32>
    %1055 = vector.extract_strided_slice %4 {offsets = [52, 0], sizes = [1, 64], strides = [1, 1]} : vector<64x64xf32> to vector<1x64xf32>
    %1056 = arith.addf %1055, %1049 : vector<1x64xf32>
    %cst_371 = arith.constant 2.000000e+00 : f32
    %1057 = vector.broadcast %cst_371 : f32 to vector<1x64xf32>
    %1058 = arith.cmpf oge, %1056, %1057 : vector<1x64xf32>
    %cst_372 = arith.constant 1.000000e+00 : f32
    %cst_373 = arith.constant 0.000000e+00 : f32
    %1059 = vector.broadcast %cst_372 : f32 to vector<1x64xf32>
    %1060 = vector.broadcast %cst_373 : f32 to vector<1x64xf32>
    %1061 = arith.select %1058, %1059, %1060 : vector<1x64xi1>, vector<1x64xf32>
    %cst_374 = arith.constant 1.55760157 : f32
    %1062 = vector.broadcast %cst_374 : f32 to vector<1x64xf32>
    %1063 = arith.mulf %1062, %1049 : vector<1x64xf32>
    %cst_375 = arith.constant 0.606530666 : f32
    %1064 = vector.broadcast %cst_375 : f32 to vector<1x64xf32>
    %1065 = arith.mulf %1064, %1029 : vector<1x64xf32>
    %1066 = arith.subf %1063, %1065 : vector<1x64xf32>
    %cst_376 = arith.constant -2.117000e+00 : f32
    %1067 = vector.broadcast %cst_376 : f32 to vector<1x64xf32>
    %1068 = arith.mulf %1067, %1061 : vector<1x64xf32>
    %1069 = arith.addf %1066, %1068 : vector<1x64xf32>
    %c4_i32_377 = arith.constant 4 : i32
    %1070 = vector.broadcast %c4_i32_377 : i32 to vector<8x64xi32>
    %1071 = arith.cmpi eq, %7, %1070 : vector<8x64xi32>
    %1072 = vector.shape_cast %1061 : vector<1x64xf32> to vector<1x64xf32>
    %1073 = vector.broadcast %1072 : vector<1x64xf32> to vector<8x64xf32>
    %1074 = arith.select %1071, %1073, %1054 : vector<8x64xi1>, vector<8x64xf32>
    %1075 = vector.extract_strided_slice %4 {offsets = [53, 0], sizes = [1, 64], strides = [1, 1]} : vector<64x64xf32> to vector<1x64xf32>
    %1076 = arith.addf %1075, %1069 : vector<1x64xf32>
    %cst_378 = arith.constant 2.000000e+00 : f32
    %1077 = vector.broadcast %cst_378 : f32 to vector<1x64xf32>
    %1078 = arith.cmpf oge, %1076, %1077 : vector<1x64xf32>
    %cst_379 = arith.constant 1.000000e+00 : f32
    %cst_380 = arith.constant 0.000000e+00 : f32
    %1079 = vector.broadcast %cst_379 : f32 to vector<1x64xf32>
    %1080 = vector.broadcast %cst_380 : f32 to vector<1x64xf32>
    %1081 = arith.select %1078, %1079, %1080 : vector<1x64xi1>, vector<1x64xf32>
    %cst_381 = arith.constant 1.55760157 : f32
    %1082 = vector.broadcast %cst_381 : f32 to vector<1x64xf32>
    %1083 = arith.mulf %1082, %1069 : vector<1x64xf32>
    %cst_382 = arith.constant 0.606530666 : f32
    %1084 = vector.broadcast %cst_382 : f32 to vector<1x64xf32>
    %1085 = arith.mulf %1084, %1049 : vector<1x64xf32>
    %1086 = arith.subf %1083, %1085 : vector<1x64xf32>
    %cst_383 = arith.constant -2.117000e+00 : f32
    %1087 = vector.broadcast %cst_383 : f32 to vector<1x64xf32>
    %1088 = arith.mulf %1087, %1081 : vector<1x64xf32>
    %1089 = arith.addf %1086, %1088 : vector<1x64xf32>
    %c5_i32_384 = arith.constant 5 : i32
    %1090 = vector.broadcast %c5_i32_384 : i32 to vector<8x64xi32>
    %1091 = arith.cmpi eq, %7, %1090 : vector<8x64xi32>
    %1092 = vector.shape_cast %1081 : vector<1x64xf32> to vector<1x64xf32>
    %1093 = vector.broadcast %1092 : vector<1x64xf32> to vector<8x64xf32>
    %1094 = arith.select %1091, %1093, %1074 : vector<8x64xi1>, vector<8x64xf32>
    %1095 = vector.extract_strided_slice %4 {offsets = [54, 0], sizes = [1, 64], strides = [1, 1]} : vector<64x64xf32> to vector<1x64xf32>
    %1096 = arith.addf %1095, %1089 : vector<1x64xf32>
    %cst_385 = arith.constant 2.000000e+00 : f32
    %1097 = vector.broadcast %cst_385 : f32 to vector<1x64xf32>
    %1098 = arith.cmpf oge, %1096, %1097 : vector<1x64xf32>
    %cst_386 = arith.constant 1.000000e+00 : f32
    %cst_387 = arith.constant 0.000000e+00 : f32
    %1099 = vector.broadcast %cst_386 : f32 to vector<1x64xf32>
    %1100 = vector.broadcast %cst_387 : f32 to vector<1x64xf32>
    %1101 = arith.select %1098, %1099, %1100 : vector<1x64xi1>, vector<1x64xf32>
    %cst_388 = arith.constant 1.55760157 : f32
    %1102 = vector.broadcast %cst_388 : f32 to vector<1x64xf32>
    %1103 = arith.mulf %1102, %1089 : vector<1x64xf32>
    %cst_389 = arith.constant 0.606530666 : f32
    %1104 = vector.broadcast %cst_389 : f32 to vector<1x64xf32>
    %1105 = arith.mulf %1104, %1069 : vector<1x64xf32>
    %1106 = arith.subf %1103, %1105 : vector<1x64xf32>
    %cst_390 = arith.constant -2.117000e+00 : f32
    %1107 = vector.broadcast %cst_390 : f32 to vector<1x64xf32>
    %1108 = arith.mulf %1107, %1101 : vector<1x64xf32>
    %1109 = arith.addf %1106, %1108 : vector<1x64xf32>
    %c6_i32_391 = arith.constant 6 : i32
    %1110 = vector.broadcast %c6_i32_391 : i32 to vector<8x64xi32>
    %1111 = arith.cmpi eq, %7, %1110 : vector<8x64xi32>
    %1112 = vector.shape_cast %1101 : vector<1x64xf32> to vector<1x64xf32>
    %1113 = vector.broadcast %1112 : vector<1x64xf32> to vector<8x64xf32>
    %1114 = arith.select %1111, %1113, %1094 : vector<8x64xi1>, vector<8x64xf32>
    %1115 = vector.extract_strided_slice %4 {offsets = [55, 0], sizes = [1, 64], strides = [1, 1]} : vector<64x64xf32> to vector<1x64xf32>
    %1116 = arith.addf %1115, %1109 : vector<1x64xf32>
    %cst_392 = arith.constant 2.000000e+00 : f32
    %1117 = vector.broadcast %cst_392 : f32 to vector<1x64xf32>
    %1118 = arith.cmpf oge, %1116, %1117 : vector<1x64xf32>
    %cst_393 = arith.constant 1.000000e+00 : f32
    %cst_394 = arith.constant 0.000000e+00 : f32
    %1119 = vector.broadcast %cst_393 : f32 to vector<1x64xf32>
    %1120 = vector.broadcast %cst_394 : f32 to vector<1x64xf32>
    %1121 = arith.select %1118, %1119, %1120 : vector<1x64xi1>, vector<1x64xf32>
    %cst_395 = arith.constant 1.55760157 : f32
    %1122 = vector.broadcast %cst_395 : f32 to vector<1x64xf32>
    %1123 = arith.mulf %1122, %1109 : vector<1x64xf32>
    %cst_396 = arith.constant 0.606530666 : f32
    %1124 = vector.broadcast %cst_396 : f32 to vector<1x64xf32>
    %1125 = arith.mulf %1124, %1089 : vector<1x64xf32>
    %1126 = arith.subf %1123, %1125 : vector<1x64xf32>
    %cst_397 = arith.constant -2.117000e+00 : f32
    %1127 = vector.broadcast %cst_397 : f32 to vector<1x64xf32>
    %1128 = arith.mulf %1127, %1121 : vector<1x64xf32>
    %1129 = arith.addf %1126, %1128 : vector<1x64xf32>
    %c7_i32_398 = arith.constant 7 : i32
    %1130 = vector.broadcast %c7_i32_398 : i32 to vector<8x64xi32>
    %1131 = arith.cmpi eq, %7, %1130 : vector<8x64xi32>
    %1132 = vector.shape_cast %1121 : vector<1x64xf32> to vector<1x64xf32>
    %1133 = vector.broadcast %1132 : vector<1x64xf32> to vector<8x64xf32>
    %1134 = arith.select %1131, %1133, %1114 : vector<8x64xi1>, vector<8x64xf32>
    %cst_399 = arith.constant 0.000000e+00 : f32
    %1135 = vector.broadcast %cst_399 : f32 to vector<8x64xf32>
    %1136 = vector.extract_strided_slice %4 {offsets = [56, 0], sizes = [1, 64], strides = [1, 1]} : vector<64x64xf32> to vector<1x64xf32>
    %1137 = arith.addf %1136, %1129 : vector<1x64xf32>
    %cst_400 = arith.constant 2.000000e+00 : f32
    %1138 = vector.broadcast %cst_400 : f32 to vector<1x64xf32>
    %1139 = arith.cmpf oge, %1137, %1138 : vector<1x64xf32>
    %cst_401 = arith.constant 1.000000e+00 : f32
    %cst_402 = arith.constant 0.000000e+00 : f32
    %1140 = vector.broadcast %cst_401 : f32 to vector<1x64xf32>
    %1141 = vector.broadcast %cst_402 : f32 to vector<1x64xf32>
    %1142 = arith.select %1139, %1140, %1141 : vector<1x64xi1>, vector<1x64xf32>
    %cst_403 = arith.constant 1.55760157 : f32
    %1143 = vector.broadcast %cst_403 : f32 to vector<1x64xf32>
    %1144 = arith.mulf %1143, %1129 : vector<1x64xf32>
    %cst_404 = arith.constant 0.606530666 : f32
    %1145 = vector.broadcast %cst_404 : f32 to vector<1x64xf32>
    %1146 = arith.mulf %1145, %1109 : vector<1x64xf32>
    %1147 = arith.subf %1144, %1146 : vector<1x64xf32>
    %cst_405 = arith.constant -2.117000e+00 : f32
    %1148 = vector.broadcast %cst_405 : f32 to vector<1x64xf32>
    %1149 = arith.mulf %1148, %1142 : vector<1x64xf32>
    %1150 = arith.addf %1147, %1149 : vector<1x64xf32>
    %c0_i32_406 = arith.constant 0 : i32
    %1151 = vector.broadcast %c0_i32_406 : i32 to vector<8x64xi32>
    %1152 = arith.cmpi eq, %7, %1151 : vector<8x64xi32>
    %1153 = vector.shape_cast %1142 : vector<1x64xf32> to vector<1x64xf32>
    %1154 = vector.broadcast %1153 : vector<1x64xf32> to vector<8x64xf32>
    %1155 = arith.select %1152, %1154, %1135 : vector<8x64xi1>, vector<8x64xf32>
    %1156 = vector.extract_strided_slice %4 {offsets = [57, 0], sizes = [1, 64], strides = [1, 1]} : vector<64x64xf32> to vector<1x64xf32>
    %1157 = arith.addf %1156, %1150 : vector<1x64xf32>
    %cst_407 = arith.constant 2.000000e+00 : f32
    %1158 = vector.broadcast %cst_407 : f32 to vector<1x64xf32>
    %1159 = arith.cmpf oge, %1157, %1158 : vector<1x64xf32>
    %cst_408 = arith.constant 1.000000e+00 : f32
    %cst_409 = arith.constant 0.000000e+00 : f32
    %1160 = vector.broadcast %cst_408 : f32 to vector<1x64xf32>
    %1161 = vector.broadcast %cst_409 : f32 to vector<1x64xf32>
    %1162 = arith.select %1159, %1160, %1161 : vector<1x64xi1>, vector<1x64xf32>
    %cst_410 = arith.constant 1.55760157 : f32
    %1163 = vector.broadcast %cst_410 : f32 to vector<1x64xf32>
    %1164 = arith.mulf %1163, %1150 : vector<1x64xf32>
    %cst_411 = arith.constant 0.606530666 : f32
    %1165 = vector.broadcast %cst_411 : f32 to vector<1x64xf32>
    %1166 = arith.mulf %1165, %1129 : vector<1x64xf32>
    %1167 = arith.subf %1164, %1166 : vector<1x64xf32>
    %cst_412 = arith.constant -2.117000e+00 : f32
    %1168 = vector.broadcast %cst_412 : f32 to vector<1x64xf32>
    %1169 = arith.mulf %1168, %1162 : vector<1x64xf32>
    %1170 = arith.addf %1167, %1169 : vector<1x64xf32>
    %c1_i32_413 = arith.constant 1 : i32
    %1171 = vector.broadcast %c1_i32_413 : i32 to vector<8x64xi32>
    %1172 = arith.cmpi eq, %7, %1171 : vector<8x64xi32>
    %1173 = vector.shape_cast %1162 : vector<1x64xf32> to vector<1x64xf32>
    %1174 = vector.broadcast %1173 : vector<1x64xf32> to vector<8x64xf32>
    %1175 = arith.select %1172, %1174, %1155 : vector<8x64xi1>, vector<8x64xf32>
    %1176 = vector.extract_strided_slice %4 {offsets = [58, 0], sizes = [1, 64], strides = [1, 1]} : vector<64x64xf32> to vector<1x64xf32>
    %1177 = arith.addf %1176, %1170 : vector<1x64xf32>
    %cst_414 = arith.constant 2.000000e+00 : f32
    %1178 = vector.broadcast %cst_414 : f32 to vector<1x64xf32>
    %1179 = arith.cmpf oge, %1177, %1178 : vector<1x64xf32>
    %cst_415 = arith.constant 1.000000e+00 : f32
    %cst_416 = arith.constant 0.000000e+00 : f32
    %1180 = vector.broadcast %cst_415 : f32 to vector<1x64xf32>
    %1181 = vector.broadcast %cst_416 : f32 to vector<1x64xf32>
    %1182 = arith.select %1179, %1180, %1181 : vector<1x64xi1>, vector<1x64xf32>
    %cst_417 = arith.constant 1.55760157 : f32
    %1183 = vector.broadcast %cst_417 : f32 to vector<1x64xf32>
    %1184 = arith.mulf %1183, %1170 : vector<1x64xf32>
    %cst_418 = arith.constant 0.606530666 : f32
    %1185 = vector.broadcast %cst_418 : f32 to vector<1x64xf32>
    %1186 = arith.mulf %1185, %1150 : vector<1x64xf32>
    %1187 = arith.subf %1184, %1186 : vector<1x64xf32>
    %cst_419 = arith.constant -2.117000e+00 : f32
    %1188 = vector.broadcast %cst_419 : f32 to vector<1x64xf32>
    %1189 = arith.mulf %1188, %1182 : vector<1x64xf32>
    %1190 = arith.addf %1187, %1189 : vector<1x64xf32>
    %c2_i32_420 = arith.constant 2 : i32
    %1191 = vector.broadcast %c2_i32_420 : i32 to vector<8x64xi32>
    %1192 = arith.cmpi eq, %7, %1191 : vector<8x64xi32>
    %1193 = vector.shape_cast %1182 : vector<1x64xf32> to vector<1x64xf32>
    %1194 = vector.broadcast %1193 : vector<1x64xf32> to vector<8x64xf32>
    %1195 = arith.select %1192, %1194, %1175 : vector<8x64xi1>, vector<8x64xf32>
    %1196 = vector.extract_strided_slice %4 {offsets = [59, 0], sizes = [1, 64], strides = [1, 1]} : vector<64x64xf32> to vector<1x64xf32>
    %1197 = arith.addf %1196, %1190 : vector<1x64xf32>
    %cst_421 = arith.constant 2.000000e+00 : f32
    %1198 = vector.broadcast %cst_421 : f32 to vector<1x64xf32>
    %1199 = arith.cmpf oge, %1197, %1198 : vector<1x64xf32>
    %cst_422 = arith.constant 1.000000e+00 : f32
    %cst_423 = arith.constant 0.000000e+00 : f32
    %1200 = vector.broadcast %cst_422 : f32 to vector<1x64xf32>
    %1201 = vector.broadcast %cst_423 : f32 to vector<1x64xf32>
    %1202 = arith.select %1199, %1200, %1201 : vector<1x64xi1>, vector<1x64xf32>
    %cst_424 = arith.constant 1.55760157 : f32
    %1203 = vector.broadcast %cst_424 : f32 to vector<1x64xf32>
    %1204 = arith.mulf %1203, %1190 : vector<1x64xf32>
    %cst_425 = arith.constant 0.606530666 : f32
    %1205 = vector.broadcast %cst_425 : f32 to vector<1x64xf32>
    %1206 = arith.mulf %1205, %1170 : vector<1x64xf32>
    %1207 = arith.subf %1204, %1206 : vector<1x64xf32>
    %cst_426 = arith.constant -2.117000e+00 : f32
    %1208 = vector.broadcast %cst_426 : f32 to vector<1x64xf32>
    %1209 = arith.mulf %1208, %1202 : vector<1x64xf32>
    %1210 = arith.addf %1207, %1209 : vector<1x64xf32>
    %c3_i32_427 = arith.constant 3 : i32
    %1211 = vector.broadcast %c3_i32_427 : i32 to vector<8x64xi32>
    %1212 = arith.cmpi eq, %7, %1211 : vector<8x64xi32>
    %1213 = vector.shape_cast %1202 : vector<1x64xf32> to vector<1x64xf32>
    %1214 = vector.broadcast %1213 : vector<1x64xf32> to vector<8x64xf32>
    %1215 = arith.select %1212, %1214, %1195 : vector<8x64xi1>, vector<8x64xf32>
    %1216 = vector.extract_strided_slice %4 {offsets = [60, 0], sizes = [1, 64], strides = [1, 1]} : vector<64x64xf32> to vector<1x64xf32>
    %1217 = arith.addf %1216, %1210 : vector<1x64xf32>
    %cst_428 = arith.constant 2.000000e+00 : f32
    %1218 = vector.broadcast %cst_428 : f32 to vector<1x64xf32>
    %1219 = arith.cmpf oge, %1217, %1218 : vector<1x64xf32>
    %cst_429 = arith.constant 1.000000e+00 : f32
    %cst_430 = arith.constant 0.000000e+00 : f32
    %1220 = vector.broadcast %cst_429 : f32 to vector<1x64xf32>
    %1221 = vector.broadcast %cst_430 : f32 to vector<1x64xf32>
    %1222 = arith.select %1219, %1220, %1221 : vector<1x64xi1>, vector<1x64xf32>
    %cst_431 = arith.constant 1.55760157 : f32
    %1223 = vector.broadcast %cst_431 : f32 to vector<1x64xf32>
    %1224 = arith.mulf %1223, %1210 : vector<1x64xf32>
    %cst_432 = arith.constant 0.606530666 : f32
    %1225 = vector.broadcast %cst_432 : f32 to vector<1x64xf32>
    %1226 = arith.mulf %1225, %1190 : vector<1x64xf32>
    %1227 = arith.subf %1224, %1226 : vector<1x64xf32>
    %cst_433 = arith.constant -2.117000e+00 : f32
    %1228 = vector.broadcast %cst_433 : f32 to vector<1x64xf32>
    %1229 = arith.mulf %1228, %1222 : vector<1x64xf32>
    %1230 = arith.addf %1227, %1229 : vector<1x64xf32>
    %c4_i32_434 = arith.constant 4 : i32
    %1231 = vector.broadcast %c4_i32_434 : i32 to vector<8x64xi32>
    %1232 = arith.cmpi eq, %7, %1231 : vector<8x64xi32>
    %1233 = vector.shape_cast %1222 : vector<1x64xf32> to vector<1x64xf32>
    %1234 = vector.broadcast %1233 : vector<1x64xf32> to vector<8x64xf32>
    %1235 = arith.select %1232, %1234, %1215 : vector<8x64xi1>, vector<8x64xf32>
    %1236 = vector.extract_strided_slice %4 {offsets = [61, 0], sizes = [1, 64], strides = [1, 1]} : vector<64x64xf32> to vector<1x64xf32>
    %1237 = arith.addf %1236, %1230 : vector<1x64xf32>
    %cst_435 = arith.constant 2.000000e+00 : f32
    %1238 = vector.broadcast %cst_435 : f32 to vector<1x64xf32>
    %1239 = arith.cmpf oge, %1237, %1238 : vector<1x64xf32>
    %cst_436 = arith.constant 1.000000e+00 : f32
    %cst_437 = arith.constant 0.000000e+00 : f32
    %1240 = vector.broadcast %cst_436 : f32 to vector<1x64xf32>
    %1241 = vector.broadcast %cst_437 : f32 to vector<1x64xf32>
    %1242 = arith.select %1239, %1240, %1241 : vector<1x64xi1>, vector<1x64xf32>
    %cst_438 = arith.constant 1.55760157 : f32
    %1243 = vector.broadcast %cst_438 : f32 to vector<1x64xf32>
    %1244 = arith.mulf %1243, %1230 : vector<1x64xf32>
    %cst_439 = arith.constant 0.606530666 : f32
    %1245 = vector.broadcast %cst_439 : f32 to vector<1x64xf32>
    %1246 = arith.mulf %1245, %1210 : vector<1x64xf32>
    %1247 = arith.subf %1244, %1246 : vector<1x64xf32>
    %cst_440 = arith.constant -2.117000e+00 : f32
    %1248 = vector.broadcast %cst_440 : f32 to vector<1x64xf32>
    %1249 = arith.mulf %1248, %1242 : vector<1x64xf32>
    %1250 = arith.addf %1247, %1249 : vector<1x64xf32>
    %c5_i32_441 = arith.constant 5 : i32
    %1251 = vector.broadcast %c5_i32_441 : i32 to vector<8x64xi32>
    %1252 = arith.cmpi eq, %7, %1251 : vector<8x64xi32>
    %1253 = vector.shape_cast %1242 : vector<1x64xf32> to vector<1x64xf32>
    %1254 = vector.broadcast %1253 : vector<1x64xf32> to vector<8x64xf32>
    %1255 = arith.select %1252, %1254, %1235 : vector<8x64xi1>, vector<8x64xf32>
    %1256 = vector.extract_strided_slice %4 {offsets = [62, 0], sizes = [1, 64], strides = [1, 1]} : vector<64x64xf32> to vector<1x64xf32>
    %1257 = arith.addf %1256, %1250 : vector<1x64xf32>
    %cst_442 = arith.constant 2.000000e+00 : f32
    %1258 = vector.broadcast %cst_442 : f32 to vector<1x64xf32>
    %1259 = arith.cmpf oge, %1257, %1258 : vector<1x64xf32>
    %cst_443 = arith.constant 1.000000e+00 : f32
    %cst_444 = arith.constant 0.000000e+00 : f32
    %1260 = vector.broadcast %cst_443 : f32 to vector<1x64xf32>
    %1261 = vector.broadcast %cst_444 : f32 to vector<1x64xf32>
    %1262 = arith.select %1259, %1260, %1261 : vector<1x64xi1>, vector<1x64xf32>
    %cst_445 = arith.constant 1.55760157 : f32
    %1263 = vector.broadcast %cst_445 : f32 to vector<1x64xf32>
    %1264 = arith.mulf %1263, %1250 : vector<1x64xf32>
    %cst_446 = arith.constant 0.606530666 : f32
    %1265 = vector.broadcast %cst_446 : f32 to vector<1x64xf32>
    %1266 = arith.mulf %1265, %1230 : vector<1x64xf32>
    %1267 = arith.subf %1264, %1266 : vector<1x64xf32>
    %cst_447 = arith.constant -2.117000e+00 : f32
    %1268 = vector.broadcast %cst_447 : f32 to vector<1x64xf32>
    %1269 = arith.mulf %1268, %1262 : vector<1x64xf32>
    %1270 = arith.addf %1267, %1269 : vector<1x64xf32>
    %c6_i32_448 = arith.constant 6 : i32
    %1271 = vector.broadcast %c6_i32_448 : i32 to vector<8x64xi32>
    %1272 = arith.cmpi eq, %7, %1271 : vector<8x64xi32>
    %1273 = vector.shape_cast %1262 : vector<1x64xf32> to vector<1x64xf32>
    %1274 = vector.broadcast %1273 : vector<1x64xf32> to vector<8x64xf32>
    %1275 = arith.select %1272, %1274, %1255 : vector<8x64xi1>, vector<8x64xf32>
    %1276 = vector.extract_strided_slice %4 {offsets = [63, 0], sizes = [1, 64], strides = [1, 1]} : vector<64x64xf32> to vector<1x64xf32>
    %1277 = arith.addf %1276, %1270 : vector<1x64xf32>
    %cst_449 = arith.constant 2.000000e+00 : f32
    %1278 = vector.broadcast %cst_449 : f32 to vector<1x64xf32>
    %1279 = arith.cmpf oge, %1277, %1278 : vector<1x64xf32>
    %cst_450 = arith.constant 1.000000e+00 : f32
    %cst_451 = arith.constant 0.000000e+00 : f32
    %1280 = vector.broadcast %cst_450 : f32 to vector<1x64xf32>
    %1281 = vector.broadcast %cst_451 : f32 to vector<1x64xf32>
    %1282 = arith.select %1279, %1280, %1281 : vector<1x64xi1>, vector<1x64xf32>
    %c7_i32_452 = arith.constant 7 : i32
    %1283 = vector.broadcast %c7_i32_452 : i32 to vector<8x64xi32>
    %1284 = arith.cmpi eq, %7, %1283 : vector<8x64xi32>
    %1285 = vector.shape_cast %1282 : vector<1x64xf32> to vector<1x64xf32>
    %1286 = vector.broadcast %1285 : vector<1x64xf32> to vector<8x64xf32>
    %1287 = arith.select %1284, %1286, %1275 : vector<8x64xi1>, vector<8x64xf32>
    %1288 = tpu.concatenate %168, %329, %490, %651, %812, %973, %1134, %1287 in 0 : vector<8x64xf32>, vector<8x64xf32>, vector<8x64xf32>, vector<8x64xf32>, vector<8x64xf32>, vector<8x64xf32>, vector<8x64xf32>, vector<8x64xf32> -> vector<64x64xf32>
    %c0_453 = arith.constant 0 : index
    %c0_454 = arith.constant 0 : index
    %1289 = vector.load %arg2[%c0_453, %c0_454] : memref<64x32xf32, #tpu.memory_space<vmem>>, vector<64x32xf32>
    %cst_455 = arith.constant dense<0.000000e+00> : vector<64x32xf32>
    %1290 = tpu.matmul %1288, %1289, %cst_455 {dimension_numbers = #tpu.dot_dimension_numbers<[1], [0], [0], [1], [0, 0, 1, 1], [], []>} : vector<64x64xf32>, vector<64x32xf32>, vector<64x32xf32> -> vector<64x32xf32>
    %cst_456 = arith.constant dense<0.000000e+00> : vector<64x32xf32>
    %1291 = tpu.matmul %0, %1290, %cst_456 {dimension_numbers = #tpu.dot_dimension_numbers<[1], [0], [0], [1], [0, 0, 1, 1], [], []>} : vector<64x64xf32>, vector<64x32xf32>, vector<64x32xf32> -> vector<64x32xf32>
    %cst_457 = arith.constant 0.000000e+00 : f32
    %1292 = vector.broadcast %cst_457 : f32 to vector<1x32xf32>
    %cst_458 = arith.constant 0.000000e+00 : f32
    %1293 = vector.broadcast %cst_458 : f32 to vector<1x32xf32>
    %1294 = tpu.iota {dimensions = array<i32: 0>} : vector<8x32xi32>
    %cst_459 = arith.constant 0.000000e+00 : f32
    %1295 = vector.broadcast %cst_459 : f32 to vector<8x32xf32>
    %1296 = vector.extract_strided_slice %1291 {offsets = [0, 0], sizes = [1, 32], strides = [1, 1]} : vector<64x32xf32> to vector<1x32xf32>
    %1297 = arith.addf %1296, %1293 : vector<1x32xf32>
    %cst_460 = arith.constant 2.000000e+00 : f32
    %1298 = vector.broadcast %cst_460 : f32 to vector<1x32xf32>
    %1299 = arith.cmpf oge, %1297, %1298 : vector<1x32xf32>
    %cst_461 = arith.constant 1.000000e+00 : f32
    %cst_462 = arith.constant 0.000000e+00 : f32
    %1300 = vector.broadcast %cst_461 : f32 to vector<1x32xf32>
    %1301 = vector.broadcast %cst_462 : f32 to vector<1x32xf32>
    %1302 = arith.select %1299, %1300, %1301 : vector<1x32xi1>, vector<1x32xf32>
    %cst_463 = arith.constant 1.55760157 : f32
    %1303 = vector.broadcast %cst_463 : f32 to vector<1x32xf32>
    %1304 = arith.mulf %1303, %1293 : vector<1x32xf32>
    %cst_464 = arith.constant 0.606530666 : f32
    %1305 = vector.broadcast %cst_464 : f32 to vector<1x32xf32>
    %1306 = arith.mulf %1305, %1292 : vector<1x32xf32>
    %1307 = arith.subf %1304, %1306 : vector<1x32xf32>
    %cst_465 = arith.constant -2.117000e+00 : f32
    %1308 = vector.broadcast %cst_465 : f32 to vector<1x32xf32>
    %1309 = arith.mulf %1308, %1302 : vector<1x32xf32>
    %1310 = arith.addf %1307, %1309 : vector<1x32xf32>
    %c0_i32_466 = arith.constant 0 : i32
    %1311 = vector.broadcast %c0_i32_466 : i32 to vector<8x32xi32>
    %1312 = arith.cmpi eq, %1294, %1311 : vector<8x32xi32>
    %1313 = vector.shape_cast %1302 : vector<1x32xf32> to vector<1x32xf32>
    %1314 = vector.broadcast %1313 : vector<1x32xf32> to vector<8x32xf32>
    %1315 = arith.select %1312, %1314, %1295 : vector<8x32xi1>, vector<8x32xf32>
    %1316 = vector.extract_strided_slice %1291 {offsets = [1, 0], sizes = [1, 32], strides = [1, 1]} : vector<64x32xf32> to vector<1x32xf32>
    %1317 = arith.addf %1316, %1310 : vector<1x32xf32>
    %cst_467 = arith.constant 2.000000e+00 : f32
    %1318 = vector.broadcast %cst_467 : f32 to vector<1x32xf32>
    %1319 = arith.cmpf oge, %1317, %1318 : vector<1x32xf32>
    %cst_468 = arith.constant 1.000000e+00 : f32
    %cst_469 = arith.constant 0.000000e+00 : f32
    %1320 = vector.broadcast %cst_468 : f32 to vector<1x32xf32>
    %1321 = vector.broadcast %cst_469 : f32 to vector<1x32xf32>
    %1322 = arith.select %1319, %1320, %1321 : vector<1x32xi1>, vector<1x32xf32>
    %cst_470 = arith.constant 1.55760157 : f32
    %1323 = vector.broadcast %cst_470 : f32 to vector<1x32xf32>
    %1324 = arith.mulf %1323, %1310 : vector<1x32xf32>
    %cst_471 = arith.constant 0.606530666 : f32
    %1325 = vector.broadcast %cst_471 : f32 to vector<1x32xf32>
    %1326 = arith.mulf %1325, %1293 : vector<1x32xf32>
    %1327 = arith.subf %1324, %1326 : vector<1x32xf32>
    %cst_472 = arith.constant -2.117000e+00 : f32
    %1328 = vector.broadcast %cst_472 : f32 to vector<1x32xf32>
    %1329 = arith.mulf %1328, %1322 : vector<1x32xf32>
    %1330 = arith.addf %1327, %1329 : vector<1x32xf32>
    %c1_i32_473 = arith.constant 1 : i32
    %1331 = vector.broadcast %c1_i32_473 : i32 to vector<8x32xi32>
    %1332 = arith.cmpi eq, %1294, %1331 : vector<8x32xi32>
    %1333 = vector.shape_cast %1322 : vector<1x32xf32> to vector<1x32xf32>
    %1334 = vector.broadcast %1333 : vector<1x32xf32> to vector<8x32xf32>
    %1335 = arith.select %1332, %1334, %1315 : vector<8x32xi1>, vector<8x32xf32>
    %1336 = vector.extract_strided_slice %1291 {offsets = [2, 0], sizes = [1, 32], strides = [1, 1]} : vector<64x32xf32> to vector<1x32xf32>
    %1337 = arith.addf %1336, %1330 : vector<1x32xf32>
    %cst_474 = arith.constant 2.000000e+00 : f32
    %1338 = vector.broadcast %cst_474 : f32 to vector<1x32xf32>
    %1339 = arith.cmpf oge, %1337, %1338 : vector<1x32xf32>
    %cst_475 = arith.constant 1.000000e+00 : f32
    %cst_476 = arith.constant 0.000000e+00 : f32
    %1340 = vector.broadcast %cst_475 : f32 to vector<1x32xf32>
    %1341 = vector.broadcast %cst_476 : f32 to vector<1x32xf32>
    %1342 = arith.select %1339, %1340, %1341 : vector<1x32xi1>, vector<1x32xf32>
    %cst_477 = arith.constant 1.55760157 : f32
    %1343 = vector.broadcast %cst_477 : f32 to vector<1x32xf32>
    %1344 = arith.mulf %1343, %1330 : vector<1x32xf32>
    %cst_478 = arith.constant 0.606530666 : f32
    %1345 = vector.broadcast %cst_478 : f32 to vector<1x32xf32>
    %1346 = arith.mulf %1345, %1310 : vector<1x32xf32>
    %1347 = arith.subf %1344, %1346 : vector<1x32xf32>
    %cst_479 = arith.constant -2.117000e+00 : f32
    %1348 = vector.broadcast %cst_479 : f32 to vector<1x32xf32>
    %1349 = arith.mulf %1348, %1342 : vector<1x32xf32>
    %1350 = arith.addf %1347, %1349 : vector<1x32xf32>
    %c2_i32_480 = arith.constant 2 : i32
    %1351 = vector.broadcast %c2_i32_480 : i32 to vector<8x32xi32>
    %1352 = arith.cmpi eq, %1294, %1351 : vector<8x32xi32>
    %1353 = vector.shape_cast %1342 : vector<1x32xf32> to vector<1x32xf32>
    %1354 = vector.broadcast %1353 : vector<1x32xf32> to vector<8x32xf32>
    %1355 = arith.select %1352, %1354, %1335 : vector<8x32xi1>, vector<8x32xf32>
    %1356 = vector.extract_strided_slice %1291 {offsets = [3, 0], sizes = [1, 32], strides = [1, 1]} : vector<64x32xf32> to vector<1x32xf32>
    %1357 = arith.addf %1356, %1350 : vector<1x32xf32>
    %cst_481 = arith.constant 2.000000e+00 : f32
    %1358 = vector.broadcast %cst_481 : f32 to vector<1x32xf32>
    %1359 = arith.cmpf oge, %1357, %1358 : vector<1x32xf32>
    %cst_482 = arith.constant 1.000000e+00 : f32
    %cst_483 = arith.constant 0.000000e+00 : f32
    %1360 = vector.broadcast %cst_482 : f32 to vector<1x32xf32>
    %1361 = vector.broadcast %cst_483 : f32 to vector<1x32xf32>
    %1362 = arith.select %1359, %1360, %1361 : vector<1x32xi1>, vector<1x32xf32>
    %cst_484 = arith.constant 1.55760157 : f32
    %1363 = vector.broadcast %cst_484 : f32 to vector<1x32xf32>
    %1364 = arith.mulf %1363, %1350 : vector<1x32xf32>
    %cst_485 = arith.constant 0.606530666 : f32
    %1365 = vector.broadcast %cst_485 : f32 to vector<1x32xf32>
    %1366 = arith.mulf %1365, %1330 : vector<1x32xf32>
    %1367 = arith.subf %1364, %1366 : vector<1x32xf32>
    %cst_486 = arith.constant -2.117000e+00 : f32
    %1368 = vector.broadcast %cst_486 : f32 to vector<1x32xf32>
    %1369 = arith.mulf %1368, %1362 : vector<1x32xf32>
    %1370 = arith.addf %1367, %1369 : vector<1x32xf32>
    %c3_i32_487 = arith.constant 3 : i32
    %1371 = vector.broadcast %c3_i32_487 : i32 to vector<8x32xi32>
    %1372 = arith.cmpi eq, %1294, %1371 : vector<8x32xi32>
    %1373 = vector.shape_cast %1362 : vector<1x32xf32> to vector<1x32xf32>
    %1374 = vector.broadcast %1373 : vector<1x32xf32> to vector<8x32xf32>
    %1375 = arith.select %1372, %1374, %1355 : vector<8x32xi1>, vector<8x32xf32>
    %1376 = vector.extract_strided_slice %1291 {offsets = [4, 0], sizes = [1, 32], strides = [1, 1]} : vector<64x32xf32> to vector<1x32xf32>
    %1377 = arith.addf %1376, %1370 : vector<1x32xf32>
    %cst_488 = arith.constant 2.000000e+00 : f32
    %1378 = vector.broadcast %cst_488 : f32 to vector<1x32xf32>
    %1379 = arith.cmpf oge, %1377, %1378 : vector<1x32xf32>
    %cst_489 = arith.constant 1.000000e+00 : f32
    %cst_490 = arith.constant 0.000000e+00 : f32
    %1380 = vector.broadcast %cst_489 : f32 to vector<1x32xf32>
    %1381 = vector.broadcast %cst_490 : f32 to vector<1x32xf32>
    %1382 = arith.select %1379, %1380, %1381 : vector<1x32xi1>, vector<1x32xf32>
    %cst_491 = arith.constant 1.55760157 : f32
    %1383 = vector.broadcast %cst_491 : f32 to vector<1x32xf32>
    %1384 = arith.mulf %1383, %1370 : vector<1x32xf32>
    %cst_492 = arith.constant 0.606530666 : f32
    %1385 = vector.broadcast %cst_492 : f32 to vector<1x32xf32>
    %1386 = arith.mulf %1385, %1350 : vector<1x32xf32>
    %1387 = arith.subf %1384, %1386 : vector<1x32xf32>
    %cst_493 = arith.constant -2.117000e+00 : f32
    %1388 = vector.broadcast %cst_493 : f32 to vector<1x32xf32>
    %1389 = arith.mulf %1388, %1382 : vector<1x32xf32>
    %1390 = arith.addf %1387, %1389 : vector<1x32xf32>
    %c4_i32_494 = arith.constant 4 : i32
    %1391 = vector.broadcast %c4_i32_494 : i32 to vector<8x32xi32>
    %1392 = arith.cmpi eq, %1294, %1391 : vector<8x32xi32>
    %1393 = vector.shape_cast %1382 : vector<1x32xf32> to vector<1x32xf32>
    %1394 = vector.broadcast %1393 : vector<1x32xf32> to vector<8x32xf32>
    %1395 = arith.select %1392, %1394, %1375 : vector<8x32xi1>, vector<8x32xf32>
    %1396 = vector.extract_strided_slice %1291 {offsets = [5, 0], sizes = [1, 32], strides = [1, 1]} : vector<64x32xf32> to vector<1x32xf32>
    %1397 = arith.addf %1396, %1390 : vector<1x32xf32>
    %cst_495 = arith.constant 2.000000e+00 : f32
    %1398 = vector.broadcast %cst_495 : f32 to vector<1x32xf32>
    %1399 = arith.cmpf oge, %1397, %1398 : vector<1x32xf32>
    %cst_496 = arith.constant 1.000000e+00 : f32
    %cst_497 = arith.constant 0.000000e+00 : f32
    %1400 = vector.broadcast %cst_496 : f32 to vector<1x32xf32>
    %1401 = vector.broadcast %cst_497 : f32 to vector<1x32xf32>
    %1402 = arith.select %1399, %1400, %1401 : vector<1x32xi1>, vector<1x32xf32>
    %cst_498 = arith.constant 1.55760157 : f32
    %1403 = vector.broadcast %cst_498 : f32 to vector<1x32xf32>
    %1404 = arith.mulf %1403, %1390 : vector<1x32xf32>
    %cst_499 = arith.constant 0.606530666 : f32
    %1405 = vector.broadcast %cst_499 : f32 to vector<1x32xf32>
    %1406 = arith.mulf %1405, %1370 : vector<1x32xf32>
    %1407 = arith.subf %1404, %1406 : vector<1x32xf32>
    %cst_500 = arith.constant -2.117000e+00 : f32
    %1408 = vector.broadcast %cst_500 : f32 to vector<1x32xf32>
    %1409 = arith.mulf %1408, %1402 : vector<1x32xf32>
    %1410 = arith.addf %1407, %1409 : vector<1x32xf32>
    %c5_i32_501 = arith.constant 5 : i32
    %1411 = vector.broadcast %c5_i32_501 : i32 to vector<8x32xi32>
    %1412 = arith.cmpi eq, %1294, %1411 : vector<8x32xi32>
    %1413 = vector.shape_cast %1402 : vector<1x32xf32> to vector<1x32xf32>
    %1414 = vector.broadcast %1413 : vector<1x32xf32> to vector<8x32xf32>
    %1415 = arith.select %1412, %1414, %1395 : vector<8x32xi1>, vector<8x32xf32>
    %1416 = vector.extract_strided_slice %1291 {offsets = [6, 0], sizes = [1, 32], strides = [1, 1]} : vector<64x32xf32> to vector<1x32xf32>
    %1417 = arith.addf %1416, %1410 : vector<1x32xf32>
    %cst_502 = arith.constant 2.000000e+00 : f32
    %1418 = vector.broadcast %cst_502 : f32 to vector<1x32xf32>
    %1419 = arith.cmpf oge, %1417, %1418 : vector<1x32xf32>
    %cst_503 = arith.constant 1.000000e+00 : f32
    %cst_504 = arith.constant 0.000000e+00 : f32
    %1420 = vector.broadcast %cst_503 : f32 to vector<1x32xf32>
    %1421 = vector.broadcast %cst_504 : f32 to vector<1x32xf32>
    %1422 = arith.select %1419, %1420, %1421 : vector<1x32xi1>, vector<1x32xf32>
    %cst_505 = arith.constant 1.55760157 : f32
    %1423 = vector.broadcast %cst_505 : f32 to vector<1x32xf32>
    %1424 = arith.mulf %1423, %1410 : vector<1x32xf32>
    %cst_506 = arith.constant 0.606530666 : f32
    %1425 = vector.broadcast %cst_506 : f32 to vector<1x32xf32>
    %1426 = arith.mulf %1425, %1390 : vector<1x32xf32>
    %1427 = arith.subf %1424, %1426 : vector<1x32xf32>
    %cst_507 = arith.constant -2.117000e+00 : f32
    %1428 = vector.broadcast %cst_507 : f32 to vector<1x32xf32>
    %1429 = arith.mulf %1428, %1422 : vector<1x32xf32>
    %1430 = arith.addf %1427, %1429 : vector<1x32xf32>
    %c6_i32_508 = arith.constant 6 : i32
    %1431 = vector.broadcast %c6_i32_508 : i32 to vector<8x32xi32>
    %1432 = arith.cmpi eq, %1294, %1431 : vector<8x32xi32>
    %1433 = vector.shape_cast %1422 : vector<1x32xf32> to vector<1x32xf32>
    %1434 = vector.broadcast %1433 : vector<1x32xf32> to vector<8x32xf32>
    %1435 = arith.select %1432, %1434, %1415 : vector<8x32xi1>, vector<8x32xf32>
    %1436 = vector.extract_strided_slice %1291 {offsets = [7, 0], sizes = [1, 32], strides = [1, 1]} : vector<64x32xf32> to vector<1x32xf32>
    %1437 = arith.addf %1436, %1430 : vector<1x32xf32>
    %cst_509 = arith.constant 2.000000e+00 : f32
    %1438 = vector.broadcast %cst_509 : f32 to vector<1x32xf32>
    %1439 = arith.cmpf oge, %1437, %1438 : vector<1x32xf32>
    %cst_510 = arith.constant 1.000000e+00 : f32
    %cst_511 = arith.constant 0.000000e+00 : f32
    %1440 = vector.broadcast %cst_510 : f32 to vector<1x32xf32>
    %1441 = vector.broadcast %cst_511 : f32 to vector<1x32xf32>
    %1442 = arith.select %1439, %1440, %1441 : vector<1x32xi1>, vector<1x32xf32>
    %cst_512 = arith.constant 1.55760157 : f32
    %1443 = vector.broadcast %cst_512 : f32 to vector<1x32xf32>
    %1444 = arith.mulf %1443, %1430 : vector<1x32xf32>
    %cst_513 = arith.constant 0.606530666 : f32
    %1445 = vector.broadcast %cst_513 : f32 to vector<1x32xf32>
    %1446 = arith.mulf %1445, %1410 : vector<1x32xf32>
    %1447 = arith.subf %1444, %1446 : vector<1x32xf32>
    %cst_514 = arith.constant -2.117000e+00 : f32
    %1448 = vector.broadcast %cst_514 : f32 to vector<1x32xf32>
    %1449 = arith.mulf %1448, %1442 : vector<1x32xf32>
    %1450 = arith.addf %1447, %1449 : vector<1x32xf32>
    %c7_i32_515 = arith.constant 7 : i32
    %1451 = vector.broadcast %c7_i32_515 : i32 to vector<8x32xi32>
    %1452 = arith.cmpi eq, %1294, %1451 : vector<8x32xi32>
    %1453 = vector.shape_cast %1442 : vector<1x32xf32> to vector<1x32xf32>
    %1454 = vector.broadcast %1453 : vector<1x32xf32> to vector<8x32xf32>
    %1455 = arith.select %1452, %1454, %1435 : vector<8x32xi1>, vector<8x32xf32>
    %cst_516 = arith.constant 0.000000e+00 : f32
    %1456 = vector.broadcast %cst_516 : f32 to vector<8x32xf32>
    %1457 = vector.extract_strided_slice %1291 {offsets = [8, 0], sizes = [1, 32], strides = [1, 1]} : vector<64x32xf32> to vector<1x32xf32>
    %1458 = arith.addf %1457, %1450 : vector<1x32xf32>
    %cst_517 = arith.constant 2.000000e+00 : f32
    %1459 = vector.broadcast %cst_517 : f32 to vector<1x32xf32>
    %1460 = arith.cmpf oge, %1458, %1459 : vector<1x32xf32>
    %cst_518 = arith.constant 1.000000e+00 : f32
    %cst_519 = arith.constant 0.000000e+00 : f32
    %1461 = vector.broadcast %cst_518 : f32 to vector<1x32xf32>
    %1462 = vector.broadcast %cst_519 : f32 to vector<1x32xf32>
    %1463 = arith.select %1460, %1461, %1462 : vector<1x32xi1>, vector<1x32xf32>
    %cst_520 = arith.constant 1.55760157 : f32
    %1464 = vector.broadcast %cst_520 : f32 to vector<1x32xf32>
    %1465 = arith.mulf %1464, %1450 : vector<1x32xf32>
    %cst_521 = arith.constant 0.606530666 : f32
    %1466 = vector.broadcast %cst_521 : f32 to vector<1x32xf32>
    %1467 = arith.mulf %1466, %1430 : vector<1x32xf32>
    %1468 = arith.subf %1465, %1467 : vector<1x32xf32>
    %cst_522 = arith.constant -2.117000e+00 : f32
    %1469 = vector.broadcast %cst_522 : f32 to vector<1x32xf32>
    %1470 = arith.mulf %1469, %1463 : vector<1x32xf32>
    %1471 = arith.addf %1468, %1470 : vector<1x32xf32>
    %c0_i32_523 = arith.constant 0 : i32
    %1472 = vector.broadcast %c0_i32_523 : i32 to vector<8x32xi32>
    %1473 = arith.cmpi eq, %1294, %1472 : vector<8x32xi32>
    %1474 = vector.shape_cast %1463 : vector<1x32xf32> to vector<1x32xf32>
    %1475 = vector.broadcast %1474 : vector<1x32xf32> to vector<8x32xf32>
    %1476 = arith.select %1473, %1475, %1456 : vector<8x32xi1>, vector<8x32xf32>
    %1477 = vector.extract_strided_slice %1291 {offsets = [9, 0], sizes = [1, 32], strides = [1, 1]} : vector<64x32xf32> to vector<1x32xf32>
    %1478 = arith.addf %1477, %1471 : vector<1x32xf32>
    %cst_524 = arith.constant 2.000000e+00 : f32
    %1479 = vector.broadcast %cst_524 : f32 to vector<1x32xf32>
    %1480 = arith.cmpf oge, %1478, %1479 : vector<1x32xf32>
    %cst_525 = arith.constant 1.000000e+00 : f32
    %cst_526 = arith.constant 0.000000e+00 : f32
    %1481 = vector.broadcast %cst_525 : f32 to vector<1x32xf32>
    %1482 = vector.broadcast %cst_526 : f32 to vector<1x32xf32>
    %1483 = arith.select %1480, %1481, %1482 : vector<1x32xi1>, vector<1x32xf32>
    %cst_527 = arith.constant 1.55760157 : f32
    %1484 = vector.broadcast %cst_527 : f32 to vector<1x32xf32>
    %1485 = arith.mulf %1484, %1471 : vector<1x32xf32>
    %cst_528 = arith.constant 0.606530666 : f32
    %1486 = vector.broadcast %cst_528 : f32 to vector<1x32xf32>
    %1487 = arith.mulf %1486, %1450 : vector<1x32xf32>
    %1488 = arith.subf %1485, %1487 : vector<1x32xf32>
    %cst_529 = arith.constant -2.117000e+00 : f32
    %1489 = vector.broadcast %cst_529 : f32 to vector<1x32xf32>
    %1490 = arith.mulf %1489, %1483 : vector<1x32xf32>
    %1491 = arith.addf %1488, %1490 : vector<1x32xf32>
    %c1_i32_530 = arith.constant 1 : i32
    %1492 = vector.broadcast %c1_i32_530 : i32 to vector<8x32xi32>
    %1493 = arith.cmpi eq, %1294, %1492 : vector<8x32xi32>
    %1494 = vector.shape_cast %1483 : vector<1x32xf32> to vector<1x32xf32>
    %1495 = vector.broadcast %1494 : vector<1x32xf32> to vector<8x32xf32>
    %1496 = arith.select %1493, %1495, %1476 : vector<8x32xi1>, vector<8x32xf32>
    %1497 = vector.extract_strided_slice %1291 {offsets = [10, 0], sizes = [1, 32], strides = [1, 1]} : vector<64x32xf32> to vector<1x32xf32>
    %1498 = arith.addf %1497, %1491 : vector<1x32xf32>
    %cst_531 = arith.constant 2.000000e+00 : f32
    %1499 = vector.broadcast %cst_531 : f32 to vector<1x32xf32>
    %1500 = arith.cmpf oge, %1498, %1499 : vector<1x32xf32>
    %cst_532 = arith.constant 1.000000e+00 : f32
    %cst_533 = arith.constant 0.000000e+00 : f32
    %1501 = vector.broadcast %cst_532 : f32 to vector<1x32xf32>
    %1502 = vector.broadcast %cst_533 : f32 to vector<1x32xf32>
    %1503 = arith.select %1500, %1501, %1502 : vector<1x32xi1>, vector<1x32xf32>
    %cst_534 = arith.constant 1.55760157 : f32
    %1504 = vector.broadcast %cst_534 : f32 to vector<1x32xf32>
    %1505 = arith.mulf %1504, %1491 : vector<1x32xf32>
    %cst_535 = arith.constant 0.606530666 : f32
    %1506 = vector.broadcast %cst_535 : f32 to vector<1x32xf32>
    %1507 = arith.mulf %1506, %1471 : vector<1x32xf32>
    %1508 = arith.subf %1505, %1507 : vector<1x32xf32>
    %cst_536 = arith.constant -2.117000e+00 : f32
    %1509 = vector.broadcast %cst_536 : f32 to vector<1x32xf32>
    %1510 = arith.mulf %1509, %1503 : vector<1x32xf32>
    %1511 = arith.addf %1508, %1510 : vector<1x32xf32>
    %c2_i32_537 = arith.constant 2 : i32
    %1512 = vector.broadcast %c2_i32_537 : i32 to vector<8x32xi32>
    %1513 = arith.cmpi eq, %1294, %1512 : vector<8x32xi32>
    %1514 = vector.shape_cast %1503 : vector<1x32xf32> to vector<1x32xf32>
    %1515 = vector.broadcast %1514 : vector<1x32xf32> to vector<8x32xf32>
    %1516 = arith.select %1513, %1515, %1496 : vector<8x32xi1>, vector<8x32xf32>
    %1517 = vector.extract_strided_slice %1291 {offsets = [11, 0], sizes = [1, 32], strides = [1, 1]} : vector<64x32xf32> to vector<1x32xf32>
    %1518 = arith.addf %1517, %1511 : vector<1x32xf32>
    %cst_538 = arith.constant 2.000000e+00 : f32
    %1519 = vector.broadcast %cst_538 : f32 to vector<1x32xf32>
    %1520 = arith.cmpf oge, %1518, %1519 : vector<1x32xf32>
    %cst_539 = arith.constant 1.000000e+00 : f32
    %cst_540 = arith.constant 0.000000e+00 : f32
    %1521 = vector.broadcast %cst_539 : f32 to vector<1x32xf32>
    %1522 = vector.broadcast %cst_540 : f32 to vector<1x32xf32>
    %1523 = arith.select %1520, %1521, %1522 : vector<1x32xi1>, vector<1x32xf32>
    %cst_541 = arith.constant 1.55760157 : f32
    %1524 = vector.broadcast %cst_541 : f32 to vector<1x32xf32>
    %1525 = arith.mulf %1524, %1511 : vector<1x32xf32>
    %cst_542 = arith.constant 0.606530666 : f32
    %1526 = vector.broadcast %cst_542 : f32 to vector<1x32xf32>
    %1527 = arith.mulf %1526, %1491 : vector<1x32xf32>
    %1528 = arith.subf %1525, %1527 : vector<1x32xf32>
    %cst_543 = arith.constant -2.117000e+00 : f32
    %1529 = vector.broadcast %cst_543 : f32 to vector<1x32xf32>
    %1530 = arith.mulf %1529, %1523 : vector<1x32xf32>
    %1531 = arith.addf %1528, %1530 : vector<1x32xf32>
    %c3_i32_544 = arith.constant 3 : i32
    %1532 = vector.broadcast %c3_i32_544 : i32 to vector<8x32xi32>
    %1533 = arith.cmpi eq, %1294, %1532 : vector<8x32xi32>
    %1534 = vector.shape_cast %1523 : vector<1x32xf32> to vector<1x32xf32>
    %1535 = vector.broadcast %1534 : vector<1x32xf32> to vector<8x32xf32>
    %1536 = arith.select %1533, %1535, %1516 : vector<8x32xi1>, vector<8x32xf32>
    %1537 = vector.extract_strided_slice %1291 {offsets = [12, 0], sizes = [1, 32], strides = [1, 1]} : vector<64x32xf32> to vector<1x32xf32>
    %1538 = arith.addf %1537, %1531 : vector<1x32xf32>
    %cst_545 = arith.constant 2.000000e+00 : f32
    %1539 = vector.broadcast %cst_545 : f32 to vector<1x32xf32>
    %1540 = arith.cmpf oge, %1538, %1539 : vector<1x32xf32>
    %cst_546 = arith.constant 1.000000e+00 : f32
    %cst_547 = arith.constant 0.000000e+00 : f32
    %1541 = vector.broadcast %cst_546 : f32 to vector<1x32xf32>
    %1542 = vector.broadcast %cst_547 : f32 to vector<1x32xf32>
    %1543 = arith.select %1540, %1541, %1542 : vector<1x32xi1>, vector<1x32xf32>
    %cst_548 = arith.constant 1.55760157 : f32
    %1544 = vector.broadcast %cst_548 : f32 to vector<1x32xf32>
    %1545 = arith.mulf %1544, %1531 : vector<1x32xf32>
    %cst_549 = arith.constant 0.606530666 : f32
    %1546 = vector.broadcast %cst_549 : f32 to vector<1x32xf32>
    %1547 = arith.mulf %1546, %1511 : vector<1x32xf32>
    %1548 = arith.subf %1545, %1547 : vector<1x32xf32>
    %cst_550 = arith.constant -2.117000e+00 : f32
    %1549 = vector.broadcast %cst_550 : f32 to vector<1x32xf32>
    %1550 = arith.mulf %1549, %1543 : vector<1x32xf32>
    %1551 = arith.addf %1548, %1550 : vector<1x32xf32>
    %c4_i32_551 = arith.constant 4 : i32
    %1552 = vector.broadcast %c4_i32_551 : i32 to vector<8x32xi32>
    %1553 = arith.cmpi eq, %1294, %1552 : vector<8x32xi32>
    %1554 = vector.shape_cast %1543 : vector<1x32xf32> to vector<1x32xf32>
    %1555 = vector.broadcast %1554 : vector<1x32xf32> to vector<8x32xf32>
    %1556 = arith.select %1553, %1555, %1536 : vector<8x32xi1>, vector<8x32xf32>
    %1557 = vector.extract_strided_slice %1291 {offsets = [13, 0], sizes = [1, 32], strides = [1, 1]} : vector<64x32xf32> to vector<1x32xf32>
    %1558 = arith.addf %1557, %1551 : vector<1x32xf32>
    %cst_552 = arith.constant 2.000000e+00 : f32
    %1559 = vector.broadcast %cst_552 : f32 to vector<1x32xf32>
    %1560 = arith.cmpf oge, %1558, %1559 : vector<1x32xf32>
    %cst_553 = arith.constant 1.000000e+00 : f32
    %cst_554 = arith.constant 0.000000e+00 : f32
    %1561 = vector.broadcast %cst_553 : f32 to vector<1x32xf32>
    %1562 = vector.broadcast %cst_554 : f32 to vector<1x32xf32>
    %1563 = arith.select %1560, %1561, %1562 : vector<1x32xi1>, vector<1x32xf32>
    %cst_555 = arith.constant 1.55760157 : f32
    %1564 = vector.broadcast %cst_555 : f32 to vector<1x32xf32>
    %1565 = arith.mulf %1564, %1551 : vector<1x32xf32>
    %cst_556 = arith.constant 0.606530666 : f32
    %1566 = vector.broadcast %cst_556 : f32 to vector<1x32xf32>
    %1567 = arith.mulf %1566, %1531 : vector<1x32xf32>
    %1568 = arith.subf %1565, %1567 : vector<1x32xf32>
    %cst_557 = arith.constant -2.117000e+00 : f32
    %1569 = vector.broadcast %cst_557 : f32 to vector<1x32xf32>
    %1570 = arith.mulf %1569, %1563 : vector<1x32xf32>
    %1571 = arith.addf %1568, %1570 : vector<1x32xf32>
    %c5_i32_558 = arith.constant 5 : i32
    %1572 = vector.broadcast %c5_i32_558 : i32 to vector<8x32xi32>
    %1573 = arith.cmpi eq, %1294, %1572 : vector<8x32xi32>
    %1574 = vector.shape_cast %1563 : vector<1x32xf32> to vector<1x32xf32>
    %1575 = vector.broadcast %1574 : vector<1x32xf32> to vector<8x32xf32>
    %1576 = arith.select %1573, %1575, %1556 : vector<8x32xi1>, vector<8x32xf32>
    %1577 = vector.extract_strided_slice %1291 {offsets = [14, 0], sizes = [1, 32], strides = [1, 1]} : vector<64x32xf32> to vector<1x32xf32>
    %1578 = arith.addf %1577, %1571 : vector<1x32xf32>
    %cst_559 = arith.constant 2.000000e+00 : f32
    %1579 = vector.broadcast %cst_559 : f32 to vector<1x32xf32>
    %1580 = arith.cmpf oge, %1578, %1579 : vector<1x32xf32>
    %cst_560 = arith.constant 1.000000e+00 : f32
    %cst_561 = arith.constant 0.000000e+00 : f32
    %1581 = vector.broadcast %cst_560 : f32 to vector<1x32xf32>
    %1582 = vector.broadcast %cst_561 : f32 to vector<1x32xf32>
    %1583 = arith.select %1580, %1581, %1582 : vector<1x32xi1>, vector<1x32xf32>
    %cst_562 = arith.constant 1.55760157 : f32
    %1584 = vector.broadcast %cst_562 : f32 to vector<1x32xf32>
    %1585 = arith.mulf %1584, %1571 : vector<1x32xf32>
    %cst_563 = arith.constant 0.606530666 : f32
    %1586 = vector.broadcast %cst_563 : f32 to vector<1x32xf32>
    %1587 = arith.mulf %1586, %1551 : vector<1x32xf32>
    %1588 = arith.subf %1585, %1587 : vector<1x32xf32>
    %cst_564 = arith.constant -2.117000e+00 : f32
    %1589 = vector.broadcast %cst_564 : f32 to vector<1x32xf32>
    %1590 = arith.mulf %1589, %1583 : vector<1x32xf32>
    %1591 = arith.addf %1588, %1590 : vector<1x32xf32>
    %c6_i32_565 = arith.constant 6 : i32
    %1592 = vector.broadcast %c6_i32_565 : i32 to vector<8x32xi32>
    %1593 = arith.cmpi eq, %1294, %1592 : vector<8x32xi32>
    %1594 = vector.shape_cast %1583 : vector<1x32xf32> to vector<1x32xf32>
    %1595 = vector.broadcast %1594 : vector<1x32xf32> to vector<8x32xf32>
    %1596 = arith.select %1593, %1595, %1576 : vector<8x32xi1>, vector<8x32xf32>
    %1597 = vector.extract_strided_slice %1291 {offsets = [15, 0], sizes = [1, 32], strides = [1, 1]} : vector<64x32xf32> to vector<1x32xf32>
    %1598 = arith.addf %1597, %1591 : vector<1x32xf32>
    %cst_566 = arith.constant 2.000000e+00 : f32
    %1599 = vector.broadcast %cst_566 : f32 to vector<1x32xf32>
    %1600 = arith.cmpf oge, %1598, %1599 : vector<1x32xf32>
    %cst_567 = arith.constant 1.000000e+00 : f32
    %cst_568 = arith.constant 0.000000e+00 : f32
    %1601 = vector.broadcast %cst_567 : f32 to vector<1x32xf32>
    %1602 = vector.broadcast %cst_568 : f32 to vector<1x32xf32>
    %1603 = arith.select %1600, %1601, %1602 : vector<1x32xi1>, vector<1x32xf32>
    %cst_569 = arith.constant 1.55760157 : f32
    %1604 = vector.broadcast %cst_569 : f32 to vector<1x32xf32>
    %1605 = arith.mulf %1604, %1591 : vector<1x32xf32>
    %cst_570 = arith.constant 0.606530666 : f32
    %1606 = vector.broadcast %cst_570 : f32 to vector<1x32xf32>
    %1607 = arith.mulf %1606, %1571 : vector<1x32xf32>
    %1608 = arith.subf %1605, %1607 : vector<1x32xf32>
    %cst_571 = arith.constant -2.117000e+00 : f32
    %1609 = vector.broadcast %cst_571 : f32 to vector<1x32xf32>
    %1610 = arith.mulf %1609, %1603 : vector<1x32xf32>
    %1611 = arith.addf %1608, %1610 : vector<1x32xf32>
    %c7_i32_572 = arith.constant 7 : i32
    %1612 = vector.broadcast %c7_i32_572 : i32 to vector<8x32xi32>
    %1613 = arith.cmpi eq, %1294, %1612 : vector<8x32xi32>
    %1614 = vector.shape_cast %1603 : vector<1x32xf32> to vector<1x32xf32>
    %1615 = vector.broadcast %1614 : vector<1x32xf32> to vector<8x32xf32>
    %1616 = arith.select %1613, %1615, %1596 : vector<8x32xi1>, vector<8x32xf32>
    %cst_573 = arith.constant 0.000000e+00 : f32
    %1617 = vector.broadcast %cst_573 : f32 to vector<8x32xf32>
    %1618 = vector.extract_strided_slice %1291 {offsets = [16, 0], sizes = [1, 32], strides = [1, 1]} : vector<64x32xf32> to vector<1x32xf32>
    %1619 = arith.addf %1618, %1611 : vector<1x32xf32>
    %cst_574 = arith.constant 2.000000e+00 : f32
    %1620 = vector.broadcast %cst_574 : f32 to vector<1x32xf32>
    %1621 = arith.cmpf oge, %1619, %1620 : vector<1x32xf32>
    %cst_575 = arith.constant 1.000000e+00 : f32
    %cst_576 = arith.constant 0.000000e+00 : f32
    %1622 = vector.broadcast %cst_575 : f32 to vector<1x32xf32>
    %1623 = vector.broadcast %cst_576 : f32 to vector<1x32xf32>
    %1624 = arith.select %1621, %1622, %1623 : vector<1x32xi1>, vector<1x32xf32>
    %cst_577 = arith.constant 1.55760157 : f32
    %1625 = vector.broadcast %cst_577 : f32 to vector<1x32xf32>
    %1626 = arith.mulf %1625, %1611 : vector<1x32xf32>
    %cst_578 = arith.constant 0.606530666 : f32
    %1627 = vector.broadcast %cst_578 : f32 to vector<1x32xf32>
    %1628 = arith.mulf %1627, %1591 : vector<1x32xf32>
    %1629 = arith.subf %1626, %1628 : vector<1x32xf32>
    %cst_579 = arith.constant -2.117000e+00 : f32
    %1630 = vector.broadcast %cst_579 : f32 to vector<1x32xf32>
    %1631 = arith.mulf %1630, %1624 : vector<1x32xf32>
    %1632 = arith.addf %1629, %1631 : vector<1x32xf32>
    %c0_i32_580 = arith.constant 0 : i32
    %1633 = vector.broadcast %c0_i32_580 : i32 to vector<8x32xi32>
    %1634 = arith.cmpi eq, %1294, %1633 : vector<8x32xi32>
    %1635 = vector.shape_cast %1624 : vector<1x32xf32> to vector<1x32xf32>
    %1636 = vector.broadcast %1635 : vector<1x32xf32> to vector<8x32xf32>
    %1637 = arith.select %1634, %1636, %1617 : vector<8x32xi1>, vector<8x32xf32>
    %1638 = vector.extract_strided_slice %1291 {offsets = [17, 0], sizes = [1, 32], strides = [1, 1]} : vector<64x32xf32> to vector<1x32xf32>
    %1639 = arith.addf %1638, %1632 : vector<1x32xf32>
    %cst_581 = arith.constant 2.000000e+00 : f32
    %1640 = vector.broadcast %cst_581 : f32 to vector<1x32xf32>
    %1641 = arith.cmpf oge, %1639, %1640 : vector<1x32xf32>
    %cst_582 = arith.constant 1.000000e+00 : f32
    %cst_583 = arith.constant 0.000000e+00 : f32
    %1642 = vector.broadcast %cst_582 : f32 to vector<1x32xf32>
    %1643 = vector.broadcast %cst_583 : f32 to vector<1x32xf32>
    %1644 = arith.select %1641, %1642, %1643 : vector<1x32xi1>, vector<1x32xf32>
    %cst_584 = arith.constant 1.55760157 : f32
    %1645 = vector.broadcast %cst_584 : f32 to vector<1x32xf32>
    %1646 = arith.mulf %1645, %1632 : vector<1x32xf32>
    %cst_585 = arith.constant 0.606530666 : f32
    %1647 = vector.broadcast %cst_585 : f32 to vector<1x32xf32>
    %1648 = arith.mulf %1647, %1611 : vector<1x32xf32>
    %1649 = arith.subf %1646, %1648 : vector<1x32xf32>
    %cst_586 = arith.constant -2.117000e+00 : f32
    %1650 = vector.broadcast %cst_586 : f32 to vector<1x32xf32>
    %1651 = arith.mulf %1650, %1644 : vector<1x32xf32>
    %1652 = arith.addf %1649, %1651 : vector<1x32xf32>
    %c1_i32_587 = arith.constant 1 : i32
    %1653 = vector.broadcast %c1_i32_587 : i32 to vector<8x32xi32>
    %1654 = arith.cmpi eq, %1294, %1653 : vector<8x32xi32>
    %1655 = vector.shape_cast %1644 : vector<1x32xf32> to vector<1x32xf32>
    %1656 = vector.broadcast %1655 : vector<1x32xf32> to vector<8x32xf32>
    %1657 = arith.select %1654, %1656, %1637 : vector<8x32xi1>, vector<8x32xf32>
    %1658 = vector.extract_strided_slice %1291 {offsets = [18, 0], sizes = [1, 32], strides = [1, 1]} : vector<64x32xf32> to vector<1x32xf32>
    %1659 = arith.addf %1658, %1652 : vector<1x32xf32>
    %cst_588 = arith.constant 2.000000e+00 : f32
    %1660 = vector.broadcast %cst_588 : f32 to vector<1x32xf32>
    %1661 = arith.cmpf oge, %1659, %1660 : vector<1x32xf32>
    %cst_589 = arith.constant 1.000000e+00 : f32
    %cst_590 = arith.constant 0.000000e+00 : f32
    %1662 = vector.broadcast %cst_589 : f32 to vector<1x32xf32>
    %1663 = vector.broadcast %cst_590 : f32 to vector<1x32xf32>
    %1664 = arith.select %1661, %1662, %1663 : vector<1x32xi1>, vector<1x32xf32>
    %cst_591 = arith.constant 1.55760157 : f32
    %1665 = vector.broadcast %cst_591 : f32 to vector<1x32xf32>
    %1666 = arith.mulf %1665, %1652 : vector<1x32xf32>
    %cst_592 = arith.constant 0.606530666 : f32
    %1667 = vector.broadcast %cst_592 : f32 to vector<1x32xf32>
    %1668 = arith.mulf %1667, %1632 : vector<1x32xf32>
    %1669 = arith.subf %1666, %1668 : vector<1x32xf32>
    %cst_593 = arith.constant -2.117000e+00 : f32
    %1670 = vector.broadcast %cst_593 : f32 to vector<1x32xf32>
    %1671 = arith.mulf %1670, %1664 : vector<1x32xf32>
    %1672 = arith.addf %1669, %1671 : vector<1x32xf32>
    %c2_i32_594 = arith.constant 2 : i32
    %1673 = vector.broadcast %c2_i32_594 : i32 to vector<8x32xi32>
    %1674 = arith.cmpi eq, %1294, %1673 : vector<8x32xi32>
    %1675 = vector.shape_cast %1664 : vector<1x32xf32> to vector<1x32xf32>
    %1676 = vector.broadcast %1675 : vector<1x32xf32> to vector<8x32xf32>
    %1677 = arith.select %1674, %1676, %1657 : vector<8x32xi1>, vector<8x32xf32>
    %1678 = vector.extract_strided_slice %1291 {offsets = [19, 0], sizes = [1, 32], strides = [1, 1]} : vector<64x32xf32> to vector<1x32xf32>
    %1679 = arith.addf %1678, %1672 : vector<1x32xf32>
    %cst_595 = arith.constant 2.000000e+00 : f32
    %1680 = vector.broadcast %cst_595 : f32 to vector<1x32xf32>
    %1681 = arith.cmpf oge, %1679, %1680 : vector<1x32xf32>
    %cst_596 = arith.constant 1.000000e+00 : f32
    %cst_597 = arith.constant 0.000000e+00 : f32
    %1682 = vector.broadcast %cst_596 : f32 to vector<1x32xf32>
    %1683 = vector.broadcast %cst_597 : f32 to vector<1x32xf32>
    %1684 = arith.select %1681, %1682, %1683 : vector<1x32xi1>, vector<1x32xf32>
    %cst_598 = arith.constant 1.55760157 : f32
    %1685 = vector.broadcast %cst_598 : f32 to vector<1x32xf32>
    %1686 = arith.mulf %1685, %1672 : vector<1x32xf32>
    %cst_599 = arith.constant 0.606530666 : f32
    %1687 = vector.broadcast %cst_599 : f32 to vector<1x32xf32>
    %1688 = arith.mulf %1687, %1652 : vector<1x32xf32>
    %1689 = arith.subf %1686, %1688 : vector<1x32xf32>
    %cst_600 = arith.constant -2.117000e+00 : f32
    %1690 = vector.broadcast %cst_600 : f32 to vector<1x32xf32>
    %1691 = arith.mulf %1690, %1684 : vector<1x32xf32>
    %1692 = arith.addf %1689, %1691 : vector<1x32xf32>
    %c3_i32_601 = arith.constant 3 : i32
    %1693 = vector.broadcast %c3_i32_601 : i32 to vector<8x32xi32>
    %1694 = arith.cmpi eq, %1294, %1693 : vector<8x32xi32>
    %1695 = vector.shape_cast %1684 : vector<1x32xf32> to vector<1x32xf32>
    %1696 = vector.broadcast %1695 : vector<1x32xf32> to vector<8x32xf32>
    %1697 = arith.select %1694, %1696, %1677 : vector<8x32xi1>, vector<8x32xf32>
    %1698 = vector.extract_strided_slice %1291 {offsets = [20, 0], sizes = [1, 32], strides = [1, 1]} : vector<64x32xf32> to vector<1x32xf32>
    %1699 = arith.addf %1698, %1692 : vector<1x32xf32>
    %cst_602 = arith.constant 2.000000e+00 : f32
    %1700 = vector.broadcast %cst_602 : f32 to vector<1x32xf32>
    %1701 = arith.cmpf oge, %1699, %1700 : vector<1x32xf32>
    %cst_603 = arith.constant 1.000000e+00 : f32
    %cst_604 = arith.constant 0.000000e+00 : f32
    %1702 = vector.broadcast %cst_603 : f32 to vector<1x32xf32>
    %1703 = vector.broadcast %cst_604 : f32 to vector<1x32xf32>
    %1704 = arith.select %1701, %1702, %1703 : vector<1x32xi1>, vector<1x32xf32>
    %cst_605 = arith.constant 1.55760157 : f32
    %1705 = vector.broadcast %cst_605 : f32 to vector<1x32xf32>
    %1706 = arith.mulf %1705, %1692 : vector<1x32xf32>
    %cst_606 = arith.constant 0.606530666 : f32
    %1707 = vector.broadcast %cst_606 : f32 to vector<1x32xf32>
    %1708 = arith.mulf %1707, %1672 : vector<1x32xf32>
    %1709 = arith.subf %1706, %1708 : vector<1x32xf32>
    %cst_607 = arith.constant -2.117000e+00 : f32
    %1710 = vector.broadcast %cst_607 : f32 to vector<1x32xf32>
    %1711 = arith.mulf %1710, %1704 : vector<1x32xf32>
    %1712 = arith.addf %1709, %1711 : vector<1x32xf32>
    %c4_i32_608 = arith.constant 4 : i32
    %1713 = vector.broadcast %c4_i32_608 : i32 to vector<8x32xi32>
    %1714 = arith.cmpi eq, %1294, %1713 : vector<8x32xi32>
    %1715 = vector.shape_cast %1704 : vector<1x32xf32> to vector<1x32xf32>
    %1716 = vector.broadcast %1715 : vector<1x32xf32> to vector<8x32xf32>
    %1717 = arith.select %1714, %1716, %1697 : vector<8x32xi1>, vector<8x32xf32>
    %1718 = vector.extract_strided_slice %1291 {offsets = [21, 0], sizes = [1, 32], strides = [1, 1]} : vector<64x32xf32> to vector<1x32xf32>
    %1719 = arith.addf %1718, %1712 : vector<1x32xf32>
    %cst_609 = arith.constant 2.000000e+00 : f32
    %1720 = vector.broadcast %cst_609 : f32 to vector<1x32xf32>
    %1721 = arith.cmpf oge, %1719, %1720 : vector<1x32xf32>
    %cst_610 = arith.constant 1.000000e+00 : f32
    %cst_611 = arith.constant 0.000000e+00 : f32
    %1722 = vector.broadcast %cst_610 : f32 to vector<1x32xf32>
    %1723 = vector.broadcast %cst_611 : f32 to vector<1x32xf32>
    %1724 = arith.select %1721, %1722, %1723 : vector<1x32xi1>, vector<1x32xf32>
    %cst_612 = arith.constant 1.55760157 : f32
    %1725 = vector.broadcast %cst_612 : f32 to vector<1x32xf32>
    %1726 = arith.mulf %1725, %1712 : vector<1x32xf32>
    %cst_613 = arith.constant 0.606530666 : f32
    %1727 = vector.broadcast %cst_613 : f32 to vector<1x32xf32>
    %1728 = arith.mulf %1727, %1692 : vector<1x32xf32>
    %1729 = arith.subf %1726, %1728 : vector<1x32xf32>
    %cst_614 = arith.constant -2.117000e+00 : f32
    %1730 = vector.broadcast %cst_614 : f32 to vector<1x32xf32>
    %1731 = arith.mulf %1730, %1724 : vector<1x32xf32>
    %1732 = arith.addf %1729, %1731 : vector<1x32xf32>
    %c5_i32_615 = arith.constant 5 : i32
    %1733 = vector.broadcast %c5_i32_615 : i32 to vector<8x32xi32>
    %1734 = arith.cmpi eq, %1294, %1733 : vector<8x32xi32>
    %1735 = vector.shape_cast %1724 : vector<1x32xf32> to vector<1x32xf32>
    %1736 = vector.broadcast %1735 : vector<1x32xf32> to vector<8x32xf32>
    %1737 = arith.select %1734, %1736, %1717 : vector<8x32xi1>, vector<8x32xf32>
    %1738 = vector.extract_strided_slice %1291 {offsets = [22, 0], sizes = [1, 32], strides = [1, 1]} : vector<64x32xf32> to vector<1x32xf32>
    %1739 = arith.addf %1738, %1732 : vector<1x32xf32>
    %cst_616 = arith.constant 2.000000e+00 : f32
    %1740 = vector.broadcast %cst_616 : f32 to vector<1x32xf32>
    %1741 = arith.cmpf oge, %1739, %1740 : vector<1x32xf32>
    %cst_617 = arith.constant 1.000000e+00 : f32
    %cst_618 = arith.constant 0.000000e+00 : f32
    %1742 = vector.broadcast %cst_617 : f32 to vector<1x32xf32>
    %1743 = vector.broadcast %cst_618 : f32 to vector<1x32xf32>
    %1744 = arith.select %1741, %1742, %1743 : vector<1x32xi1>, vector<1x32xf32>
    %cst_619 = arith.constant 1.55760157 : f32
    %1745 = vector.broadcast %cst_619 : f32 to vector<1x32xf32>
    %1746 = arith.mulf %1745, %1732 : vector<1x32xf32>
    %cst_620 = arith.constant 0.606530666 : f32
    %1747 = vector.broadcast %cst_620 : f32 to vector<1x32xf32>
    %1748 = arith.mulf %1747, %1712 : vector<1x32xf32>
    %1749 = arith.subf %1746, %1748 : vector<1x32xf32>
    %cst_621 = arith.constant -2.117000e+00 : f32
    %1750 = vector.broadcast %cst_621 : f32 to vector<1x32xf32>
    %1751 = arith.mulf %1750, %1744 : vector<1x32xf32>
    %1752 = arith.addf %1749, %1751 : vector<1x32xf32>
    %c6_i32_622 = arith.constant 6 : i32
    %1753 = vector.broadcast %c6_i32_622 : i32 to vector<8x32xi32>
    %1754 = arith.cmpi eq, %1294, %1753 : vector<8x32xi32>
    %1755 = vector.shape_cast %1744 : vector<1x32xf32> to vector<1x32xf32>
    %1756 = vector.broadcast %1755 : vector<1x32xf32> to vector<8x32xf32>
    %1757 = arith.select %1754, %1756, %1737 : vector<8x32xi1>, vector<8x32xf32>
    %1758 = vector.extract_strided_slice %1291 {offsets = [23, 0], sizes = [1, 32], strides = [1, 1]} : vector<64x32xf32> to vector<1x32xf32>
    %1759 = arith.addf %1758, %1752 : vector<1x32xf32>
    %cst_623 = arith.constant 2.000000e+00 : f32
    %1760 = vector.broadcast %cst_623 : f32 to vector<1x32xf32>
    %1761 = arith.cmpf oge, %1759, %1760 : vector<1x32xf32>
    %cst_624 = arith.constant 1.000000e+00 : f32
    %cst_625 = arith.constant 0.000000e+00 : f32
    %1762 = vector.broadcast %cst_624 : f32 to vector<1x32xf32>
    %1763 = vector.broadcast %cst_625 : f32 to vector<1x32xf32>
    %1764 = arith.select %1761, %1762, %1763 : vector<1x32xi1>, vector<1x32xf32>
    %cst_626 = arith.constant 1.55760157 : f32
    %1765 = vector.broadcast %cst_626 : f32 to vector<1x32xf32>
    %1766 = arith.mulf %1765, %1752 : vector<1x32xf32>
    %cst_627 = arith.constant 0.606530666 : f32
    %1767 = vector.broadcast %cst_627 : f32 to vector<1x32xf32>
    %1768 = arith.mulf %1767, %1732 : vector<1x32xf32>
    %1769 = arith.subf %1766, %1768 : vector<1x32xf32>
    %cst_628 = arith.constant -2.117000e+00 : f32
    %1770 = vector.broadcast %cst_628 : f32 to vector<1x32xf32>
    %1771 = arith.mulf %1770, %1764 : vector<1x32xf32>
    %1772 = arith.addf %1769, %1771 : vector<1x32xf32>
    %c7_i32_629 = arith.constant 7 : i32
    %1773 = vector.broadcast %c7_i32_629 : i32 to vector<8x32xi32>
    %1774 = arith.cmpi eq, %1294, %1773 : vector<8x32xi32>
    %1775 = vector.shape_cast %1764 : vector<1x32xf32> to vector<1x32xf32>
    %1776 = vector.broadcast %1775 : vector<1x32xf32> to vector<8x32xf32>
    %1777 = arith.select %1774, %1776, %1757 : vector<8x32xi1>, vector<8x32xf32>
    %cst_630 = arith.constant 0.000000e+00 : f32
    %1778 = vector.broadcast %cst_630 : f32 to vector<8x32xf32>
    %1779 = vector.extract_strided_slice %1291 {offsets = [24, 0], sizes = [1, 32], strides = [1, 1]} : vector<64x32xf32> to vector<1x32xf32>
    %1780 = arith.addf %1779, %1772 : vector<1x32xf32>
    %cst_631 = arith.constant 2.000000e+00 : f32
    %1781 = vector.broadcast %cst_631 : f32 to vector<1x32xf32>
    %1782 = arith.cmpf oge, %1780, %1781 : vector<1x32xf32>
    %cst_632 = arith.constant 1.000000e+00 : f32
    %cst_633 = arith.constant 0.000000e+00 : f32
    %1783 = vector.broadcast %cst_632 : f32 to vector<1x32xf32>
    %1784 = vector.broadcast %cst_633 : f32 to vector<1x32xf32>
    %1785 = arith.select %1782, %1783, %1784 : vector<1x32xi1>, vector<1x32xf32>
    %cst_634 = arith.constant 1.55760157 : f32
    %1786 = vector.broadcast %cst_634 : f32 to vector<1x32xf32>
    %1787 = arith.mulf %1786, %1772 : vector<1x32xf32>
    %cst_635 = arith.constant 0.606530666 : f32
    %1788 = vector.broadcast %cst_635 : f32 to vector<1x32xf32>
    %1789 = arith.mulf %1788, %1752 : vector<1x32xf32>
    %1790 = arith.subf %1787, %1789 : vector<1x32xf32>
    %cst_636 = arith.constant -2.117000e+00 : f32
    %1791 = vector.broadcast %cst_636 : f32 to vector<1x32xf32>
    %1792 = arith.mulf %1791, %1785 : vector<1x32xf32>
    %1793 = arith.addf %1790, %1792 : vector<1x32xf32>
    %c0_i32_637 = arith.constant 0 : i32
    %1794 = vector.broadcast %c0_i32_637 : i32 to vector<8x32xi32>
    %1795 = arith.cmpi eq, %1294, %1794 : vector<8x32xi32>
    %1796 = vector.shape_cast %1785 : vector<1x32xf32> to vector<1x32xf32>
    %1797 = vector.broadcast %1796 : vector<1x32xf32> to vector<8x32xf32>
    %1798 = arith.select %1795, %1797, %1778 : vector<8x32xi1>, vector<8x32xf32>
    %1799 = vector.extract_strided_slice %1291 {offsets = [25, 0], sizes = [1, 32], strides = [1, 1]} : vector<64x32xf32> to vector<1x32xf32>
    %1800 = arith.addf %1799, %1793 : vector<1x32xf32>
    %cst_638 = arith.constant 2.000000e+00 : f32
    %1801 = vector.broadcast %cst_638 : f32 to vector<1x32xf32>
    %1802 = arith.cmpf oge, %1800, %1801 : vector<1x32xf32>
    %cst_639 = arith.constant 1.000000e+00 : f32
    %cst_640 = arith.constant 0.000000e+00 : f32
    %1803 = vector.broadcast %cst_639 : f32 to vector<1x32xf32>
    %1804 = vector.broadcast %cst_640 : f32 to vector<1x32xf32>
    %1805 = arith.select %1802, %1803, %1804 : vector<1x32xi1>, vector<1x32xf32>
    %cst_641 = arith.constant 1.55760157 : f32
    %1806 = vector.broadcast %cst_641 : f32 to vector<1x32xf32>
    %1807 = arith.mulf %1806, %1793 : vector<1x32xf32>
    %cst_642 = arith.constant 0.606530666 : f32
    %1808 = vector.broadcast %cst_642 : f32 to vector<1x32xf32>
    %1809 = arith.mulf %1808, %1772 : vector<1x32xf32>
    %1810 = arith.subf %1807, %1809 : vector<1x32xf32>
    %cst_643 = arith.constant -2.117000e+00 : f32
    %1811 = vector.broadcast %cst_643 : f32 to vector<1x32xf32>
    %1812 = arith.mulf %1811, %1805 : vector<1x32xf32>
    %1813 = arith.addf %1810, %1812 : vector<1x32xf32>
    %c1_i32_644 = arith.constant 1 : i32
    %1814 = vector.broadcast %c1_i32_644 : i32 to vector<8x32xi32>
    %1815 = arith.cmpi eq, %1294, %1814 : vector<8x32xi32>
    %1816 = vector.shape_cast %1805 : vector<1x32xf32> to vector<1x32xf32>
    %1817 = vector.broadcast %1816 : vector<1x32xf32> to vector<8x32xf32>
    %1818 = arith.select %1815, %1817, %1798 : vector<8x32xi1>, vector<8x32xf32>
    %1819 = vector.extract_strided_slice %1291 {offsets = [26, 0], sizes = [1, 32], strides = [1, 1]} : vector<64x32xf32> to vector<1x32xf32>
    %1820 = arith.addf %1819, %1813 : vector<1x32xf32>
    %cst_645 = arith.constant 2.000000e+00 : f32
    %1821 = vector.broadcast %cst_645 : f32 to vector<1x32xf32>
    %1822 = arith.cmpf oge, %1820, %1821 : vector<1x32xf32>
    %cst_646 = arith.constant 1.000000e+00 : f32
    %cst_647 = arith.constant 0.000000e+00 : f32
    %1823 = vector.broadcast %cst_646 : f32 to vector<1x32xf32>
    %1824 = vector.broadcast %cst_647 : f32 to vector<1x32xf32>
    %1825 = arith.select %1822, %1823, %1824 : vector<1x32xi1>, vector<1x32xf32>
    %cst_648 = arith.constant 1.55760157 : f32
    %1826 = vector.broadcast %cst_648 : f32 to vector<1x32xf32>
    %1827 = arith.mulf %1826, %1813 : vector<1x32xf32>
    %cst_649 = arith.constant 0.606530666 : f32
    %1828 = vector.broadcast %cst_649 : f32 to vector<1x32xf32>
    %1829 = arith.mulf %1828, %1793 : vector<1x32xf32>
    %1830 = arith.subf %1827, %1829 : vector<1x32xf32>
    %cst_650 = arith.constant -2.117000e+00 : f32
    %1831 = vector.broadcast %cst_650 : f32 to vector<1x32xf32>
    %1832 = arith.mulf %1831, %1825 : vector<1x32xf32>
    %1833 = arith.addf %1830, %1832 : vector<1x32xf32>
    %c2_i32_651 = arith.constant 2 : i32
    %1834 = vector.broadcast %c2_i32_651 : i32 to vector<8x32xi32>
    %1835 = arith.cmpi eq, %1294, %1834 : vector<8x32xi32>
    %1836 = vector.shape_cast %1825 : vector<1x32xf32> to vector<1x32xf32>
    %1837 = vector.broadcast %1836 : vector<1x32xf32> to vector<8x32xf32>
    %1838 = arith.select %1835, %1837, %1818 : vector<8x32xi1>, vector<8x32xf32>
    %1839 = vector.extract_strided_slice %1291 {offsets = [27, 0], sizes = [1, 32], strides = [1, 1]} : vector<64x32xf32> to vector<1x32xf32>
    %1840 = arith.addf %1839, %1833 : vector<1x32xf32>
    %cst_652 = arith.constant 2.000000e+00 : f32
    %1841 = vector.broadcast %cst_652 : f32 to vector<1x32xf32>
    %1842 = arith.cmpf oge, %1840, %1841 : vector<1x32xf32>
    %cst_653 = arith.constant 1.000000e+00 : f32
    %cst_654 = arith.constant 0.000000e+00 : f32
    %1843 = vector.broadcast %cst_653 : f32 to vector<1x32xf32>
    %1844 = vector.broadcast %cst_654 : f32 to vector<1x32xf32>
    %1845 = arith.select %1842, %1843, %1844 : vector<1x32xi1>, vector<1x32xf32>
    %cst_655 = arith.constant 1.55760157 : f32
    %1846 = vector.broadcast %cst_655 : f32 to vector<1x32xf32>
    %1847 = arith.mulf %1846, %1833 : vector<1x32xf32>
    %cst_656 = arith.constant 0.606530666 : f32
    %1848 = vector.broadcast %cst_656 : f32 to vector<1x32xf32>
    %1849 = arith.mulf %1848, %1813 : vector<1x32xf32>
    %1850 = arith.subf %1847, %1849 : vector<1x32xf32>
    %cst_657 = arith.constant -2.117000e+00 : f32
    %1851 = vector.broadcast %cst_657 : f32 to vector<1x32xf32>
    %1852 = arith.mulf %1851, %1845 : vector<1x32xf32>
    %1853 = arith.addf %1850, %1852 : vector<1x32xf32>
    %c3_i32_658 = arith.constant 3 : i32
    %1854 = vector.broadcast %c3_i32_658 : i32 to vector<8x32xi32>
    %1855 = arith.cmpi eq, %1294, %1854 : vector<8x32xi32>
    %1856 = vector.shape_cast %1845 : vector<1x32xf32> to vector<1x32xf32>
    %1857 = vector.broadcast %1856 : vector<1x32xf32> to vector<8x32xf32>
    %1858 = arith.select %1855, %1857, %1838 : vector<8x32xi1>, vector<8x32xf32>
    %1859 = vector.extract_strided_slice %1291 {offsets = [28, 0], sizes = [1, 32], strides = [1, 1]} : vector<64x32xf32> to vector<1x32xf32>
    %1860 = arith.addf %1859, %1853 : vector<1x32xf32>
    %cst_659 = arith.constant 2.000000e+00 : f32
    %1861 = vector.broadcast %cst_659 : f32 to vector<1x32xf32>
    %1862 = arith.cmpf oge, %1860, %1861 : vector<1x32xf32>
    %cst_660 = arith.constant 1.000000e+00 : f32
    %cst_661 = arith.constant 0.000000e+00 : f32
    %1863 = vector.broadcast %cst_660 : f32 to vector<1x32xf32>
    %1864 = vector.broadcast %cst_661 : f32 to vector<1x32xf32>
    %1865 = arith.select %1862, %1863, %1864 : vector<1x32xi1>, vector<1x32xf32>
    %cst_662 = arith.constant 1.55760157 : f32
    %1866 = vector.broadcast %cst_662 : f32 to vector<1x32xf32>
    %1867 = arith.mulf %1866, %1853 : vector<1x32xf32>
    %cst_663 = arith.constant 0.606530666 : f32
    %1868 = vector.broadcast %cst_663 : f32 to vector<1x32xf32>
    %1869 = arith.mulf %1868, %1833 : vector<1x32xf32>
    %1870 = arith.subf %1867, %1869 : vector<1x32xf32>
    %cst_664 = arith.constant -2.117000e+00 : f32
    %1871 = vector.broadcast %cst_664 : f32 to vector<1x32xf32>
    %1872 = arith.mulf %1871, %1865 : vector<1x32xf32>
    %1873 = arith.addf %1870, %1872 : vector<1x32xf32>
    %c4_i32_665 = arith.constant 4 : i32
    %1874 = vector.broadcast %c4_i32_665 : i32 to vector<8x32xi32>
    %1875 = arith.cmpi eq, %1294, %1874 : vector<8x32xi32>
    %1876 = vector.shape_cast %1865 : vector<1x32xf32> to vector<1x32xf32>
    %1877 = vector.broadcast %1876 : vector<1x32xf32> to vector<8x32xf32>
    %1878 = arith.select %1875, %1877, %1858 : vector<8x32xi1>, vector<8x32xf32>
    %1879 = vector.extract_strided_slice %1291 {offsets = [29, 0], sizes = [1, 32], strides = [1, 1]} : vector<64x32xf32> to vector<1x32xf32>
    %1880 = arith.addf %1879, %1873 : vector<1x32xf32>
    %cst_666 = arith.constant 2.000000e+00 : f32
    %1881 = vector.broadcast %cst_666 : f32 to vector<1x32xf32>
    %1882 = arith.cmpf oge, %1880, %1881 : vector<1x32xf32>
    %cst_667 = arith.constant 1.000000e+00 : f32
    %cst_668 = arith.constant 0.000000e+00 : f32
    %1883 = vector.broadcast %cst_667 : f32 to vector<1x32xf32>
    %1884 = vector.broadcast %cst_668 : f32 to vector<1x32xf32>
    %1885 = arith.select %1882, %1883, %1884 : vector<1x32xi1>, vector<1x32xf32>
    %cst_669 = arith.constant 1.55760157 : f32
    %1886 = vector.broadcast %cst_669 : f32 to vector<1x32xf32>
    %1887 = arith.mulf %1886, %1873 : vector<1x32xf32>
    %cst_670 = arith.constant 0.606530666 : f32
    %1888 = vector.broadcast %cst_670 : f32 to vector<1x32xf32>
    %1889 = arith.mulf %1888, %1853 : vector<1x32xf32>
    %1890 = arith.subf %1887, %1889 : vector<1x32xf32>
    %cst_671 = arith.constant -2.117000e+00 : f32
    %1891 = vector.broadcast %cst_671 : f32 to vector<1x32xf32>
    %1892 = arith.mulf %1891, %1885 : vector<1x32xf32>
    %1893 = arith.addf %1890, %1892 : vector<1x32xf32>
    %c5_i32_672 = arith.constant 5 : i32
    %1894 = vector.broadcast %c5_i32_672 : i32 to vector<8x32xi32>
    %1895 = arith.cmpi eq, %1294, %1894 : vector<8x32xi32>
    %1896 = vector.shape_cast %1885 : vector<1x32xf32> to vector<1x32xf32>
    %1897 = vector.broadcast %1896 : vector<1x32xf32> to vector<8x32xf32>
    %1898 = arith.select %1895, %1897, %1878 : vector<8x32xi1>, vector<8x32xf32>
    %1899 = vector.extract_strided_slice %1291 {offsets = [30, 0], sizes = [1, 32], strides = [1, 1]} : vector<64x32xf32> to vector<1x32xf32>
    %1900 = arith.addf %1899, %1893 : vector<1x32xf32>
    %cst_673 = arith.constant 2.000000e+00 : f32
    %1901 = vector.broadcast %cst_673 : f32 to vector<1x32xf32>
    %1902 = arith.cmpf oge, %1900, %1901 : vector<1x32xf32>
    %cst_674 = arith.constant 1.000000e+00 : f32
    %cst_675 = arith.constant 0.000000e+00 : f32
    %1903 = vector.broadcast %cst_674 : f32 to vector<1x32xf32>
    %1904 = vector.broadcast %cst_675 : f32 to vector<1x32xf32>
    %1905 = arith.select %1902, %1903, %1904 : vector<1x32xi1>, vector<1x32xf32>
    %cst_676 = arith.constant 1.55760157 : f32
    %1906 = vector.broadcast %cst_676 : f32 to vector<1x32xf32>
    %1907 = arith.mulf %1906, %1893 : vector<1x32xf32>
    %cst_677 = arith.constant 0.606530666 : f32
    %1908 = vector.broadcast %cst_677 : f32 to vector<1x32xf32>
    %1909 = arith.mulf %1908, %1873 : vector<1x32xf32>
    %1910 = arith.subf %1907, %1909 : vector<1x32xf32>
    %cst_678 = arith.constant -2.117000e+00 : f32
    %1911 = vector.broadcast %cst_678 : f32 to vector<1x32xf32>
    %1912 = arith.mulf %1911, %1905 : vector<1x32xf32>
    %1913 = arith.addf %1910, %1912 : vector<1x32xf32>
    %c6_i32_679 = arith.constant 6 : i32
    %1914 = vector.broadcast %c6_i32_679 : i32 to vector<8x32xi32>
    %1915 = arith.cmpi eq, %1294, %1914 : vector<8x32xi32>
    %1916 = vector.shape_cast %1905 : vector<1x32xf32> to vector<1x32xf32>
    %1917 = vector.broadcast %1916 : vector<1x32xf32> to vector<8x32xf32>
    %1918 = arith.select %1915, %1917, %1898 : vector<8x32xi1>, vector<8x32xf32>
    %1919 = vector.extract_strided_slice %1291 {offsets = [31, 0], sizes = [1, 32], strides = [1, 1]} : vector<64x32xf32> to vector<1x32xf32>
    %1920 = arith.addf %1919, %1913 : vector<1x32xf32>
    %cst_680 = arith.constant 2.000000e+00 : f32
    %1921 = vector.broadcast %cst_680 : f32 to vector<1x32xf32>
    %1922 = arith.cmpf oge, %1920, %1921 : vector<1x32xf32>
    %cst_681 = arith.constant 1.000000e+00 : f32
    %cst_682 = arith.constant 0.000000e+00 : f32
    %1923 = vector.broadcast %cst_681 : f32 to vector<1x32xf32>
    %1924 = vector.broadcast %cst_682 : f32 to vector<1x32xf32>
    %1925 = arith.select %1922, %1923, %1924 : vector<1x32xi1>, vector<1x32xf32>
    %cst_683 = arith.constant 1.55760157 : f32
    %1926 = vector.broadcast %cst_683 : f32 to vector<1x32xf32>
    %1927 = arith.mulf %1926, %1913 : vector<1x32xf32>
    %cst_684 = arith.constant 0.606530666 : f32
    %1928 = vector.broadcast %cst_684 : f32 to vector<1x32xf32>
    %1929 = arith.mulf %1928, %1893 : vector<1x32xf32>
    %1930 = arith.subf %1927, %1929 : vector<1x32xf32>
    %cst_685 = arith.constant -2.117000e+00 : f32
    %1931 = vector.broadcast %cst_685 : f32 to vector<1x32xf32>
    %1932 = arith.mulf %1931, %1925 : vector<1x32xf32>
    %1933 = arith.addf %1930, %1932 : vector<1x32xf32>
    %c7_i32_686 = arith.constant 7 : i32
    %1934 = vector.broadcast %c7_i32_686 : i32 to vector<8x32xi32>
    %1935 = arith.cmpi eq, %1294, %1934 : vector<8x32xi32>
    %1936 = vector.shape_cast %1925 : vector<1x32xf32> to vector<1x32xf32>
    %1937 = vector.broadcast %1936 : vector<1x32xf32> to vector<8x32xf32>
    %1938 = arith.select %1935, %1937, %1918 : vector<8x32xi1>, vector<8x32xf32>
    %cst_687 = arith.constant 0.000000e+00 : f32
    %1939 = vector.broadcast %cst_687 : f32 to vector<8x32xf32>
    %1940 = vector.extract_strided_slice %1291 {offsets = [32, 0], sizes = [1, 32], strides = [1, 1]} : vector<64x32xf32> to vector<1x32xf32>
    %1941 = arith.addf %1940, %1933 : vector<1x32xf32>
    %cst_688 = arith.constant 2.000000e+00 : f32
    %1942 = vector.broadcast %cst_688 : f32 to vector<1x32xf32>
    %1943 = arith.cmpf oge, %1941, %1942 : vector<1x32xf32>
    %cst_689 = arith.constant 1.000000e+00 : f32
    %cst_690 = arith.constant 0.000000e+00 : f32
    %1944 = vector.broadcast %cst_689 : f32 to vector<1x32xf32>
    %1945 = vector.broadcast %cst_690 : f32 to vector<1x32xf32>
    %1946 = arith.select %1943, %1944, %1945 : vector<1x32xi1>, vector<1x32xf32>
    %cst_691 = arith.constant 1.55760157 : f32
    %1947 = vector.broadcast %cst_691 : f32 to vector<1x32xf32>
    %1948 = arith.mulf %1947, %1933 : vector<1x32xf32>
    %cst_692 = arith.constant 0.606530666 : f32
    %1949 = vector.broadcast %cst_692 : f32 to vector<1x32xf32>
    %1950 = arith.mulf %1949, %1913 : vector<1x32xf32>
    %1951 = arith.subf %1948, %1950 : vector<1x32xf32>
    %cst_693 = arith.constant -2.117000e+00 : f32
    %1952 = vector.broadcast %cst_693 : f32 to vector<1x32xf32>
    %1953 = arith.mulf %1952, %1946 : vector<1x32xf32>
    %1954 = arith.addf %1951, %1953 : vector<1x32xf32>
    %c0_i32_694 = arith.constant 0 : i32
    %1955 = vector.broadcast %c0_i32_694 : i32 to vector<8x32xi32>
    %1956 = arith.cmpi eq, %1294, %1955 : vector<8x32xi32>
    %1957 = vector.shape_cast %1946 : vector<1x32xf32> to vector<1x32xf32>
    %1958 = vector.broadcast %1957 : vector<1x32xf32> to vector<8x32xf32>
    %1959 = arith.select %1956, %1958, %1939 : vector<8x32xi1>, vector<8x32xf32>
    %1960 = vector.extract_strided_slice %1291 {offsets = [33, 0], sizes = [1, 32], strides = [1, 1]} : vector<64x32xf32> to vector<1x32xf32>
    %1961 = arith.addf %1960, %1954 : vector<1x32xf32>
    %cst_695 = arith.constant 2.000000e+00 : f32
    %1962 = vector.broadcast %cst_695 : f32 to vector<1x32xf32>
    %1963 = arith.cmpf oge, %1961, %1962 : vector<1x32xf32>
    %cst_696 = arith.constant 1.000000e+00 : f32
    %cst_697 = arith.constant 0.000000e+00 : f32
    %1964 = vector.broadcast %cst_696 : f32 to vector<1x32xf32>
    %1965 = vector.broadcast %cst_697 : f32 to vector<1x32xf32>
    %1966 = arith.select %1963, %1964, %1965 : vector<1x32xi1>, vector<1x32xf32>
    %cst_698 = arith.constant 1.55760157 : f32
    %1967 = vector.broadcast %cst_698 : f32 to vector<1x32xf32>
    %1968 = arith.mulf %1967, %1954 : vector<1x32xf32>
    %cst_699 = arith.constant 0.606530666 : f32
    %1969 = vector.broadcast %cst_699 : f32 to vector<1x32xf32>
    %1970 = arith.mulf %1969, %1933 : vector<1x32xf32>
    %1971 = arith.subf %1968, %1970 : vector<1x32xf32>
    %cst_700 = arith.constant -2.117000e+00 : f32
    %1972 = vector.broadcast %cst_700 : f32 to vector<1x32xf32>
    %1973 = arith.mulf %1972, %1966 : vector<1x32xf32>
    %1974 = arith.addf %1971, %1973 : vector<1x32xf32>
    %c1_i32_701 = arith.constant 1 : i32
    %1975 = vector.broadcast %c1_i32_701 : i32 to vector<8x32xi32>
    %1976 = arith.cmpi eq, %1294, %1975 : vector<8x32xi32>
    %1977 = vector.shape_cast %1966 : vector<1x32xf32> to vector<1x32xf32>
    %1978 = vector.broadcast %1977 : vector<1x32xf32> to vector<8x32xf32>
    %1979 = arith.select %1976, %1978, %1959 : vector<8x32xi1>, vector<8x32xf32>
    %1980 = vector.extract_strided_slice %1291 {offsets = [34, 0], sizes = [1, 32], strides = [1, 1]} : vector<64x32xf32> to vector<1x32xf32>
    %1981 = arith.addf %1980, %1974 : vector<1x32xf32>
    %cst_702 = arith.constant 2.000000e+00 : f32
    %1982 = vector.broadcast %cst_702 : f32 to vector<1x32xf32>
    %1983 = arith.cmpf oge, %1981, %1982 : vector<1x32xf32>
    %cst_703 = arith.constant 1.000000e+00 : f32
    %cst_704 = arith.constant 0.000000e+00 : f32
    %1984 = vector.broadcast %cst_703 : f32 to vector<1x32xf32>
    %1985 = vector.broadcast %cst_704 : f32 to vector<1x32xf32>
    %1986 = arith.select %1983, %1984, %1985 : vector<1x32xi1>, vector<1x32xf32>
    %cst_705 = arith.constant 1.55760157 : f32
    %1987 = vector.broadcast %cst_705 : f32 to vector<1x32xf32>
    %1988 = arith.mulf %1987, %1974 : vector<1x32xf32>
    %cst_706 = arith.constant 0.606530666 : f32
    %1989 = vector.broadcast %cst_706 : f32 to vector<1x32xf32>
    %1990 = arith.mulf %1989, %1954 : vector<1x32xf32>
    %1991 = arith.subf %1988, %1990 : vector<1x32xf32>
    %cst_707 = arith.constant -2.117000e+00 : f32
    %1992 = vector.broadcast %cst_707 : f32 to vector<1x32xf32>
    %1993 = arith.mulf %1992, %1986 : vector<1x32xf32>
    %1994 = arith.addf %1991, %1993 : vector<1x32xf32>
    %c2_i32_708 = arith.constant 2 : i32
    %1995 = vector.broadcast %c2_i32_708 : i32 to vector<8x32xi32>
    %1996 = arith.cmpi eq, %1294, %1995 : vector<8x32xi32>
    %1997 = vector.shape_cast %1986 : vector<1x32xf32> to vector<1x32xf32>
    %1998 = vector.broadcast %1997 : vector<1x32xf32> to vector<8x32xf32>
    %1999 = arith.select %1996, %1998, %1979 : vector<8x32xi1>, vector<8x32xf32>
    %2000 = vector.extract_strided_slice %1291 {offsets = [35, 0], sizes = [1, 32], strides = [1, 1]} : vector<64x32xf32> to vector<1x32xf32>
    %2001 = arith.addf %2000, %1994 : vector<1x32xf32>
    %cst_709 = arith.constant 2.000000e+00 : f32
    %2002 = vector.broadcast %cst_709 : f32 to vector<1x32xf32>
    %2003 = arith.cmpf oge, %2001, %2002 : vector<1x32xf32>
    %cst_710 = arith.constant 1.000000e+00 : f32
    %cst_711 = arith.constant 0.000000e+00 : f32
    %2004 = vector.broadcast %cst_710 : f32 to vector<1x32xf32>
    %2005 = vector.broadcast %cst_711 : f32 to vector<1x32xf32>
    %2006 = arith.select %2003, %2004, %2005 : vector<1x32xi1>, vector<1x32xf32>
    %cst_712 = arith.constant 1.55760157 : f32
    %2007 = vector.broadcast %cst_712 : f32 to vector<1x32xf32>
    %2008 = arith.mulf %2007, %1994 : vector<1x32xf32>
    %cst_713 = arith.constant 0.606530666 : f32
    %2009 = vector.broadcast %cst_713 : f32 to vector<1x32xf32>
    %2010 = arith.mulf %2009, %1974 : vector<1x32xf32>
    %2011 = arith.subf %2008, %2010 : vector<1x32xf32>
    %cst_714 = arith.constant -2.117000e+00 : f32
    %2012 = vector.broadcast %cst_714 : f32 to vector<1x32xf32>
    %2013 = arith.mulf %2012, %2006 : vector<1x32xf32>
    %2014 = arith.addf %2011, %2013 : vector<1x32xf32>
    %c3_i32_715 = arith.constant 3 : i32
    %2015 = vector.broadcast %c3_i32_715 : i32 to vector<8x32xi32>
    %2016 = arith.cmpi eq, %1294, %2015 : vector<8x32xi32>
    %2017 = vector.shape_cast %2006 : vector<1x32xf32> to vector<1x32xf32>
    %2018 = vector.broadcast %2017 : vector<1x32xf32> to vector<8x32xf32>
    %2019 = arith.select %2016, %2018, %1999 : vector<8x32xi1>, vector<8x32xf32>
    %2020 = vector.extract_strided_slice %1291 {offsets = [36, 0], sizes = [1, 32], strides = [1, 1]} : vector<64x32xf32> to vector<1x32xf32>
    %2021 = arith.addf %2020, %2014 : vector<1x32xf32>
    %cst_716 = arith.constant 2.000000e+00 : f32
    %2022 = vector.broadcast %cst_716 : f32 to vector<1x32xf32>
    %2023 = arith.cmpf oge, %2021, %2022 : vector<1x32xf32>
    %cst_717 = arith.constant 1.000000e+00 : f32
    %cst_718 = arith.constant 0.000000e+00 : f32
    %2024 = vector.broadcast %cst_717 : f32 to vector<1x32xf32>
    %2025 = vector.broadcast %cst_718 : f32 to vector<1x32xf32>
    %2026 = arith.select %2023, %2024, %2025 : vector<1x32xi1>, vector<1x32xf32>
    %cst_719 = arith.constant 1.55760157 : f32
    %2027 = vector.broadcast %cst_719 : f32 to vector<1x32xf32>
    %2028 = arith.mulf %2027, %2014 : vector<1x32xf32>
    %cst_720 = arith.constant 0.606530666 : f32
    %2029 = vector.broadcast %cst_720 : f32 to vector<1x32xf32>
    %2030 = arith.mulf %2029, %1994 : vector<1x32xf32>
    %2031 = arith.subf %2028, %2030 : vector<1x32xf32>
    %cst_721 = arith.constant -2.117000e+00 : f32
    %2032 = vector.broadcast %cst_721 : f32 to vector<1x32xf32>
    %2033 = arith.mulf %2032, %2026 : vector<1x32xf32>
    %2034 = arith.addf %2031, %2033 : vector<1x32xf32>
    %c4_i32_722 = arith.constant 4 : i32
    %2035 = vector.broadcast %c4_i32_722 : i32 to vector<8x32xi32>
    %2036 = arith.cmpi eq, %1294, %2035 : vector<8x32xi32>
    %2037 = vector.shape_cast %2026 : vector<1x32xf32> to vector<1x32xf32>
    %2038 = vector.broadcast %2037 : vector<1x32xf32> to vector<8x32xf32>
    %2039 = arith.select %2036, %2038, %2019 : vector<8x32xi1>, vector<8x32xf32>
    %2040 = vector.extract_strided_slice %1291 {offsets = [37, 0], sizes = [1, 32], strides = [1, 1]} : vector<64x32xf32> to vector<1x32xf32>
    %2041 = arith.addf %2040, %2034 : vector<1x32xf32>
    %cst_723 = arith.constant 2.000000e+00 : f32
    %2042 = vector.broadcast %cst_723 : f32 to vector<1x32xf32>
    %2043 = arith.cmpf oge, %2041, %2042 : vector<1x32xf32>
    %cst_724 = arith.constant 1.000000e+00 : f32
    %cst_725 = arith.constant 0.000000e+00 : f32
    %2044 = vector.broadcast %cst_724 : f32 to vector<1x32xf32>
    %2045 = vector.broadcast %cst_725 : f32 to vector<1x32xf32>
    %2046 = arith.select %2043, %2044, %2045 : vector<1x32xi1>, vector<1x32xf32>
    %cst_726 = arith.constant 1.55760157 : f32
    %2047 = vector.broadcast %cst_726 : f32 to vector<1x32xf32>
    %2048 = arith.mulf %2047, %2034 : vector<1x32xf32>
    %cst_727 = arith.constant 0.606530666 : f32
    %2049 = vector.broadcast %cst_727 : f32 to vector<1x32xf32>
    %2050 = arith.mulf %2049, %2014 : vector<1x32xf32>
    %2051 = arith.subf %2048, %2050 : vector<1x32xf32>
    %cst_728 = arith.constant -2.117000e+00 : f32
    %2052 = vector.broadcast %cst_728 : f32 to vector<1x32xf32>
    %2053 = arith.mulf %2052, %2046 : vector<1x32xf32>
    %2054 = arith.addf %2051, %2053 : vector<1x32xf32>
    %c5_i32_729 = arith.constant 5 : i32
    %2055 = vector.broadcast %c5_i32_729 : i32 to vector<8x32xi32>
    %2056 = arith.cmpi eq, %1294, %2055 : vector<8x32xi32>
    %2057 = vector.shape_cast %2046 : vector<1x32xf32> to vector<1x32xf32>
    %2058 = vector.broadcast %2057 : vector<1x32xf32> to vector<8x32xf32>
    %2059 = arith.select %2056, %2058, %2039 : vector<8x32xi1>, vector<8x32xf32>
    %2060 = vector.extract_strided_slice %1291 {offsets = [38, 0], sizes = [1, 32], strides = [1, 1]} : vector<64x32xf32> to vector<1x32xf32>
    %2061 = arith.addf %2060, %2054 : vector<1x32xf32>
    %cst_730 = arith.constant 2.000000e+00 : f32
    %2062 = vector.broadcast %cst_730 : f32 to vector<1x32xf32>
    %2063 = arith.cmpf oge, %2061, %2062 : vector<1x32xf32>
    %cst_731 = arith.constant 1.000000e+00 : f32
    %cst_732 = arith.constant 0.000000e+00 : f32
    %2064 = vector.broadcast %cst_731 : f32 to vector<1x32xf32>
    %2065 = vector.broadcast %cst_732 : f32 to vector<1x32xf32>
    %2066 = arith.select %2063, %2064, %2065 : vector<1x32xi1>, vector<1x32xf32>
    %cst_733 = arith.constant 1.55760157 : f32
    %2067 = vector.broadcast %cst_733 : f32 to vector<1x32xf32>
    %2068 = arith.mulf %2067, %2054 : vector<1x32xf32>
    %cst_734 = arith.constant 0.606530666 : f32
    %2069 = vector.broadcast %cst_734 : f32 to vector<1x32xf32>
    %2070 = arith.mulf %2069, %2034 : vector<1x32xf32>
    %2071 = arith.subf %2068, %2070 : vector<1x32xf32>
    %cst_735 = arith.constant -2.117000e+00 : f32
    %2072 = vector.broadcast %cst_735 : f32 to vector<1x32xf32>
    %2073 = arith.mulf %2072, %2066 : vector<1x32xf32>
    %2074 = arith.addf %2071, %2073 : vector<1x32xf32>
    %c6_i32_736 = arith.constant 6 : i32
    %2075 = vector.broadcast %c6_i32_736 : i32 to vector<8x32xi32>
    %2076 = arith.cmpi eq, %1294, %2075 : vector<8x32xi32>
    %2077 = vector.shape_cast %2066 : vector<1x32xf32> to vector<1x32xf32>
    %2078 = vector.broadcast %2077 : vector<1x32xf32> to vector<8x32xf32>
    %2079 = arith.select %2076, %2078, %2059 : vector<8x32xi1>, vector<8x32xf32>
    %2080 = vector.extract_strided_slice %1291 {offsets = [39, 0], sizes = [1, 32], strides = [1, 1]} : vector<64x32xf32> to vector<1x32xf32>
    %2081 = arith.addf %2080, %2074 : vector<1x32xf32>
    %cst_737 = arith.constant 2.000000e+00 : f32
    %2082 = vector.broadcast %cst_737 : f32 to vector<1x32xf32>
    %2083 = arith.cmpf oge, %2081, %2082 : vector<1x32xf32>
    %cst_738 = arith.constant 1.000000e+00 : f32
    %cst_739 = arith.constant 0.000000e+00 : f32
    %2084 = vector.broadcast %cst_738 : f32 to vector<1x32xf32>
    %2085 = vector.broadcast %cst_739 : f32 to vector<1x32xf32>
    %2086 = arith.select %2083, %2084, %2085 : vector<1x32xi1>, vector<1x32xf32>
    %cst_740 = arith.constant 1.55760157 : f32
    %2087 = vector.broadcast %cst_740 : f32 to vector<1x32xf32>
    %2088 = arith.mulf %2087, %2074 : vector<1x32xf32>
    %cst_741 = arith.constant 0.606530666 : f32
    %2089 = vector.broadcast %cst_741 : f32 to vector<1x32xf32>
    %2090 = arith.mulf %2089, %2054 : vector<1x32xf32>
    %2091 = arith.subf %2088, %2090 : vector<1x32xf32>
    %cst_742 = arith.constant -2.117000e+00 : f32
    %2092 = vector.broadcast %cst_742 : f32 to vector<1x32xf32>
    %2093 = arith.mulf %2092, %2086 : vector<1x32xf32>
    %2094 = arith.addf %2091, %2093 : vector<1x32xf32>
    %c7_i32_743 = arith.constant 7 : i32
    %2095 = vector.broadcast %c7_i32_743 : i32 to vector<8x32xi32>
    %2096 = arith.cmpi eq, %1294, %2095 : vector<8x32xi32>
    %2097 = vector.shape_cast %2086 : vector<1x32xf32> to vector<1x32xf32>
    %2098 = vector.broadcast %2097 : vector<1x32xf32> to vector<8x32xf32>
    %2099 = arith.select %2096, %2098, %2079 : vector<8x32xi1>, vector<8x32xf32>
    %cst_744 = arith.constant 0.000000e+00 : f32
    %2100 = vector.broadcast %cst_744 : f32 to vector<8x32xf32>
    %2101 = vector.extract_strided_slice %1291 {offsets = [40, 0], sizes = [1, 32], strides = [1, 1]} : vector<64x32xf32> to vector<1x32xf32>
    %2102 = arith.addf %2101, %2094 : vector<1x32xf32>
    %cst_745 = arith.constant 2.000000e+00 : f32
    %2103 = vector.broadcast %cst_745 : f32 to vector<1x32xf32>
    %2104 = arith.cmpf oge, %2102, %2103 : vector<1x32xf32>
    %cst_746 = arith.constant 1.000000e+00 : f32
    %cst_747 = arith.constant 0.000000e+00 : f32
    %2105 = vector.broadcast %cst_746 : f32 to vector<1x32xf32>
    %2106 = vector.broadcast %cst_747 : f32 to vector<1x32xf32>
    %2107 = arith.select %2104, %2105, %2106 : vector<1x32xi1>, vector<1x32xf32>
    %cst_748 = arith.constant 1.55760157 : f32
    %2108 = vector.broadcast %cst_748 : f32 to vector<1x32xf32>
    %2109 = arith.mulf %2108, %2094 : vector<1x32xf32>
    %cst_749 = arith.constant 0.606530666 : f32
    %2110 = vector.broadcast %cst_749 : f32 to vector<1x32xf32>
    %2111 = arith.mulf %2110, %2074 : vector<1x32xf32>
    %2112 = arith.subf %2109, %2111 : vector<1x32xf32>
    %cst_750 = arith.constant -2.117000e+00 : f32
    %2113 = vector.broadcast %cst_750 : f32 to vector<1x32xf32>
    %2114 = arith.mulf %2113, %2107 : vector<1x32xf32>
    %2115 = arith.addf %2112, %2114 : vector<1x32xf32>
    %c0_i32_751 = arith.constant 0 : i32
    %2116 = vector.broadcast %c0_i32_751 : i32 to vector<8x32xi32>
    %2117 = arith.cmpi eq, %1294, %2116 : vector<8x32xi32>
    %2118 = vector.shape_cast %2107 : vector<1x32xf32> to vector<1x32xf32>
    %2119 = vector.broadcast %2118 : vector<1x32xf32> to vector<8x32xf32>
    %2120 = arith.select %2117, %2119, %2100 : vector<8x32xi1>, vector<8x32xf32>
    %2121 = vector.extract_strided_slice %1291 {offsets = [41, 0], sizes = [1, 32], strides = [1, 1]} : vector<64x32xf32> to vector<1x32xf32>
    %2122 = arith.addf %2121, %2115 : vector<1x32xf32>
    %cst_752 = arith.constant 2.000000e+00 : f32
    %2123 = vector.broadcast %cst_752 : f32 to vector<1x32xf32>
    %2124 = arith.cmpf oge, %2122, %2123 : vector<1x32xf32>
    %cst_753 = arith.constant 1.000000e+00 : f32
    %cst_754 = arith.constant 0.000000e+00 : f32
    %2125 = vector.broadcast %cst_753 : f32 to vector<1x32xf32>
    %2126 = vector.broadcast %cst_754 : f32 to vector<1x32xf32>
    %2127 = arith.select %2124, %2125, %2126 : vector<1x32xi1>, vector<1x32xf32>
    %cst_755 = arith.constant 1.55760157 : f32
    %2128 = vector.broadcast %cst_755 : f32 to vector<1x32xf32>
    %2129 = arith.mulf %2128, %2115 : vector<1x32xf32>
    %cst_756 = arith.constant 0.606530666 : f32
    %2130 = vector.broadcast %cst_756 : f32 to vector<1x32xf32>
    %2131 = arith.mulf %2130, %2094 : vector<1x32xf32>
    %2132 = arith.subf %2129, %2131 : vector<1x32xf32>
    %cst_757 = arith.constant -2.117000e+00 : f32
    %2133 = vector.broadcast %cst_757 : f32 to vector<1x32xf32>
    %2134 = arith.mulf %2133, %2127 : vector<1x32xf32>
    %2135 = arith.addf %2132, %2134 : vector<1x32xf32>
    %c1_i32_758 = arith.constant 1 : i32
    %2136 = vector.broadcast %c1_i32_758 : i32 to vector<8x32xi32>
    %2137 = arith.cmpi eq, %1294, %2136 : vector<8x32xi32>
    %2138 = vector.shape_cast %2127 : vector<1x32xf32> to vector<1x32xf32>
    %2139 = vector.broadcast %2138 : vector<1x32xf32> to vector<8x32xf32>
    %2140 = arith.select %2137, %2139, %2120 : vector<8x32xi1>, vector<8x32xf32>
    %2141 = vector.extract_strided_slice %1291 {offsets = [42, 0], sizes = [1, 32], strides = [1, 1]} : vector<64x32xf32> to vector<1x32xf32>
    %2142 = arith.addf %2141, %2135 : vector<1x32xf32>
    %cst_759 = arith.constant 2.000000e+00 : f32
    %2143 = vector.broadcast %cst_759 : f32 to vector<1x32xf32>
    %2144 = arith.cmpf oge, %2142, %2143 : vector<1x32xf32>
    %cst_760 = arith.constant 1.000000e+00 : f32
    %cst_761 = arith.constant 0.000000e+00 : f32
    %2145 = vector.broadcast %cst_760 : f32 to vector<1x32xf32>
    %2146 = vector.broadcast %cst_761 : f32 to vector<1x32xf32>
    %2147 = arith.select %2144, %2145, %2146 : vector<1x32xi1>, vector<1x32xf32>
    %cst_762 = arith.constant 1.55760157 : f32
    %2148 = vector.broadcast %cst_762 : f32 to vector<1x32xf32>
    %2149 = arith.mulf %2148, %2135 : vector<1x32xf32>
    %cst_763 = arith.constant 0.606530666 : f32
    %2150 = vector.broadcast %cst_763 : f32 to vector<1x32xf32>
    %2151 = arith.mulf %2150, %2115 : vector<1x32xf32>
    %2152 = arith.subf %2149, %2151 : vector<1x32xf32>
    %cst_764 = arith.constant -2.117000e+00 : f32
    %2153 = vector.broadcast %cst_764 : f32 to vector<1x32xf32>
    %2154 = arith.mulf %2153, %2147 : vector<1x32xf32>
    %2155 = arith.addf %2152, %2154 : vector<1x32xf32>
    %c2_i32_765 = arith.constant 2 : i32
    %2156 = vector.broadcast %c2_i32_765 : i32 to vector<8x32xi32>
    %2157 = arith.cmpi eq, %1294, %2156 : vector<8x32xi32>
    %2158 = vector.shape_cast %2147 : vector<1x32xf32> to vector<1x32xf32>
    %2159 = vector.broadcast %2158 : vector<1x32xf32> to vector<8x32xf32>
    %2160 = arith.select %2157, %2159, %2140 : vector<8x32xi1>, vector<8x32xf32>
    %2161 = vector.extract_strided_slice %1291 {offsets = [43, 0], sizes = [1, 32], strides = [1, 1]} : vector<64x32xf32> to vector<1x32xf32>
    %2162 = arith.addf %2161, %2155 : vector<1x32xf32>
    %cst_766 = arith.constant 2.000000e+00 : f32
    %2163 = vector.broadcast %cst_766 : f32 to vector<1x32xf32>
    %2164 = arith.cmpf oge, %2162, %2163 : vector<1x32xf32>
    %cst_767 = arith.constant 1.000000e+00 : f32
    %cst_768 = arith.constant 0.000000e+00 : f32
    %2165 = vector.broadcast %cst_767 : f32 to vector<1x32xf32>
    %2166 = vector.broadcast %cst_768 : f32 to vector<1x32xf32>
    %2167 = arith.select %2164, %2165, %2166 : vector<1x32xi1>, vector<1x32xf32>
    %cst_769 = arith.constant 1.55760157 : f32
    %2168 = vector.broadcast %cst_769 : f32 to vector<1x32xf32>
    %2169 = arith.mulf %2168, %2155 : vector<1x32xf32>
    %cst_770 = arith.constant 0.606530666 : f32
    %2170 = vector.broadcast %cst_770 : f32 to vector<1x32xf32>
    %2171 = arith.mulf %2170, %2135 : vector<1x32xf32>
    %2172 = arith.subf %2169, %2171 : vector<1x32xf32>
    %cst_771 = arith.constant -2.117000e+00 : f32
    %2173 = vector.broadcast %cst_771 : f32 to vector<1x32xf32>
    %2174 = arith.mulf %2173, %2167 : vector<1x32xf32>
    %2175 = arith.addf %2172, %2174 : vector<1x32xf32>
    %c3_i32_772 = arith.constant 3 : i32
    %2176 = vector.broadcast %c3_i32_772 : i32 to vector<8x32xi32>
    %2177 = arith.cmpi eq, %1294, %2176 : vector<8x32xi32>
    %2178 = vector.shape_cast %2167 : vector<1x32xf32> to vector<1x32xf32>
    %2179 = vector.broadcast %2178 : vector<1x32xf32> to vector<8x32xf32>
    %2180 = arith.select %2177, %2179, %2160 : vector<8x32xi1>, vector<8x32xf32>
    %2181 = vector.extract_strided_slice %1291 {offsets = [44, 0], sizes = [1, 32], strides = [1, 1]} : vector<64x32xf32> to vector<1x32xf32>
    %2182 = arith.addf %2181, %2175 : vector<1x32xf32>
    %cst_773 = arith.constant 2.000000e+00 : f32
    %2183 = vector.broadcast %cst_773 : f32 to vector<1x32xf32>
    %2184 = arith.cmpf oge, %2182, %2183 : vector<1x32xf32>
    %cst_774 = arith.constant 1.000000e+00 : f32
    %cst_775 = arith.constant 0.000000e+00 : f32
    %2185 = vector.broadcast %cst_774 : f32 to vector<1x32xf32>
    %2186 = vector.broadcast %cst_775 : f32 to vector<1x32xf32>
    %2187 = arith.select %2184, %2185, %2186 : vector<1x32xi1>, vector<1x32xf32>
    %cst_776 = arith.constant 1.55760157 : f32
    %2188 = vector.broadcast %cst_776 : f32 to vector<1x32xf32>
    %2189 = arith.mulf %2188, %2175 : vector<1x32xf32>
    %cst_777 = arith.constant 0.606530666 : f32
    %2190 = vector.broadcast %cst_777 : f32 to vector<1x32xf32>
    %2191 = arith.mulf %2190, %2155 : vector<1x32xf32>
    %2192 = arith.subf %2189, %2191 : vector<1x32xf32>
    %cst_778 = arith.constant -2.117000e+00 : f32
    %2193 = vector.broadcast %cst_778 : f32 to vector<1x32xf32>
    %2194 = arith.mulf %2193, %2187 : vector<1x32xf32>
    %2195 = arith.addf %2192, %2194 : vector<1x32xf32>
    %c4_i32_779 = arith.constant 4 : i32
    %2196 = vector.broadcast %c4_i32_779 : i32 to vector<8x32xi32>
    %2197 = arith.cmpi eq, %1294, %2196 : vector<8x32xi32>
    %2198 = vector.shape_cast %2187 : vector<1x32xf32> to vector<1x32xf32>
    %2199 = vector.broadcast %2198 : vector<1x32xf32> to vector<8x32xf32>
    %2200 = arith.select %2197, %2199, %2180 : vector<8x32xi1>, vector<8x32xf32>
    %2201 = vector.extract_strided_slice %1291 {offsets = [45, 0], sizes = [1, 32], strides = [1, 1]} : vector<64x32xf32> to vector<1x32xf32>
    %2202 = arith.addf %2201, %2195 : vector<1x32xf32>
    %cst_780 = arith.constant 2.000000e+00 : f32
    %2203 = vector.broadcast %cst_780 : f32 to vector<1x32xf32>
    %2204 = arith.cmpf oge, %2202, %2203 : vector<1x32xf32>
    %cst_781 = arith.constant 1.000000e+00 : f32
    %cst_782 = arith.constant 0.000000e+00 : f32
    %2205 = vector.broadcast %cst_781 : f32 to vector<1x32xf32>
    %2206 = vector.broadcast %cst_782 : f32 to vector<1x32xf32>
    %2207 = arith.select %2204, %2205, %2206 : vector<1x32xi1>, vector<1x32xf32>
    %cst_783 = arith.constant 1.55760157 : f32
    %2208 = vector.broadcast %cst_783 : f32 to vector<1x32xf32>
    %2209 = arith.mulf %2208, %2195 : vector<1x32xf32>
    %cst_784 = arith.constant 0.606530666 : f32
    %2210 = vector.broadcast %cst_784 : f32 to vector<1x32xf32>
    %2211 = arith.mulf %2210, %2175 : vector<1x32xf32>
    %2212 = arith.subf %2209, %2211 : vector<1x32xf32>
    %cst_785 = arith.constant -2.117000e+00 : f32
    %2213 = vector.broadcast %cst_785 : f32 to vector<1x32xf32>
    %2214 = arith.mulf %2213, %2207 : vector<1x32xf32>
    %2215 = arith.addf %2212, %2214 : vector<1x32xf32>
    %c5_i32_786 = arith.constant 5 : i32
    %2216 = vector.broadcast %c5_i32_786 : i32 to vector<8x32xi32>
    %2217 = arith.cmpi eq, %1294, %2216 : vector<8x32xi32>
    %2218 = vector.shape_cast %2207 : vector<1x32xf32> to vector<1x32xf32>
    %2219 = vector.broadcast %2218 : vector<1x32xf32> to vector<8x32xf32>
    %2220 = arith.select %2217, %2219, %2200 : vector<8x32xi1>, vector<8x32xf32>
    %2221 = vector.extract_strided_slice %1291 {offsets = [46, 0], sizes = [1, 32], strides = [1, 1]} : vector<64x32xf32> to vector<1x32xf32>
    %2222 = arith.addf %2221, %2215 : vector<1x32xf32>
    %cst_787 = arith.constant 2.000000e+00 : f32
    %2223 = vector.broadcast %cst_787 : f32 to vector<1x32xf32>
    %2224 = arith.cmpf oge, %2222, %2223 : vector<1x32xf32>
    %cst_788 = arith.constant 1.000000e+00 : f32
    %cst_789 = arith.constant 0.000000e+00 : f32
    %2225 = vector.broadcast %cst_788 : f32 to vector<1x32xf32>
    %2226 = vector.broadcast %cst_789 : f32 to vector<1x32xf32>
    %2227 = arith.select %2224, %2225, %2226 : vector<1x32xi1>, vector<1x32xf32>
    %cst_790 = arith.constant 1.55760157 : f32
    %2228 = vector.broadcast %cst_790 : f32 to vector<1x32xf32>
    %2229 = arith.mulf %2228, %2215 : vector<1x32xf32>
    %cst_791 = arith.constant 0.606530666 : f32
    %2230 = vector.broadcast %cst_791 : f32 to vector<1x32xf32>
    %2231 = arith.mulf %2230, %2195 : vector<1x32xf32>
    %2232 = arith.subf %2229, %2231 : vector<1x32xf32>
    %cst_792 = arith.constant -2.117000e+00 : f32
    %2233 = vector.broadcast %cst_792 : f32 to vector<1x32xf32>
    %2234 = arith.mulf %2233, %2227 : vector<1x32xf32>
    %2235 = arith.addf %2232, %2234 : vector<1x32xf32>
    %c6_i32_793 = arith.constant 6 : i32
    %2236 = vector.broadcast %c6_i32_793 : i32 to vector<8x32xi32>
    %2237 = arith.cmpi eq, %1294, %2236 : vector<8x32xi32>
    %2238 = vector.shape_cast %2227 : vector<1x32xf32> to vector<1x32xf32>
    %2239 = vector.broadcast %2238 : vector<1x32xf32> to vector<8x32xf32>
    %2240 = arith.select %2237, %2239, %2220 : vector<8x32xi1>, vector<8x32xf32>
    %2241 = vector.extract_strided_slice %1291 {offsets = [47, 0], sizes = [1, 32], strides = [1, 1]} : vector<64x32xf32> to vector<1x32xf32>
    %2242 = arith.addf %2241, %2235 : vector<1x32xf32>
    %cst_794 = arith.constant 2.000000e+00 : f32
    %2243 = vector.broadcast %cst_794 : f32 to vector<1x32xf32>
    %2244 = arith.cmpf oge, %2242, %2243 : vector<1x32xf32>
    %cst_795 = arith.constant 1.000000e+00 : f32
    %cst_796 = arith.constant 0.000000e+00 : f32
    %2245 = vector.broadcast %cst_795 : f32 to vector<1x32xf32>
    %2246 = vector.broadcast %cst_796 : f32 to vector<1x32xf32>
    %2247 = arith.select %2244, %2245, %2246 : vector<1x32xi1>, vector<1x32xf32>
    %cst_797 = arith.constant 1.55760157 : f32
    %2248 = vector.broadcast %cst_797 : f32 to vector<1x32xf32>
    %2249 = arith.mulf %2248, %2235 : vector<1x32xf32>
    %cst_798 = arith.constant 0.606530666 : f32
    %2250 = vector.broadcast %cst_798 : f32 to vector<1x32xf32>
    %2251 = arith.mulf %2250, %2215 : vector<1x32xf32>
    %2252 = arith.subf %2249, %2251 : vector<1x32xf32>
    %cst_799 = arith.constant -2.117000e+00 : f32
    %2253 = vector.broadcast %cst_799 : f32 to vector<1x32xf32>
    %2254 = arith.mulf %2253, %2247 : vector<1x32xf32>
    %2255 = arith.addf %2252, %2254 : vector<1x32xf32>
    %c7_i32_800 = arith.constant 7 : i32
    %2256 = vector.broadcast %c7_i32_800 : i32 to vector<8x32xi32>
    %2257 = arith.cmpi eq, %1294, %2256 : vector<8x32xi32>
    %2258 = vector.shape_cast %2247 : vector<1x32xf32> to vector<1x32xf32>
    %2259 = vector.broadcast %2258 : vector<1x32xf32> to vector<8x32xf32>
    %2260 = arith.select %2257, %2259, %2240 : vector<8x32xi1>, vector<8x32xf32>
    %cst_801 = arith.constant 0.000000e+00 : f32
    %2261 = vector.broadcast %cst_801 : f32 to vector<8x32xf32>
    %2262 = vector.extract_strided_slice %1291 {offsets = [48, 0], sizes = [1, 32], strides = [1, 1]} : vector<64x32xf32> to vector<1x32xf32>
    %2263 = arith.addf %2262, %2255 : vector<1x32xf32>
    %cst_802 = arith.constant 2.000000e+00 : f32
    %2264 = vector.broadcast %cst_802 : f32 to vector<1x32xf32>
    %2265 = arith.cmpf oge, %2263, %2264 : vector<1x32xf32>
    %cst_803 = arith.constant 1.000000e+00 : f32
    %cst_804 = arith.constant 0.000000e+00 : f32
    %2266 = vector.broadcast %cst_803 : f32 to vector<1x32xf32>
    %2267 = vector.broadcast %cst_804 : f32 to vector<1x32xf32>
    %2268 = arith.select %2265, %2266, %2267 : vector<1x32xi1>, vector<1x32xf32>
    %cst_805 = arith.constant 1.55760157 : f32
    %2269 = vector.broadcast %cst_805 : f32 to vector<1x32xf32>
    %2270 = arith.mulf %2269, %2255 : vector<1x32xf32>
    %cst_806 = arith.constant 0.606530666 : f32
    %2271 = vector.broadcast %cst_806 : f32 to vector<1x32xf32>
    %2272 = arith.mulf %2271, %2235 : vector<1x32xf32>
    %2273 = arith.subf %2270, %2272 : vector<1x32xf32>
    %cst_807 = arith.constant -2.117000e+00 : f32
    %2274 = vector.broadcast %cst_807 : f32 to vector<1x32xf32>
    %2275 = arith.mulf %2274, %2268 : vector<1x32xf32>
    %2276 = arith.addf %2273, %2275 : vector<1x32xf32>
    %c0_i32_808 = arith.constant 0 : i32
    %2277 = vector.broadcast %c0_i32_808 : i32 to vector<8x32xi32>
    %2278 = arith.cmpi eq, %1294, %2277 : vector<8x32xi32>
    %2279 = vector.shape_cast %2268 : vector<1x32xf32> to vector<1x32xf32>
    %2280 = vector.broadcast %2279 : vector<1x32xf32> to vector<8x32xf32>
    %2281 = arith.select %2278, %2280, %2261 : vector<8x32xi1>, vector<8x32xf32>
    %2282 = vector.extract_strided_slice %1291 {offsets = [49, 0], sizes = [1, 32], strides = [1, 1]} : vector<64x32xf32> to vector<1x32xf32>
    %2283 = arith.addf %2282, %2276 : vector<1x32xf32>
    %cst_809 = arith.constant 2.000000e+00 : f32
    %2284 = vector.broadcast %cst_809 : f32 to vector<1x32xf32>
    %2285 = arith.cmpf oge, %2283, %2284 : vector<1x32xf32>
    %cst_810 = arith.constant 1.000000e+00 : f32
    %cst_811 = arith.constant 0.000000e+00 : f32
    %2286 = vector.broadcast %cst_810 : f32 to vector<1x32xf32>
    %2287 = vector.broadcast %cst_811 : f32 to vector<1x32xf32>
    %2288 = arith.select %2285, %2286, %2287 : vector<1x32xi1>, vector<1x32xf32>
    %cst_812 = arith.constant 1.55760157 : f32
    %2289 = vector.broadcast %cst_812 : f32 to vector<1x32xf32>
    %2290 = arith.mulf %2289, %2276 : vector<1x32xf32>
    %cst_813 = arith.constant 0.606530666 : f32
    %2291 = vector.broadcast %cst_813 : f32 to vector<1x32xf32>
    %2292 = arith.mulf %2291, %2255 : vector<1x32xf32>
    %2293 = arith.subf %2290, %2292 : vector<1x32xf32>
    %cst_814 = arith.constant -2.117000e+00 : f32
    %2294 = vector.broadcast %cst_814 : f32 to vector<1x32xf32>
    %2295 = arith.mulf %2294, %2288 : vector<1x32xf32>
    %2296 = arith.addf %2293, %2295 : vector<1x32xf32>
    %c1_i32_815 = arith.constant 1 : i32
    %2297 = vector.broadcast %c1_i32_815 : i32 to vector<8x32xi32>
    %2298 = arith.cmpi eq, %1294, %2297 : vector<8x32xi32>
    %2299 = vector.shape_cast %2288 : vector<1x32xf32> to vector<1x32xf32>
    %2300 = vector.broadcast %2299 : vector<1x32xf32> to vector<8x32xf32>
    %2301 = arith.select %2298, %2300, %2281 : vector<8x32xi1>, vector<8x32xf32>
    %2302 = vector.extract_strided_slice %1291 {offsets = [50, 0], sizes = [1, 32], strides = [1, 1]} : vector<64x32xf32> to vector<1x32xf32>
    %2303 = arith.addf %2302, %2296 : vector<1x32xf32>
    %cst_816 = arith.constant 2.000000e+00 : f32
    %2304 = vector.broadcast %cst_816 : f32 to vector<1x32xf32>
    %2305 = arith.cmpf oge, %2303, %2304 : vector<1x32xf32>
    %cst_817 = arith.constant 1.000000e+00 : f32
    %cst_818 = arith.constant 0.000000e+00 : f32
    %2306 = vector.broadcast %cst_817 : f32 to vector<1x32xf32>
    %2307 = vector.broadcast %cst_818 : f32 to vector<1x32xf32>
    %2308 = arith.select %2305, %2306, %2307 : vector<1x32xi1>, vector<1x32xf32>
    %cst_819 = arith.constant 1.55760157 : f32
    %2309 = vector.broadcast %cst_819 : f32 to vector<1x32xf32>
    %2310 = arith.mulf %2309, %2296 : vector<1x32xf32>
    %cst_820 = arith.constant 0.606530666 : f32
    %2311 = vector.broadcast %cst_820 : f32 to vector<1x32xf32>
    %2312 = arith.mulf %2311, %2276 : vector<1x32xf32>
    %2313 = arith.subf %2310, %2312 : vector<1x32xf32>
    %cst_821 = arith.constant -2.117000e+00 : f32
    %2314 = vector.broadcast %cst_821 : f32 to vector<1x32xf32>
    %2315 = arith.mulf %2314, %2308 : vector<1x32xf32>
    %2316 = arith.addf %2313, %2315 : vector<1x32xf32>
    %c2_i32_822 = arith.constant 2 : i32
    %2317 = vector.broadcast %c2_i32_822 : i32 to vector<8x32xi32>
    %2318 = arith.cmpi eq, %1294, %2317 : vector<8x32xi32>
    %2319 = vector.shape_cast %2308 : vector<1x32xf32> to vector<1x32xf32>
    %2320 = vector.broadcast %2319 : vector<1x32xf32> to vector<8x32xf32>
    %2321 = arith.select %2318, %2320, %2301 : vector<8x32xi1>, vector<8x32xf32>
    %2322 = vector.extract_strided_slice %1291 {offsets = [51, 0], sizes = [1, 32], strides = [1, 1]} : vector<64x32xf32> to vector<1x32xf32>
    %2323 = arith.addf %2322, %2316 : vector<1x32xf32>
    %cst_823 = arith.constant 2.000000e+00 : f32
    %2324 = vector.broadcast %cst_823 : f32 to vector<1x32xf32>
    %2325 = arith.cmpf oge, %2323, %2324 : vector<1x32xf32>
    %cst_824 = arith.constant 1.000000e+00 : f32
    %cst_825 = arith.constant 0.000000e+00 : f32
    %2326 = vector.broadcast %cst_824 : f32 to vector<1x32xf32>
    %2327 = vector.broadcast %cst_825 : f32 to vector<1x32xf32>
    %2328 = arith.select %2325, %2326, %2327 : vector<1x32xi1>, vector<1x32xf32>
    %cst_826 = arith.constant 1.55760157 : f32
    %2329 = vector.broadcast %cst_826 : f32 to vector<1x32xf32>
    %2330 = arith.mulf %2329, %2316 : vector<1x32xf32>
    %cst_827 = arith.constant 0.606530666 : f32
    %2331 = vector.broadcast %cst_827 : f32 to vector<1x32xf32>
    %2332 = arith.mulf %2331, %2296 : vector<1x32xf32>
    %2333 = arith.subf %2330, %2332 : vector<1x32xf32>
    %cst_828 = arith.constant -2.117000e+00 : f32
    %2334 = vector.broadcast %cst_828 : f32 to vector<1x32xf32>
    %2335 = arith.mulf %2334, %2328 : vector<1x32xf32>
    %2336 = arith.addf %2333, %2335 : vector<1x32xf32>
    %c3_i32_829 = arith.constant 3 : i32
    %2337 = vector.broadcast %c3_i32_829 : i32 to vector<8x32xi32>
    %2338 = arith.cmpi eq, %1294, %2337 : vector<8x32xi32>
    %2339 = vector.shape_cast %2328 : vector<1x32xf32> to vector<1x32xf32>
    %2340 = vector.broadcast %2339 : vector<1x32xf32> to vector<8x32xf32>
    %2341 = arith.select %2338, %2340, %2321 : vector<8x32xi1>, vector<8x32xf32>
    %2342 = vector.extract_strided_slice %1291 {offsets = [52, 0], sizes = [1, 32], strides = [1, 1]} : vector<64x32xf32> to vector<1x32xf32>
    %2343 = arith.addf %2342, %2336 : vector<1x32xf32>
    %cst_830 = arith.constant 2.000000e+00 : f32
    %2344 = vector.broadcast %cst_830 : f32 to vector<1x32xf32>
    %2345 = arith.cmpf oge, %2343, %2344 : vector<1x32xf32>
    %cst_831 = arith.constant 1.000000e+00 : f32
    %cst_832 = arith.constant 0.000000e+00 : f32
    %2346 = vector.broadcast %cst_831 : f32 to vector<1x32xf32>
    %2347 = vector.broadcast %cst_832 : f32 to vector<1x32xf32>
    %2348 = arith.select %2345, %2346, %2347 : vector<1x32xi1>, vector<1x32xf32>
    %cst_833 = arith.constant 1.55760157 : f32
    %2349 = vector.broadcast %cst_833 : f32 to vector<1x32xf32>
    %2350 = arith.mulf %2349, %2336 : vector<1x32xf32>
    %cst_834 = arith.constant 0.606530666 : f32
    %2351 = vector.broadcast %cst_834 : f32 to vector<1x32xf32>
    %2352 = arith.mulf %2351, %2316 : vector<1x32xf32>
    %2353 = arith.subf %2350, %2352 : vector<1x32xf32>
    %cst_835 = arith.constant -2.117000e+00 : f32
    %2354 = vector.broadcast %cst_835 : f32 to vector<1x32xf32>
    %2355 = arith.mulf %2354, %2348 : vector<1x32xf32>
    %2356 = arith.addf %2353, %2355 : vector<1x32xf32>
    %c4_i32_836 = arith.constant 4 : i32
    %2357 = vector.broadcast %c4_i32_836 : i32 to vector<8x32xi32>
    %2358 = arith.cmpi eq, %1294, %2357 : vector<8x32xi32>
    %2359 = vector.shape_cast %2348 : vector<1x32xf32> to vector<1x32xf32>
    %2360 = vector.broadcast %2359 : vector<1x32xf32> to vector<8x32xf32>
    %2361 = arith.select %2358, %2360, %2341 : vector<8x32xi1>, vector<8x32xf32>
    %2362 = vector.extract_strided_slice %1291 {offsets = [53, 0], sizes = [1, 32], strides = [1, 1]} : vector<64x32xf32> to vector<1x32xf32>
    %2363 = arith.addf %2362, %2356 : vector<1x32xf32>
    %cst_837 = arith.constant 2.000000e+00 : f32
    %2364 = vector.broadcast %cst_837 : f32 to vector<1x32xf32>
    %2365 = arith.cmpf oge, %2363, %2364 : vector<1x32xf32>
    %cst_838 = arith.constant 1.000000e+00 : f32
    %cst_839 = arith.constant 0.000000e+00 : f32
    %2366 = vector.broadcast %cst_838 : f32 to vector<1x32xf32>
    %2367 = vector.broadcast %cst_839 : f32 to vector<1x32xf32>
    %2368 = arith.select %2365, %2366, %2367 : vector<1x32xi1>, vector<1x32xf32>
    %cst_840 = arith.constant 1.55760157 : f32
    %2369 = vector.broadcast %cst_840 : f32 to vector<1x32xf32>
    %2370 = arith.mulf %2369, %2356 : vector<1x32xf32>
    %cst_841 = arith.constant 0.606530666 : f32
    %2371 = vector.broadcast %cst_841 : f32 to vector<1x32xf32>
    %2372 = arith.mulf %2371, %2336 : vector<1x32xf32>
    %2373 = arith.subf %2370, %2372 : vector<1x32xf32>
    %cst_842 = arith.constant -2.117000e+00 : f32
    %2374 = vector.broadcast %cst_842 : f32 to vector<1x32xf32>
    %2375 = arith.mulf %2374, %2368 : vector<1x32xf32>
    %2376 = arith.addf %2373, %2375 : vector<1x32xf32>
    %c5_i32_843 = arith.constant 5 : i32
    %2377 = vector.broadcast %c5_i32_843 : i32 to vector<8x32xi32>
    %2378 = arith.cmpi eq, %1294, %2377 : vector<8x32xi32>
    %2379 = vector.shape_cast %2368 : vector<1x32xf32> to vector<1x32xf32>
    %2380 = vector.broadcast %2379 : vector<1x32xf32> to vector<8x32xf32>
    %2381 = arith.select %2378, %2380, %2361 : vector<8x32xi1>, vector<8x32xf32>
    %2382 = vector.extract_strided_slice %1291 {offsets = [54, 0], sizes = [1, 32], strides = [1, 1]} : vector<64x32xf32> to vector<1x32xf32>
    %2383 = arith.addf %2382, %2376 : vector<1x32xf32>
    %cst_844 = arith.constant 2.000000e+00 : f32
    %2384 = vector.broadcast %cst_844 : f32 to vector<1x32xf32>
    %2385 = arith.cmpf oge, %2383, %2384 : vector<1x32xf32>
    %cst_845 = arith.constant 1.000000e+00 : f32
    %cst_846 = arith.constant 0.000000e+00 : f32
    %2386 = vector.broadcast %cst_845 : f32 to vector<1x32xf32>
    %2387 = vector.broadcast %cst_846 : f32 to vector<1x32xf32>
    %2388 = arith.select %2385, %2386, %2387 : vector<1x32xi1>, vector<1x32xf32>
    %cst_847 = arith.constant 1.55760157 : f32
    %2389 = vector.broadcast %cst_847 : f32 to vector<1x32xf32>
    %2390 = arith.mulf %2389, %2376 : vector<1x32xf32>
    %cst_848 = arith.constant 0.606530666 : f32
    %2391 = vector.broadcast %cst_848 : f32 to vector<1x32xf32>
    %2392 = arith.mulf %2391, %2356 : vector<1x32xf32>
    %2393 = arith.subf %2390, %2392 : vector<1x32xf32>
    %cst_849 = arith.constant -2.117000e+00 : f32
    %2394 = vector.broadcast %cst_849 : f32 to vector<1x32xf32>
    %2395 = arith.mulf %2394, %2388 : vector<1x32xf32>
    %2396 = arith.addf %2393, %2395 : vector<1x32xf32>
    %c6_i32_850 = arith.constant 6 : i32
    %2397 = vector.broadcast %c6_i32_850 : i32 to vector<8x32xi32>
    %2398 = arith.cmpi eq, %1294, %2397 : vector<8x32xi32>
    %2399 = vector.shape_cast %2388 : vector<1x32xf32> to vector<1x32xf32>
    %2400 = vector.broadcast %2399 : vector<1x32xf32> to vector<8x32xf32>
    %2401 = arith.select %2398, %2400, %2381 : vector<8x32xi1>, vector<8x32xf32>
    %2402 = vector.extract_strided_slice %1291 {offsets = [55, 0], sizes = [1, 32], strides = [1, 1]} : vector<64x32xf32> to vector<1x32xf32>
    %2403 = arith.addf %2402, %2396 : vector<1x32xf32>
    %cst_851 = arith.constant 2.000000e+00 : f32
    %2404 = vector.broadcast %cst_851 : f32 to vector<1x32xf32>
    %2405 = arith.cmpf oge, %2403, %2404 : vector<1x32xf32>
    %cst_852 = arith.constant 1.000000e+00 : f32
    %cst_853 = arith.constant 0.000000e+00 : f32
    %2406 = vector.broadcast %cst_852 : f32 to vector<1x32xf32>
    %2407 = vector.broadcast %cst_853 : f32 to vector<1x32xf32>
    %2408 = arith.select %2405, %2406, %2407 : vector<1x32xi1>, vector<1x32xf32>
    %cst_854 = arith.constant 1.55760157 : f32
    %2409 = vector.broadcast %cst_854 : f32 to vector<1x32xf32>
    %2410 = arith.mulf %2409, %2396 : vector<1x32xf32>
    %cst_855 = arith.constant 0.606530666 : f32
    %2411 = vector.broadcast %cst_855 : f32 to vector<1x32xf32>
    %2412 = arith.mulf %2411, %2376 : vector<1x32xf32>
    %2413 = arith.subf %2410, %2412 : vector<1x32xf32>
    %cst_856 = arith.constant -2.117000e+00 : f32
    %2414 = vector.broadcast %cst_856 : f32 to vector<1x32xf32>
    %2415 = arith.mulf %2414, %2408 : vector<1x32xf32>
    %2416 = arith.addf %2413, %2415 : vector<1x32xf32>
    %c7_i32_857 = arith.constant 7 : i32
    %2417 = vector.broadcast %c7_i32_857 : i32 to vector<8x32xi32>
    %2418 = arith.cmpi eq, %1294, %2417 : vector<8x32xi32>
    %2419 = vector.shape_cast %2408 : vector<1x32xf32> to vector<1x32xf32>
    %2420 = vector.broadcast %2419 : vector<1x32xf32> to vector<8x32xf32>
    %2421 = arith.select %2418, %2420, %2401 : vector<8x32xi1>, vector<8x32xf32>
    %cst_858 = arith.constant 0.000000e+00 : f32
    %2422 = vector.broadcast %cst_858 : f32 to vector<8x32xf32>
    %2423 = vector.extract_strided_slice %1291 {offsets = [56, 0], sizes = [1, 32], strides = [1, 1]} : vector<64x32xf32> to vector<1x32xf32>
    %2424 = arith.addf %2423, %2416 : vector<1x32xf32>
    %cst_859 = arith.constant 2.000000e+00 : f32
    %2425 = vector.broadcast %cst_859 : f32 to vector<1x32xf32>
    %2426 = arith.cmpf oge, %2424, %2425 : vector<1x32xf32>
    %cst_860 = arith.constant 1.000000e+00 : f32
    %cst_861 = arith.constant 0.000000e+00 : f32
    %2427 = vector.broadcast %cst_860 : f32 to vector<1x32xf32>
    %2428 = vector.broadcast %cst_861 : f32 to vector<1x32xf32>
    %2429 = arith.select %2426, %2427, %2428 : vector<1x32xi1>, vector<1x32xf32>
    %cst_862 = arith.constant 1.55760157 : f32
    %2430 = vector.broadcast %cst_862 : f32 to vector<1x32xf32>
    %2431 = arith.mulf %2430, %2416 : vector<1x32xf32>
    %cst_863 = arith.constant 0.606530666 : f32
    %2432 = vector.broadcast %cst_863 : f32 to vector<1x32xf32>
    %2433 = arith.mulf %2432, %2396 : vector<1x32xf32>
    %2434 = arith.subf %2431, %2433 : vector<1x32xf32>
    %cst_864 = arith.constant -2.117000e+00 : f32
    %2435 = vector.broadcast %cst_864 : f32 to vector<1x32xf32>
    %2436 = arith.mulf %2435, %2429 : vector<1x32xf32>
    %2437 = arith.addf %2434, %2436 : vector<1x32xf32>
    %c0_i32_865 = arith.constant 0 : i32
    %2438 = vector.broadcast %c0_i32_865 : i32 to vector<8x32xi32>
    %2439 = arith.cmpi eq, %1294, %2438 : vector<8x32xi32>
    %2440 = vector.shape_cast %2429 : vector<1x32xf32> to vector<1x32xf32>
    %2441 = vector.broadcast %2440 : vector<1x32xf32> to vector<8x32xf32>
    %2442 = arith.select %2439, %2441, %2422 : vector<8x32xi1>, vector<8x32xf32>
    %2443 = vector.extract_strided_slice %1291 {offsets = [57, 0], sizes = [1, 32], strides = [1, 1]} : vector<64x32xf32> to vector<1x32xf32>
    %2444 = arith.addf %2443, %2437 : vector<1x32xf32>
    %cst_866 = arith.constant 2.000000e+00 : f32
    %2445 = vector.broadcast %cst_866 : f32 to vector<1x32xf32>
    %2446 = arith.cmpf oge, %2444, %2445 : vector<1x32xf32>
    %cst_867 = arith.constant 1.000000e+00 : f32
    %cst_868 = arith.constant 0.000000e+00 : f32
    %2447 = vector.broadcast %cst_867 : f32 to vector<1x32xf32>
    %2448 = vector.broadcast %cst_868 : f32 to vector<1x32xf32>
    %2449 = arith.select %2446, %2447, %2448 : vector<1x32xi1>, vector<1x32xf32>
    %cst_869 = arith.constant 1.55760157 : f32
    %2450 = vector.broadcast %cst_869 : f32 to vector<1x32xf32>
    %2451 = arith.mulf %2450, %2437 : vector<1x32xf32>
    %cst_870 = arith.constant 0.606530666 : f32
    %2452 = vector.broadcast %cst_870 : f32 to vector<1x32xf32>
    %2453 = arith.mulf %2452, %2416 : vector<1x32xf32>
    %2454 = arith.subf %2451, %2453 : vector<1x32xf32>
    %cst_871 = arith.constant -2.117000e+00 : f32
    %2455 = vector.broadcast %cst_871 : f32 to vector<1x32xf32>
    %2456 = arith.mulf %2455, %2449 : vector<1x32xf32>
    %2457 = arith.addf %2454, %2456 : vector<1x32xf32>
    %c1_i32_872 = arith.constant 1 : i32
    %2458 = vector.broadcast %c1_i32_872 : i32 to vector<8x32xi32>
    %2459 = arith.cmpi eq, %1294, %2458 : vector<8x32xi32>
    %2460 = vector.shape_cast %2449 : vector<1x32xf32> to vector<1x32xf32>
    %2461 = vector.broadcast %2460 : vector<1x32xf32> to vector<8x32xf32>
    %2462 = arith.select %2459, %2461, %2442 : vector<8x32xi1>, vector<8x32xf32>
    %2463 = vector.extract_strided_slice %1291 {offsets = [58, 0], sizes = [1, 32], strides = [1, 1]} : vector<64x32xf32> to vector<1x32xf32>
    %2464 = arith.addf %2463, %2457 : vector<1x32xf32>
    %cst_873 = arith.constant 2.000000e+00 : f32
    %2465 = vector.broadcast %cst_873 : f32 to vector<1x32xf32>
    %2466 = arith.cmpf oge, %2464, %2465 : vector<1x32xf32>
    %cst_874 = arith.constant 1.000000e+00 : f32
    %cst_875 = arith.constant 0.000000e+00 : f32
    %2467 = vector.broadcast %cst_874 : f32 to vector<1x32xf32>
    %2468 = vector.broadcast %cst_875 : f32 to vector<1x32xf32>
    %2469 = arith.select %2466, %2467, %2468 : vector<1x32xi1>, vector<1x32xf32>
    %cst_876 = arith.constant 1.55760157 : f32
    %2470 = vector.broadcast %cst_876 : f32 to vector<1x32xf32>
    %2471 = arith.mulf %2470, %2457 : vector<1x32xf32>
    %cst_877 = arith.constant 0.606530666 : f32
    %2472 = vector.broadcast %cst_877 : f32 to vector<1x32xf32>
    %2473 = arith.mulf %2472, %2437 : vector<1x32xf32>
    %2474 = arith.subf %2471, %2473 : vector<1x32xf32>
    %cst_878 = arith.constant -2.117000e+00 : f32
    %2475 = vector.broadcast %cst_878 : f32 to vector<1x32xf32>
    %2476 = arith.mulf %2475, %2469 : vector<1x32xf32>
    %2477 = arith.addf %2474, %2476 : vector<1x32xf32>
    %c2_i32_879 = arith.constant 2 : i32
    %2478 = vector.broadcast %c2_i32_879 : i32 to vector<8x32xi32>
    %2479 = arith.cmpi eq, %1294, %2478 : vector<8x32xi32>
    %2480 = vector.shape_cast %2469 : vector<1x32xf32> to vector<1x32xf32>
    %2481 = vector.broadcast %2480 : vector<1x32xf32> to vector<8x32xf32>
    %2482 = arith.select %2479, %2481, %2462 : vector<8x32xi1>, vector<8x32xf32>
    %2483 = vector.extract_strided_slice %1291 {offsets = [59, 0], sizes = [1, 32], strides = [1, 1]} : vector<64x32xf32> to vector<1x32xf32>
    %2484 = arith.addf %2483, %2477 : vector<1x32xf32>
    %cst_880 = arith.constant 2.000000e+00 : f32
    %2485 = vector.broadcast %cst_880 : f32 to vector<1x32xf32>
    %2486 = arith.cmpf oge, %2484, %2485 : vector<1x32xf32>
    %cst_881 = arith.constant 1.000000e+00 : f32
    %cst_882 = arith.constant 0.000000e+00 : f32
    %2487 = vector.broadcast %cst_881 : f32 to vector<1x32xf32>
    %2488 = vector.broadcast %cst_882 : f32 to vector<1x32xf32>
    %2489 = arith.select %2486, %2487, %2488 : vector<1x32xi1>, vector<1x32xf32>
    %cst_883 = arith.constant 1.55760157 : f32
    %2490 = vector.broadcast %cst_883 : f32 to vector<1x32xf32>
    %2491 = arith.mulf %2490, %2477 : vector<1x32xf32>
    %cst_884 = arith.constant 0.606530666 : f32
    %2492 = vector.broadcast %cst_884 : f32 to vector<1x32xf32>
    %2493 = arith.mulf %2492, %2457 : vector<1x32xf32>
    %2494 = arith.subf %2491, %2493 : vector<1x32xf32>
    %cst_885 = arith.constant -2.117000e+00 : f32
    %2495 = vector.broadcast %cst_885 : f32 to vector<1x32xf32>
    %2496 = arith.mulf %2495, %2489 : vector<1x32xf32>
    %2497 = arith.addf %2494, %2496 : vector<1x32xf32>
    %c3_i32_886 = arith.constant 3 : i32
    %2498 = vector.broadcast %c3_i32_886 : i32 to vector<8x32xi32>
    %2499 = arith.cmpi eq, %1294, %2498 : vector<8x32xi32>
    %2500 = vector.shape_cast %2489 : vector<1x32xf32> to vector<1x32xf32>
    %2501 = vector.broadcast %2500 : vector<1x32xf32> to vector<8x32xf32>
    %2502 = arith.select %2499, %2501, %2482 : vector<8x32xi1>, vector<8x32xf32>
    %2503 = vector.extract_strided_slice %1291 {offsets = [60, 0], sizes = [1, 32], strides = [1, 1]} : vector<64x32xf32> to vector<1x32xf32>
    %2504 = arith.addf %2503, %2497 : vector<1x32xf32>
    %cst_887 = arith.constant 2.000000e+00 : f32
    %2505 = vector.broadcast %cst_887 : f32 to vector<1x32xf32>
    %2506 = arith.cmpf oge, %2504, %2505 : vector<1x32xf32>
    %cst_888 = arith.constant 1.000000e+00 : f32
    %cst_889 = arith.constant 0.000000e+00 : f32
    %2507 = vector.broadcast %cst_888 : f32 to vector<1x32xf32>
    %2508 = vector.broadcast %cst_889 : f32 to vector<1x32xf32>
    %2509 = arith.select %2506, %2507, %2508 : vector<1x32xi1>, vector<1x32xf32>
    %cst_890 = arith.constant 1.55760157 : f32
    %2510 = vector.broadcast %cst_890 : f32 to vector<1x32xf32>
    %2511 = arith.mulf %2510, %2497 : vector<1x32xf32>
    %cst_891 = arith.constant 0.606530666 : f32
    %2512 = vector.broadcast %cst_891 : f32 to vector<1x32xf32>
    %2513 = arith.mulf %2512, %2477 : vector<1x32xf32>
    %2514 = arith.subf %2511, %2513 : vector<1x32xf32>
    %cst_892 = arith.constant -2.117000e+00 : f32
    %2515 = vector.broadcast %cst_892 : f32 to vector<1x32xf32>
    %2516 = arith.mulf %2515, %2509 : vector<1x32xf32>
    %2517 = arith.addf %2514, %2516 : vector<1x32xf32>
    %c4_i32_893 = arith.constant 4 : i32
    %2518 = vector.broadcast %c4_i32_893 : i32 to vector<8x32xi32>
    %2519 = arith.cmpi eq, %1294, %2518 : vector<8x32xi32>
    %2520 = vector.shape_cast %2509 : vector<1x32xf32> to vector<1x32xf32>
    %2521 = vector.broadcast %2520 : vector<1x32xf32> to vector<8x32xf32>
    %2522 = arith.select %2519, %2521, %2502 : vector<8x32xi1>, vector<8x32xf32>
    %2523 = vector.extract_strided_slice %1291 {offsets = [61, 0], sizes = [1, 32], strides = [1, 1]} : vector<64x32xf32> to vector<1x32xf32>
    %2524 = arith.addf %2523, %2517 : vector<1x32xf32>
    %cst_894 = arith.constant 2.000000e+00 : f32
    %2525 = vector.broadcast %cst_894 : f32 to vector<1x32xf32>
    %2526 = arith.cmpf oge, %2524, %2525 : vector<1x32xf32>
    %cst_895 = arith.constant 1.000000e+00 : f32
    %cst_896 = arith.constant 0.000000e+00 : f32
    %2527 = vector.broadcast %cst_895 : f32 to vector<1x32xf32>
    %2528 = vector.broadcast %cst_896 : f32 to vector<1x32xf32>
    %2529 = arith.select %2526, %2527, %2528 : vector<1x32xi1>, vector<1x32xf32>
    %cst_897 = arith.constant 1.55760157 : f32
    %2530 = vector.broadcast %cst_897 : f32 to vector<1x32xf32>
    %2531 = arith.mulf %2530, %2517 : vector<1x32xf32>
    %cst_898 = arith.constant 0.606530666 : f32
    %2532 = vector.broadcast %cst_898 : f32 to vector<1x32xf32>
    %2533 = arith.mulf %2532, %2497 : vector<1x32xf32>
    %2534 = arith.subf %2531, %2533 : vector<1x32xf32>
    %cst_899 = arith.constant -2.117000e+00 : f32
    %2535 = vector.broadcast %cst_899 : f32 to vector<1x32xf32>
    %2536 = arith.mulf %2535, %2529 : vector<1x32xf32>
    %2537 = arith.addf %2534, %2536 : vector<1x32xf32>
    %c5_i32_900 = arith.constant 5 : i32
    %2538 = vector.broadcast %c5_i32_900 : i32 to vector<8x32xi32>
    %2539 = arith.cmpi eq, %1294, %2538 : vector<8x32xi32>
    %2540 = vector.shape_cast %2529 : vector<1x32xf32> to vector<1x32xf32>
    %2541 = vector.broadcast %2540 : vector<1x32xf32> to vector<8x32xf32>
    %2542 = arith.select %2539, %2541, %2522 : vector<8x32xi1>, vector<8x32xf32>
    %2543 = vector.extract_strided_slice %1291 {offsets = [62, 0], sizes = [1, 32], strides = [1, 1]} : vector<64x32xf32> to vector<1x32xf32>
    %2544 = arith.addf %2543, %2537 : vector<1x32xf32>
    %cst_901 = arith.constant 2.000000e+00 : f32
    %2545 = vector.broadcast %cst_901 : f32 to vector<1x32xf32>
    %2546 = arith.cmpf oge, %2544, %2545 : vector<1x32xf32>
    %cst_902 = arith.constant 1.000000e+00 : f32
    %cst_903 = arith.constant 0.000000e+00 : f32
    %2547 = vector.broadcast %cst_902 : f32 to vector<1x32xf32>
    %2548 = vector.broadcast %cst_903 : f32 to vector<1x32xf32>
    %2549 = arith.select %2546, %2547, %2548 : vector<1x32xi1>, vector<1x32xf32>
    %cst_904 = arith.constant 1.55760157 : f32
    %2550 = vector.broadcast %cst_904 : f32 to vector<1x32xf32>
    %2551 = arith.mulf %2550, %2537 : vector<1x32xf32>
    %cst_905 = arith.constant 0.606530666 : f32
    %2552 = vector.broadcast %cst_905 : f32 to vector<1x32xf32>
    %2553 = arith.mulf %2552, %2517 : vector<1x32xf32>
    %2554 = arith.subf %2551, %2553 : vector<1x32xf32>
    %cst_906 = arith.constant -2.117000e+00 : f32
    %2555 = vector.broadcast %cst_906 : f32 to vector<1x32xf32>
    %2556 = arith.mulf %2555, %2549 : vector<1x32xf32>
    %2557 = arith.addf %2554, %2556 : vector<1x32xf32>
    %c6_i32_907 = arith.constant 6 : i32
    %2558 = vector.broadcast %c6_i32_907 : i32 to vector<8x32xi32>
    %2559 = arith.cmpi eq, %1294, %2558 : vector<8x32xi32>
    %2560 = vector.shape_cast %2549 : vector<1x32xf32> to vector<1x32xf32>
    %2561 = vector.broadcast %2560 : vector<1x32xf32> to vector<8x32xf32>
    %2562 = arith.select %2559, %2561, %2542 : vector<8x32xi1>, vector<8x32xf32>
    %2563 = vector.extract_strided_slice %1291 {offsets = [63, 0], sizes = [1, 32], strides = [1, 1]} : vector<64x32xf32> to vector<1x32xf32>
    %2564 = arith.addf %2563, %2557 : vector<1x32xf32>
    %cst_908 = arith.constant 2.000000e+00 : f32
    %2565 = vector.broadcast %cst_908 : f32 to vector<1x32xf32>
    %2566 = arith.cmpf oge, %2564, %2565 : vector<1x32xf32>
    %cst_909 = arith.constant 1.000000e+00 : f32
    %cst_910 = arith.constant 0.000000e+00 : f32
    %2567 = vector.broadcast %cst_909 : f32 to vector<1x32xf32>
    %2568 = vector.broadcast %cst_910 : f32 to vector<1x32xf32>
    %2569 = arith.select %2566, %2567, %2568 : vector<1x32xi1>, vector<1x32xf32>
    %c7_i32_911 = arith.constant 7 : i32
    %2570 = vector.broadcast %c7_i32_911 : i32 to vector<8x32xi32>
    %2571 = arith.cmpi eq, %1294, %2570 : vector<8x32xi32>
    %2572 = vector.shape_cast %2569 : vector<1x32xf32> to vector<1x32xf32>
    %2573 = vector.broadcast %2572 : vector<1x32xf32> to vector<8x32xf32>
    %2574 = arith.select %2571, %2573, %2562 : vector<8x32xi1>, vector<8x32xf32>
    %2575 = tpu.concatenate %1455, %1616, %1777, %1938, %2099, %2260, %2421, %2574 in 0 : vector<8x32xf32>, vector<8x32xf32>, vector<8x32xf32>, vector<8x32xf32>, vector<8x32xf32>, vector<8x32xf32>, vector<8x32xf32>, vector<8x32xf32> -> vector<64x32xf32>
    %c0_912 = arith.constant 0 : index
    %c0_913 = arith.constant 0 : index
    %2576 = vector.load %arg4[%c0_912, %c0_913] : memref<64x32xf32, #tpu.memory_space<vmem>>, vector<64x32xf32>
    tpu.vector_store %arg4[%c0_912, %c0_913], %2575 {strides = array<i32>} : memref<64x32xf32, #tpu.memory_space<vmem>>, vector<64x32xf32>,
    return
  }
}

</mosaic_0001>

<bundles_post_ra>
// kernel: slayer_network_forward.1
= control target key start
LH: loop header
LB: loop body
LE: loop exit
PB: predicated region body
PF: predicated region fallthrough
CT: control target
= control target key end

     0   :  { %vm90_vm0 = vcmask 523264   ;;  %v156_v44 = vlaneseq  ;;  %v2249_v45 = vmov 0.0   ;;  %s3035_s1 = inlined_call_operand.vmem [shape: f32[128,64], index: 1, kind: input, shape index: {}]   ;;  %s3036_s0 = inlined_call_operand.vmem [shape: f32[64,128], index: 0, kind: input, shape index: {}]   ;;  %s3037_s3 = inlined_call_operand.vmem [shape: f32[64,64], index: 3, kind: input, shape index: {}]   ;;  %s3038_s2 = inlined_call_operand.vmem [shape: f32[64,32], index: 2, kind: input, shape index: {}]   ;;  %s3039_s4 = inlined_call_operand.vmem [shape: f32[64,32], index: 4, kind: output, shape index: {}]  }
   0x1   :  { %v48_v0 = vld [vmem:[%s3035_s1 + $0x78] sm:$0xff]  ;;  %v47_v1 = vld [vmem:[%s3035_s1 + $0x70] sm:$0xff]  ;;  %v46_v2 = vld [vmem:[%s3035_s1 + $0x68] sm:$0xff] }
   0x2   :  { %49 = vmatpush.msra.mxu0 %v48_v0  ;;  %v45_v3 = vld [vmem:[%s3035_s1 + $0x60] sm:$0xff]  ;;  %v44_v4 = vld [vmem:[%s3035_s1 + $0x58] sm:$0xff]  ;;  %v43_v5 = vld [vmem:[%s3035_s1 + $0x50] sm:$0xff]  ;;  %v2387_v49 = vshrl.u32 %v156_v44, 7 }
   0x3   :  { %v42_v6 = vld [vmem:[%s3035_s1 + $0x48] sm:$0xff]  ;;  %v41_v7 = vld [vmem:[%s3035_s1 + $0x40] sm:$0xff]  ;;  %v40_v8 = vld [vmem:[%s3035_s1 + $0x38] sm:$0xff] }
   0x4   :  { %50 = vmatpush.msra.mxu0 %v47_v1  ;;  %v39_v9 = vld [vmem:[%s3035_s1 + $0x30] sm:$0xff]  ;;  %v38_v10 = vld [vmem:[%s3035_s1 + $0x28] sm:$0xff]  ;;  %v37_v11 = vld [vmem:[%s3035_s1 + $0x20] sm:$0xff]  ;;  %vm163_vm3 = vcmp.eq.s32.totalorder %v2387_v49, 0  ;;  %vm178_vm4 = vcmp.eq.s32.totalorder %v2387_v49, 1  ;;  %vm195_vm10 = vcmp.eq.s32.totalorder %v2387_v49, 2 }
   0x5   :  { %v36_v12 = vld [vmem:[%s3035_s1 + $0x18] sm:$0xff]  ;;  %v35_v13 = vld [vmem:[%s3035_s1 + $0x10] sm:$0xff]  ;;  %v34_v14 = vld [vmem:[%s3035_s1 + $0x8] sm:$0xff]  ;;  %vm212_vm11 = vcmp.eq.s32.totalorder %v2387_v49, 3  ;;  %vm229_vm12 = vcmp.eq.s32.totalorder %v2387_v49, 4  ;;  %vm246_vm13 = vcmp.eq.s32.totalorder %v2387_v49, 5 }
   0x6   :  { %51 = vmatpush.msra.mxu0 %v46_v2  ;;  %v33_v15 = vld [vmem:[%s3035_s1] sm:$0xff]  ;;  %v26_v17 = vld [vmem:[%s3036_s0 + $0x8] sm:$0xff]  ;;  %v27_v18 = vld [vmem:[%s3036_s0 + $0x10] sm:$0xff]  ;;  %vm263_vm14 = vcmp.eq.s32.totalorder %v2387_v49, 6 }
   0x7   :  { %v25_v16 = vld [vmem:[%s3036_s0] sm:$0xff]  ;;  %v28_v19 = vld [vmem:[%s3036_s0 + $0x18] sm:$0xff]  ;;  %v30_v21 = vld [vmem:[%s3036_s0 + $0x28] sm:$0xff] }
   0x8   :  { %52 = vmatpush.msra.mxu0 %v45_v3  ;;  %v29_v20 = vld [vmem:[%s3036_s0 + $0x20] sm:$0xff]  ;;  %v31_v22 = vld [vmem:[%s3036_s0 + $0x30] sm:$0xff]  ;;  %v32_v23 = vld [vmem:[%s3036_s0 + $0x38] sm:$0xff] }
   0x9   :  { %v17_v32 = vld [vmem:[%s3037_s3] sm:$0xff]  ;;  %v18_v33 = vld [vmem:[%s3037_s3 + $0x8] sm:$0xff]  ;;  %v19_v34 = vld [vmem:[%s3037_s3 + $0x10] sm:$0xff] }
   0xa   :  { %53 = vmatpush.msra.mxu0 %v44_v4  ;;  %v1136_v35 = vld [vmem:[%s3038_s2 + $0x38] sm:$0xff]  ;;  %v1135_v36 = vld [vmem:[%s3038_s2 + $0x30] sm:$0xff]  ;;  %v1134_v37 = vld [vmem:[%s3038_s2 + $0x28] sm:$0xff] }
   0xb   :  { %1169 = vmatpush.msra.mxu2 %v1136_v35  ;;  %v1133_v38 = vld [vmem:[%s3038_s2 + $0x20] sm:$0xff]  ;;  %v1132_v39 = vld [vmem:[%s3038_s2 + $0x18] sm:$0xff]  ;;  %v1131_v40 = vld [vmem:[%s3038_s2 + $0x10] sm:$0xff] }
   0xc   :  { %54 = vmatpush.msra.mxu0 %v43_v5  ;;  %v1130_v41 = vld [vmem:[%s3038_s2 + $0x8] sm:$0xff]  ;;  %v1129_v42 = vld [vmem:[%s3038_s2] sm:$0xff] }
   0xd   :  { %1170 = vmatpush.msra.mxu2 %v1135_v36 }
   0xe   :  { %55 = vmatpush.msra.mxu0 %v42_v6 }
   0xf   :  { %1171 = vmatpush.msra.mxu2 %v1134_v37 }
  0x10   :  { %56 = vmatpush.msra.mxu0 %v41_v7 }
  0x11   :  { %1172 = vmatpush.msra.mxu2 %v1133_v38 }
  0x12   :  { %57 = vmatpush.msra.mxu0 %v40_v8 }
  0x13   :  { %1173 = vmatpush.msra.mxu2 %v1132_v39 }
  0x14   :  { %58 = vmatpush.msra.mxu0 %v39_v9 }
  0x15   :  { %1174 = vmatpush.msra.mxu2 %v1131_v40 }
  0x16   :  { %59 = vmatpush.msra.mxu0 %v38_v10 }
  0x17   :  { %1175 = vmatpush.msra.mxu2 %v1130_v41 }
  0x18   :  { %60 = vmatpush.msra.mxu0 %v37_v11 }
  0x19   :  { %1176 = vmatpush.msra.mxu2 %v1129_v42 }
  0x1a   :  { %61 = vmatpush.msra.mxu0 %v36_v12 }
  0x1c   :  { %62 = vmatpush.msra.mxu0 %v35_v13 }
  0x1e   :  { %63 = vmatpush.msra.mxu0 %v34_v14 }
  0x20   :  { %64 = vmatpush.msra.mxu0 %v33_v15 }
  0x21   :  { %65 = vmatmul.f32.vlgmr.msra.gmra.mxu0 %v25_v16 }
  0x29   :  { %68 = vmatmul.f32.gmra.mxu0 %v26_v17 }
  0x31   :  { %71 = vmatmul.f32.gmra.mxu0 %v27_v18 }
  0x39   :  { %74 = vmatmul.f32.gmra.mxu0 %v28_v19 }
  0x41   :  { %77 = vmatmul.f32.gmra.mxu0 %v29_v20 }
  0x49   :  { %80 = vmatmul.f32.gmra.mxu0 %v30_v21 }
  0x51   :  { %83 = vmatmul.f32.gmra.mxu0 %v31_v22 }
  0x59   :  { %86 = vmatmul.f32.gmra.mxu0 %v32_v23 }
  0x9e   :  { %v66_v24 = vpop.f32.mrf.mxu0 }
  0xa6   :  { %v69_v25 = vpop.f32.mrf.mxu0 }
  0xae   :  { %v72_v26 = vpop.f32.mrf.mxu0 }
  0xb6   :  { %v75_v27 = vpop.f32.mrf.mxu0 }
  0xbe   :  { %v78_v28 = vpop.f32.mrf.mxu0 }
  0xc6   :  { %v81_v29 = vpop.f32.mrf.mxu0 }
  0xce   :  { %v84_v30 = vpop.f32.mrf.mxu0 }
  0xd6   :  { %v87_v31 = vpop.f32.mrf.mxu0 }
  0xd7   :  { %123 = vmatpush.msra.mxu1 %v87_v31 }
  0xd9   :  { %124 = vmatpush.msra.mxu1 %v84_v30 }
  0xdb   :  { %125 = vmatpush.msra.mxu1 %v81_v29 }
  0xdd   :  { %126 = vmatpush.msra.mxu1 %v78_v28 }
  0xdf   :  { %127 = vmatpush.msra.mxu1 %v75_v27 }
  0xe1   :  { %128 = vmatpush.msra.mxu1 %v72_v26 }
  0xe3   :  { %129 = vmatpush.msra.mxu1 %v69_v25 }
  0xe5   :  { %130 = vmatpush.msra.mxu1 %v66_v24 }
  0xe6   :  { %2219 = vmatmul.msk.f32.vlgmr.msra.gmra.mxu1 %vm90_vm0, %v17_v32 }
  0xee   :  { %2220 = vmatmul.msk.f32.gmra.mxu1 %vm90_vm0, %v18_v33 }
  0xf6   :  { %2221 = vmatmul.msk.f32.gmra.mxu1 %vm90_vm0, %v19_v34 }
 0x163   :  { %v2383_v43 = vpop.f32.mrf.mxu1 }
 0x164   :  { %vm159_vm1 = vcmp.ge.f32.partialorder %v2383_v43, 2.0 }
 0x165   :  { %v160_v46 = vsel %vm159_vm1, 1.0, %v2249_v45  ;;  %vm280_vm1 = vcmp.eq.s32.totalorder %v2387_v49, 7 }
 0x166   :  { %v161_v47 = vmul.f32 -2.117, %v160_v46  ;;  %v164_v51 = vperm.slane %v160_v46, 0 }
 0x168   :  { %v167_v48 = vrot.slane %v161_v47, 7  ;;  %v165_v55 = vsel %vm163_vm3, %v164_v51, 0.0  ;;  %v172_v56 = vmul.f32 1.5576016, %v161_v47  ;;  %v188_v0 = vmul.f32 0.60653067, %v161_v47 }
 0x16a   :  { %v169_v50 = vadd.f32 %v167_v48, %v2383_v43 }
 0x16c   :  { %vm170_vm2 = vcmp.ge.f32.partialorder %v169_v50, 2.0  ;;  %v20_v50 = vld [vmem:[%s3037_s3 + $0x18] sm:$0xff] }
 0x16d   :  { %v171_v52 = vsel %vm170_vm2, 1.0, %v2249_v45  ;;  %2222 = vmatmul.msk.f32.gmra.mxu1 %vm90_vm0, %v20_v50 }
 0x16e   :  { %v173_v53 = vmul.f32 -2.117, %v171_v52  ;;  %v179_v54 = vperm.slane %v171_v52, 1 }
 0x170   :  { %v175_v57 = vrot.slane %v173_v53, 1  ;;  %v2397_v58 = vsel %vm178_vm4, %v179_v54, %v165_v55 }
 0x172   :  { %v177_v59 = vadd.f32 %v175_v57, %v172_v56 }
 0x174   :  { %v182_v60 = vrot.slane %v177_v59, 6  ;;  %v187_v62 = vmul.f32 1.5576016, %v177_v59  ;;  %v205_v9 = vmul.f32 0.60653067, %v177_v59 }
 0x176   :  { %v184_v61 = vadd.f32 %v182_v60, %v2383_v43  ;;  %v189_v2 = vsub.f32 %v187_v62, %v188_v0  ;;  %v2435_v0 = vpop.f32.mrf.mxu1 }
 0x178   :  { %vm185_vm5 = vcmp.ge.f32.partialorder %v184_v61, 2.0 }
 0x179   :  { %v186_v63 = vsel %vm185_vm5, 1.0, %v2249_v45 }
 0x17a   :  { %v190_v1 = vmul.f32 -2.117, %v186_v63  ;;  %v196_v41 = vperm.slane %v186_v63, 2 }
 0x17c   :  { %v192_v3 = vrot.slane %v190_v1, 2  ;;  %v197_v51 = vsel %vm195_vm10, %v196_v41, %v2397_v58 }
 0x17e   :  { %v194_v4 = vadd.f32 %v192_v3, %v189_v2 }
 0x180   :  { %v199_v5 = vrot.slane %v194_v4, 5  ;;  %v204_v7 = vmul.f32 1.5576016, %v194_v4  ;;  %v222_v18 = vmul.f32 0.60653067, %v194_v4 }
 0x182   :  { %v201_v6 = vadd.f32 %v199_v5, %v2383_v43  ;;  %v206_v11 = vsub.f32 %v204_v7, %v205_v9 }
 0x184   :  { %vm202_vm6 = vcmp.ge.f32.partialorder %v201_v6, 2.0 }
 0x185   :  { %v203_v8 = vsel %vm202_vm6, 1.0, %v2249_v45 }
 0x186   :  { %v207_v10 = vmul.f32 -2.117, %v203_v8  ;;  %v213_v42 = vperm.slane %v203_v8, 3 }
 0x188   :  { %v209_v12 = vrot.slane %v207_v10, 3  ;;  %v214_v53 = vsel %vm212_vm11, %v213_v42, %v197_v51 }
 0x18a   :  { %v211_v13 = vadd.f32 %v209_v12, %v206_v11 }
 0x18c   :  { %v216_v14 = vrot.slane %v211_v13, 4  ;;  %v221_v16 = vmul.f32 1.5576016, %v211_v13  ;;  %v239_v27 = vmul.f32 0.60653067, %v211_v13 }
 0x18e   :  { %v218_v15 = vadd.f32 %v216_v14, %v2383_v43  ;;  %v223_v20 = vsub.f32 %v221_v16, %v222_v18 }
 0x190   :  { %vm219_vm7 = vcmp.ge.f32.partialorder %v218_v15, 2.0 }
 0x191   :  { %v220_v17 = vsel %vm219_vm7, 1.0, %v2249_v45 }
 0x192   :  { %v224_v19 = vmul.f32 -2.117, %v220_v17  ;;  %v230_v46 = vperm.slane %v220_v17, 4 }
 0x194   :  { %v226_v21 = vrot.slane %v224_v19, 4  ;;  %v231_v54 = vsel %vm229_vm12, %v230_v46, %v214_v53 }
 0x196   :  { %v228_v22 = vadd.f32 %v226_v21, %v223_v20 }
 0x198   :  { %v233_v23 = vrot.slane %v228_v22, 3  ;;  %v238_v25 = vmul.f32 1.5576016, %v228_v22  ;;  %v256_v36 = vmul.f32 0.60653067, %v228_v22 }
 0x19a   :  { %v235_v24 = vadd.f32 %v233_v23, %v2383_v43  ;;  %v240_v29 = vsub.f32 %v238_v25, %v239_v27 }
 0x19c   :  { %vm236_vm8 = vcmp.ge.f32.partialorder %v235_v24, 2.0 }
 0x19d   :  { %v237_v26 = vsel %vm236_vm8, 1.0, %v2249_v45 }
 0x19e   :  { %v241_v28 = vmul.f32 -2.117, %v237_v26  ;;  %v247_v47 = vperm.slane %v237_v26, 5 }
 0x1a0   :  { %v243_v30 = vrot.slane %v241_v28, 5  ;;  %v248_v56 = vsel %vm246_vm13, %v247_v47, %v231_v54 }
 0x1a2   :  { %v245_v31 = vadd.f32 %v243_v30, %v240_v29 }
 0x1a4   :  { %v250_v32 = vrot.slane %v245_v31, 2  ;;  %v255_v34 = vmul.f32 1.5576016, %v245_v31  ;;  %v273_v57 = vmul.f32 0.60653067, %v245_v31 }
 0x1a6   :  { %v252_v33 = vadd.f32 %v250_v32, %v2383_v43  ;;  %v257_v38 = vsub.f32 %v255_v34, %v256_v36 }
 0x1a8   :  { %vm253_vm9 = vcmp.ge.f32.partialorder %v252_v33, 2.0 }
 0x1a9   :  { %v254_v35 = vsel %vm253_vm9, 1.0, %v2249_v45 }
 0x1aa   :  { %v258_v37 = vmul.f32 -2.117, %v254_v35  ;;  %v264_v52 = vperm.slane %v254_v35, 6 }
 0x1ac   :  { %v260_v39 = vrot.slane %v258_v37, 6  ;;  %v265_v60 = vsel %vm263_vm14, %v264_v52, %v248_v56 }
 0x1ae   :  { %v262_v40 = vadd.f32 %v260_v39, %v257_v38 }
 0x1b0   :  { %v267_v44 = vrot.slane %v262_v40, 1  ;;  %v287_v4 = vmul.f32 0.60653067, %v262_v40 }
 0x1b2   :  { %v269_v48 = vadd.f32 %v267_v44, %v2383_v43  ;;  %v272_v43 = vmul.f32 1.5576016, %v262_v40 }
 0x1b4   :  { %vm270_vm15 = vcmp.ge.f32.partialorder %v269_v48, 2.0  ;;  %v274_v61 = vsub.f32 %v272_v43, %v273_v57 }
 0x1b5   :  { %v271_v55 = vsel %vm270_vm15, 1.0, %v2249_v45 }
 0x1b6   :  { %v275_v58 = vmul.f32 -2.117, %v271_v55  ;;  %v281_v59 = vperm.slane %v271_v55, 7 }
 0x1b8   :  { %v277_v62 = vrot.slane %v275_v58, 7  ;;  %v282_v63 = vsel %vm280_vm1, %v281_v59, %v265_v60 }
 0x1b9   :  { %2227 = vmatmul.msk.f32.vlgmr.msra.gmra.mxu2 %vm90_vm0, %v282_v63 }
 0x1ba   :  { %v279_v1 = vadd.f32 %v277_v62, %v274_v61 }
 0x1bc   :  { %v286_v2 = vmul.f32 1.5576016, %v279_v1  ;;  %v283_v3 = vadd.f32 %v279_v1, %v2435_v0  ;;  %v300_v14 = vmul.f32 0.60653067, %v279_v1 }
 0x1be   :  { %vm284_vm2 = vcmp.ge.f32.partialorder %v283_v3, 2.0  ;;  %v288_v6 = vsub.f32 %v286_v2, %v287_v4 }
 0x1bf   :  { %v285_v5 = vsel %vm284_vm2, 1.0, %v2249_v45 }
 0x1c0   :  { %v289_v7 = vmul.f32 -2.117, %v285_v5  ;;  %v291_v11 = vperm.slane %v285_v5, 0 }
 0x1c2   :  { %v290_v8 = vadd.f32 %v289_v7, %v288_v6  ;;  %v292_v17 = vsel %vm163_vm3, %v291_v11, 0.0 }
 0x1c4   :  { %v294_v9 = vrot.slane %v290_v8, 7  ;;  %v299_v12 = vmul.f32 1.5576016, %v290_v8  ;;  %v316_v26 = vmul.f32 0.60653067, %v290_v8 }
 0x1c6   :  { %v296_v10 = vadd.f32 %v294_v9, %v2435_v0  ;;  %v301_v18 = vsub.f32 %v299_v12, %v300_v14 }
 0x1c8   :  { %vm297_vm5 = vcmp.ge.f32.partialorder %v296_v10, 2.0 }
 0x1c9   :  { %v298_v13 = vsel %vm297_vm5, 1.0, %v2249_v45 }
 0x1ca   :  { %v302_v15 = vmul.f32 -2.117, %v298_v13  ;;  %v307_v16 = vperm.slane %v298_v13, 1 }
 0x1cc   :  { %v304_v19 = vrot.slane %v302_v15, 1  ;;  %v308_v20 = vsel %vm178_vm4, %v307_v16, %v292_v17 }
 0x1ce   :  { %v306_v21 = vadd.f32 %v304_v19, %v301_v18 }
 0x1d0   :  { %v310_v22 = vrot.slane %v306_v21, 6  ;;  %v315_v24 = vmul.f32 1.5576016, %v306_v21  ;;  %v332_v35 = vmul.f32 0.60653067, %v306_v21 }
 0x1d2   :  { %v312_v23 = vadd.f32 %v310_v22, %v2435_v0  ;;  %v317_v28 = vsub.f32 %v315_v24, %v316_v26 }
 0x1d4   :  { %vm313_vm6 = vcmp.ge.f32.partialorder %v312_v23, 2.0 }
 0x1d5   :  { %v314_v25 = vsel %vm313_vm6, 1.0, %v2249_v45 }
 0x1d6   :  { %v318_v27 = vmul.f32 -2.117, %v314_v25  ;;  %v323_v6 = vperm.slane %v314_v25, 2  ;;  %v2470_v25 = vpop.f32.mrf.mxu1 }
 0x1d8   :  { %v320_v29 = vrot.slane %v318_v27, 2  ;;  %v324_v12 = vsel %vm195_vm10, %v323_v6, %v308_v20 }
 0x1da   :  { %v322_v30 = vadd.f32 %v320_v29, %v317_v28 }
 0x1dc   :  { %v326_v31 = vrot.slane %v322_v30, 5  ;;  %v331_v33 = vmul.f32 1.5576016, %v322_v30  ;;  %v348_v46 = vmul.f32 0.60653067, %v322_v30 }
 0x1de   :  { %v328_v32 = vadd.f32 %v326_v31, %v2435_v0  ;;  %v333_v37 = vsub.f32 %v331_v33, %v332_v35  ;;  %v21_v33 = vld [vmem:[%s3037_s3 + $0x20] sm:$0xff] }
 0x1df   :  { %2223 = vmatmul.msk.f32.gmra.mxu1 %vm90_vm0, %v21_v33 }
 0x1e0   :  { %vm329_vm7 = vcmp.ge.f32.partialorder %v328_v32, 2.0 }
 0x1e1   :  { %v330_v34 = vsel %vm329_vm7, 1.0, %v2249_v45 }
 0x1e2   :  { %v334_v36 = vmul.f32 -2.117, %v330_v34  ;;  %v339_v7 = vperm.slane %v330_v34, 3 }
 0x1e4   :  { %v336_v38 = vrot.slane %v334_v36, 3  ;;  %v340_v14 = vsel %vm212_vm11, %v339_v7, %v324_v12 }
 0x1e6   :  { %v338_v39 = vadd.f32 %v336_v38, %v333_v37 }
 0x1e8   :  { %v342_v40 = vrot.slane %v338_v39, 4  ;;  %v347_v42 = vmul.f32 1.5576016, %v338_v39  ;;  %v364_v55 = vmul.f32 0.60653067, %v338_v39 }
 0x1ea   :  { %v344_v41 = vadd.f32 %v342_v40, %v2435_v0  ;;  %v349_v48 = vsub.f32 %v347_v42, %v348_v46 }
 0x1ec   :  { %vm345_vm8 = vcmp.ge.f32.partialorder %v344_v41, 2.0 }
 0x1ed   :  { %v346_v44 = vsel %vm345_vm8, 1.0, %v2249_v45 }
 0x1ee   :  { %v350_v47 = vmul.f32 -2.117, %v346_v44  ;;  %v355_v9 = vperm.slane %v346_v44, 4 }
 0x1f0   :  { %v352_v50 = vrot.slane %v350_v47, 4  ;;  %v356_v16 = vsel %vm229_vm12, %v355_v9, %v340_v14 }
 0x1f2   :  { %v354_v51 = vadd.f32 %v352_v50, %v349_v48 }
 0x1f4   :  { %v358_v52 = vrot.slane %v354_v51, 3  ;;  %v363_v43 = vmul.f32 1.5576016, %v354_v51  ;;  %v380_v1 = vmul.f32 0.60653067, %v354_v51 }
 0x1f6   :  { %v360_v53 = vadd.f32 %v358_v52, %v2435_v0  ;;  %v365_v57 = vsub.f32 %v363_v43, %v364_v55 }
 0x1f8   :  { %vm361_vm9 = vcmp.ge.f32.partialorder %v360_v53, 2.0 }
 0x1f9   :  { %v362_v54 = vsel %vm361_vm9, 1.0, %v2249_v45 }
 0x1fa   :  { %v366_v56 = vmul.f32 -2.117, %v362_v54  ;;  %v371_v10 = vperm.slane %v362_v54, 5 }
 0x1fc   :  { %v368_v58 = vrot.slane %v366_v56, 5  ;;  %v372_v18 = vsel %vm246_vm13, %v371_v10, %v356_v16 }
 0x1fe   :  { %v370_v59 = vadd.f32 %v368_v58, %v365_v57 }
 0x200   :  { %v374_v60 = vrot.slane %v370_v59, 2  ;;  %v379_v62 = vmul.f32 1.5576016, %v370_v59  ;;  %v396_v19 = vmul.f32 0.60653067, %v370_v59 }
 0x202   :  { %v376_v61 = vadd.f32 %v374_v60, %v2435_v0  ;;  %v381_v3 = vsub.f32 %v379_v62, %v380_v1 }
 0x204   :  { %vm377_vm15 = vcmp.ge.f32.partialorder %v376_v61, 2.0 }
 0x205   :  { %v378_v63 = vsel %vm377_vm15, 1.0, %v2249_v45 }
 0x206   :  { %v382_v2 = vmul.f32 -2.117, %v378_v63  ;;  %v387_v13 = vperm.slane %v378_v63, 6 }
 0x208   :  { %v384_v4 = vrot.slane %v382_v2, 6  ;;  %v388_v20 = vsel %vm263_vm14, %v387_v13, %v372_v18 }
 0x20a   :  { %v386_v5 = vadd.f32 %v384_v4, %v381_v3 }
 0x20c   :  { %v390_v8 = vrot.slane %v386_v5, 1  ;;  %v395_v15 = vmul.f32 1.5576016, %v386_v5  ;;  %v409_v29 = vmul.f32 0.60653067, %v386_v5 }
 0x20e   :  { %v392_v11 = vadd.f32 %v390_v8, %v2435_v0  ;;  %v397_v22 = vsub.f32 %v395_v15, %v396_v19 }
 0x210   :  { %vm393_vm2 = vcmp.ge.f32.partialorder %v392_v11, 2.0 }
 0x211   :  { %v394_v17 = vsel %vm393_vm2, 1.0, %v2249_v45 }
 0x212   :  { %v398_v21 = vmul.f32 -2.117, %v394_v17  ;;  %v403_v0 = vperm.slane %v394_v17, 7 }
 0x214   :  { %v400_v23 = vrot.slane %v398_v21, 7  ;;  %v404_v24 = vsel %vm280_vm1, %v403_v0, %v388_v20 }
 0x215   :  { %2228 = vmatmul.msk.f32.gmra.mxu2 %vm90_vm0, %v404_v24 }
 0x216   :  { %v402_v26 = vadd.f32 %v400_v23, %v397_v22 }
 0x218   :  { %v408_v27 = vmul.f32 1.5576016, %v402_v26  ;;  %v405_v28 = vadd.f32 %v402_v26, %v2470_v25  ;;  %v422_v40 = vmul.f32 0.60653067, %v402_v26 }
 0x21a   :  { %vm406_vm5 = vcmp.ge.f32.partialorder %v405_v28, 2.0  ;;  %v410_v31 = vsub.f32 %v408_v27, %v409_v29 }
 0x21b   :  { %v407_v30 = vsel %vm406_vm5, 1.0, %v2249_v45 }
 0x21c   :  { %v411_v32 = vmul.f32 -2.117, %v407_v30  ;;  %v413_v37 = vperm.slane %v407_v30, 0 }
 0x21e   :  { %v412_v34 = vadd.f32 %v411_v32, %v410_v31  ;;  %v414_v44 = vsel %vm163_vm3, %v413_v37, 0.0 }
 0x220   :  { %v416_v35 = vrot.slane %v412_v34, 7  ;;  %v421_v38 = vmul.f32 1.5576016, %v412_v34  ;;  %v438_v54 = vmul.f32 0.60653067, %v412_v34 }
 0x222   :  { %v418_v36 = vadd.f32 %v416_v35, %v2470_v25  ;;  %v423_v46 = vsub.f32 %v421_v38, %v422_v40 }
 0x224   :  { %vm419_vm6 = vcmp.ge.f32.partialorder %v418_v36, 2.0 }
 0x225   :  { %v420_v39 = vsel %vm419_vm6, 1.0, %v2249_v45 }
 0x226   :  { %v424_v41 = vmul.f32 -2.117, %v420_v39  ;;  %v429_v42 = vperm.slane %v420_v39, 1 }
 0x228   :  { %v426_v47 = vrot.slane %v424_v41, 1  ;;  %v430_v48 = vsel %vm178_vm4, %v429_v42, %v414_v44 }
 0x22a   :  { %v428_v50 = vadd.f32 %v426_v47, %v423_v46 }
 0x22c   :  { %v432_v51 = vrot.slane %v428_v50, 6  ;;  %v437_v53 = vmul.f32 1.5576016, %v428_v50  ;;  %v454_v63 = vmul.f32 0.60653067, %v428_v50 }
 0x22e   :  { %v434_v52 = vadd.f32 %v432_v51, %v2470_v25  ;;  %v439_v56 = vsub.f32 %v437_v53, %v438_v54 }
 0x230   :  { %vm435_vm7 = vcmp.ge.f32.partialorder %v434_v52, 2.0 }
 0x231   :  { %v436_v43 = vsel %vm435_vm7, 1.0, %v2249_v45 }
 0x232   :  { %v440_v55 = vmul.f32 -2.117, %v436_v43  ;;  %v445_v32 = vperm.slane %v436_v43, 2  ;;  %v2509_v43 = vpop.f32.mrf.mxu1 }
 0x234   :  { %v442_v57 = vrot.slane %v440_v55, 2  ;;  %v446_v38 = vsel %vm195_vm10, %v445_v32, %v430_v48 }
 0x236   :  { %v444_v58 = vadd.f32 %v442_v57, %v439_v56 }
 0x238   :  { %v448_v59 = vrot.slane %v444_v58, 5  ;;  %v453_v61 = vmul.f32 1.5576016, %v444_v58  ;;  %v470_v9 = vmul.f32 0.60653067, %v444_v58 }
 0x23a   :  { %v450_v60 = vadd.f32 %v448_v59, %v2470_v25  ;;  %v455_v2 = vsub.f32 %v453_v61, %v454_v63  ;;  %v2516_v61 = vld [vmem:[%s3037_s3 + $0x28] sm:$0xff] }
 0x23b   :  { %2224 = vmatmul.msk.f32.gmra.mxu1 %vm90_vm0, %v2516_v61 }
 0x23c   :  { %vm451_vm8 = vcmp.ge.f32.partialorder %v450_v60, 2.0 }
 0x23d   :  { %v452_v62 = vsel %vm451_vm8, 1.0, %v2249_v45 }
 0x23e   :  { %v456_v1 = vmul.f32 -2.117, %v452_v62  ;;  %v461_v33 = vperm.slane %v452_v62, 3 }
 0x240   :  { %v458_v3 = vrot.slane %v456_v1, 3  ;;  %v462_v40 = vsel %vm212_vm11, %v461_v33, %v446_v38 }
 0x242   :  { %v460_v4 = vadd.f32 %v458_v3, %v455_v2 }
 0x244   :  { %v464_v5 = vrot.slane %v460_v4, 4  ;;  %v469_v7 = vmul.f32 1.5576016, %v460_v4  ;;  %v486_v18 = vmul.f32 0.60653067, %v460_v4 }
 0x246   :  { %v466_v6 = vadd.f32 %v464_v5, %v2470_v25  ;;  %v471_v11 = vsub.f32 %v469_v7, %v470_v9 }
 0x248   :  { %vm467_vm9 = vcmp.ge.f32.partialorder %v466_v6, 2.0 }
 0x249   :  { %v468_v8 = vsel %vm467_vm9, 1.0, %v2249_v45 }
 0x24a   :  { %v472_v10 = vmul.f32 -2.117, %v468_v8  ;;  %v477_v35 = vperm.slane %v468_v8, 4 }
 0x24c   :  { %v474_v12 = vrot.slane %v472_v10, 4  ;;  %v478_v42 = vsel %vm229_vm12, %v477_v35, %v462_v40 }
 0x24e   :  { %v476_v13 = vadd.f32 %v474_v12, %v471_v11 }
 0x250   :  { %v480_v14 = vrot.slane %v476_v13, 3  ;;  %v485_v16 = vmul.f32 1.5576016, %v476_v13  ;;  %v502_v27 = vmul.f32 0.60653067, %v476_v13 }
 0x252   :  { %v482_v15 = vadd.f32 %v480_v14, %v2470_v25  ;;  %v487_v21 = vsub.f32 %v485_v16, %v486_v18 }
 0x254   :  { %vm483_vm15 = vcmp.ge.f32.partialorder %v482_v15, 2.0 }
 0x255   :  { %v484_v17 = vsel %vm483_vm15, 1.0, %v2249_v45 }
 0x256   :  { %v488_v19 = vmul.f32 -2.117, %v484_v17  ;;  %v493_v36 = vperm.slane %v484_v17, 5 }
 0x258   :  { %v490_v0 = vrot.slane %v488_v19, 5  ;;  %v494_v46 = vsel %vm246_vm13, %v493_v36, %v478_v42 }
 0x25a   :  { %v492_v20 = vadd.f32 %v490_v0, %v487_v21 }
 0x25c   :  { %v496_v22 = vrot.slane %v492_v20, 2  ;;  %v501_v24 = vmul.f32 1.5576016, %v492_v20  ;;  %v518_v47 = vmul.f32 0.60653067, %v492_v20 }
 0x25e   :  { %v498_v23 = vadd.f32 %v496_v22, %v2470_v25  ;;  %v503_v29 = vsub.f32 %v501_v24, %v502_v27 }
 0x260   :  { %vm499_vm2 = vcmp.ge.f32.partialorder %v498_v23, 2.0 }
 0x261   :  { %v500_v26 = vsel %vm499_vm2, 1.0, %v2249_v45 }
 0x262   :  { %v504_v28 = vmul.f32 -2.117, %v500_v26  ;;  %v509_v39 = vperm.slane %v500_v26, 6 }
 0x264   :  { %v506_v30 = vrot.slane %v504_v28, 6  ;;  %v510_v48 = vsel %vm263_vm14, %v509_v39, %v494_v46 }
 0x266   :  { %v508_v31 = vadd.f32 %v506_v30, %v503_v29 }
 0x268   :  { %v512_v34 = vrot.slane %v508_v31, 1  ;;  %v517_v41 = vmul.f32 1.5576016, %v508_v31  ;;  %v531_v57 = vmul.f32 0.60653067, %v508_v31 }
 0x26a   :  { %v514_v37 = vadd.f32 %v512_v34, %v2470_v25  ;;  %v519_v51 = vsub.f32 %v517_v41, %v518_v47 }
 0x26c   :  { %vm515_vm5 = vcmp.ge.f32.partialorder %v514_v37, 2.0 }
 0x26d   :  { %v516_v44 = vsel %vm515_vm5, 1.0, %v2249_v45 }
 0x26e   :  { %v520_v50 = vmul.f32 -2.117, %v516_v44  ;;  %v525_v25 = vperm.slane %v516_v44, 7 }
 0x270   :  { %v522_v52 = vrot.slane %v520_v50, 7  ;;  %v526_v53 = vsel %vm280_vm1, %v525_v25, %v510_v48 }
 0x271   :  { %2229 = vmatmul.msk.f32.gmra.mxu2 %vm90_vm0, %v526_v53 }
 0x272   :  { %v524_v54 = vadd.f32 %v522_v52, %v519_v51 }
 0x274   :  { %v530_v55 = vmul.f32 1.5576016, %v524_v54  ;;  %v527_v56 = vadd.f32 %v524_v54, %v2509_v43  ;;  %v544_v5 = vmul.f32 0.60653067, %v524_v54 }
 0x276   :  { %vm528_vm6 = vcmp.ge.f32.partialorder %v527_v56, 2.0  ;;  %v532_v59 = vsub.f32 %v530_v55, %v531_v57 }
 0x277   :  { %v529_v58 = vsel %vm528_vm6, 1.0, %v2249_v45 }
 0x278   :  { %v533_v60 = vmul.f32 -2.117, %v529_v58  ;;  %v535_v2 = vperm.slane %v529_v58, 0 }
 0x27a   :  { %v534_v62 = vadd.f32 %v533_v60, %v532_v59  ;;  %v536_v8 = vsel %vm163_vm3, %v535_v2, 0.0 }
 0x27c   :  { %v538_v63 = vrot.slane %v534_v62, 7  ;;  %v543_v3 = vmul.f32 1.5576016, %v534_v62  ;;  %v560_v17 = vmul.f32 0.60653067, %v534_v62 }
 0x27e   :  { %v540_v1 = vadd.f32 %v538_v63, %v2509_v43  ;;  %v545_v9 = vsub.f32 %v543_v3, %v544_v5 }
 0x280   :  { %vm541_vm7 = vcmp.ge.f32.partialorder %v540_v1, 2.0 }
 0x281   :  { %v542_v4 = vsel %vm541_vm7, 1.0, %v2249_v45 }
 0x282   :  { %v546_v6 = vmul.f32 -2.117, %v542_v4  ;;  %v551_v7 = vperm.slane %v542_v4, 1 }
 0x284   :  { %v548_v10 = vrot.slane %v546_v6, 1  ;;  %v552_v11 = vsel %vm178_vm4, %v551_v7, %v536_v8 }
 0x286   :  { %v550_v12 = vadd.f32 %v548_v10, %v545_v9 }
 0x288   :  { %v554_v13 = vrot.slane %v550_v12, 6  ;;  %v559_v15 = vmul.f32 1.5576016, %v550_v12  ;;  %v576_v26 = vmul.f32 0.60653067, %v550_v12 }
 0x28a   :  { %v556_v14 = vadd.f32 %v554_v13, %v2509_v43  ;;  %v561_v19 = vsub.f32 %v559_v15, %v560_v17  ;;  %v2551_v17 = vpop.f32.mrf.mxu1 }
 0x28c   :  { %vm557_vm8 = vcmp.ge.f32.partialorder %v556_v14, 2.0 }
 0x28d   :  { %v558_v16 = vsel %vm557_vm8, 1.0, %v2249_v45 }
 0x28e   :  { %v562_v18 = vmul.f32 -2.117, %v558_v16  ;;  %v567_v60 = vperm.slane %v558_v16, 2 }
 0x290   :  { %v564_v21 = vrot.slane %v562_v18, 2  ;;  %v568_v4 = vsel %vm195_vm10, %v567_v60, %v552_v11 }
 0x292   :  { %v566_v0 = vadd.f32 %v564_v21, %v561_v19 }
 0x294   :  { %v570_v20 = vrot.slane %v566_v0, 5  ;;  %v575_v23 = vmul.f32 1.5576016, %v566_v0  ;;  %v592_v35 = vmul.f32 0.60653067, %v566_v0 }
 0x296   :  { %v572_v22 = vadd.f32 %v570_v20, %v2509_v43  ;;  %v577_v28 = vsub.f32 %v575_v23, %v576_v26 }
 0x298   :  { %vm573_vm9 = vcmp.ge.f32.partialorder %v572_v22, 2.0 }
 0x299   :  { %v574_v24 = vsel %vm573_vm9, 1.0, %v2249_v45 }
 0x29a   :  { %v578_v27 = vmul.f32 -2.117, %v574_v24  ;;  %v583_v62 = vperm.slane %v574_v24, 3  ;;  %v2558_v24 = vld [vmem:[%s3037_s3 + $0x30] sm:$0xff] }
 0x29b   :  { %2225 = vmatmul.msk.f32.gmra.mxu1 %vm90_vm0, %v2558_v24 }
 0x29c   :  { %v580_v29 = vrot.slane %v578_v27, 3  ;;  %v584_v6 = vsel %vm212_vm11, %v583_v62, %v568_v4 }
 0x29e   :  { %v582_v30 = vadd.f32 %v580_v29, %v577_v28 }
 0x2a0   :  { %v586_v31 = vrot.slane %v582_v30, 4  ;;  %v591_v33 = vmul.f32 1.5576016, %v582_v30  ;;  %v608_v46 = vmul.f32 0.60653067, %v582_v30 }
 0x2a2   :  { %v588_v32 = vadd.f32 %v586_v31, %v2509_v43  ;;  %v593_v37 = vsub.f32 %v591_v33, %v592_v35 }
 0x2a4   :  { %vm589_vm15 = vcmp.ge.f32.partialorder %v588_v32, 2.0 }
 0x2a5   :  { %v590_v34 = vsel %vm589_vm15, 1.0, %v2249_v45 }
 0x2a6   :  { %v594_v36 = vmul.f32 -2.117, %v590_v34  ;;  %v599_v1 = vperm.slane %v590_v34, 4 }
 0x2a8   :  { %v596_v38 = vrot.slane %v594_v36, 4  ;;  %v600_v8 = vsel %vm229_vm12, %v599_v1, %v584_v6 }
 0x2aa   :  { %v598_v39 = vadd.f32 %v596_v38, %v593_v37 }
 0x2ac   :  { %v602_v40 = vrot.slane %v598_v39, 3  ;;  %v607_v42 = vmul.f32 1.5576016, %v598_v39  ;;  %v624_v55 = vmul.f32 0.60653067, %v598_v39 }
 0x2ae   :  { %v604_v41 = vadd.f32 %v602_v40, %v2509_v43  ;;  %v609_v50 = vsub.f32 %v607_v42, %v608_v46 }
 0x2b0   :  { %vm605_vm2 = vcmp.ge.f32.partialorder %v604_v41, 2.0 }
 0x2b1   :  { %v606_v44 = vsel %vm605_vm2, 1.0, %v2249_v45 }
 0x2b2   :  { %v610_v47 = vmul.f32 -2.117, %v606_v44  ;;  %v615_v2 = vperm.slane %v606_v44, 5 }
 0x2b4   :  { %v612_v25 = vrot.slane %v610_v47, 5  ;;  %v616_v10 = vsel %vm246_vm13, %v615_v2, %v600_v8 }
 0x2b6   :  { %v614_v48 = vadd.f32 %v612_v25, %v609_v50 }
 0x2b8   :  { %v618_v51 = vrot.slane %v614_v48, 2  ;;  %v623_v53 = vmul.f32 1.5576016, %v614_v48  ;;  %v640_v12 = vmul.f32 0.60653067, %v614_v48 }
 0x2ba   :  { %v620_v52 = vadd.f32 %v618_v51, %v2509_v43  ;;  %v625_v57 = vsub.f32 %v623_v53, %v624_v55 }
 0x2bc   :  { %vm621_vm5 = vcmp.ge.f32.partialorder %v620_v52, 2.0 }
 0x2bd   :  { %v622_v54 = vsel %vm621_vm5, 1.0, %v2249_v45 }
 0x2be   :  { %v626_v56 = vmul.f32 -2.117, %v622_v54  ;;  %v631_v5 = vperm.slane %v622_v54, 6 }
 0x2c0   :  { %v628_v58 = vrot.slane %v626_v56, 6  ;;  %v632_v11 = vsel %vm263_vm14, %v631_v5, %v616_v10 }
 0x2c2   :  { %v630_v59 = vadd.f32 %v628_v58, %v625_v57 }
 0x2c4   :  { %v634_v63 = vrot.slane %v630_v59, 1  ;;  %v639_v7 = vmul.f32 1.5576016, %v630_v59  ;;  %v653_v0 = vmul.f32 0.60653067, %v630_v59 }
 0x2c6   :  { %v636_v3 = vadd.f32 %v634_v63, %v2509_v43  ;;  %v641_v14 = vsub.f32 %v639_v7, %v640_v12 }
 0x2c8   :  { %vm637_vm6 = vcmp.ge.f32.partialorder %v636_v3, 2.0 }
 0x2c9   :  { %v638_v9 = vsel %vm637_vm6, 1.0, %v2249_v45 }
 0x2ca   :  { %v642_v13 = vmul.f32 -2.117, %v638_v9  ;;  %v647_v43 = vperm.slane %v638_v9, 7 }
 0x2cc   :  { %v644_v15 = vrot.slane %v642_v13, 7  ;;  %v648_v16 = vsel %vm280_vm1, %v647_v43, %v632_v11 }
 0x2cd   :  { %2230 = vmatmul.msk.f32.gmra.mxu2 %vm90_vm0, %v648_v16 }
 0x2ce   :  { %v646_v18 = vadd.f32 %v644_v15, %v641_v14 }
 0x2d0   :  { %v652_v19 = vmul.f32 1.5576016, %v646_v18  ;;  %v649_v21 = vadd.f32 %v646_v18, %v2551_v17  ;;  %v666_v32 = vmul.f32 0.60653067, %v646_v18 }
 0x2d2   :  { %vm650_vm7 = vcmp.ge.f32.partialorder %v649_v21, 2.0  ;;  %v654_v22 = vsub.f32 %v652_v19, %v653_v0 }
 0x2d3   :  { %v651_v20 = vsel %vm650_vm7, 1.0, %v2249_v45 }
 0x2d4   :  { %v655_v23 = vmul.f32 -2.117, %v651_v20  ;;  %v657_v29 = vperm.slane %v651_v20, 0 }
 0x2d6   :  { %v656_v26 = vadd.f32 %v655_v23, %v654_v22  ;;  %v658_v35 = vsel %vm163_vm3, %v657_v29, 0.0 }
 0x2d8   :  { %v660_v27 = vrot.slane %v656_v26, 7  ;;  %v665_v30 = vmul.f32 1.5576016, %v656_v26  ;;  %v682_v46 = vmul.f32 0.60653067, %v656_v26 }
 0x2da   :  { %v662_v28 = vadd.f32 %v660_v27, %v2551_v17  ;;  %v667_v36 = vsub.f32 %v665_v30, %v666_v32 }
 0x2dc   :  { %vm663_vm8 = vcmp.ge.f32.partialorder %v662_v28, 2.0 }
 0x2dd   :  { %v664_v31 = vsel %vm663_vm8, 1.0, %v2249_v45 }
 0x2de   :  { %v668_v33 = vmul.f32 -2.117, %v664_v31  ;;  %v673_v34 = vperm.slane %v664_v31, 1 }
 0x2e0   :  { %v670_v37 = vrot.slane %v668_v33, 1  ;;  %v674_v38 = vsel %vm178_vm4, %v673_v34, %v658_v35 }
 0x2e2   :  { %v672_v39 = vadd.f32 %v670_v37, %v667_v36 }
 0x2e4   :  { %v676_v40 = vrot.slane %v672_v39, 6  ;;  %v681_v42 = vmul.f32 1.5576016, %v672_v39  ;;  %v698_v55 = vmul.f32 0.60653067, %v672_v39 }
 0x2e6   :  { %v678_v41 = vadd.f32 %v676_v40, %v2551_v17  ;;  %v683_v50 = vsub.f32 %v681_v42, %v682_v46 }
 0x2e8   :  { %vm679_vm9 = vcmp.ge.f32.partialorder %v678_v41, 2.0 }
 0x2e9   :  { %v680_v44 = vsel %vm679_vm9, 1.0, %v2249_v45 }
 0x2ea   :  { %v684_v47 = vmul.f32 -2.117, %v680_v44  ;;  %v689_v26 = vperm.slane %v680_v44, 2 }
 0x2ec   :  { %v686_v25 = vrot.slane %v684_v47, 2  ;;  %v690_v32 = vsel %vm195_vm10, %v689_v26, %v674_v38  ;;  %v2593_v47 = vpop.f32.mrf.mxu1 }
 0x2ee   :  { %v688_v48 = vadd.f32 %v686_v25, %v683_v50 }
 0x2f0   :  { %v692_v51 = vrot.slane %v688_v48, 5  ;;  %v697_v53 = vmul.f32 1.5576016, %v688_v48  ;;  %v714_v2 = vmul.f32 0.60653067, %v688_v48 }
 0x2f2   :  { %v694_v52 = vadd.f32 %v692_v51, %v2551_v17  ;;  %v699_v57 = vsub.f32 %v697_v53, %v698_v55  ;;  %v2600_v55 = vld [vmem:[%s3037_s3 + $0x38] sm:$0xff] }
 0x2f3   :  { %2226 = vmatmul.msk.f32.gmra.mxu1 %vm90_vm0, %v2600_v55 }
 0x2f4   :  { %vm695_vm15 = vcmp.ge.f32.partialorder %v694_v52, 2.0 }
 0x2f5   :  { %v696_v54 = vsel %vm695_vm15, 1.0, %v2249_v45 }
 0x2f6   :  { %v700_v56 = vmul.f32 -2.117, %v696_v54  ;;  %v705_v27 = vperm.slane %v696_v54, 3 }
 0x2f8   :  { %v702_v58 = vrot.slane %v700_v56, 3  ;;  %v706_v34 = vsel %vm212_vm11, %v705_v27, %v690_v32 }
 0x2fa   :  { %v704_v59 = vadd.f32 %v702_v58, %v699_v57 }
 0x2fc   :  { %v708_v60 = vrot.slane %v704_v59, 4  ;;  %v713_v63 = vmul.f32 1.5576016, %v704_v59  ;;  %v730_v12 = vmul.f32 0.60653067, %v704_v59 }
 0x2fe   :  { %v710_v62 = vadd.f32 %v708_v60, %v2551_v17  ;;  %v715_v4 = vsub.f32 %v713_v63, %v714_v2 }
 0x300   :  { %vm711_vm2 = vcmp.ge.f32.partialorder %v710_v62, 2.0 }
 0x301   :  { %v712_v1 = vsel %vm711_vm2, 1.0, %v2249_v45 }
 0x302   :  { %v716_v3 = vmul.f32 -2.117, %v712_v1  ;;  %v721_v29 = vperm.slane %v712_v1, 4 }
 0x304   :  { %v718_v5 = vrot.slane %v716_v3, 4  ;;  %v722_v36 = vsel %vm229_vm12, %v721_v29, %v706_v34 }
 0x306   :  { %v720_v6 = vadd.f32 %v718_v5, %v715_v4 }
 0x308   :  { %v724_v7 = vrot.slane %v720_v6, 3  ;;  %v729_v9 = vmul.f32 1.5576016, %v720_v6  ;;  %v746_v21 = vmul.f32 0.60653067, %v720_v6 }
 0x30a   :  { %v726_v8 = vadd.f32 %v724_v7, %v2551_v17  ;;  %v731_v43 = vsub.f32 %v729_v9, %v730_v12 }
 0x30c   :  { %vm727_vm5 = vcmp.ge.f32.partialorder %v726_v8, 2.0 }
 0x30d   :  { %v728_v10 = vsel %vm727_vm5, 1.0, %v2249_v45 }
 0x30e   :  { %v732_v13 = vmul.f32 -2.117, %v728_v10  ;;  %v737_v30 = vperm.slane %v728_v10, 5 }
 0x310   :  { %v734_v11 = vrot.slane %v732_v13, 5  ;;  %v738_v39 = vsel %vm246_vm13, %v737_v30, %v722_v36 }
 0x312   :  { %v736_v14 = vadd.f32 %v734_v11, %v731_v43 }
 0x314   :  { %v740_v15 = vrot.slane %v736_v14, 2  ;;  %v745_v18 = vmul.f32 1.5576016, %v736_v14  ;;  %v762_v40 = vmul.f32 0.60653067, %v736_v14 }
 0x316   :  { %v742_v16 = vadd.f32 %v740_v15, %v2551_v17  ;;  %v747_v20 = vsub.f32 %v745_v18, %v746_v21 }
 0x318   :  { %vm743_vm6 = vcmp.ge.f32.partialorder %v742_v16, 2.0 }
 0x319   :  { %v744_v19 = vsel %vm743_vm6, 1.0, %v2249_v45 }
 0x31a   :  { %v748_v0 = vmul.f32 -2.117, %v744_v19  ;;  %v753_v33 = vperm.slane %v744_v19, 6 }
 0x31c   :  { %v750_v22 = vrot.slane %v748_v0, 6  ;;  %v754_v38 = vsel %vm263_vm14, %v753_v33, %v738_v39 }
 0x31e   :  { %v752_v23 = vadd.f32 %v750_v22, %v747_v20 }
 0x320   :  { %v756_v28 = vrot.slane %v752_v23, 1  ;;  %v761_v35 = vmul.f32 1.5576016, %v752_v23  ;;  %v775_v51 = vmul.f32 0.60653067, %v752_v23 }
 0x322   :  { %v758_v31 = vadd.f32 %v756_v28, %v2551_v17  ;;  %v763_v42 = vsub.f32 %v761_v35, %v762_v40 }
 0x324   :  { %vm759_vm7 = vcmp.ge.f32.partialorder %v758_v31, 2.0 }
 0x325   :  { %v760_v37 = vsel %vm759_vm7, 1.0, %v2249_v45 }
 0x326   :  { %v764_v41 = vmul.f32 -2.117, %v760_v37  ;;  %v769_v17 = vperm.slane %v760_v37, 7 }
 0x328   :  { %v766_v44 = vrot.slane %v764_v41, 7  ;;  %v770_v46 = vsel %vm280_vm1, %v769_v17, %v754_v38 }
 0x329   :  { %2231 = vmatmul.msk.f32.gmra.mxu2 %vm90_vm0, %v770_v46 }
 0x32a   :  { %v768_v50 = vadd.f32 %v766_v44, %v763_v42 }
 0x32c   :  { %v774_v25 = vmul.f32 1.5576016, %v768_v50  ;;  %v771_v48 = vadd.f32 %v768_v50, %v2593_v47  ;;  %v788_v63 = vmul.f32 0.60653067, %v768_v50 }
 0x32e   :  { %vm772_vm8 = vcmp.ge.f32.partialorder %v771_v48, 2.0  ;;  %v776_v53 = vsub.f32 %v774_v25, %v775_v51 }
 0x32f   :  { %v773_v52 = vsel %vm772_vm8, 1.0, %v2249_v45 }
 0x330   :  { %v777_v54 = vmul.f32 -2.117, %v773_v52  ;;  %v779_v59 = vperm.slane %v773_v52, 0 }
 0x332   :  { %v778_v56 = vadd.f32 %v777_v54, %v776_v53  ;;  %v780_v3 = vsel %vm163_vm3, %v779_v59, 0.0 }
 0x334   :  { %v782_v57 = vrot.slane %v778_v56, 7  ;;  %v787_v60 = vmul.f32 1.5576016, %v778_v56  ;;  %v804_v13 = vmul.f32 0.60653067, %v778_v56 }
 0x336   :  { %v784_v58 = vadd.f32 %v782_v57, %v2593_v47  ;;  %v789_v4 = vsub.f32 %v787_v60, %v788_v63 }
 0x338   :  { %vm785_vm9 = vcmp.ge.f32.partialorder %v784_v58, 2.0 }
 0x339   :  { %v786_v62 = vsel %vm785_vm9, 1.0, %v2249_v45 }
 0x33a   :  { %v790_v1 = vmul.f32 -2.117, %v786_v62  ;;  %v795_v2 = vperm.slane %v786_v62, 1 }
 0x33c   :  { %v792_v5 = vrot.slane %v790_v1, 1  ;;  %v796_v6 = vsel %vm178_vm4, %v795_v2, %v780_v3 }
 0x33e   :  { %v794_v7 = vadd.f32 %v792_v5, %v789_v4 }
 0x340   :  { %v798_v8 = vrot.slane %v794_v7, 6  ;;  %v803_v10 = vmul.f32 1.5576016, %v794_v7  ;;  %v820_v0 = vmul.f32 0.60653067, %v794_v7 }
 0x342   :  { %v800_v9 = vadd.f32 %v798_v8, %v2593_v47  ;;  %v805_v11 = vsub.f32 %v803_v10, %v804_v13 }
 0x344   :  { %vm801_vm15 = vcmp.ge.f32.partialorder %v800_v9, 2.0 }
 0x345   :  { %v802_v12 = vsel %vm801_vm15, 1.0, %v2249_v45 }
 0x346   :  { %v806_v43 = vmul.f32 -2.117, %v802_v12  ;;  %v811_v57 = vperm.slane %v802_v12, 2 }
 0x348   :  { %v808_v14 = vrot.slane %v806_v43, 2  ;;  %v812_v1 = vsel %vm195_vm10, %v811_v57, %v796_v6 }
 0x34a   :  { %v810_v15 = vadd.f32 %v808_v14, %v805_v11  ;;  %v2635_v11 = vpop.f32.mrf.mxu1 }
 0x34c   :  { %v814_v16 = vrot.slane %v810_v15, 5  ;;  %v819_v19 = vmul.f32 1.5576016, %v810_v15  ;;  %v836_v31 = vmul.f32 0.60653067, %v810_v15 }
 0x34e   :  { %v816_v18 = vadd.f32 %v814_v16, %v2593_v47  ;;  %v821_v22 = vsub.f32 %v819_v19, %v820_v0 }
 0x350   :  { %vm817_vm2 = vcmp.ge.f32.partialorder %v816_v18, 2.0 }
 0x351   :  { %v818_v21 = vsel %vm817_vm2, 1.0, %v2249_v45 }
 0x352   :  { %v822_v20 = vmul.f32 -2.117, %v818_v21  ;;  %v827_v58 = vperm.slane %v818_v21, 3 }
 0x354   :  { %v824_v23 = vrot.slane %v822_v20, 3  ;;  %v828_v3 = vsel %vm212_vm11, %v827_v58, %v812_v1 }
 0x356   :  { %v826_v26 = vadd.f32 %v824_v23, %v821_v22 }
 0x358   :  { %v830_v27 = vrot.slane %v826_v26, 4  ;;  %v835_v29 = vmul.f32 1.5576016, %v826_v26  ;;  %v852_v41 = vmul.f32 0.60653067, %v826_v26 }
 0x35a   :  { %v832_v28 = vadd.f32 %v830_v27, %v2593_v47  ;;  %v837_v33 = vsub.f32 %v835_v29, %v836_v31 }
 0x35c   :  { %vm833_vm5 = vcmp.ge.f32.partialorder %v832_v28, 2.0 }
 0x35d   :  { %v834_v30 = vsel %vm833_vm5, 1.0, %v2249_v45 }
 0x35e   :  { %v838_v32 = vmul.f32 -2.117, %v834_v30  ;;  %v843_v60 = vperm.slane %v834_v30, 4 }
 0x360   :  { %v840_v34 = vrot.slane %v838_v32, 4  ;;  %v844_v5 = vsel %vm229_vm12, %v843_v60, %v828_v3 }
 0x362   :  { %v842_v35 = vadd.f32 %v840_v34, %v837_v33 }
 0x364   :  { %v846_v36 = vrot.slane %v842_v35, 3  ;;  %v851_v39 = vmul.f32 1.5576016, %v842_v35  ;;  %v868_v51 = vmul.f32 0.60653067, %v842_v35 }
 0x366   :  { %v848_v37 = vadd.f32 %v846_v36, %v2593_v47  ;;  %v853_v38 = vsub.f32 %v851_v39, %v852_v41 }
 0x368   :  { %vm849_vm6 = vcmp.ge.f32.partialorder %v848_v37, 2.0 }
 0x369   :  { %v850_v40 = vsel %vm849_vm6, 1.0, %v2249_v45 }
 0x36a   :  { %v854_v17 = vmul.f32 -2.117, %v850_v40  ;;  %v859_v62 = vperm.slane %v850_v40, 5 }
 0x36c   :  { %v856_v42 = vrot.slane %v854_v17, 5  ;;  %v860_v8 = vsel %vm246_vm13, %v859_v62, %v844_v5 }
 0x36e   :  { %v858_v44 = vadd.f32 %v856_v42, %v853_v38 }
 0x370   :  { %v862_v46 = vrot.slane %v858_v44, 2  ;;  %v867_v25 = vmul.f32 1.5576016, %v858_v44  ;;  %v884_v9 = vmul.f32 0.60653067, %v858_v44 }
 0x372   :  { %v864_v50 = vadd.f32 %v862_v46, %v2593_v47  ;;  %v869_v53 = vsub.f32 %v867_v25, %v868_v51 }
 0x374   :  { %vm865_vm7 = vcmp.ge.f32.partialorder %v864_v50, 2.0 }
 0x375   :  { %v866_v48 = vsel %vm865_vm7, 1.0, %v2249_v45 }
 0x376   :  { %v870_v52 = vmul.f32 -2.117, %v866_v48  ;;  %v875_v2 = vperm.slane %v866_v48, 6 }
 0x378   :  { %v872_v54 = vrot.slane %v870_v52, 6  ;;  %v876_v6 = vsel %vm263_vm14, %v875_v2, %v860_v8 }
 0x37a   :  { %v874_v56 = vadd.f32 %v872_v54, %v869_v53 }
 0x37c   :  { %v878_v59 = vrot.slane %v874_v56, 1  ;;  %v883_v4 = vmul.f32 1.5576016, %v874_v56  ;;  %v897_v18 = vmul.f32 0.60653067, %v874_v56 }
 0x37e   :  { %v880_v63 = vadd.f32 %v878_v59, %v2593_v47  ;;  %v885_v12 = vsub.f32 %v883_v4, %v884_v9 }
 0x380   :  { %vm881_vm8 = vcmp.ge.f32.partialorder %v880_v63, 2.0 }
 0x381   :  { %v882_v7 = vsel %vm881_vm8, 1.0, %v2249_v45 }
 0x382   :  { %v886_v10 = vmul.f32 -2.117, %v882_v7  ;;  %v891_v47 = vperm.slane %v882_v7, 7 }
 0x384   :  { %v888_v13 = vrot.slane %v886_v10, 7  ;;  %v892_v43 = vsel %vm280_vm1, %v891_v47, %v876_v6 }
 0x385   :  { %2232 = vmatmul.msk.f32.gmra.mxu2 %vm90_vm0, %v892_v43 }
 0x386   :  { %v890_v14 = vadd.f32 %v888_v13, %v885_v12 }
 0x388   :  { %v896_v15 = vmul.f32 1.5576016, %v890_v14  ;;  %v893_v16 = vadd.f32 %v890_v14, %v2635_v11  ;;  %v910_v29 = vmul.f32 0.60653067, %v890_v14 }
 0x38a   :  { %vm894_vm9 = vcmp.ge.f32.partialorder %v893_v16, 2.0  ;;  %v898_v21 = vsub.f32 %v896_v15, %v897_v18 }
 0x38b   :  { %v895_v19 = vsel %vm894_vm9, 1.0, %v2249_v45 }
 0x38c   :  { %v899_v0 = vmul.f32 -2.117, %v895_v19  ;;  %v901_v26 = vperm.slane %v895_v19, 0 }
 0x38e   :  { %v900_v20 = vadd.f32 %v899_v0, %v898_v21  ;;  %v902_v32 = vsel %vm163_vm3, %v901_v26, 0.0 }
 0x390   :  { %v904_v22 = vrot.slane %v900_v20, 7  ;;  %v909_v27 = vmul.f32 1.5576016, %v900_v20  ;;  %v926_v17 = vmul.f32 0.60653067, %v900_v20 }
 0x392   :  { %v906_v23 = vadd.f32 %v904_v22, %v2635_v11  ;;  %v911_v33 = vsub.f32 %v909_v27, %v910_v29 }
 0x394   :  { %vm907_vm15 = vcmp.ge.f32.partialorder %v906_v23, 2.0 }
 0x395   :  { %v908_v28 = vsel %vm907_vm15, 1.0, %v2249_v45 }
 0x396   :  { %v912_v30 = vmul.f32 -2.117, %v908_v28  ;;  %v917_v31 = vperm.slane %v908_v28, 1 }
 0x398   :  { %v914_v34 = vrot.slane %v912_v30, 1  ;;  %v918_v35 = vsel %vm178_vm4, %v917_v31, %v902_v32 }
 0x39a   :  { %v916_v36 = vadd.f32 %v914_v34, %v911_v33 }
 0x39c   :  { %v920_v37 = vrot.slane %v916_v36, 6  ;;  %v925_v40 = vmul.f32 1.5576016, %v916_v36  ;;  %v942_v52 = vmul.f32 0.60653067, %v916_v36 }
 0x39e   :  { %v922_v39 = vadd.f32 %v920_v37, %v2635_v11  ;;  %v927_v42 = vsub.f32 %v925_v40, %v926_v17 }
 0x3a0   :  { %vm923_vm2 = vcmp.ge.f32.partialorder %v922_v39, 2.0 }
 0x3a1   :  { %v924_v41 = vsel %vm923_vm2, 1.0, %v2249_v45 }
 0x3a2   :  { %v928_v38 = vmul.f32 -2.117, %v924_v41  ;;  %v933_v22 = vperm.slane %v924_v41, 2 }
 0x3a4   :  { %v930_v44 = vrot.slane %v928_v38, 2  ;;  %v934_v30 = vsel %vm195_vm10, %v933_v22, %v918_v35 }
 0x3a6   :  { %v932_v46 = vadd.f32 %v930_v44, %v927_v42  ;;  %v2670_v42 = vpop.f32.mrf.mxu1 }
 0x3a8   :  { %v936_v50 = vrot.slane %v932_v46, 5  ;;  %v941_v48 = vmul.f32 1.5576016, %v932_v46  ;;  %v958_v63 = vmul.f32 0.60653067, %v932_v46 }
 0x3aa   :  { %v938_v25 = vadd.f32 %v936_v50, %v2635_v11  ;;  %v943_v54 = vsub.f32 %v941_v48, %v942_v52 }
 0x3ac   :  { %vm939_vm5 = vcmp.ge.f32.partialorder %v938_v25, 2.0 }
 0x3ad   :  { %v940_v51 = vsel %vm939_vm5, 1.0, %v2249_v45 }
 0x3ae   :  { %v944_v53 = vmul.f32 -2.117, %v940_v51  ;;  %v949_v23 = vperm.slane %v940_v51, 3 }
 0x3b0   :  { %v946_v56 = vrot.slane %v944_v53, 3  ;;  %v950_v32 = vsel %vm212_vm11, %v949_v23, %v934_v30 }
 0x3b2   :  { %v948_v57 = vadd.f32 %v946_v56, %v943_v54 }
 0x3b4   :  { %v952_v58 = vrot.slane %v948_v57, 4  ;;  %v957_v60 = vmul.f32 1.5576016, %v948_v57  ;;  %v974_v10 = vmul.f32 0.60653067, %v948_v57 }
 0x3b6   :  { %v954_v59 = vadd.f32 %v952_v58, %v2635_v11  ;;  %v959_v2 = vsub.f32 %v957_v60, %v958_v63 }
 0x3b8   :  { %vm955_vm6 = vcmp.ge.f32.partialorder %v954_v59, 2.0 }
 0x3b9   :  { %v956_v62 = vsel %vm955_vm6, 1.0, %v2249_v45 }
 0x3ba   :  { %v960_v1 = vmul.f32 -2.117, %v956_v62  ;;  %v965_v27 = vperm.slane %v956_v62, 4 }
 0x3bc   :  { %v962_v3 = vrot.slane %v960_v1, 4  ;;  %v966_v34 = vsel %vm229_vm12, %v965_v27, %v950_v32 }
 0x3be   :  { %v964_v4 = vadd.f32 %v962_v3, %v959_v2 }
 0x3c0   :  { %v968_v5 = vrot.slane %v964_v4, 3  ;;  %v973_v8 = vmul.f32 1.5576016, %v964_v4  ;;  %v990_v18 = vmul.f32 0.60653067, %v964_v4 }
 0x3c2   :  { %v970_v7 = vadd.f32 %v968_v5, %v2635_v11  ;;  %v975_v6 = vsub.f32 %v973_v8, %v974_v10 }
 0x3c4   :  { %vm971_vm7 = vcmp.ge.f32.partialorder %v970_v7, 2.0 }
 0x3c5   :  { %v972_v9 = vsel %vm971_vm7, 1.0, %v2249_v45 }
 0x3c6   :  { %v976_v47 = vmul.f32 -2.117, %v972_v9  ;;  %v981_v28 = vperm.slane %v972_v9, 5 }
 0x3c8   :  { %v978_v12 = vrot.slane %v976_v47, 5  ;;  %v982_v37 = vsel %vm246_vm13, %v981_v28, %v966_v34 }
 0x3ca   :  { %v980_v13 = vadd.f32 %v978_v12, %v975_v6 }
 0x3cc   :  { %v984_v43 = vrot.slane %v980_v13, 2  ;;  %v989_v15 = vmul.f32 1.5576016, %v980_v13  ;;  %v1006_v39 = vmul.f32 0.60653067, %v980_v13 }
 0x3ce   :  { %v986_v14 = vadd.f32 %v984_v43, %v2635_v11  ;;  %v991_v21 = vsub.f32 %v989_v15, %v990_v18 }
 0x3d0   :  { %vm987_vm8 = vcmp.ge.f32.partialorder %v986_v14, 2.0 }
 0x3d1   :  { %v988_v16 = vsel %vm987_vm8, 1.0, %v2249_v45 }
 0x3d2   :  { %v992_v19 = vmul.f32 -2.117, %v988_v16  ;;  %v997_v31 = vperm.slane %v988_v16, 6 }
 0x3d4   :  { %v994_v0 = vrot.slane %v992_v19, 6  ;;  %v998_v35 = vsel %vm263_vm14, %v997_v31, %v982_v37 }
 0x3d6   :  { %v996_v20 = vadd.f32 %v994_v0, %v991_v21 }
 0x3d8   :  { %v1000_v26 = vrot.slane %v996_v20, 1  ;;  %v1005_v33 = vmul.f32 1.5576016, %v996_v20  ;;  %v1019_v25 = vmul.f32 0.60653067, %v996_v20 }
 0x3da   :  { %v1002_v29 = vadd.f32 %v1000_v26, %v2635_v11  ;;  %v1007_v41 = vsub.f32 %v1005_v33, %v1006_v39 }
 0x3dc   :  { %vm1003_vm9 = vcmp.ge.f32.partialorder %v1002_v29, 2.0 }
 0x3dd   :  { %v1004_v36 = vsel %vm1003_vm9, 1.0, %v2249_v45 }
 0x3de   :  { %v1008_v40 = vmul.f32 -2.117, %v1004_v36  ;;  %v1013_v11 = vperm.slane %v1004_v36, 7 }
 0x3e0   :  { %v1010_v17 = vrot.slane %v1008_v40, 7  ;;  %v1014_v38 = vsel %vm280_vm1, %v1013_v11, %v998_v35 }
 0x3e1   :  { %2233 = vmatmul.msk.f32.gmra.mxu2 %vm90_vm0, %v1014_v38 }
 0x3e2   :  { %v1012_v44 = vadd.f32 %v1010_v17, %v1007_v41 }
 0x3e4   :  { %v1018_v46 = vmul.f32 1.5576016, %v1012_v44  ;;  %v1015_v50 = vadd.f32 %v1012_v44, %v2670_v42  ;;  %v1032_v60 = vmul.f32 0.60653067, %v1012_v44 }
 0x3e6   :  { %vm1016_vm15 = vcmp.ge.f32.partialorder %v1015_v50, 2.0  ;;  %v1020_v51 = vsub.f32 %v1018_v46, %v1019_v25 }
 0x3e7   :  { %v1017_v48 = vsel %vm1016_vm15, 1.0, %v2249_v45 }
 0x3e8   :  { %v1021_v52 = vmul.f32 -2.117, %v1017_v48  ;;  %v1023_v57 = vperm.slane %v1017_v48, 0 }
 0x3ea   :  { %v1022_v53 = vadd.f32 %v1021_v52, %v1020_v51  ;;  %v1024_v1 = vsel %vm163_vm3, %v1023_v57, 0.0 }
 0x3ec   :  { %v1026_v54 = vrot.slane %v1022_v53, 7  ;;  %v1031_v58 = vmul.f32 1.5576016, %v1022_v53  ;;  %v1048_v47 = vmul.f32 0.60653067, %v1022_v53 }
 0x3ee   :  { %v1028_v56 = vadd.f32 %v1026_v54, %v2670_v42  ;;  %v1033_v2 = vsub.f32 %v1031_v58, %v1032_v60 }
 0x3f0   :  { %vm1029_vm2 = vcmp.ge.f32.partialorder %v1028_v56, 2.0 }
 0x3f1   :  { %v1030_v59 = vsel %vm1029_vm2, 1.0, %v2249_v45 }
 0x3f2   :  { %v1034_v62 = vmul.f32 -2.117, %v1030_v59  ;;  %v1039_v63 = vperm.slane %v1030_v59, 1 }
 0x3f4   :  { %v1036_v3 = vrot.slane %v1034_v62, 1  ;;  %v1040_v4 = vsel %vm178_vm4, %v1039_v63, %v1024_v1 }
 0x3f6   :  { %v1038_v5 = vadd.f32 %v1036_v3, %v1033_v2 }
 0x3f8   :  { %v1042_v7 = vrot.slane %v1038_v5, 6  ;;  %v1047_v9 = vmul.f32 1.5576016, %v1038_v5  ;;  %v1064_v19 = vmul.f32 0.60653067, %v1038_v5 }
 0x3fa   :  { %v1044_v8 = vadd.f32 %v1042_v7, %v2670_v42  ;;  %v1049_v12 = vsub.f32 %v1047_v9, %v1048_v47 }
 0x3fc   :  { %vm1045_vm5 = vcmp.ge.f32.partialorder %v1044_v8, 2.0  ;;  %v1178_v8 = vpop.f32.mrf.mxu2 }
 0x3fd   :  { %v1046_v10 = vsel %vm1045_vm5, 1.0, %v2249_v45 }
 0x3fe   :  { %v1050_v6 = vmul.f32 -2.117, %v1046_v10  ;;  %v1055_v54 = vperm.slane %v1046_v10, 2 }
 0x400   :  { %v1052_v13 = vrot.slane %v1050_v6, 2  ;;  %v1056_v62 = vsel %vm195_vm10, %v1055_v54, %v1040_v4 }
 0x402   :  { %v1054_v43 = vadd.f32 %v1052_v13, %v1049_v12 }
 0x404   :  { %v1058_v14 = vrot.slane %v1054_v43, 5  ;;  %v1063_v16 = vmul.f32 1.5576016, %v1054_v43  ;;  %v1080_v29 = vmul.f32 0.60653067, %v1054_v43  ;;  %v1181_v9 = vpop.f32.mrf.mxu2 }
 0x406   :  { %v1060_v15 = vadd.f32 %v1058_v14, %v2670_v42  ;;  %v1065_v0 = vsub.f32 %v1063_v16, %v1064_v19  ;;  %v2244_v14 = vld [vmem:[%s3037_s3] sm:$0xff]  ;;  %v2246_v16 = vld [vmem:[%s3037_s3 + $0x10] sm:$0xff] }
 0x407   :  { %v2248_v19 = vld [vmem:[%s3037_s3 + $0x20] sm:$0xff] }
 0x408   :  { %vm1061_vm6 = vcmp.ge.f32.partialorder %v1060_v15, 2.0  ;;  %v2245_v15 = vld [vmem:[%s3037_s3 + $0x8] sm:$0xff] }
 0x409   :  { %v1062_v18 = vsel %vm1061_vm6, 1.0, %v2249_v45 }
 0x40a   :  { %v1066_v21 = vmul.f32 -2.117, %v1062_v18  ;;  %v1071_v56 = vperm.slane %v1062_v18, 3  ;;  %v2247_v18 = vld [vmem:[%s3037_s3 + $0x18] sm:$0xff] }
 0x40c   :  { %v1068_v20 = vrot.slane %v1066_v21, 3  ;;  %v1072_v1 = vsel %vm212_vm11, %v1071_v56, %v1056_v62  ;;  %v1184_v10 = vpop.f32.mrf.mxu2 }
 0x40e   :  { %v1070_v22 = vadd.f32 %v1068_v20, %v1065_v0 }
 0x410   :  { %v1074_v23 = vrot.slane %v1070_v22, 4  ;;  %v1079_v27 = vmul.f32 1.5576016, %v1070_v22  ;;  %v1096_v40 = vmul.f32 0.60653067, %v1070_v22 }
 0x412   :  { %v1076_v26 = vadd.f32 %v1074_v23, %v2670_v42  ;;  %v1081_v31 = vsub.f32 %v1079_v27, %v1080_v29 }
 0x414   :  { %vm1077_vm7 = vcmp.ge.f32.partialorder %v1076_v26, 2.0  ;;  %v1187_v47 = vpop.f32.mrf.mxu2 }
 0x415   :  { %v1078_v28 = vsel %vm1077_vm7, 1.0, %v2249_v45 }
 0x416   :  { %v1082_v30 = vmul.f32 -2.117, %v1078_v28  ;;  %v1087_v58 = vperm.slane %v1078_v28, 4 }
 0x418   :  { %v1084_v32 = vrot.slane %v1082_v30, 4  ;;  %v1088_v2 = vsel %vm229_vm12, %v1087_v58, %v1072_v1 }
 0x41a   :  { %v1086_v33 = vadd.f32 %v1084_v32, %v1081_v31 }
 0x41c   :  { %v1090_v34 = vrot.slane %v1086_v33, 3  ;;  %v1095_v37 = vmul.f32 1.5576016, %v1086_v33  ;;  %v1112_v25 = vmul.f32 0.60653067, %v1086_v33  ;;  %v1190_v6 = vpop.f32.mrf.mxu2 }
 0x41e   :  { %v1092_v36 = vadd.f32 %v1090_v34, %v2670_v42  ;;  %v1097_v35 = vsub.f32 %v1095_v37, %v1096_v40 }
 0x420   :  { %vm1093_vm8 = vcmp.ge.f32.partialorder %v1092_v36, 2.0 }
 0x421   :  { %v1094_v39 = vsel %vm1093_vm8, 1.0, %v2249_v45 }
 0x422   :  { %v1098_v11 = vmul.f32 -2.117, %v1094_v39  ;;  %v1103_v59 = vperm.slane %v1094_v39, 5 }
 0x424   :  { %v1100_v41 = vrot.slane %v1098_v11, 5  ;;  %v1104_v5 = vsel %vm246_vm13, %v1103_v59, %v1088_v2  ;;  %v1193_v12 = vpop.f32.mrf.mxu2 }
 0x426   :  { %v1102_v17 = vadd.f32 %v1100_v41, %v1097_v35 }
 0x428   :  { %v1106_v38 = vrot.slane %v1102_v17, 2  ;;  %v1111_v46 = vmul.f32 1.5576016, %v1102_v17 }
 0x42a   :  { %v1108_v44 = vadd.f32 %v1106_v38, %v2670_v42  ;;  %v1113_v51 = vsub.f32 %v1111_v46, %v1112_v25 }
 0x42c   :  { %vm1109_vm9 = vcmp.ge.f32.partialorder %v1108_v44, 2.0 }
 0x42d   :  { %v1110_v50 = vsel %vm1109_vm9, 1.0, %v2249_v45 }
 0x42e   :  { %v1114_v48 = vmul.f32 -2.117, %v1110_v50  ;;  %v1119_v63 = vperm.slane %v1110_v50, 6 }
 0x430   :  { %v1116_v52 = vrot.slane %v1114_v48, 6 }
 0x432   :  { %v1118_v53 = vadd.f32 %v1116_v52, %v1113_v51 }
 0x434   :  { %v1122_v57 = vrot.slane %v1118_v53, 1 }
 0x436   :  { %v1124_v60 = vadd.f32 %v1122_v57, %v2670_v42  ;;  %v1120_v42 = vsel %vm263_vm14, %v1119_v63, %v1104_v5 }
 0x438   :  { %vm1125_vm15 = vcmp.ge.f32.partialorder %v1124_v60, 2.0 }
 0x439   :  { %v1126_v3 = vsel %vm1125_vm15, 1.0, %v2249_v45 }
 0x43a   :  { %v1127_v7 = vperm.slane %v1126_v3, 7 }
 0x43c   :  { %v1128_v4 = vsel %vm280_vm1, %v1127_v7, %v1120_v42 }
 0x43d   :  { %2234 = vmatmul.msk.f32.gmra.mxu2 %vm90_vm0, %v1128_v4 }
 0x464   :  { %v1196_v13 = vpop.f32.mrf.mxu2 }
 0x4c0   :  { %v1199_v43 = vpop.f32.mrf.mxu2 }
 0x4c1   :  { %1210 = vmatpush.msra.mxu3 %v1199_v43 }
 0x4c3   :  { %1211 = vmatpush.msra.mxu3 %v1196_v13 }
 0x4c5   :  { %1212 = vmatpush.msra.mxu3 %v1193_v12 }
 0x4c7   :  { %1213 = vmatpush.msra.mxu3 %v1190_v6 }
 0x4c9   :  { %1214 = vmatpush.msra.mxu3 %v1187_v47 }
 0x4cb   :  { %1215 = vmatpush.msra.mxu3 %v1184_v10 }
 0x4cd   :  { %1216 = vmatpush.msra.mxu3 %v1181_v9 }
 0x4cf   :  { %1217 = vmatpush.msra.mxu3 %v1178_v8 }
 0x4d0   :  { %2235 = vmatmul.msk.f32.vlgmr.msra.gmra.mxu3 %vm90_vm0, %v2244_v14 }
 0x4d8   :  { %2236 = vmatmul.msk.f32.gmra.mxu3 %vm90_vm0, %v2245_v15 }
 0x4e0   :  { %2237 = vmatmul.msk.f32.gmra.mxu3 %vm90_vm0, %v2246_v16 }
 0x4e8   :  { %2238 = vmatmul.msk.f32.gmra.mxu3 %vm90_vm0, %v2247_v18 }
 0x4f0   :  { %2239 = vmatmul.msk.f32.gmra.mxu3 %vm90_vm0, %v2248_v19 }
 0x4f8   :  { %2240 = vmatmul.msk.f32.gmra.mxu3 %vm90_vm0, %v2516_v61 }
 0x500   :  { %2241 = vmatmul.msk.f32.gmra.mxu3 %vm90_vm0, %v2558_v24 }
 0x508   :  { %2242 = vmatmul.msk.f32.gmra.mxu3 %vm90_vm0, %v2600_v55 }
 0x553   :  { %v2731_v21 = vpop.f32.mrf.mxu3 }
 0x554   :  { %vm1244_vm2 = vcmp.ge.f32.partialorder %v2731_v21, 2.0 }
 0x555   :  { %v1245_v0 = vsel %vm1244_vm2, 1.0, %v2249_v45  ;;  %vm2206_vm2 = vcmask 261120  }
 0x556   :  { %v1246_v20 = vmul.f32 -2.117, %v1245_v0  ;;  %v1248_v26 = vperm.slane %v1245_v0, 0 }
 0x558   :  { %v1251_v22 = vrot.slane %v1246_v20, 7  ;;  %v1249_v24 = vsel %vm163_vm3, %v1248_v26, 0.0  ;;  %v1256_v55 = vmul.f32 1.5576016, %v1246_v20  ;;  %v1271_v37 = vmul.f32 0.60653067, %v1246_v20 }
 0x55a   :  { %v1253_v23 = vadd.f32 %v1251_v22, %v2731_v21 }
 0x55c   :  { %vm1254_vm5 = vcmp.ge.f32.partialorder %v1253_v23, 2.0 }
 0x55d   :  { %v1255_v61 = vsel %vm1254_vm5, 1.0, %v2249_v45 }
 0x55e   :  { %v1257_v27 = vmul.f32 -2.117, %v1255_v61  ;;  %v1262_v28 = vperm.slane %v1255_v61, 1 }
 0x560   :  { %v1259_v29 = vrot.slane %v1257_v27, 1  ;;  %v1263_v30 = vsel %vm178_vm4, %v1262_v28, %v1249_v24 }
 0x562   :  { %v1261_v31 = vadd.f32 %v1259_v29, %v1256_v55 }
 0x564   :  { %v1265_v32 = vrot.slane %v1261_v31, 6  ;;  %v1270_v34 = vmul.f32 1.5576016, %v1261_v31  ;;  %v1287_v46 = vmul.f32 0.60653067, %v1261_v31 }
 0x566   :  { %v1267_v33 = vadd.f32 %v1265_v32, %v2731_v21  ;;  %v1272_v40 = vsub.f32 %v1270_v34, %v1271_v37 }
 0x568   :  { %vm1268_vm0 = vcmp.ge.f32.partialorder %v1267_v33, 2.0 }
 0x569   :  { %v1269_v36 = vsel %vm1268_vm0, 1.0, %v2249_v45 }
 0x56a   :  { %v1273_v39 = vmul.f32 -2.117, %v1269_v36  ;;  %v1278_v16 = vperm.slane %v1269_v36, 2  ;;  %v2769_v36 = vpop.f32.mrf.mxu3 }
 0x56c   :  { %v1275_v11 = vrot.slane %v1273_v39, 2  ;;  %v1279_v23 = vsel %vm195_vm10, %v1278_v16, %v1263_v30 }
 0x56e   :  { %v1277_v35 = vadd.f32 %v1275_v11, %v1272_v40 }
 0x570   :  { %v1281_v41 = vrot.slane %v1277_v35, 5  ;;  %v1286_v38 = vmul.f32 1.5576016, %v1277_v35  ;;  %v1303_v57 = vmul.f32 0.60653067, %v1277_v35 }
 0x572   :  { %v1283_v17 = vadd.f32 %v1281_v41, %v2731_v21  ;;  %v1288_v25 = vsub.f32 %v1286_v38, %v1287_v46 }
 0x574   :  { %vm1284_vm6 = vcmp.ge.f32.partialorder %v1283_v17, 2.0 }
 0x575   :  { %v1285_v44 = vsel %vm1284_vm6, 1.0, %v2249_v45 }
 0x576   :  { %v1289_v50 = vmul.f32 -2.117, %v1285_v44  ;;  %v1294_v18 = vperm.slane %v1285_v44, 3 }
 0x578   :  { %v1291_v48 = vrot.slane %v1289_v50, 3  ;;  %v1295_v61 = vsel %vm212_vm11, %v1294_v18, %v1279_v23 }
 0x57a   :  { %v1293_v51 = vadd.f32 %v1291_v48, %v1288_v25 }
 0x57c   :  { %v1297_v52 = vrot.slane %v1293_v51, 4  ;;  %v1302_v54 = vmul.f32 1.5576016, %v1293_v51  ;;  %v1319_v5 = vmul.f32 0.60653067, %v1293_v51 }
 0x57e   :  { %v1299_v53 = vadd.f32 %v1297_v52, %v2731_v21  ;;  %v1304_v59 = vsub.f32 %v1302_v54, %v1303_v57 }
 0x580   :  { %vm1300_vm7 = vcmp.ge.f32.partialorder %v1299_v53, 2.0 }
 0x581   :  { %v1301_v56 = vsel %vm1300_vm7, 1.0, %v2249_v45 }
 0x582   :  { %v1305_v58 = vmul.f32 -2.117, %v1301_v56  ;;  %v1310_v0 = vperm.slane %v1301_v56, 4 }
 0x584   :  { %v1307_v60 = vrot.slane %v1305_v58, 4  ;;  %v1311_v28 = vsel %vm229_vm12, %v1310_v0, %v1295_v61 }
 0x586   :  { %v1309_v62 = vadd.f32 %v1307_v60, %v1304_v59 }
 0x588   :  { %v1313_v63 = vrot.slane %v1309_v62, 3  ;;  %v1318_v2 = vmul.f32 1.5576016, %v1309_v62  ;;  %v1335_v12 = vmul.f32 0.60653067, %v1309_v62 }
 0x58a   :  { %v1315_v1 = vadd.f32 %v1313_v63, %v2731_v21  ;;  %v1320_v42 = vsub.f32 %v1318_v2, %v1319_v5 }
 0x58c   :  { %vm1316_vm8 = vcmp.ge.f32.partialorder %v1315_v1, 2.0 }
 0x58d   :  { %v1317_v3 = vsel %vm1316_vm8, 1.0, %v2249_v45 }
 0x58e   :  { %v1321_v7 = vmul.f32 -2.117, %v1317_v3  ;;  %v1326_v20 = vperm.slane %v1317_v3, 5 }
 0x590   :  { %v1323_v4 = vrot.slane %v1321_v7, 5  ;;  %v1327_v55 = vsel %vm246_vm13, %v1326_v20, %v1311_v28 }
 0x592   :  { %v1325_v8 = vadd.f32 %v1323_v4, %v1320_v42 }
 0x594   :  { %v1329_v9 = vrot.slane %v1325_v8, 2  ;;  %v1334_v47 = vmul.f32 1.5576016, %v1325_v8  ;;  %v1351_v29 = vmul.f32 0.60653067, %v1325_v8 }
 0x596   :  { %v1331_v10 = vadd.f32 %v1329_v9, %v2731_v21  ;;  %v1336_v43 = vsub.f32 %v1334_v47, %v1335_v12 }
 0x598   :  { %vm1332_vm9 = vcmp.ge.f32.partialorder %v1331_v10, 2.0 }
 0x599   :  { %v1333_v6 = vsel %vm1332_vm9, 1.0, %v2249_v45 }
 0x59a   :  { %v1337_v13 = vmul.f32 -2.117, %v1333_v6  ;;  %v1342_v26 = vperm.slane %v1333_v6, 6 }
 0x59c   :  { %v1339_v14 = vrot.slane %v1337_v13, 6  ;;  %v1343_v30 = vsel %vm263_vm14, %v1342_v26, %v1327_v55 }
 0x59e   :  { %v1341_v15 = vadd.f32 %v1339_v14, %v1336_v43 }
 0x5a0   :  { %v1345_v19 = vrot.slane %v1341_v15, 1  ;;  %v1350_v27 = vmul.f32 1.5576016, %v1341_v15  ;;  %v1364_v11 = vmul.f32 0.60653067, %v1341_v15 }
 0x5a2   :  { %v1347_v22 = vadd.f32 %v1345_v19, %v2731_v21  ;;  %v1352_v32 = vsub.f32 %v1350_v27, %v1351_v29 }
 0x5a4   :  { %vm1348_vm15 = vcmp.ge.f32.partialorder %v1347_v22, 2.0 }
 0x5a5   :  { %v1349_v24 = vsel %vm1348_vm15, 1.0, %v2249_v45 }
 0x5a6   :  { %v1353_v21 = vmul.f32 -2.117, %v1349_v24  ;;  %v1358_v31 = vperm.slane %v1349_v24, 7 }
 0x5a8   :  { %v1355_v33 = vrot.slane %v1353_v21, 7  ;;  %v1359_v34 = vsel %vm280_vm1, %v1358_v31, %v1343_v30 }
 0x5a9   :  { %2207 = vst.msk [vmem:[%s3039_s4] sm:$0xff] %vm2206_vm2, %v1359_v34 }
 0x5aa   :  { %v1357_v37 = vadd.f32 %v1355_v33, %v1352_v32 }
 0x5ac   :  { %v1363_v39 = vmul.f32 1.5576016, %v1357_v37  ;;  %v1360_v40 = vadd.f32 %v1357_v37, %v2769_v36  ;;  %v1377_v51 = vmul.f32 0.60653067, %v1357_v37 }
 0x5ae   :  { %vm1361_vm5 = vcmp.ge.f32.partialorder %v1360_v40, 2.0  ;;  %v1365_v41 = vsub.f32 %v1363_v39, %v1364_v11 }
 0x5af   :  { %v1362_v35 = vsel %vm1361_vm5, 1.0, %v2249_v45 }
 0x5b0   :  { %v1366_v17 = vmul.f32 -2.117, %v1362_v35  ;;  %v1368_v50 = vperm.slane %v1362_v35, 0 }
 0x5b2   :  { %v1367_v38 = vadd.f32 %v1366_v17, %v1365_v41  ;;  %v1369_v54 = vsel %vm163_vm3, %v1368_v50, 0.0 }
 0x5b4   :  { %v1371_v44 = vrot.slane %v1367_v38, 7  ;;  %v1376_v25 = vmul.f32 1.5576016, %v1367_v38  ;;  %v1393_v2 = vmul.f32 0.60653067, %v1367_v38 }
 0x5b6   :  { %v1373_v46 = vadd.f32 %v1371_v44, %v2769_v36  ;;  %v1378_v56 = vsub.f32 %v1376_v25, %v1377_v51 }
 0x5b8   :  { %vm1374_vm0 = vcmp.ge.f32.partialorder %v1373_v46, 2.0 }
 0x5b9   :  { %v1375_v48 = vsel %vm1374_vm0, 1.0, %v2249_v45 }
 0x5ba   :  { %v1379_v52 = vmul.f32 -2.117, %v1375_v48  ;;  %v1384_v53 = vperm.slane %v1375_v48, 1 }
 0x5bc   :  { %v1381_v57 = vrot.slane %v1379_v52, 1  ;;  %v1385_v58 = vsel %vm178_vm4, %v1384_v53, %v1369_v54 }
 0x5be   :  { %v1383_v59 = vadd.f32 %v1381_v57, %v1378_v56 }
 0x5c0   :  { %v1387_v60 = vrot.slane %v1383_v59, 6  ;;  %v1392_v63 = vmul.f32 1.5576016, %v1383_v59  ;;  %v1409_v47 = vmul.f32 0.60653067, %v1383_v59 }
 0x5c2   :  { %v1389_v62 = vadd.f32 %v1387_v60, %v2769_v36  ;;  %v1394_v5 = vsub.f32 %v1392_v63, %v1393_v2 }
 0x5c4   :  { %vm1390_vm6 = vcmp.ge.f32.partialorder %v1389_v62, 2.0 }
 0x5c5   :  { %v1391_v1 = vsel %vm1390_vm6, 1.0, %v2249_v45 }
 0x5c6   :  { %v1395_v3 = vmul.f32 -2.117, %v1391_v1  ;;  %v1400_v41 = vperm.slane %v1391_v1, 2  ;;  %v2807_v1 = vpop.f32.mrf.mxu3 }
 0x5c8   :  { %v1397_v7 = vrot.slane %v1395_v3, 2  ;;  %v1401_v25 = vsel %vm195_vm10, %v1400_v41, %v1385_v58 }
 0x5ca   :  { %v1399_v42 = vadd.f32 %v1397_v7, %v1394_v5 }
 0x5cc   :  { %v1403_v4 = vrot.slane %v1399_v42, 5  ;;  %v1408_v9 = vmul.f32 1.5576016, %v1399_v42  ;;  %v1425_v19 = vmul.f32 0.60653067, %v1399_v42 }
 0x5ce   :  { %v1405_v8 = vadd.f32 %v1403_v4, %v2769_v36  ;;  %v1410_v12 = vsub.f32 %v1408_v9, %v1409_v47 }
 0x5d0   :  { %vm1406_vm7 = vcmp.ge.f32.partialorder %v1405_v8, 2.0 }
 0x5d1   :  { %v1407_v10 = vsel %vm1406_vm7, 1.0, %v2249_v45 }
 0x5d2   :  { %v1411_v6 = vmul.f32 -2.117, %v1407_v10  ;;  %v1416_v17 = vperm.slane %v1407_v10, 3 }
 0x5d4   :  { %v1413_v13 = vrot.slane %v1411_v6, 3  ;;  %v1417_v51 = vsel %vm212_vm11, %v1416_v17, %v1401_v25 }
 0x5d6   :  { %v1415_v43 = vadd.f32 %v1413_v13, %v1410_v12 }
 0x5d8   :  { %v1419_v14 = vrot.slane %v1415_v43, 4  ;;  %v1424_v16 = vmul.f32 1.5576016, %v1415_v43  ;;  %v1441_v24 = vmul.f32 0.60653067, %v1415_v43 }
 0x5da   :  { %v1421_v15 = vadd.f32 %v1419_v14, %v2769_v36  ;;  %v1426_v20 = vsub.f32 %v1424_v16, %v1425_v19 }
 0x5dc   :  { %vm1422_vm8 = vcmp.ge.f32.partialorder %v1421_v15, 2.0 }
 0x5dd   :  { %v1423_v18 = vsel %vm1422_vm8, 1.0, %v2249_v45 }
 0x5de   :  { %v1427_v0 = vmul.f32 -2.117, %v1423_v18  ;;  %v1432_v44 = vperm.slane %v1423_v18, 4 }
 0x5e0   :  { %v1429_v22 = vrot.slane %v1427_v0, 4  ;;  %v1433_v53 = vsel %vm229_vm12, %v1432_v44, %v1417_v51 }
 0x5e2   :  { %v1431_v23 = vadd.f32 %v1429_v22, %v1426_v20 }
 0x5e4   :  { %v1435_v26 = vrot.slane %v1431_v23, 3  ;;  %v1440_v27 = vmul.f32 1.5576016, %v1431_v23  ;;  %v1457_v37 = vmul.f32 0.60653067, %v1431_v23 }
 0x5e6   :  { %v1437_v61 = vadd.f32 %v1435_v26, %v2769_v36  ;;  %v1442_v29 = vsub.f32 %v1440_v27, %v1441_v24 }
 0x5e8   :  { %vm1438_vm9 = vcmp.ge.f32.partialorder %v1437_v61, 2.0 }
 0x5e9   :  { %v1439_v28 = vsel %vm1438_vm9, 1.0, %v2249_v45 }
 0x5ea   :  { %v1443_v55 = vmul.f32 -2.117, %v1439_v28  ;;  %v1448_v46 = vperm.slane %v1439_v28, 5 }
 0x5ec   :  { %v1445_v21 = vrot.slane %v1443_v55, 5  ;;  %v1449_v56 = vsel %vm246_vm13, %v1448_v46, %v1433_v53 }
 0x5ee   :  { %v1447_v31 = vadd.f32 %v1445_v21, %v1442_v29 }
 0x5f0   :  { %v1451_v30 = vrot.slane %v1447_v31, 2  ;;  %v1456_v33 = vmul.f32 1.5576016, %v1447_v31  ;;  %v1473_v57 = vmul.f32 0.60653067, %v1447_v31 }
 0x5f2   :  { %v1453_v32 = vadd.f32 %v1451_v30, %v2769_v36  ;;  %v1458_v40 = vsub.f32 %v1456_v33, %v1457_v37 }
 0x5f4   :  { %vm1454_vm15 = vcmp.ge.f32.partialorder %v1453_v32, 2.0 }
 0x5f5   :  { %v1455_v34 = vsel %vm1454_vm15, 1.0, %v2249_v45 }
 0x5f6   :  { %v1459_v39 = vmul.f32 -2.117, %v1455_v34  ;;  %v1464_v48 = vperm.slane %v1455_v34, 6 }
 0x5f8   :  { %v1461_v11 = vrot.slane %v1459_v39, 6  ;;  %v1465_v58 = vsel %vm263_vm14, %v1464_v48, %v1449_v56 }
 0x5fa   :  { %v1463_v35 = vadd.f32 %v1461_v11, %v1458_v40 }
 0x5fc   :  { %v1467_v38 = vrot.slane %v1463_v35, 1  ;;  %v1472_v52 = vmul.f32 1.5576016, %v1463_v35  ;;  %v1486_v7 = vmul.f32 0.60653067, %v1463_v35 }
 0x5fe   :  { %v1469_v50 = vadd.f32 %v1467_v38, %v2769_v36  ;;  %v1474_v60 = vsub.f32 %v1472_v52, %v1473_v57 }
 0x600   :  { %vm1470_vm5 = vcmp.ge.f32.partialorder %v1469_v50, 2.0 }
 0x601   :  { %v1471_v54 = vsel %vm1470_vm5, 1.0, %v2249_v45 }
 0x602   :  { %v1475_v59 = vmul.f32 -2.117, %v1471_v54  ;;  %v1480_v36 = vperm.slane %v1471_v54, 7 }
 0x604   :  { %v1477_v62 = vrot.slane %v1475_v59, 7  ;;  %v1481_v63 = vsel %vm280_vm1, %v1480_v36, %v1465_v58 }
 0x605   :  { %2208 = vst.msk [vmem:[%s3039_s4 + $0x8] sm:$0xff] %vm2206_vm2, %v1481_v63 }
 0x606   :  { %v1479_v2 = vadd.f32 %v1477_v62, %v1474_v60 }
 0x608   :  { %v1485_v3 = vmul.f32 1.5576016, %v1479_v2  ;;  %v1482_v5 = vadd.f32 %v1479_v2, %v2807_v1  ;;  %v1499_v43 = vmul.f32 0.60653067, %v1479_v2 }
 0x60a   :  { %vm1483_vm0 = vcmp.ge.f32.partialorder %v1482_v5, 2.0  ;;  %v1487_v4 = vsub.f32 %v1485_v3, %v1486_v7 }
 0x60b   :  { %v1484_v42 = vsel %vm1483_vm0, 1.0, %v2249_v45 }
 0x60c   :  { %v1488_v8 = vmul.f32 -2.117, %v1484_v42  ;;  %v1490_v6 = vperm.slane %v1484_v42, 0 }
 0x60e   :  { %v1489_v9 = vadd.f32 %v1488_v8, %v1487_v4  ;;  %v1491_v16 = vsel %vm163_vm3, %v1490_v6, 0.0 }
 0x610   :  { %v1493_v10 = vrot.slane %v1489_v9, 7  ;;  %v1498_v12 = vmul.f32 1.5576016, %v1489_v9  ;;  %v1515_v27 = vmul.f32 0.60653067, %v1489_v9 }
 0x612   :  { %v1495_v47 = vadd.f32 %v1493_v10, %v2807_v1  ;;  %v1500_v18 = vsub.f32 %v1498_v12, %v1499_v43 }
 0x614   :  { %vm1496_vm6 = vcmp.ge.f32.partialorder %v1495_v47, 2.0 }
 0x615   :  { %v1497_v13 = vsel %vm1496_vm6, 1.0, %v2249_v45 }
 0x616   :  { %v1501_v14 = vmul.f32 -2.117, %v1497_v13  ;;  %v1506_v15 = vperm.slane %v1497_v13, 1 }
 0x618   :  { %v1503_v19 = vrot.slane %v1501_v14, 1  ;;  %v1507_v0 = vsel %vm178_vm4, %v1506_v15, %v1491_v16 }
 0x61a   :  { %v1505_v20 = vadd.f32 %v1503_v19, %v1500_v18 }
 0x61c   :  { %v1509_v22 = vrot.slane %v1505_v20, 6  ;;  %v1514_v26 = vmul.f32 1.5576016, %v1505_v20  ;;  %v1531_v33 = vmul.f32 0.60653067, %v1505_v20 }
 0x61e   :  { %v1511_v23 = vadd.f32 %v1509_v22, %v2807_v1  ;;  %v1516_v24 = vsub.f32 %v1514_v26, %v1515_v27 }
 0x620   :  { %vm1512_vm7 = vcmp.ge.f32.partialorder %v1511_v23, 2.0 }
 0x621   :  { %v1513_v61 = vsel %vm1512_vm7, 1.0, %v2249_v45 }
 0x622   :  { %v1517_v28 = vmul.f32 -2.117, %v1513_v61  ;;  %v1522_v4 = vperm.slane %v1513_v61, 2  ;;  %v2845_v61 = vpop.f32.mrf.mxu3 }
 0x624   :  { %v1519_v55 = vrot.slane %v1517_v28, 2  ;;  %v1523_v12 = vsel %vm195_vm10, %v1522_v4, %v1507_v0 }
 0x626   :  { %v1521_v29 = vadd.f32 %v1519_v55, %v1516_v24 }
 0x628   :  { %v1525_v21 = vrot.slane %v1521_v29, 5  ;;  %v1530_v30 = vmul.f32 1.5576016, %v1521_v29  ;;  %v1547_v38 = vmul.f32 0.60653067, %v1521_v29 }
 0x62a   :  { %v1527_v31 = vadd.f32 %v1525_v21, %v2807_v1  ;;  %v1532_v37 = vsub.f32 %v1530_v30, %v1531_v33 }
 0x62c   :  { %vm1528_vm8 = vcmp.ge.f32.partialorder %v1527_v31, 2.0 }
 0x62d   :  { %v1529_v32 = vsel %vm1528_vm8, 1.0, %v2249_v45 }
 0x62e   :  { %v1533_v34 = vmul.f32 -2.117, %v1529_v32  ;;  %v1538_v8 = vperm.slane %v1529_v32, 3 }
 0x630   :  { %v1535_v39 = vrot.slane %v1533_v34, 3  ;;  %v1539_v43 = vsel %vm212_vm11, %v1538_v8, %v1523_v12 }
 0x632   :  { %v1537_v40 = vadd.f32 %v1535_v39, %v1532_v37 }
 0x634   :  { %v1541_v11 = vrot.slane %v1537_v40, 4  ;;  %v1546_v41 = vmul.f32 1.5576016, %v1537_v40  ;;  %v1563_v54 = vmul.f32 0.60653067, %v1537_v40 }
 0x636   :  { %v1543_v35 = vadd.f32 %v1541_v11, %v2807_v1  ;;  %v1548_v46 = vsub.f32 %v1546_v41, %v1547_v38 }
 0x638   :  { %vm1544_vm9 = vcmp.ge.f32.partialorder %v1543_v35, 2.0 }
 0x639   :  { %v1545_v17 = vsel %vm1544_vm9, 1.0, %v2249_v45 }
 0x63a   :  { %v1549_v44 = vmul.f32 -2.117, %v1545_v17  ;;  %v1554_v10 = vperm.slane %v1545_v17, 4 }
 0x63c   :  { %v1551_v50 = vrot.slane %v1549_v44, 4  ;;  %v1555_v15 = vsel %vm229_vm12, %v1554_v10, %v1539_v43 }
 0x63e   :  { %v1553_v25 = vadd.f32 %v1551_v50, %v1548_v46 }
 0x640   :  { %v1557_v48 = vrot.slane %v1553_v25, 3  ;;  %v1562_v52 = vmul.f32 1.5576016, %v1553_v25  ;;  %v1579_v2 = vmul.f32 0.60653067, %v1553_v25 }
 0x642   :  { %v1559_v51 = vadd.f32 %v1557_v48, %v2807_v1  ;;  %v1564_v57 = vsub.f32 %v1562_v52, %v1563_v54 }
 0x644   :  { %vm1560_vm15 = vcmp.ge.f32.partialorder %v1559_v51, 2.0 }
 0x645   :  { %v1561_v53 = vsel %vm1560_vm15, 1.0, %v2249_v45 }
 0x646   :  { %v1565_v56 = vmul.f32 -2.117, %v1561_v53  ;;  %v1570_v47 = vperm.slane %v1561_v53, 5 }
 0x648   :  { %v1567_v59 = vrot.slane %v1565_v56, 5  ;;  %v1571_v18 = vsel %vm246_vm13, %v1570_v47, %v1555_v15 }
 0x64a   :  { %v1569_v36 = vadd.f32 %v1567_v59, %v1564_v57 }
 0x64c   :  { %v1573_v58 = vrot.slane %v1569_v36, 2  ;;  %v1578_v62 = vmul.f32 1.5576016, %v1569_v36  ;;  %v1595_v19 = vmul.f32 0.60653067, %v1569_v36 }
 0x64e   :  { %v1575_v60 = vadd.f32 %v1573_v58, %v2807_v1  ;;  %v1580_v5 = vsub.f32 %v1578_v62, %v1579_v2 }
 0x650   :  { %vm1576_vm5 = vcmp.ge.f32.partialorder %v1575_v60, 2.0 }
 0x651   :  { %v1577_v63 = vsel %vm1576_vm5, 1.0, %v2249_v45 }
 0x652   :  { %v1581_v3 = vmul.f32 -2.117, %v1577_v63  ;;  %v1586_v13 = vperm.slane %v1577_v63, 6 }
 0x654   :  { %v1583_v7 = vrot.slane %v1581_v3, 6  ;;  %v1587_v0 = vsel %vm263_vm14, %v1586_v13, %v1571_v18 }
 0x656   :  { %v1585_v42 = vadd.f32 %v1583_v7, %v1580_v5 }
 0x658   :  { %v1589_v9 = vrot.slane %v1585_v42, 1  ;;  %v1594_v14 = vmul.f32 1.5576016, %v1585_v42  ;;  %v1608_v55 = vmul.f32 0.60653067, %v1585_v42 }
 0x65a   :  { %v1591_v6 = vadd.f32 %v1589_v9, %v2807_v1  ;;  %v1596_v22 = vsub.f32 %v1594_v14, %v1595_v19 }
 0x65c   :  { %vm1592_vm0 = vcmp.ge.f32.partialorder %v1591_v6, 2.0 }
 0x65d   :  { %v1593_v16 = vsel %vm1592_vm0, 1.0, %v2249_v45 }
 0x65e   :  { %v1597_v20 = vmul.f32 -2.117, %v1593_v16  ;;  %v1602_v1 = vperm.slane %v1593_v16, 7 }
 0x660   :  { %v1599_v23 = vrot.slane %v1597_v20, 7  ;;  %v1603_v26 = vsel %vm280_vm1, %v1602_v1, %v1587_v0 }
 0x661   :  { %2209 = vst.msk [vmem:[%s3039_s4 + $0x10] sm:$0xff] %vm2206_vm2, %v1603_v26 }
 0x662   :  { %v1601_v27 = vadd.f32 %v1599_v23, %v1596_v22 }
 0x664   :  { %v1607_v28 = vmul.f32 1.5576016, %v1601_v27  ;;  %v1604_v24 = vadd.f32 %v1601_v27, %v2845_v61  ;;  %v1621_v40 = vmul.f32 0.60653067, %v1601_v27 }
 0x666   :  { %vm1605_vm6 = vcmp.ge.f32.partialorder %v1604_v24, 2.0  ;;  %v1609_v21 = vsub.f32 %v1607_v28, %v1608_v55 }
 0x667   :  { %v1606_v29 = vsel %vm1605_vm6, 1.0, %v2249_v45 }
 0x668   :  { %v1610_v31 = vmul.f32 -2.117, %v1606_v29  ;;  %v1612_v34 = vperm.slane %v1606_v29, 0 }
 0x66a   :  { %v1611_v30 = vadd.f32 %v1610_v31, %v1609_v21  ;;  %v1613_v41 = vsel %vm163_vm3, %v1612_v34, 0.0 }
 0x66c   :  { %v1615_v32 = vrot.slane %v1611_v30, 7  ;;  %v1620_v37 = vmul.f32 1.5576016, %v1611_v30  ;;  %v1637_v52 = vmul.f32 0.60653067, %v1611_v30 }
 0x66e   :  { %v1617_v33 = vadd.f32 %v1615_v32, %v2845_v61  ;;  %v1622_v17 = vsub.f32 %v1620_v37, %v1621_v40 }
 0x670   :  { %vm1618_vm7 = vcmp.ge.f32.partialorder %v1617_v33, 2.0 }
 0x671   :  { %v1619_v39 = vsel %vm1618_vm7, 1.0, %v2249_v45 }
 0x672   :  { %v1623_v11 = vmul.f32 -2.117, %v1619_v39  ;;  %v1628_v35 = vperm.slane %v1619_v39, 1 }
 0x674   :  { %v1625_v38 = vrot.slane %v1623_v11, 1  ;;  %v1629_v44 = vsel %vm178_vm4, %v1628_v35, %v1613_v41 }
 0x676   :  { %v1627_v46 = vadd.f32 %v1625_v38, %v1622_v17 }
 0x678   :  { %v1631_v50 = vrot.slane %v1627_v46, 6  ;;  %v1636_v48 = vmul.f32 1.5576016, %v1627_v46  ;;  %v1653_v62 = vmul.f32 0.60653067, %v1627_v46 }
 0x67a   :  { %v1633_v25 = vadd.f32 %v1631_v50, %v2845_v61  ;;  %v1638_v54 = vsub.f32 %v1636_v48, %v1637_v52 }
 0x67c   :  { %vm1634_vm8 = vcmp.ge.f32.partialorder %v1633_v25, 2.0 }
 0x67d   :  { %v1635_v51 = vsel %vm1634_vm8, 1.0, %v2249_v45 }
 0x67e   :  { %v1639_v53 = vmul.f32 -2.117, %v1635_v51  ;;  %v1644_v21 = vperm.slane %v1635_v51, 2  ;;  %v2883_v51 = vpop.f32.mrf.mxu3 }
 0x680   :  { %v1641_v56 = vrot.slane %v1639_v53, 2  ;;  %v1645_v37 = vsel %vm195_vm10, %v1644_v21, %v1629_v44 }
 0x682   :  { %v1643_v57 = vadd.f32 %v1641_v56, %v1638_v54 }
 0x684   :  { %v1647_v59 = vrot.slane %v1643_v57, 5  ;;  %v1652_v58 = vmul.f32 1.5576016, %v1643_v57  ;;  %v1669_v9 = vmul.f32 0.60653067, %v1643_v57 }
 0x686   :  { %v1649_v36 = vadd.f32 %v1647_v59, %v2845_v61  ;;  %v1654_v2 = vsub.f32 %v1652_v58, %v1653_v62 }
 0x688   :  { %vm1650_vm9 = vcmp.ge.f32.partialorder %v1649_v36, 2.0 }
 0x689   :  { %v1651_v60 = vsel %vm1650_vm9, 1.0, %v2249_v45 }
 0x68a   :  { %v1655_v63 = vmul.f32 -2.117, %v1651_v60  ;;  %v1660_v31 = vperm.slane %v1651_v60, 3 }
 0x68c   :  { %v1657_v3 = vrot.slane %v1655_v63, 3  ;;  %v1661_v40 = vsel %vm212_vm11, %v1660_v31, %v1645_v37 }
 0x68e   :  { %v1659_v5 = vadd.f32 %v1657_v3, %v1654_v2 }
 0x690   :  { %v1663_v7 = vrot.slane %v1659_v5, 4  ;;  %v1668_v4 = vmul.f32 1.5576016, %v1659_v5  ;;  %v1685_v16 = vmul.f32 0.60653067, %v1659_v5 }
 0x692   :  { %v1665_v42 = vadd.f32 %v1663_v7, %v2845_v61  ;;  %v1670_v47 = vsub.f32 %v1668_v4, %v1669_v9 }
 0x694   :  { %vm1666_vm15 = vcmp.ge.f32.partialorder %v1665_v42, 2.0 }
 0x695   :  { %v1667_v8 = vsel %vm1666_vm15, 1.0, %v2249_v45 }
 0x696   :  { %v1671_v10 = vmul.f32 -2.117, %v1667_v8  ;;  %v1676_v32 = vperm.slane %v1667_v8, 4 }
 0x698   :  { %v1673_v6 = vrot.slane %v1671_v10, 4  ;;  %v1677_v35 = vsel %vm229_vm12, %v1676_v32, %v1661_v40 }
 0x69a   :  { %v1675_v12 = vadd.f32 %v1673_v6, %v1670_v47 }
 0x69c   :  { %v1679_v13 = vrot.slane %v1675_v12, 3  ;;  %v1684_v14 = vmul.f32 1.5576016, %v1675_v12  ;;  %v1701_v27 = vmul.f32 0.60653067, %v1675_v12 }
 0x69e   :  { %v1681_v43 = vadd.f32 %v1679_v13, %v2845_v61  ;;  %v1686_v19 = vsub.f32 %v1684_v14, %v1685_v16 }
 0x6a0   :  { %vm1682_vm5 = vcmp.ge.f32.partialorder %v1681_v43, 2.0 }
 0x6a1   :  { %v1683_v15 = vsel %vm1682_vm5, 1.0, %v2249_v45 }
 0x6a2   :  { %v1687_v18 = vmul.f32 -2.117, %v1683_v15  ;;  %v1692_v33 = vperm.slane %v1683_v15, 5 }
 0x6a4   :  { %v1689_v20 = vrot.slane %v1687_v18, 5  ;;  %v1693_v17 = vsel %vm246_vm13, %v1692_v33, %v1677_v35 }
 0x6a6   :  { %v1691_v1 = vadd.f32 %v1689_v20, %v1686_v19 }
 0x6a8   :  { %v1695_v0 = vrot.slane %v1691_v1, 2  ;;  %v1700_v23 = vmul.f32 1.5576016, %v1691_v1  ;;  %v1717_v38 = vmul.f32 0.60653067, %v1691_v1 }
 0x6aa   :  { %v1697_v22 = vadd.f32 %v1695_v0, %v2845_v61  ;;  %v1702_v24 = vsub.f32 %v1700_v23, %v1701_v27 }
 0x6ac   :  { %vm1698_vm0 = vcmp.ge.f32.partialorder %v1697_v22, 2.0 }
 0x6ad   :  { %v1699_v26 = vsel %vm1698_vm0, 1.0, %v2249_v45 }
 0x6ae   :  { %v1703_v28 = vmul.f32 -2.117, %v1699_v26  ;;  %v1708_v39 = vperm.slane %v1699_v26, 6 }
 0x6b0   :  { %v1705_v55 = vrot.slane %v1703_v28, 6  ;;  %v1709_v44 = vsel %vm263_vm14, %v1708_v39, %v1693_v17 }
 0x6b2   :  { %v1707_v29 = vadd.f32 %v1705_v55, %v1702_v24 }
 0x6b4   :  { %v1711_v30 = vrot.slane %v1707_v29, 1  ;;  %v1716_v11 = vmul.f32 1.5576016, %v1707_v29  ;;  %v1730_v56 = vmul.f32 0.60653067, %v1707_v29 }
 0x6b6   :  { %v1713_v34 = vadd.f32 %v1711_v30, %v2845_v61  ;;  %v1718_v50 = vsub.f32 %v1716_v11, %v1717_v38 }
 0x6b8   :  { %vm1714_vm6 = vcmp.ge.f32.partialorder %v1713_v34, 2.0 }
 0x6b9   :  { %v1715_v41 = vsel %vm1714_vm6, 1.0, %v2249_v45 }
 0x6ba   :  { %v1719_v46 = vmul.f32 -2.117, %v1715_v41  ;;  %v1724_v61 = vperm.slane %v1715_v41, 7 }
 0x6bc   :  { %v1721_v25 = vrot.slane %v1719_v46, 7  ;;  %v1725_v48 = vsel %vm280_vm1, %v1724_v61, %v1709_v44 }
 0x6bd   :  { %2210 = vst.msk [vmem:[%s3039_s4 + $0x18] sm:$0xff] %vm2206_vm2, %v1725_v48 }
 0x6be   :  { %v1723_v52 = vadd.f32 %v1721_v25, %v1718_v50 }
 0x6c0   :  { %v1729_v53 = vmul.f32 1.5576016, %v1723_v52  ;;  %v1726_v54 = vadd.f32 %v1723_v52, %v2883_v51  ;;  %v1743_v5 = vmul.f32 0.60653067, %v1723_v52 }
 0x6c2   :  { %vm1727_vm7 = vcmp.ge.f32.partialorder %v1726_v54, 2.0  ;;  %v1731_v59 = vsub.f32 %v1729_v53, %v1730_v56 }
 0x6c3   :  { %v1728_v57 = vsel %vm1727_vm7, 1.0, %v2249_v45 }
 0x6c4   :  { %v1732_v36 = vmul.f32 -2.117, %v1728_v57  ;;  %v1734_v63 = vperm.slane %v1728_v57, 0 }
 0x6c6   :  { %v1733_v58 = vadd.f32 %v1732_v36, %v1731_v59  ;;  %v1735_v4 = vsel %vm163_vm3, %v1734_v63, 0.0 }
 0x6c8   :  { %v1737_v60 = vrot.slane %v1733_v58, 7  ;;  %v1742_v2 = vmul.f32 1.5576016, %v1733_v58  ;;  %v1759_v14 = vmul.f32 0.60653067, %v1733_v58 }
 0x6ca   :  { %v1739_v62 = vadd.f32 %v1737_v60, %v2883_v51  ;;  %v1744_v8 = vsub.f32 %v1742_v2, %v1743_v5 }
 0x6cc   :  { %vm1740_vm8 = vcmp.ge.f32.partialorder %v1739_v62, 2.0 }
 0x6cd   :  { %v1741_v3 = vsel %vm1740_vm8, 1.0, %v2249_v45 }
 0x6ce   :  { %v1745_v7 = vmul.f32 -2.117, %v1741_v3  ;;  %v1750_v42 = vperm.slane %v1741_v3, 1 }
 0x6d0   :  { %v1747_v9 = vrot.slane %v1745_v7, 1  ;;  %v1751_v10 = vsel %vm178_vm4, %v1750_v42, %v1735_v4 }
 0x6d2   :  { %v1749_v47 = vadd.f32 %v1747_v9, %v1744_v8 }
 0x6d4   :  { %v1753_v6 = vrot.slane %v1749_v47, 6  ;;  %v1758_v13 = vmul.f32 1.5576016, %v1749_v47  ;;  %v1775_v23 = vmul.f32 0.60653067, %v1749_v47 }
 0x6d6   :  { %v1755_v12 = vadd.f32 %v1753_v6, %v2883_v51  ;;  %v1760_v16 = vsub.f32 %v1758_v13, %v1759_v14 }
 0x6d8   :  { %vm1756_vm9 = vcmp.ge.f32.partialorder %v1755_v12, 2.0 }
 0x6d9   :  { %v1757_v43 = vsel %vm1756_vm9, 1.0, %v2249_v45 }
 0x6da   :  { %v1761_v15 = vmul.f32 -2.117, %v1757_v43  ;;  %v1766_v59 = vperm.slane %v1757_v43, 2  ;;  %v2921_v43 = vpop.f32.mrf.mxu3 }
 0x6dc   :  { %v1763_v18 = vrot.slane %v1761_v15, 2  ;;  %v1767_v2 = vsel %vm195_vm10, %v1766_v59, %v1751_v10 }
 0x6de   :  { %v1765_v19 = vadd.f32 %v1763_v18, %v1760_v16 }
 0x6e0   :  { %v1769_v20 = vrot.slane %v1765_v19, 5  ;;  %v1774_v0 = vmul.f32 1.5576016, %v1765_v19  ;;  %v1791_v30 = vmul.f32 0.60653067, %v1765_v19 }
 0x6e2   :  { %v1771_v1 = vadd.f32 %v1769_v20, %v2883_v51  ;;  %v1776_v27 = vsub.f32 %v1774_v0, %v1775_v23 }
 0x6e4   :  { %vm1772_vm15 = vcmp.ge.f32.partialorder %v1771_v1, 2.0 }
 0x6e5   :  { %v1773_v22 = vsel %vm1772_vm15, 1.0, %v2249_v45 }
 0x6e6   :  { %v1777_v26 = vmul.f32 -2.117, %v1773_v22  ;;  %v1782_v36 = vperm.slane %v1773_v22, 3 }
 0x6e8   :  { %v1779_v28 = vrot.slane %v1777_v26, 3  ;;  %v1783_v5 = vsel %vm212_vm11, %v1782_v36, %v1767_v2 }
 0x6ea   :  { %v1781_v24 = vadd.f32 %v1779_v28, %v1776_v27 }
 0x6ec   :  { %v1785_v55 = vrot.slane %v1781_v24, 4  ;;  %v1790_v21 = vmul.f32 1.5576016, %v1781_v24  ;;  %v1807_v41 = vmul.f32 0.60653067, %v1781_v24 }
 0x6ee   :  { %v1787_v29 = vadd.f32 %v1785_v55, %v2883_v51  ;;  %v1792_v33 = vsub.f32 %v1790_v21, %v1791_v30 }
 0x6f0   :  { %vm1788_vm5 = vcmp.ge.f32.partialorder %v1787_v29, 2.0 }
 0x6f1   :  { %v1789_v31 = vsel %vm1788_vm5, 1.0, %v2249_v45 }
 0x6f2   :  { %v1793_v32 = vmul.f32 -2.117, %v1789_v31  ;;  %v1798_v60 = vperm.slane %v1789_v31, 4 }
 0x6f4   :  { %v1795_v34 = vrot.slane %v1793_v32, 4  ;;  %v1799_v42 = vsel %vm229_vm12, %v1798_v60, %v1783_v5 }
 0x6f6   :  { %v1797_v37 = vadd.f32 %v1795_v34, %v1792_v33 }
 0x6f8   :  { %v1801_v39 = vrot.slane %v1797_v37, 3  ;;  %v1806_v11 = vmul.f32 1.5576016, %v1797_v37  ;;  %v1823_v52 = vmul.f32 0.60653067, %v1797_v37 }
 0x6fa   :  { %v1803_v40 = vadd.f32 %v1801_v39, %v2883_v51  ;;  %v1808_v38 = vsub.f32 %v1806_v11, %v1807_v41 }
 0x6fc   :  { %vm1804_vm0 = vcmp.ge.f32.partialorder %v1803_v40, 2.0 }
 0x6fd   :  { %v1805_v35 = vsel %vm1804_vm0, 1.0, %v2249_v45 }
 0x6fe   :  { %v1809_v17 = vmul.f32 -2.117, %v1805_v35  ;;  %v1814_v62 = vperm.slane %v1805_v35, 5 }
 0x700   :  { %v1811_v46 = vrot.slane %v1809_v17, 5  ;;  %v1815_v8 = vsel %vm246_vm13, %v1814_v62, %v1799_v42 }
 0x702   :  { %v1813_v61 = vadd.f32 %v1811_v46, %v1808_v38 }
 0x704   :  { %v1817_v44 = vrot.slane %v1813_v61, 2  ;;  %v1822_v25 = vmul.f32 1.5576016, %v1813_v61  ;;  %v1839_v9 = vmul.f32 0.60653067, %v1813_v61 }
 0x706   :  { %v1819_v50 = vadd.f32 %v1817_v44, %v2883_v51  ;;  %v1824_v54 = vsub.f32 %v1822_v25, %v1823_v52 }
 0x708   :  { %vm1820_vm6 = vcmp.ge.f32.partialorder %v1819_v50, 2.0 }
 0x709   :  { %v1821_v48 = vsel %vm1820_vm6, 1.0, %v2249_v45 }
 0x70a   :  { %v1825_v53 = vmul.f32 -2.117, %v1821_v48  ;;  %v1830_v3 = vperm.slane %v1821_v48, 6 }
 0x70c   :  { %v1827_v56 = vrot.slane %v1825_v53, 6  ;;  %v1831_v10 = vsel %vm263_vm14, %v1830_v3, %v1815_v8 }
 0x70e   :  { %v1829_v57 = vadd.f32 %v1827_v56, %v1824_v54 }
 0x710   :  { %v1833_v58 = vrot.slane %v1829_v57, 1  ;;  %v1838_v7 = vmul.f32 1.5576016, %v1829_v57  ;;  %v1852_v18 = vmul.f32 0.60653067, %v1829_v57 }
 0x712   :  { %v1835_v63 = vadd.f32 %v1833_v58, %v2883_v51  ;;  %v1840_v6 = vsub.f32 %v1838_v7, %v1839_v9 }
 0x714   :  { %vm1836_vm7 = vcmp.ge.f32.partialorder %v1835_v63, 2.0 }
 0x715   :  { %v1837_v4 = vsel %vm1836_vm7, 1.0, %v2249_v45 }
 0x716   :  { %v1841_v47 = vmul.f32 -2.117, %v1837_v4  ;;  %v1846_v51 = vperm.slane %v1837_v4, 7 }
 0x718   :  { %v1843_v12 = vrot.slane %v1841_v47, 7  ;;  %v1847_v13 = vsel %vm280_vm1, %v1846_v51, %v1831_v10 }
 0x719   :  { %2211 = vst.msk [vmem:[%s3039_s4 + $0x20] sm:$0xff] %vm2206_vm2, %v1847_v13 }
 0x71a   :  { %v1845_v14 = vadd.f32 %v1843_v12, %v1840_v6 }
 0x71c   :  { %v1851_v15 = vmul.f32 1.5576016, %v1845_v14  ;;  %v1848_v16 = vadd.f32 %v1845_v14, %v2921_v43  ;;  %v1865_v24 = vmul.f32 0.60653067, %v1845_v14 }
 0x71e   :  { %vm1849_vm8 = vcmp.ge.f32.partialorder %v1848_v16, 2.0  ;;  %v1853_v20 = vsub.f32 %v1851_v15, %v1852_v18 }
 0x71f   :  { %v1850_v19 = vsel %vm1849_vm8, 1.0, %v2249_v45 }
 0x720   :  { %v1854_v1 = vmul.f32 -2.117, %v1850_v19  ;;  %v1856_v26 = vperm.slane %v1850_v19, 0 }
 0x722   :  { %v1855_v0 = vadd.f32 %v1854_v1, %v1853_v20  ;;  %v1857_v21 = vsel %vm163_vm3, %v1856_v26, 0.0 }
 0x724   :  { %v1859_v22 = vrot.slane %v1855_v0, 7  ;;  %v1864_v27 = vmul.f32 1.5576016, %v1855_v0  ;;  %v1881_v11 = vmul.f32 0.60653067, %v1855_v0 }
 0x726   :  { %v1861_v23 = vadd.f32 %v1859_v22, %v2921_v43  ;;  %v1866_v31 = vsub.f32 %v1864_v27, %v1865_v24 }
 0x728   :  { %vm1862_vm9 = vcmp.ge.f32.partialorder %v1861_v23, 2.0 }
 0x729   :  { %v1863_v28 = vsel %vm1862_vm9, 1.0, %v2249_v45 }
 0x72a   :  { %v1867_v55 = vmul.f32 -2.117, %v1863_v28  ;;  %v1872_v29 = vperm.slane %v1863_v28, 1 }
 0x72c   :  { %v1869_v30 = vrot.slane %v1867_v55, 1  ;;  %v1873_v32 = vsel %vm178_vm4, %v1872_v29, %v1857_v21 }
 0x72e   :  { %v1871_v33 = vadd.f32 %v1869_v30, %v1866_v31 }
 0x730   :  { %v1875_v34 = vrot.slane %v1871_v33, 6  ;;  %v1880_v39 = vmul.f32 1.5576016, %v1871_v33  ;;  %v1897_v25 = vmul.f32 0.60653067, %v1871_v33 }
 0x732   :  { %v1877_v37 = vadd.f32 %v1875_v34, %v2921_v43  ;;  %v1882_v41 = vsub.f32 %v1880_v39, %v1881_v11 }
 0x734   :  { %vm1878_vm15 = vcmp.ge.f32.partialorder %v1877_v37, 2.0 }
 0x735   :  { %v1879_v40 = vsel %vm1878_vm15, 1.0, %v2249_v45 }
 0x736   :  { %v1883_v35 = vmul.f32 -2.117, %v1879_v40  ;;  %v1888_v20 = vperm.slane %v1879_v40, 2  ;;  %v2959_v40 = vpop.f32.mrf.mxu3 }
 0x738   :  { %v1885_v17 = vrot.slane %v1883_v35, 2  ;;  %v1889_v27 = vsel %vm195_vm10, %v1888_v20, %v1873_v32 }
 0x73a   :  { %v1887_v38 = vadd.f32 %v1885_v17, %v1882_v41 }
 0x73c   :  { %v1891_v46 = vrot.slane %v1887_v38, 5  ;;  %v1896_v44 = vmul.f32 1.5576016, %v1887_v38  ;;  %v1913_v58 = vmul.f32 0.60653067, %v1887_v38 }
 0x73e   :  { %v1893_v61 = vadd.f32 %v1891_v46, %v2921_v43  ;;  %v1898_v52 = vsub.f32 %v1896_v44, %v1897_v25 }
 0x740   :  { %vm1894_vm5 = vcmp.ge.f32.partialorder %v1893_v61, 2.0 }
 0x741   :  { %v1895_v50 = vsel %vm1894_vm5, 1.0, %v2249_v45 }
 0x742   :  { %v1899_v48 = vmul.f32 -2.117, %v1895_v50  ;;  %v1904_v1 = vperm.slane %v1895_v50, 3 }
 0x744   :  { %v1901_v53 = vrot.slane %v1899_v48, 3  ;;  %v1905_v24 = vsel %vm212_vm11, %v1904_v1, %v1889_v27 }
 0x746   :  { %v1903_v54 = vadd.f32 %v1901_v53, %v1898_v52 }
 0x748   :  { %v1907_v56 = vrot.slane %v1903_v54, 4  ;;  %v1912_v59 = vmul.f32 1.5576016, %v1903_v54  ;;  %v1929_v4 = vmul.f32 0.60653067, %v1903_v54 }
 0x74a   :  { %v1909_v57 = vadd.f32 %v1907_v56, %v2921_v43  ;;  %v1914_v62 = vsub.f32 %v1912_v59, %v1913_v58 }
 0x74c   :  { %vm1910_vm0 = vcmp.ge.f32.partialorder %v1909_v57, 2.0 }
 0x74d   :  { %v1911_v36 = vsel %vm1910_vm0, 1.0, %v2249_v45 }
 0x74e   :  { %v1915_v60 = vmul.f32 -2.117, %v1911_v36  ;;  %v1920_v22 = vperm.slane %v1911_v36, 4 }
 0x750   :  { %v1917_v63 = vrot.slane %v1915_v60, 4  ;;  %v1921_v29 = vsel %vm229_vm12, %v1920_v22, %v1905_v24 }
 0x752   :  { %v1919_v2 = vadd.f32 %v1917_v63, %v1914_v62 }
 0x754   :  { %v1923_v3 = vrot.slane %v1919_v2, 3  ;;  %v1928_v7 = vmul.f32 1.5576016, %v1919_v2  ;;  %v1945_v14 = vmul.f32 0.60653067, %v1919_v2 }
 0x756   :  { %v1925_v5 = vadd.f32 %v1923_v3, %v2921_v43  ;;  %v1930_v9 = vsub.f32 %v1928_v7, %v1929_v4 }
 0x758   :  { %vm1926_vm6 = vcmp.ge.f32.partialorder %v1925_v5, 2.0 }
 0x759   :  { %v1927_v42 = vsel %vm1926_vm6, 1.0, %v2249_v45 }
 0x75a   :  { %v1931_v8 = vmul.f32 -2.117, %v1927_v42  ;;  %v1936_v23 = vperm.slane %v1927_v42, 5 }
 0x75c   :  { %v1933_v47 = vrot.slane %v1931_v8, 5  ;;  %v1937_v31 = vsel %vm246_vm13, %v1936_v23, %v1921_v29 }
 0x75e   :  { %v1935_v51 = vadd.f32 %v1933_v47, %v1930_v9 }
 0x760   :  { %v1939_v10 = vrot.slane %v1935_v51, 2  ;;  %v1944_v12 = vmul.f32 1.5576016, %v1935_v51 }
 0x762   :  { %v1941_v6 = vadd.f32 %v1939_v10, %v2921_v43  ;;  %v1946_v16 = vsub.f32 %v1944_v12, %v1945_v14 }
 0x764   :  { %vm1942_vm7 = vcmp.ge.f32.partialorder %v1941_v6, 2.0 }
 0x765   :  { %v1943_v13 = vsel %vm1942_vm7, 1.0, %v2249_v45 }
 0x766   :  { %v1947_v15 = vmul.f32 -2.117, %v1943_v13  ;;  %v1952_v28 = vperm.slane %v1943_v13, 6 }
 0x768   :  { %v1949_v18 = vrot.slane %v1947_v15, 6  ;;  %v1953_v32 = vsel %vm263_vm14, %v1952_v28, %v1937_v31 }
 0x76a   :  { %v1951_v19 = vadd.f32 %v1949_v18, %v1946_v16 }
 0x76c   :  { %v1955_v0 = vrot.slane %v1951_v19, 1  ;;  %v1960_v55 = vmul.f32 1.5576016, %v1951_v19  ;;  %v1974_v17 = vmul.f32 0.60653067, %v1951_v19 }
 0x76e   :  { %v1957_v26 = vadd.f32 %v1955_v0, %v2921_v43  ;;  %v1961_v43 = vmul.f32 0.60653067, %v1935_v51 }
 0x770   :  { %vm1958_vm8 = vcmp.ge.f32.partialorder %v1957_v26, 2.0  ;;  %v1962_v39 = vsub.f32 %v1960_v55, %v1961_v43 }
 0x771   :  { %v1959_v21 = vsel %vm1958_vm8, 1.0, %v2249_v45 }
 0x772   :  { %v1963_v30 = vmul.f32 -2.117, %v1959_v21  ;;  %v1968_v33 = vperm.slane %v1959_v21, 7 }
 0x774   :  { %v1965_v34 = vrot.slane %v1963_v30, 7  ;;  %v1969_v37 = vsel %vm280_vm1, %v1968_v33, %v1953_v32 }
 0x775   :  { %2212 = vst.msk [vmem:[%s3039_s4 + $0x28] sm:$0xff] %vm2206_vm2, %v1969_v37 }
 0x776   :  { %v1967_v11 = vadd.f32 %v1965_v34, %v1962_v39 }
 0x778   :  { %v1970_v35 = vadd.f32 %v1967_v11, %v2959_v40  ;;  %v1973_v41 = vmul.f32 1.5576016, %v1967_v11  ;;  %v1987_v54 = vmul.f32 0.60653067, %v1967_v11 }
 0x77a   :  { %vm1971_vm9 = vcmp.ge.f32.partialorder %v1970_v35, 2.0  ;;  %v1975_v46 = vsub.f32 %v1973_v41, %v1974_v17 }
 0x77b   :  { %v1972_v38 = vsel %vm1971_vm9, 1.0, %v2249_v45 }
 0x77c   :  { %v1976_v61 = vmul.f32 -2.117, %v1972_v38  ;;  %v1978_v48 = vperm.slane %v1972_v38, 0 }
 0x77e   :  { %v1977_v44 = vadd.f32 %v1976_v61, %v1975_v46  ;;  %v1979_v59 = vsel %vm163_vm3, %v1978_v48, 0.0 }
 0x780   :  { %v1981_v50 = vrot.slane %v1977_v44, 7  ;;  %v1986_v52 = vmul.f32 1.5576016, %v1977_v44  ;;  %v2003_v7 = vmul.f32 0.60653067, %v1977_v44 }
 0x782   :  { %v1983_v25 = vadd.f32 %v1981_v50, %v2959_v40  ;;  %v1988_v36 = vsub.f32 %v1986_v52, %v1987_v54 }
 0x784   :  { %vm1984_vm15 = vcmp.ge.f32.partialorder %v1983_v25, 2.0 }
 0x785   :  { %v1985_v53 = vsel %vm1984_vm15, 1.0, %v2249_v45 }
 0x786   :  { %v1989_v56 = vmul.f32 -2.117, %v1985_v53  ;;  %v1994_v57 = vperm.slane %v1985_v53, 1 }
 0x788   :  { %v1991_v58 = vrot.slane %v1989_v56, 1  ;;  %v1995_v60 = vsel %vm178_vm4, %v1994_v57, %v1979_v59 }
 0x78a   :  { %v1993_v62 = vadd.f32 %v1991_v58, %v1988_v36 }
 0x78c   :  { %v1997_v63 = vrot.slane %v1993_v62, 6  ;;  %v2002_v3 = vmul.f32 1.5576016, %v1993_v62  ;;  %v2019_v12 = vmul.f32 0.60653067, %v1993_v62 }
 0x78e   :  { %v1999_v2 = vadd.f32 %v1997_v63, %v2959_v40  ;;  %v2004_v4 = vsub.f32 %v2002_v3, %v2003_v7 }
 0x790   :  { %vm2000_vm5 = vcmp.ge.f32.partialorder %v1999_v2, 2.0 }
 0x791   :  { %v2001_v5 = vsel %vm2000_vm5, 1.0, %v2249_v45 }
 0x792   :  { %v2005_v42 = vmul.f32 -2.117, %v2001_v5  ;;  %v2010_v46 = vperm.slane %v2001_v5, 2  ;;  %v2997_v5 = vpop.f32.mrf.mxu3 }
 0x794   :  { %v2007_v8 = vrot.slane %v2005_v42, 2  ;;  %v2011_v52 = vsel %vm195_vm10, %v2010_v46, %v1995_v60 }
 0x796   :  { %v2009_v9 = vadd.f32 %v2007_v8, %v2004_v4 }
 0x798   :  { %v2013_v47 = vrot.slane %v2009_v9, 5  ;;  %v2018_v10 = vmul.f32 1.5576016, %v2009_v9  ;;  %v2035_v0 = vmul.f32 0.60653067, %v2009_v9 }
 0x79a   :  { %v2015_v51 = vadd.f32 %v2013_v47, %v2959_v40  ;;  %v2020_v14 = vsub.f32 %v2018_v10, %v2019_v12 }
 0x79c   :  { %vm2016_vm0 = vcmp.ge.f32.partialorder %v2015_v51, 2.0 }
 0x79d   :  { %v2017_v6 = vsel %vm2016_vm0, 1.0, %v2249_v45 }
 0x79e   :  { %v2021_v13 = vmul.f32 -2.117, %v2017_v6  ;;  %v2026_v61 = vperm.slane %v2017_v6, 3 }
 0x7a0   :  { %v2023_v15 = vrot.slane %v2021_v13, 3  ;;  %v2027_v54 = vsel %vm212_vm11, %v2026_v61, %v2011_v52 }
 0x7a2   :  { %v2025_v16 = vadd.f32 %v2023_v15, %v2020_v14 }
 0x7a4   :  { %v2029_v18 = vrot.slane %v2025_v16, 4  ;;  %v2034_v20 = vmul.f32 1.5576016, %v2025_v16  ;;  %v2051_v21 = vmul.f32 0.60653067, %v2025_v16 }
 0x7a6   :  { %v2031_v19 = vadd.f32 %v2029_v18, %v2959_v40  ;;  %v2036_v23 = vsub.f32 %v2034_v20, %v2035_v0 }
 0x7a8   :  { %vm2032_vm6 = vcmp.ge.f32.partialorder %v2031_v19, 2.0 }
 0x7a9   :  { %v2033_v1 = vsel %vm2032_vm6, 1.0, %v2249_v45 }
 0x7aa   :  { %v2037_v22 = vmul.f32 -2.117, %v2033_v1  ;;  %v2042_v50 = vperm.slane %v2033_v1, 4 }
 0x7ac   :  { %v2039_v26 = vrot.slane %v2037_v22, 4  ;;  %v2043_v57 = vsel %vm229_vm12, %v2042_v50, %v2027_v54 }
 0x7ae   :  { %v2041_v27 = vadd.f32 %v2039_v26, %v2036_v23 }
 0x7b0   :  { %v2045_v28 = vrot.slane %v2041_v27, 3  ;;  %v2050_v55 = vmul.f32 1.5576016, %v2041_v27  ;;  %v2067_v11 = vmul.f32 0.60653067, %v2041_v27 }
 0x7b2   :  { %v2047_v24 = vadd.f32 %v2045_v28, %v2959_v40  ;;  %v2052_v30 = vsub.f32 %v2050_v55, %v2051_v21 }
 0x7b4   :  { %vm2048_vm7 = vcmp.ge.f32.partialorder %v2047_v24, 2.0 }
 0x7b5   :  { %v2049_v29 = vsel %vm2048_vm7, 1.0, %v2249_v45 }
 0x7b6   :  { %v2053_v31 = vmul.f32 -2.117, %v2049_v29  ;;  %v2058_v25 = vperm.slane %v2049_v29, 5 }
 0x7b8   :  { %v2055_v33 = vrot.slane %v2053_v31, 5  ;;  %v2059_v36 = vsel %vm246_vm13, %v2058_v25, %v2043_v57 }
 0x7ba   :  { %v2057_v43 = vadd.f32 %v2055_v33, %v2052_v30 }
 0x7bc   :  { %v2061_v32 = vrot.slane %v2057_v43, 2  ;;  %v2066_v37 = vmul.f32 1.5576016, %v2057_v43 }
 0x7be   :  { %v2063_v34 = vadd.f32 %v2061_v32, %v2959_v40  ;;  %v2068_v41 = vsub.f32 %v2066_v37, %v2067_v11 }
 0x7c0   :  { %vm2064_vm8 = vcmp.ge.f32.partialorder %v2063_v34, 2.0 }
 0x7c1   :  { %v2065_v39 = vsel %vm2064_vm8, 1.0, %v2249_v45 }
 0x7c2   :  { %v2069_v35 = vmul.f32 -2.117, %v2065_v39  ;;  %v2074_v53 = vperm.slane %v2065_v39, 6 }
 0x7c4   :  { %v2071_v17 = vrot.slane %v2069_v35, 6  ;;  %v2075_v60 = vsel %vm263_vm14, %v2074_v53, %v2059_v36 }
 0x7c6   :  { %v2073_v38 = vadd.f32 %v2071_v17, %v2068_v41 }
 0x7c8   :  { %v2077_v44 = vrot.slane %v2073_v38, 1  ;;  %v2082_v56 = vmul.f32 1.5576016, %v2073_v38  ;;  %v2096_v8 = vmul.f32 0.60653067, %v2073_v38 }
 0x7ca   :  { %v2079_v48 = vadd.f32 %v2077_v44, %v2959_v40  ;;  %v2083_v40 = vmul.f32 0.60653067, %v2057_v43 }
 0x7cc   :  { %vm2080_vm9 = vcmp.ge.f32.partialorder %v2079_v48, 2.0  ;;  %v2084_v2 = vsub.f32 %v2082_v56, %v2083_v40 }
 0x7cd   :  { %v2081_v59 = vsel %vm2080_vm9, 1.0, %v2249_v45 }
 0x7ce   :  { %v2085_v58 = vmul.f32 -2.117, %v2081_v59  ;;  %v2090_v62 = vperm.slane %v2081_v59, 7 }
 0x7d0   :  { %v2091_v63 = vsel %vm280_vm1, %v2090_v62, %v2075_v60  ;;  %v2087_v3 = vrot.slane %v2085_v58, 7 }
 0x7d1   :  { %2213 = vst.msk [vmem:[%s3039_s4 + $0x30] sm:$0xff] %vm2206_vm2, %v2091_v63 }
 0x7d2   :  { %v2089_v7 = vadd.f32 %v2087_v3, %v2084_v2 }
 0x7d4   :  { %v2092_v42 = vadd.f32 %v2089_v7, %v2997_v5  ;;  %v2095_v4 = vmul.f32 1.5576016, %v2089_v7  ;;  %v2109_v16 = vmul.f32 0.60653067, %v2089_v7 }
 0x7d6   :  { %vm2093_vm15 = vcmp.ge.f32.partialorder %v2092_v42, 2.0  ;;  %v2097_v47 = vsub.f32 %v2095_v4, %v2096_v8 }
 0x7d7   :  { %v2094_v9 = vsel %vm2093_vm15, 1.0, %v2249_v45 }
 0x7d8   :  { %v2098_v51 = vmul.f32 -2.117, %v2094_v9  ;;  %v2100_v13 = vperm.slane %v2094_v9, 0 }
 0x7da   :  { %v2099_v10 = vadd.f32 %v2098_v51, %v2097_v47  ;;  %v2101_v20 = vsel %vm163_vm3, %v2100_v13, 0.0 }
 0x7dc   :  { %v2103_v6 = vrot.slane %v2099_v10, 7  ;;  %v2108_v14 = vmul.f32 1.5576016, %v2099_v10  ;;  %v2125_v55 = vmul.f32 0.60653067, %v2099_v10 }
 0x7de   :  { %v2105_v12 = vadd.f32 %v2103_v6, %v2997_v5  ;;  %v2110_v1 = vsub.f32 %v2108_v14, %v2109_v16 }
 0x7e0   :  { %vm2106_vm5 = vcmp.ge.f32.partialorder %v2105_v12, 2.0 }
 0x7e1   :  { %v2107_v15 = vsel %vm2106_vm5, 1.0, %v2249_v45 }
 0x7e2   :  { %v2111_v18 = vmul.f32 -2.117, %v2107_v15  ;;  %v2116_v19 = vperm.slane %v2107_v15, 1 }
 0x7e4   :  { %v2113_v0 = vrot.slane %v2111_v18, 1  ;;  %v2117_v22 = vsel %vm178_vm4, %v2116_v19, %v2101_v20 }
 0x7e6   :  { %v2115_v23 = vadd.f32 %v2113_v0, %v2110_v1 }
 0x7e8   :  { %v2119_v26 = vrot.slane %v2115_v23, 6  ;;  %v2124_v28 = vmul.f32 1.5576016, %v2115_v23  ;;  %v2141_v37 = vmul.f32 0.60653067, %v2115_v23 }
 0x7ea   :  { %v2121_v27 = vadd.f32 %v2119_v26, %v2997_v5  ;;  %v2126_v21 = vsub.f32 %v2124_v28, %v2125_v55 }
 0x7ec   :  { %vm2122_vm0 = vcmp.ge.f32.partialorder %v2121_v27, 2.0 }
 0x7ed   :  { %v2123_v24 = vsel %vm2122_vm0, 1.0, %v2249_v45 }
 0x7ee   :  { %v2127_v29 = vmul.f32 -2.117, %v2123_v24  ;;  %v2132_v47 = vperm.slane %v2123_v24, 2 }
 0x7f0   :  { %v2129_v31 = vrot.slane %v2127_v29, 2  ;;  %v2133_v14 = vsel %vm195_vm10, %v2132_v47, %v2117_v22 }
 0x7f2   :  { %v2131_v30 = vadd.f32 %v2129_v31, %v2126_v21 }
 0x7f4   :  { %v2135_v33 = vrot.slane %v2131_v30, 5  ;;  %v2140_v32 = vmul.f32 1.5576016, %v2131_v30  ;;  %v2157_v44 = vmul.f32 0.60653067, %v2131_v30 }
 0x7f6   :  { %v2137_v43 = vadd.f32 %v2135_v33, %v2997_v5  ;;  %v2142_v11 = vsub.f32 %v2140_v32, %v2141_v37 }
 0x7f8   :  { %vm2138_vm3 = vcmp.ge.f32.partialorder %v2137_v43, 2.0 }
 0x7f9   :  { %v2139_v34 = vsel %vm2138_vm3, 1.0, %v2249_v45 }
 0x7fa   :  { %v2143_v39 = vmul.f32 -2.117, %v2139_v34  ;;  %v2148_v51 = vperm.slane %v2139_v34, 3 }
 0x7fc   :  { %v2145_v35 = vrot.slane %v2143_v39, 3  ;;  %v2149_v16 = vsel %vm212_vm11, %v2148_v51, %v2133_v14 }
 0x7fe   :  { %v2147_v41 = vadd.f32 %v2145_v35, %v2142_v11 }
 0x800   :  { %v2151_v17 = vrot.slane %v2147_v41, 4  ;;  %v2156_v46 = vmul.f32 1.5576016, %v2147_v41  ;;  %v2173_v59 = vmul.f32 0.60653067, %v2147_v41 }
 0x802   :  { %v2153_v38 = vadd.f32 %v2151_v17, %v2997_v5  ;;  %v2158_v25 = vsub.f32 %v2156_v46, %v2157_v44 }
 0x804   :  { %vm2154_vm4 = vcmp.ge.f32.partialorder %v2153_v38, 2.0 }
 0x805   :  { %v2155_v61 = vsel %vm2154_vm4, 1.0, %v2249_v45 }
 0x806   :  { %v2159_v50 = vmul.f32 -2.117, %v2155_v61  ;;  %v2164_v6 = vperm.slane %v2155_v61, 4 }
 0x808   :  { %v2161_v48 = vrot.slane %v2159_v50, 4  ;;  %v2165_v18 = vsel %vm229_vm12, %v2164_v6, %v2149_v16 }
 0x80a   :  { %v2163_v52 = vadd.f32 %v2161_v48, %v2158_v25 }
 0x80c   :  { %v2167_v53 = vrot.slane %v2163_v52, 3  ;;  %v2172_v56 = vmul.f32 1.5576016, %v2163_v52  ;;  %v2189_v7 = vmul.f32 0.60653067, %v2163_v52 }
 0x80e   :  { %v2169_v54 = vadd.f32 %v2167_v53, %v2997_v5  ;;  %v2174_v58 = vsub.f32 %v2172_v56, %v2173_v59 }
 0x810   :  { %vm2170_vm6 = vcmp.ge.f32.partialorder %v2169_v54, 2.0 }
 0x811   :  { %v2171_v57 = vsel %vm2170_vm6, 1.0, %v2249_v45 }
 0x812   :  { %v2175_v36 = vmul.f32 -2.117, %v2171_v57  ;;  %v2180_v12 = vperm.slane %v2171_v57, 5 }
 0x814   :  { %v2177_v62 = vrot.slane %v2175_v36, 5  ;;  %v2181_v20 = vsel %vm246_vm13, %v2180_v12, %v2165_v18 }
 0x816   :  { %v2179_v40 = vadd.f32 %v2177_v62, %v2174_v58 }
 0x818   :  { %v2183_v60 = vrot.slane %v2179_v40, 2  ;;  %v2188_v2 = vmul.f32 1.5576016, %v2179_v40 }
 0x81a   :  { %v2185_v63 = vadd.f32 %v2183_v60, %v2997_v5  ;;  %v2190_v4 = vsub.f32 %v2188_v2, %v2189_v7 }
 0x81c   :  { %vm2186_vm7 = vcmp.ge.f32.partialorder %v2185_v63, 2.0 }
 0x81d   :  { %v2187_v3 = vsel %vm2186_vm7, 1.0, %v2249_v45 }
 0x81e   :  { %v2191_v42 = vmul.f32 -2.117, %v2187_v3  ;;  %v2196_v15 = vperm.slane %v2187_v3, 6 }
 0x820   :  { %v2193_v8 = vrot.slane %v2191_v42, 6 }
 0x822   :  { %v2195_v9 = vadd.f32 %v2193_v8, %v2190_v4 }
 0x824   :  { %v2199_v10 = vrot.slane %v2195_v9, 1 }
 0x826   :  { %v2201_v13 = vadd.f32 %v2199_v10, %v2997_v5  ;;  %v2197_v5 = vsel %vm263_vm14, %v2196_v15, %v2181_v20 }
 0x828   :  { %vm2202_vm8 = vcmp.ge.f32.partialorder %v2201_v13, 2.0 }
 0x829   :  { %v2203_v19 = vsel %vm2202_vm8, 1.0, %v2249_v45 }
 0x82a   :  { %v2204_v1 = vperm.slane %v2203_v19, 7 }
 0x82c   :  { %v2205_v0 = vsel %vm280_vm1, %v2204_v1, %v2197_v5 }
 0x82d   :  { %2214 = vst.msk [vmem:[%s3039_s4 + $0x38] sm:$0xff] %vm2206_vm2, %v2205_v0 }

</bundles_post_ra>
